<compile_context>
chip_gen: v7x
topology: tpu7x:2x2x1
jax: 0.10.0
libtpu: 0.0.40
codegen_flags: <defaults>
</compile_context>

<pallas_src>
import functools
import math

import jax
import jax.numpy as jnp
import numpy as np
from jax.experimental import pallas as pl
from jax.experimental.pallas import tpu as pltpu  # noqa: F401  (kept for parity / future emit_pipeline use)

# ---- small hyperparameters consistent with the module structure ----
VOCAB_SIZE = 100
MAX_QN_LEN = 16
NUM_QUERIES = 8
D_MODEL = 256          # multiple of 128 -> lane-aligned
NHEAD = 2              # head_dim = 128 -> per-head slices are lane-aligned
NUM_BLOCKS = 2
DIM_FF = 256
HEAD_DIM = D_MODEL // NHEAD
LN_EPS = 1e-5

# Packed (stacked-over-blocks) parameter ordering fed to the fused kernel.
PACKED_KEYS = [
    'ln_w', 'ln_b',
    's_qkv_w', 's_qkv_b', 's_wo', 's_bo',
    'c_q_w', 'c_q_b', 'c_kv_w', 'c_kv_b', 'c_wo', 'c_bo',
    'ff_w1', 'ff_b1', 'ff_w2', 'ff_b2',
]


# ------------------------------ fused kernel ---------------------------------
def _fused_qformer_kernel(x_ref, img_ref,
                          ln_w, ln_b,
                          s_qkv_w, s_qkv_b, s_wo, s_bo,
                          c_q_w, c_q_b, c_kv_w, c_kv_b, c_wo, c_bo,
                          ff_w1, ff_b1, ff_w2, ff_b2,
                          out_ref, *, B, T, I):
    scale = 1.0 / math.sqrt(HEAD_DIM)
    D = D_MODEL

    x = x_ref[...]        # [B*T, D] f32   (batch folded into M)
    img = img_ref[...]    # [B*I, D] f32

    def layer_norm(h, w, b):
        # f32 elementwise path (v5e VPU/EUP have no bf16).
        mu = jnp.mean(h, axis=-1, keepdims=True)
        var = jnp.mean(jnp.square(h - mu), axis=-1, keepdims=True)
        return (h - mu) * jax.lax.rsqrt(var + LN_EPS) * w + b

    def bdot(a, w):
        # bf16 operands on the MXU, f32 accumulation.
        return jnp.dot(a.astype(jnp.bfloat16), w,
                       preferred_element_type=jnp.float32)

    def attention(q, k, v, Tq, Tk):
        # q: [B*Tq, D], k/v: [B*Tk, D] f32; projections/biases already applied.
        per_batch = []
        for b in range(B):                              # static loop, B=2
            qb = q[b * Tq:(b + 1) * Tq]
            kb = k[b * Tk:(b + 1) * Tk]
            vb = v[b * Tk:(b + 1) * Tk]
            ctx_heads = []
            for h in range(NHEAD):                      # static per-head loop
                lo = h * HEAD_DIM
                qh = (qb[:, lo:lo + HEAD_DIM] * scale).astype(jnp.bfloat16)
                kh = kb[:, lo:lo + HEAD_DIM].astype(jnp.bfloat16)
                vh = vb[:, lo:lo + HEAD_DIM].astype(jnp.bfloat16)
                s = jax.lax.dot_general(qh, kh, (((1,), (1,)), ((), ())),
                                        preferred_element_type=jnp.float32)
                s = s - jnp.max(s, axis=-1, keepdims=True)
                e = jnp.exp(s)                          # f32 EUP
                inv = pl.reciprocal(jnp.sum(e, axis=-1, keepdims=True),
                                    approx=True)        # EUP slot, ~free
                p = (e * inv).astype(jnp.bfloat16)
                ctx_heads.append(jnp.dot(p, vh,
                                         preferred_element_type=jnp.float32))
            per_batch.append(jnp.concatenate(ctx_heads, axis=-1))  # [Tq, D]
        return jnp.concatenate(per_batch, axis=0)       # [B*Tq, D]

    # Static loop over transformer blocks; x never leaves VMEM in between.
    for blk in range(NUM_BLOCKS):
        lw = ln_w[blk]   # [3, D]
        lb = ln_b[blk]   # [3, D]

        # ---- self attention (fused QKV projection, batch folded into M) ----
        h1 = layer_norm(x, lw[0:1], lb[0:1])
        qkv = bdot(h1, s_qkv_w[blk]) + s_qkv_b[blk]
        ctx = attention(qkv[:, :D], qkv[:, D:2 * D], qkv[:, 2 * D:], T, T)
        x = x + bdot(ctx, s_wo[blk]) + s_bo[blk]

        # ---- cross attention with image embeddings (fused K|V projection) ----
        h2 = layer_norm(x, lw[1:2], lb[1:2])
        q = bdot(h2, c_q_w[blk]) + c_q_b[blk]
        kv = bdot(img, c_kv_w[blk]) + c_kv_b[blk]
        ctx = attention(q, kv[:, :D], kv[:, D:], T, I)
        x = x + bdot(ctx, c_wo[blk]) + c_bo[blk]

        # ---- feed-forward ----
        h3 = layer_norm(x, lw[2:3], lb[2:3])
        ff = jnp.maximum(bdot(h3, ff_w1[blk]) + ff_b1[blk], 0.0)
        x = x + bdot(ff, ff_w2[blk]) + ff_b2[blk]

    # Write only the query rows -> [B, NUM_QUERIES, D] (halves HBM writeback).
    for b in range(B):
        out_ref[b] = x[b * T:b * T + NUM_QUERIES]


def qformer_blocks_pallas(x, image_embeds, packed):
    """Runs ALL QFormer blocks in ONE single-step pallas_call.

    x: [B, T, D] f32, image_embeds: [B, I, D] f32, packed: bf16/f32 weight dict.
    Returns [B, NUM_QUERIES, D] f32 (only the query rows).
    """
    B, T, D = x.shape
    I = image_embeds.shape[1]
    # Fold batch into the matmul M dimension host-side (free reshape).
    x2d = x.reshape(B * T, D)
    img2d = image_embeds.reshape(B * I, D)
    weights = [packed[k] for k in PACKED_KEYS]

    kernel = functools.partial(_fused_qformer_kernel, B=B, T=T, I=I)

    # No grid: single invocation, every operand resident whole in VMEM
    # (single-buffered -- no double-buffer duplication of the weight set,
    # no per-step pipeline overhead, no per-TensorCore weight re-DMA).
    return pl.pallas_call(
        kernel,
        out_shape=jax.ShapeDtypeStruct((B, NUM_QUERIES, D), jnp.float32),
    )(x2d, img2d, *weights)


# ------------------------- parameter initialization -------------------------
def init_params(key):
    keys = jax.random.split(key, 3 + NUM_BLOCKS)
    params = {
        'learned_queries': jax.random.normal(keys[0], (NUM_QUERIES, D_MODEL), jnp.float32),
        'text_emb': jax.random.normal(keys[1], (VOCAB_SIZE, D_MODEL), jnp.float32) * 0.02,
        'pos_emb': jax.random.normal(keys[2], (MAX_QN_LEN, D_MODEL), jnp.float32) * 0.02,
        'blocks': [],
    }
    for i in range(NUM_BLOCKS):
        bk = jax.random.split(keys[3 + i], 20)
        s = 0.05

        def W(k, shp):
            return jax.random.normal(k, shp, jnp.float32) * s

        bp = {
            'ln1_w': jnp.ones((1, D_MODEL), jnp.float32),
            'ln1_b': jnp.zeros((1, D_MODEL), jnp.float32),
            's_wq': W(bk[0], (D_MODEL, D_MODEL)),
            's_wk': W(bk[1], (D_MODEL, D_MODEL)),
            's_wv': W(bk[2], (D_MODEL, D_MODEL)),
            's_bq': W(bk[3], (1, D_MODEL)),
            's_bk': W(bk[4], (1, D_MODEL)),
            's_bv': W(bk[5], (1, D_MODEL)),
            's_wo': W(bk[6], (D_MODEL, D_MODEL)),
            's_bo': W(bk[7], (1, D_MODEL)),
            'ln2_w': jnp.ones((1, D_MODEL), jnp.float32),
            'ln2_b': jnp.zeros((1, D_MODEL), jnp.float32),
            'c_wq': W(bk[8], (D_MODEL, D_MODEL)),
            'c_wk': W(bk[9], (D_MODEL, D_MODEL)),
            'c_wv': W(bk[10], (D_MODEL, D_MODEL)),
            'c_bq': W(bk[11], (1, D_MODEL)),
            'c_bk': W(bk[16], (1, D_MODEL)),
            'c_bv': W(bk[17], (1, D_MODEL)),
            'c_wo': W(bk[12], (D_MODEL, D_MODEL)),
            'c_bo': W(bk[18], (1, D_MODEL)),
            'ln3_w': jnp.ones((1, D_MODEL), jnp.float32),
            'ln3_b': jnp.zeros((1, D_MODEL), jnp.float32),
            'ff_w1': W(bk[13], (D_MODEL, DIM_FF)),
            'ff_b1': W(bk[14], (1, DIM_FF)),
            'ff_w2': W(bk[15], (DIM_FF, D_MODEL)),
            'ff_b2': W(bk[19], (1, D_MODEL)),
        }
        params['blocks'].append(bp)
    return params


def pack_params(params):
    """One-time host-side packing (call at parameter-load time, NOT per forward).

    Fuses QKV / K|V projection weights, stacks across blocks, and stores every
    2-D matmul operand in bf16 (halves the dominant HBM weight DMA).  Biases and
    LayerNorm params stay f32 (they feed the VPU elementwise path).
    """
    blocks = params['blocks']
    BF16 = jnp.bfloat16

    def stack(fn, dtype=jnp.float32):
        return jnp.stack([fn(bp) for bp in blocks], axis=0).astype(dtype)

    return {
        'ln_w': stack(lambda bp: jnp.concatenate(
            [bp['ln1_w'], bp['ln2_w'], bp['ln3_w']], axis=0)),            # [NB,3,D]
        'ln_b': stack(lambda bp: jnp.concatenate(
            [bp['ln1_b'], bp['ln2_b'], bp['ln3_b']], axis=0)),
        's_qkv_w': stack(lambda bp: jnp.concatenate(
            [bp['s_wq'], bp['s_wk'], bp['s_wv']], axis=1), BF16),         # [NB,D,3D]
        's_qkv_b': stack(lambda bp: jnp.concatenate(
            [bp['s_bq'], bp['s_bk'], bp['s_bv']], axis=1)),               # [NB,1,3D]
        's_wo': stack(lambda bp: bp['s_wo'], BF16),
        's_bo': stack(lambda bp: bp['s_bo']),
        'c_q_w': stack(lambda bp: bp['c_wq'], BF16),
        'c_q_b': stack(lambda bp: bp['c_bq']),
        'c_kv_w': stack(lambda bp: jnp.concatenate(
            [bp['c_wk'], bp['c_wv']], axis=1), BF16),                     # [NB,D,2D]
        'c_kv_b': stack(lambda bp: jnp.concatenate(
            [bp['c_bk'], bp['c_bv']], axis=1)),                           # [NB,1,2D]
        'c_wo': stack(lambda bp: bp['c_wo'], BF16),
        'c_bo': stack(lambda bp: bp['c_bo']),
        'ff_w1': stack(lambda bp: bp['ff_w1'], BF16),
        'ff_b1': stack(lambda bp: bp['ff_b1']),
        'ff_w2': stack(lambda bp: bp['ff_w2'], BF16),
        'ff_b2': stack(lambda bp: bp['ff_b2']),
    }


# ------------------------------- forward glue -------------------------------
def qformer_forward(question_ids, image_embeds, params, packed):
    """packed = pack_params(params), computed ONCE at load time (hot path only
    does embedding lookups + one pallas_call)."""
    B, Q = question_ids.shape
    question_embs = params['text_emb'][question_ids] + params['pos_emb'][:Q][None, :, :]
    query_embs = jnp.broadcast_to(params['learned_queries'][None],
                                  (B,) + params['learned_queries'].shape)
    x = jnp.concatenate([query_embs, question_embs], axis=1)   # [B, N+Q, D]
    return qformer_blocks_pallas(x, image_embeds, packed)      # [B, N, D]


# --------------------------- pure-JAX reference ------------------------------
def _block_ref(x, img, bp):
    def ln(h, w, b):
        mu = h.mean(-1, keepdims=True)
        var = ((h - mu) ** 2).mean(-1, keepdims=True)
        return (h - mu) / jnp.sqrt(var + LN_EPS) * w + b

    def mha(q_in, kv_in, wq, wk, wv, bq, bk, bv, wo, bo):
        q = q_in @ wq + bq
        k = kv_in @ wk + bk
        v = kv_in @ wv + bv
        B_, Tq, D = q.shape
        Tk = k.shape[1]
        qh = q.reshape(B_, Tq, NHEAD, HEAD_DIM).transpose(0, 2, 1, 3)
        kh = k.reshape(B_, Tk, NHEAD, HEAD_DIM).transpose(0, 2, 1, 3)
        vh = v.reshape(B_, Tk, NHEAD, HEAD_DIM).transpose(0, 2, 1, 3)
        s = jnp.einsum('bhqd,bhkd->bhqk', qh, kh) / math.sqrt(HEAD_DIM)
        a = jax.nn.softmax(s, axis=-1)
        ctx = jnp.einsum('bhqk,bhkd->bhqd', a, vh).transpose(0, 2, 1, 3).reshape(B_, Tq, D)
        return ctx @ wo + bo

    h1 = ln(x, bp['ln1_w'], bp['ln1_b'])
    x = x + mha(h1, h1, bp['s_wq'], bp['s_wk'], bp['s_wv'],
                bp['s_bq'], bp['s_bk'], bp['s_bv'], bp['s_wo'], bp['s_bo'])
    h2 = ln(x, bp['ln2_w'], bp['ln2_b'])
    x = x + mha(h2, img, bp['c_wq'], bp['c_wk'], bp['c_wv'],
                bp['c_bq'], bp['c_bk'], bp['c_bv'], bp['c_wo'], bp['c_bo'])
    h3 = ln(x, bp['ln3_w'], bp['ln3_b'])
    ff = jax.nn.relu(h3 @ bp['ff_w1'] + bp['ff_b1'])
    x = x + ff @ bp['ff_w2'] + bp['ff_b2']
    return x


def qformer_ref(question_ids, image_embeds, params):
    B, Q = question_ids.shape
    question_embs = params['text_emb'][question_ids] + params['pos_emb'][:Q][None, :, :]
    query_embs = jnp.broadcast_to(params['learned_queries'][None],
                                  (B,) + params['learned_queries'].shape)
    x = jnp.concatenate([query_embs, question_embs], axis=1)
    for bp in params['blocks']:
        x = _block_ref(x, image_embeds, bp)
    return x[:, :NUM_QUERIES, :]


if __name__ == "__main__":
    key = jax.random.PRNGKey(0)
    kp, kq, ki = jax.random.split(key, 3)
    params = init_params(kp)
    packed = pack_params(params)   # one-time packing, hoisted off the hot path

    B, Q, I = 2, 8, 16
    question_ids = jax.random.randint(kq, (B, Q), 0, VOCAB_SIZE, dtype=jnp.int32)
    image_embeds = jax.random.normal(ki, (B, I, D_MODEL), jnp.float32)

    out = qformer_forward(question_ids, image_embeds, params, packed)
    out = jax.block_until_ready(out)
    assert out.shape == (B, NUM_QUERIES, D_MODEL)

    ref = jax.block_until_ready(qformer_ref(question_ids, image_embeds, params))
    # bf16 weights/activations on the MXU (f32 accumulation) + approx reciprocal
    # give O(1e-2) relative drift vs the f32 reference; 4e-2 covers that while
    # still catching any structural/weight-wiring bug (which would be O(0.1-1)).
    np.testing.assert_allclose(np.asarray(out), np.asarray(ref), rtol=4e-2, atol=4e-2)

    print("KERNEL_OK")
</pallas_src>

<mosaic_0001>
module attributes {stable_mosaic.version = 11 : i64} {
  func.func @_fused_qformer_kernel(%arg0: memref<32x256xf32, #tpu.memory_space<vmem>>, %arg1: memref<32x256xf32, #tpu.memory_space<vmem>>, %arg2: memref<2x3x256xf32, #tpu.memory_space<vmem>>, %arg3: memref<2x3x256xf32, #tpu.memory_space<vmem>>, %arg4: memref<2x256x768xbf16, #tpu.memory_space<vmem>>, %arg5: memref<2x1x768xf32, #tpu.memory_space<vmem>>, %arg6: memref<2x256x256xbf16, #tpu.memory_space<vmem>>, %arg7: memref<2x1x256xf32, #tpu.memory_space<vmem>>, %arg8: memref<2x256x256xbf16, #tpu.memory_space<vmem>>, %arg9: memref<2x1x256xf32, #tpu.memory_space<vmem>>, %arg10: memref<2x256x512xbf16, #tpu.memory_space<vmem>>, %arg11: memref<2x1x512xf32, #tpu.memory_space<vmem>>, %arg12: memref<2x256x256xbf16, #tpu.memory_space<vmem>>, %arg13: memref<2x1x256xf32, #tpu.memory_space<vmem>>, %arg14: memref<2x256x256xbf16, #tpu.memory_space<vmem>>, %arg15: memref<2x1x256xf32, #tpu.memory_space<vmem>>, %arg16: memref<2x256x256xbf16, #tpu.memory_space<vmem>>, %arg17: memref<2x1x256xf32, #tpu.memory_space<vmem>>, %arg18: memref<2x8x256xf32, #tpu.memory_space<vmem>>) attributes {dimension_semantics = [], scalar_prefetch = 0 : i64, scratch_operands = 0 : i64, tpu.core_type = #tpu.core_type<tc>} {
    %c0 = arith.constant 0 : index
    %c0_0 = arith.constant 0 : index
    %0 = vector.load %arg0[%c0, %c0_0] : memref<32x256xf32, #tpu.memory_space<vmem>>, vector<32x256xf32>
    %c0_1 = arith.constant 0 : index
    %c0_2 = arith.constant 0 : index
    %1 = vector.load %arg1[%c0_1, %c0_2] : memref<32x256xf32, #tpu.memory_space<vmem>>, vector<32x256xf32>
    %c0_3 = arith.constant 0 : index
    %c0_4 = arith.constant 0 : index
    %c0_5 = arith.constant 0 : index
    %2 = vector.load %arg2[%c0_3, %c0_4, %c0_5] : memref<2x3x256xf32, #tpu.memory_space<vmem>>, vector<1x3x256xf32>
    %3 = vector.shape_cast %2 : vector<1x3x256xf32> to vector<3x256xf32>
    %c0_6 = arith.constant 0 : index
    %c0_7 = arith.constant 0 : index
    %c0_8 = arith.constant 0 : index
    %4 = vector.load %arg3[%c0_6, %c0_7, %c0_8] : memref<2x3x256xf32, #tpu.memory_space<vmem>>, vector<1x3x256xf32>
    %5 = vector.shape_cast %4 : vector<1x3x256xf32> to vector<3x256xf32>
    %6 = vector.extract_strided_slice %3 {offsets = [0, 0], sizes = [1, 256], strides = [1, 1]} : vector<3x256xf32> to vector<1x256xf32>
    %7 = vector.extract_strided_slice %5 {offsets = [0, 0], sizes = [1, 256], strides = [1, 1]} : vector<3x256xf32> to vector<1x256xf32>
    %cst = arith.constant dense<0.000000e+00> : vector<32xf32>
    %8 = vector.multi_reduction <add>, %0, %cst [1] : vector<32x256xf32> to vector<32xf32>
    %9 = vector.shape_cast %8 : vector<32xf32> to vector<32x1xf32>
    %cst_9 = arith.constant 2.560000e+02 : f32
    %10 = vector.broadcast %cst_9 : f32 to vector<32x1xf32>
    %11 = arith.divf %9, %10 : vector<32x1xf32>
    %12 = vector.broadcast %11 : vector<32x1xf32> to vector<32x256xf32>
    %13 = arith.subf %0, %12 : vector<32x256xf32>
    %14 = arith.mulf %13, %13 : vector<32x256xf32>
    %cst_10 = arith.constant dense<0.000000e+00> : vector<32xf32>
    %15 = vector.multi_reduction <add>, %14, %cst_10 [1] : vector<32x256xf32> to vector<32xf32>
    %16 = vector.shape_cast %15 : vector<32xf32> to vector<32x1xf32>
    %cst_11 = arith.constant 2.560000e+02 : f32
    %17 = vector.broadcast %cst_11 : f32 to vector<32x1xf32>
    %18 = arith.divf %16, %17 : vector<32x1xf32>
    %19 = vector.broadcast %11 : vector<32x1xf32> to vector<32x256xf32>
    %20 = arith.subf %0, %19 : vector<32x256xf32>
    %cst_12 = arith.constant 9.99999974E-6 : f32
    %21 = vector.broadcast %cst_12 : f32 to vector<32x1xf32>
    %22 = arith.addf %18, %21 : vector<32x1xf32>
    %23 = math.rsqrt %22 : vector<32x1xf32>
    %24 = vector.broadcast %23 : vector<32x1xf32> to vector<32x256xf32>
    %25 = arith.mulf %20, %24 : vector<32x256xf32>
    %26 = vector.broadcast %6 : vector<1x256xf32> to vector<32x256xf32>
    %27 = arith.mulf %25, %26 : vector<32x256xf32>
    %28 = vector.broadcast %7 : vector<1x256xf32> to vector<32x256xf32>
    %29 = arith.addf %27, %28 : vector<32x256xf32>
    %c0_13 = arith.constant 0 : index
    %c0_14 = arith.constant 0 : index
    %c0_15 = arith.constant 0 : index
    %30 = vector.load %arg4[%c0_13, %c0_14, %c0_15] : memref<2x256x768xbf16, #tpu.memory_space<vmem>>, vector<1x256x768xbf16>
    %31 = vector.shape_cast %30 : vector<1x256x768xbf16> to vector<256x768xbf16>
    %32 = arith.truncf %29 : vector<32x256xf32> to vector<32x256xbf16>
    %cst_16 = arith.constant dense<0.000000e+00> : vector<32x768xf32>
    %33 = tpu.matmul %32, %31, %cst_16 {dimension_numbers = #tpu.dot_dimension_numbers<[1], [0], [0], [1], [0, 0, 1, 1], [], []>} : vector<32x256xbf16>, vector<256x768xbf16>, vector<32x768xf32> -> vector<32x768xf32>
    %c0_17 = arith.constant 0 : index
    %c0_18 = arith.constant 0 : index
    %c0_19 = arith.constant 0 : index
    %34 = vector.load %arg5[%c0_17, %c0_18, %c0_19] : memref<2x1x768xf32, #tpu.memory_space<vmem>>, vector<1x1x768xf32>
    %35 = vector.shape_cast %34 : vector<1x1x768xf32> to vector<1x768xf32>
    %36 = vector.broadcast %35 : vector<1x768xf32> to vector<32x768xf32>
    %37 = arith.addf %33, %36 : vector<32x768xf32>
    %38 = vector.extract_strided_slice %37 {offsets = [0, 0], sizes = [32, 256], strides = [1, 1]} : vector<32x768xf32> to vector<32x256xf32>
    %39 = vector.extract_strided_slice %37 {offsets = [0, 256], sizes = [32, 256], strides = [1, 1]} : vector<32x768xf32> to vector<32x256xf32>
    %40 = vector.extract_strided_slice %37 {offsets = [0, 512], sizes = [32, 256], strides = [1, 1]} : vector<32x768xf32> to vector<32x256xf32>
    %41 = vector.extract_strided_slice %38 {offsets = [0, 0], sizes = [16, 256], strides = [1, 1]} : vector<32x256xf32> to vector<16x256xf32>
    %42 = vector.extract_strided_slice %39 {offsets = [0, 0], sizes = [16, 256], strides = [1, 1]} : vector<32x256xf32> to vector<16x256xf32>
    %43 = vector.extract_strided_slice %40 {offsets = [0, 0], sizes = [16, 256], strides = [1, 1]} : vector<32x256xf32> to vector<16x256xf32>
    %44 = vector.extract_strided_slice %41 {offsets = [0, 0], sizes = [16, 128], strides = [1, 1]} : vector<16x256xf32> to vector<16x128xf32>
    %cst_20 = arith.constant 0.0883883461 : f32
    %45 = vector.broadcast %cst_20 : f32 to vector<16x128xf32>
    %46 = arith.mulf %44, %45 : vector<16x128xf32>
    %47 = arith.truncf %46 : vector<16x128xf32> to vector<16x128xbf16>
    %48 = vector.extract_strided_slice %42 {offsets = [0, 0], sizes = [16, 128], strides = [1, 1]} : vector<16x256xf32> to vector<16x128xf32>
    %49 = arith.truncf %48 : vector<16x128xf32> to vector<16x128xbf16>
    %50 = vector.extract_strided_slice %43 {offsets = [0, 0], sizes = [16, 128], strides = [1, 1]} : vector<16x256xf32> to vector<16x128xf32>
    %51 = arith.truncf %50 : vector<16x128xf32> to vector<16x128xbf16>
    %cst_21 = arith.constant dense<0.000000e+00> : vector<16x16xf32>
    %52 = tpu.matmul %47, %49, %cst_21 {dimension_numbers = #tpu.dot_dimension_numbers<[1], [1], [0], [0], [0, 0, 1, 0], [], []>} : vector<16x128xbf16>, vector<16x128xbf16>, vector<16x16xf32> -> vector<16x16xf32>
    %cst_22 = arith.constant dense<0xFF800000> : vector<16xf32>
    %53 = vector.multi_reduction <maximumf>, %52, %cst_22 [1] : vector<16x16xf32> to vector<16xf32>
    %54 = vector.shape_cast %53 : vector<16xf32> to vector<16x1xf32>
    %55 = vector.broadcast %54 : vector<16x1xf32> to vector<16x16xf32>
    %56 = arith.subf %52, %55 : vector<16x16xf32>
    %57 = math.exp %56 : vector<16x16xf32>
    %cst_23 = arith.constant dense<0.000000e+00> : vector<16xf32>
    %58 = vector.multi_reduction <add>, %57, %cst_23 [1] : vector<16x16xf32> to vector<16xf32>
    %59 = vector.shape_cast %58 : vector<16xf32> to vector<16x1xf32>
    %60 = tpu.reciprocal %59 {approx = true} : vector<16x1xf32> -> vector<16x1xf32>
    %61 = vector.broadcast %60 : vector<16x1xf32> to vector<16x16xf32>
    %62 = arith.mulf %57, %61 : vector<16x16xf32>
    %63 = arith.truncf %62 : vector<16x16xf32> to vector<16x16xbf16>
    %cst_24 = arith.constant dense<0.000000e+00> : vector<16x128xf32>
    %64 = tpu.matmul %63, %51, %cst_24 {dimension_numbers = #tpu.dot_dimension_numbers<[1], [0], [0], [1], [0, 0, 1, 1], [], []>} : vector<16x16xbf16>, vector<16x128xbf16>, vector<16x128xf32> -> vector<16x128xf32>
    %65 = vector.extract_strided_slice %41 {offsets = [0, 128], sizes = [16, 128], strides = [1, 1]} : vector<16x256xf32> to vector<16x128xf32>
    %cst_25 = arith.constant 0.0883883461 : f32
    %66 = vector.broadcast %cst_25 : f32 to vector<16x128xf32>
    %67 = arith.mulf %65, %66 : vector<16x128xf32>
    %68 = arith.truncf %67 : vector<16x128xf32> to vector<16x128xbf16>
    %69 = vector.extract_strided_slice %42 {offsets = [0, 128], sizes = [16, 128], strides = [1, 1]} : vector<16x256xf32> to vector<16x128xf32>
    %70 = arith.truncf %69 : vector<16x128xf32> to vector<16x128xbf16>
    %71 = vector.extract_strided_slice %43 {offsets = [0, 128], sizes = [16, 128], strides = [1, 1]} : vector<16x256xf32> to vector<16x128xf32>
    %72 = arith.truncf %71 : vector<16x128xf32> to vector<16x128xbf16>
    %cst_26 = arith.constant dense<0.000000e+00> : vector<16x16xf32>
    %73 = tpu.matmul %68, %70, %cst_26 {dimension_numbers = #tpu.dot_dimension_numbers<[1], [1], [0], [0], [0, 0, 1, 0], [], []>} : vector<16x128xbf16>, vector<16x128xbf16>, vector<16x16xf32> -> vector<16x16xf32>
    %cst_27 = arith.constant dense<0xFF800000> : vector<16xf32>
    %74 = vector.multi_reduction <maximumf>, %73, %cst_27 [1] : vector<16x16xf32> to vector<16xf32>
    %75 = vector.shape_cast %74 : vector<16xf32> to vector<16x1xf32>
    %76 = vector.broadcast %75 : vector<16x1xf32> to vector<16x16xf32>
    %77 = arith.subf %73, %76 : vector<16x16xf32>
    %78 = math.exp %77 : vector<16x16xf32>
    %cst_28 = arith.constant dense<0.000000e+00> : vector<16xf32>
    %79 = vector.multi_reduction <add>, %78, %cst_28 [1] : vector<16x16xf32> to vector<16xf32>
    %80 = vector.shape_cast %79 : vector<16xf32> to vector<16x1xf32>
    %81 = tpu.reciprocal %80 {approx = true} : vector<16x1xf32> -> vector<16x1xf32>
    %82 = vector.broadcast %81 : vector<16x1xf32> to vector<16x16xf32>
    %83 = arith.mulf %78, %82 : vector<16x16xf32>
    %84 = arith.truncf %83 : vector<16x16xf32> to vector<16x16xbf16>
    %cst_29 = arith.constant dense<0.000000e+00> : vector<16x128xf32>
    %85 = tpu.matmul %84, %72, %cst_29 {dimension_numbers = #tpu.dot_dimension_numbers<[1], [0], [0], [1], [0, 0, 1, 1], [], []>} : vector<16x16xbf16>, vector<16x128xbf16>, vector<16x128xf32> -> vector<16x128xf32>
    %86 = tpu.concatenate %64, %85 in 1 : vector<16x128xf32>, vector<16x128xf32> -> vector<16x256xf32>
    %87 = vector.extract_strided_slice %38 {offsets = [16, 0], sizes = [16, 256], strides = [1, 1]} : vector<32x256xf32> to vector<16x256xf32>
    %88 = vector.extract_strided_slice %39 {offsets = [16, 0], sizes = [16, 256], strides = [1, 1]} : vector<32x256xf32> to vector<16x256xf32>
    %89 = vector.extract_strided_slice %40 {offsets = [16, 0], sizes = [16, 256], strides = [1, 1]} : vector<32x256xf32> to vector<16x256xf32>
    %90 = vector.extract_strided_slice %87 {offsets = [0, 0], sizes = [16, 128], strides = [1, 1]} : vector<16x256xf32> to vector<16x128xf32>
    %cst_30 = arith.constant 0.0883883461 : f32
    %91 = vector.broadcast %cst_30 : f32 to vector<16x128xf32>
    %92 = arith.mulf %90, %91 : vector<16x128xf32>
    %93 = arith.truncf %92 : vector<16x128xf32> to vector<16x128xbf16>
    %94 = vector.extract_strided_slice %88 {offsets = [0, 0], sizes = [16, 128], strides = [1, 1]} : vector<16x256xf32> to vector<16x128xf32>
    %95 = arith.truncf %94 : vector<16x128xf32> to vector<16x128xbf16>
    %96 = vector.extract_strided_slice %89 {offsets = [0, 0], sizes = [16, 128], strides = [1, 1]} : vector<16x256xf32> to vector<16x128xf32>
    %97 = arith.truncf %96 : vector<16x128xf32> to vector<16x128xbf16>
    %cst_31 = arith.constant dense<0.000000e+00> : vector<16x16xf32>
    %98 = tpu.matmul %93, %95, %cst_31 {dimension_numbers = #tpu.dot_dimension_numbers<[1], [1], [0], [0], [0, 0, 1, 0], [], []>} : vector<16x128xbf16>, vector<16x128xbf16>, vector<16x16xf32> -> vector<16x16xf32>
    %cst_32 = arith.constant dense<0xFF800000> : vector<16xf32>
    %99 = vector.multi_reduction <maximumf>, %98, %cst_32 [1] : vector<16x16xf32> to vector<16xf32>
    %100 = vector.shape_cast %99 : vector<16xf32> to vector<16x1xf32>
    %101 = vector.broadcast %100 : vector<16x1xf32> to vector<16x16xf32>
    %102 = arith.subf %98, %101 : vector<16x16xf32>
    %103 = math.exp %102 : vector<16x16xf32>
    %cst_33 = arith.constant dense<0.000000e+00> : vector<16xf32>
    %104 = vector.multi_reduction <add>, %103, %cst_33 [1] : vector<16x16xf32> to vector<16xf32>
    %105 = vector.shape_cast %104 : vector<16xf32> to vector<16x1xf32>
    %106 = tpu.reciprocal %105 {approx = true} : vector<16x1xf32> -> vector<16x1xf32>
    %107 = vector.broadcast %106 : vector<16x1xf32> to vector<16x16xf32>
    %108 = arith.mulf %103, %107 : vector<16x16xf32>
    %109 = arith.truncf %108 : vector<16x16xf32> to vector<16x16xbf16>
    %cst_34 = arith.constant dense<0.000000e+00> : vector<16x128xf32>
    %110 = tpu.matmul %109, %97, %cst_34 {dimension_numbers = #tpu.dot_dimension_numbers<[1], [0], [0], [1], [0, 0, 1, 1], [], []>} : vector<16x16xbf16>, vector<16x128xbf16>, vector<16x128xf32> -> vector<16x128xf32>
    %111 = vector.extract_strided_slice %87 {offsets = [0, 128], sizes = [16, 128], strides = [1, 1]} : vector<16x256xf32> to vector<16x128xf32>
    %cst_35 = arith.constant 0.0883883461 : f32
    %112 = vector.broadcast %cst_35 : f32 to vector<16x128xf32>
    %113 = arith.mulf %111, %112 : vector<16x128xf32>
    %114 = arith.truncf %113 : vector<16x128xf32> to vector<16x128xbf16>
    %115 = vector.extract_strided_slice %88 {offsets = [0, 128], sizes = [16, 128], strides = [1, 1]} : vector<16x256xf32> to vector<16x128xf32>
    %116 = arith.truncf %115 : vector<16x128xf32> to vector<16x128xbf16>
    %117 = vector.extract_strided_slice %89 {offsets = [0, 128], sizes = [16, 128], strides = [1, 1]} : vector<16x256xf32> to vector<16x128xf32>
    %118 = arith.truncf %117 : vector<16x128xf32> to vector<16x128xbf16>
    %cst_36 = arith.constant dense<0.000000e+00> : vector<16x16xf32>
    %119 = tpu.matmul %114, %116, %cst_36 {dimension_numbers = #tpu.dot_dimension_numbers<[1], [1], [0], [0], [0, 0, 1, 0], [], []>} : vector<16x128xbf16>, vector<16x128xbf16>, vector<16x16xf32> -> vector<16x16xf32>
    %cst_37 = arith.constant dense<0xFF800000> : vector<16xf32>
    %120 = vector.multi_reduction <maximumf>, %119, %cst_37 [1] : vector<16x16xf32> to vector<16xf32>
    %121 = vector.shape_cast %120 : vector<16xf32> to vector<16x1xf32>
    %122 = vector.broadcast %121 : vector<16x1xf32> to vector<16x16xf32>
    %123 = arith.subf %119, %122 : vector<16x16xf32>
    %124 = math.exp %123 : vector<16x16xf32>
    %cst_38 = arith.constant dense<0.000000e+00> : vector<16xf32>
    %125 = vector.multi_reduction <add>, %124, %cst_38 [1] : vector<16x16xf32> to vector<16xf32>
    %126 = vector.shape_cast %125 : vector<16xf32> to vector<16x1xf32>
    %127 = tpu.reciprocal %126 {approx = true} : vector<16x1xf32> -> vector<16x1xf32>
    %128 = vector.broadcast %127 : vector<16x1xf32> to vector<16x16xf32>
    %129 = arith.mulf %124, %128 : vector<16x16xf32>
    %130 = arith.truncf %129 : vector<16x16xf32> to vector<16x16xbf16>
    %cst_39 = arith.constant dense<0.000000e+00> : vector<16x128xf32>
    %131 = tpu.matmul %130, %118, %cst_39 {dimension_numbers = #tpu.dot_dimension_numbers<[1], [0], [0], [1], [0, 0, 1, 1], [], []>} : vector<16x16xbf16>, vector<16x128xbf16>, vector<16x128xf32> -> vector<16x128xf32>
    %132 = tpu.concatenate %110, %131 in 1 : vector<16x128xf32>, vector<16x128xf32> -> vector<16x256xf32>
    %133 = tpu.concatenate %86, %132 in 0 : vector<16x256xf32>, vector<16x256xf32> -> vector<32x256xf32>
    %c0_40 = arith.constant 0 : index
    %c0_41 = arith.constant 0 : index
    %c0_42 = arith.constant 0 : index
    %134 = vector.load %arg6[%c0_40, %c0_41, %c0_42] : memref<2x256x256xbf16, #tpu.memory_space<vmem>>, vector<1x256x256xbf16>
    %135 = vector.shape_cast %134 : vector<1x256x256xbf16> to vector<256x256xbf16>
    %136 = arith.truncf %133 : vector<32x256xf32> to vector<32x256xbf16>
    %cst_43 = arith.constant dense<0.000000e+00> : vector<32x256xf32>
    %137 = tpu.matmul %136, %135, %cst_43 {dimension_numbers = #tpu.dot_dimension_numbers<[1], [0], [0], [1], [0, 0, 1, 1], [], []>} : vector<32x256xbf16>, vector<256x256xbf16>, vector<32x256xf32> -> vector<32x256xf32>
    %138 = arith.addf %0, %137 : vector<32x256xf32>
    %c0_44 = arith.constant 0 : index
    %c0_45 = arith.constant 0 : index
    %c0_46 = arith.constant 0 : index
    %139 = vector.load %arg7[%c0_44, %c0_45, %c0_46] : memref<2x1x256xf32, #tpu.memory_space<vmem>>, vector<1x1x256xf32>
    %140 = vector.shape_cast %139 : vector<1x1x256xf32> to vector<1x256xf32>
    %141 = vector.broadcast %140 : vector<1x256xf32> to vector<32x256xf32>
    %142 = arith.addf %138, %141 : vector<32x256xf32>
    %143 = vector.extract_strided_slice %3 {offsets = [1, 0], sizes = [1, 256], strides = [1, 1]} : vector<3x256xf32> to vector<1x256xf32>
    %144 = vector.extract_strided_slice %5 {offsets = [1, 0], sizes = [1, 256], strides = [1, 1]} : vector<3x256xf32> to vector<1x256xf32>
    %cst_47 = arith.constant dense<0.000000e+00> : vector<32xf32>
    %145 = vector.multi_reduction <add>, %142, %cst_47 [1] : vector<32x256xf32> to vector<32xf32>
    %146 = vector.shape_cast %145 : vector<32xf32> to vector<32x1xf32>
    %cst_48 = arith.constant 2.560000e+02 : f32
    %147 = vector.broadcast %cst_48 : f32 to vector<32x1xf32>
    %148 = arith.divf %146, %147 : vector<32x1xf32>
    %149 = vector.broadcast %148 : vector<32x1xf32> to vector<32x256xf32>
    %150 = arith.subf %142, %149 : vector<32x256xf32>
    %151 = arith.mulf %150, %150 : vector<32x256xf32>
    %cst_49 = arith.constant dense<0.000000e+00> : vector<32xf32>
    %152 = vector.multi_reduction <add>, %151, %cst_49 [1] : vector<32x256xf32> to vector<32xf32>
    %153 = vector.shape_cast %152 : vector<32xf32> to vector<32x1xf32>
    %cst_50 = arith.constant 2.560000e+02 : f32
    %154 = vector.broadcast %cst_50 : f32 to vector<32x1xf32>
    %155 = arith.divf %153, %154 : vector<32x1xf32>
    %156 = vector.broadcast %148 : vector<32x1xf32> to vector<32x256xf32>
    %157 = arith.subf %142, %156 : vector<32x256xf32>
    %cst_51 = arith.constant 9.99999974E-6 : f32
    %158 = vector.broadcast %cst_51 : f32 to vector<32x1xf32>
    %159 = arith.addf %155, %158 : vector<32x1xf32>
    %160 = math.rsqrt %159 : vector<32x1xf32>
    %161 = vector.broadcast %160 : vector<32x1xf32> to vector<32x256xf32>
    %162 = arith.mulf %157, %161 : vector<32x256xf32>
    %163 = vector.broadcast %143 : vector<1x256xf32> to vector<32x256xf32>
    %164 = arith.mulf %162, %163 : vector<32x256xf32>
    %165 = vector.broadcast %144 : vector<1x256xf32> to vector<32x256xf32>
    %166 = arith.addf %164, %165 : vector<32x256xf32>
    %c0_52 = arith.constant 0 : index
    %c0_53 = arith.constant 0 : index
    %c0_54 = arith.constant 0 : index
    %167 = vector.load %arg8[%c0_52, %c0_53, %c0_54] : memref<2x256x256xbf16, #tpu.memory_space<vmem>>, vector<1x256x256xbf16>
    %168 = vector.shape_cast %167 : vector<1x256x256xbf16> to vector<256x256xbf16>
    %169 = arith.truncf %166 : vector<32x256xf32> to vector<32x256xbf16>
    %cst_55 = arith.constant dense<0.000000e+00> : vector<32x256xf32>
    %170 = tpu.matmul %169, %168, %cst_55 {dimension_numbers = #tpu.dot_dimension_numbers<[1], [0], [0], [1], [0, 0, 1, 1], [], []>} : vector<32x256xbf16>, vector<256x256xbf16>, vector<32x256xf32> -> vector<32x256xf32>
    %c0_56 = arith.constant 0 : index
    %c0_57 = arith.constant 0 : index
    %c0_58 = arith.constant 0 : index
    %171 = vector.load %arg9[%c0_56, %c0_57, %c0_58] : memref<2x1x256xf32, #tpu.memory_space<vmem>>, vector<1x1x256xf32>
    %172 = vector.shape_cast %171 : vector<1x1x256xf32> to vector<1x256xf32>
    %173 = vector.broadcast %172 : vector<1x256xf32> to vector<32x256xf32>
    %174 = arith.addf %170, %173 : vector<32x256xf32>
    %c0_59 = arith.constant 0 : index
    %c0_60 = arith.constant 0 : index
    %c0_61 = arith.constant 0 : index
    %175 = vector.load %arg10[%c0_59, %c0_60, %c0_61] : memref<2x256x512xbf16, #tpu.memory_space<vmem>>, vector<1x256x512xbf16>
    %176 = vector.shape_cast %175 : vector<1x256x512xbf16> to vector<256x512xbf16>
    %177 = arith.truncf %1 : vector<32x256xf32> to vector<32x256xbf16>
    %cst_62 = arith.constant dense<0.000000e+00> : vector<32x512xf32>
    %178 = tpu.matmul %177, %176, %cst_62 {dimension_numbers = #tpu.dot_dimension_numbers<[1], [0], [0], [1], [0, 0, 1, 1], [], []>} : vector<32x256xbf16>, vector<256x512xbf16>, vector<32x512xf32> -> vector<32x512xf32>
    %c0_63 = arith.constant 0 : index
    %c0_64 = arith.constant 0 : index
    %c0_65 = arith.constant 0 : index
    %179 = vector.load %arg11[%c0_63, %c0_64, %c0_65] : memref<2x1x512xf32, #tpu.memory_space<vmem>>, vector<1x1x512xf32>
    %180 = vector.shape_cast %179 : vector<1x1x512xf32> to vector<1x512xf32>
    %181 = vector.broadcast %180 : vector<1x512xf32> to vector<32x512xf32>
    %182 = arith.addf %178, %181 : vector<32x512xf32>
    %183 = vector.extract_strided_slice %182 {offsets = [0, 0], sizes = [32, 256], strides = [1, 1]} : vector<32x512xf32> to vector<32x256xf32>
    %184 = vector.extract_strided_slice %182 {offsets = [0, 256], sizes = [32, 256], strides = [1, 1]} : vector<32x512xf32> to vector<32x256xf32>
    %185 = vector.extract_strided_slice %174 {offsets = [0, 0], sizes = [16, 256], strides = [1, 1]} : vector<32x256xf32> to vector<16x256xf32>
    %186 = vector.extract_strided_slice %183 {offsets = [0, 0], sizes = [16, 256], strides = [1, 1]} : vector<32x256xf32> to vector<16x256xf32>
    %187 = vector.extract_strided_slice %184 {offsets = [0, 0], sizes = [16, 256], strides = [1, 1]} : vector<32x256xf32> to vector<16x256xf32>
    %188 = vector.extract_strided_slice %185 {offsets = [0, 0], sizes = [16, 128], strides = [1, 1]} : vector<16x256xf32> to vector<16x128xf32>
    %cst_66 = arith.constant 0.0883883461 : f32
    %189 = vector.broadcast %cst_66 : f32 to vector<16x128xf32>
    %190 = arith.mulf %188, %189 : vector<16x128xf32>
    %191 = arith.truncf %190 : vector<16x128xf32> to vector<16x128xbf16>
    %192 = vector.extract_strided_slice %186 {offsets = [0, 0], sizes = [16, 128], strides = [1, 1]} : vector<16x256xf32> to vector<16x128xf32>
    %193 = arith.truncf %192 : vector<16x128xf32> to vector<16x128xbf16>
    %194 = vector.extract_strided_slice %187 {offsets = [0, 0], sizes = [16, 128], strides = [1, 1]} : vector<16x256xf32> to vector<16x128xf32>
    %195 = arith.truncf %194 : vector<16x128xf32> to vector<16x128xbf16>
    %cst_67 = arith.constant dense<0.000000e+00> : vector<16x16xf32>
    %196 = tpu.matmul %191, %193, %cst_67 {dimension_numbers = #tpu.dot_dimension_numbers<[1], [1], [0], [0], [0, 0, 1, 0], [], []>} : vector<16x128xbf16>, vector<16x128xbf16>, vector<16x16xf32> -> vector<16x16xf32>
    %cst_68 = arith.constant dense<0xFF800000> : vector<16xf32>
    %197 = vector.multi_reduction <maximumf>, %196, %cst_68 [1] : vector<16x16xf32> to vector<16xf32>
    %198 = vector.shape_cast %197 : vector<16xf32> to vector<16x1xf32>
    %199 = vector.broadcast %198 : vector<16x1xf32> to vector<16x16xf32>
    %200 = arith.subf %196, %199 : vector<16x16xf32>
    %201 = math.exp %200 : vector<16x16xf32>
    %cst_69 = arith.constant dense<0.000000e+00> : vector<16xf32>
    %202 = vector.multi_reduction <add>, %201, %cst_69 [1] : vector<16x16xf32> to vector<16xf32>
    %203 = vector.shape_cast %202 : vector<16xf32> to vector<16x1xf32>
    %204 = tpu.reciprocal %203 {approx = true} : vector<16x1xf32> -> vector<16x1xf32>
    %205 = vector.broadcast %204 : vector<16x1xf32> to vector<16x16xf32>
    %206 = arith.mulf %201, %205 : vector<16x16xf32>
    %207 = arith.truncf %206 : vector<16x16xf32> to vector<16x16xbf16>
    %cst_70 = arith.constant dense<0.000000e+00> : vector<16x128xf32>
    %208 = tpu.matmul %207, %195, %cst_70 {dimension_numbers = #tpu.dot_dimension_numbers<[1], [0], [0], [1], [0, 0, 1, 1], [], []>} : vector<16x16xbf16>, vector<16x128xbf16>, vector<16x128xf32> -> vector<16x128xf32>
    %209 = vector.extract_strided_slice %185 {offsets = [0, 128], sizes = [16, 128], strides = [1, 1]} : vector<16x256xf32> to vector<16x128xf32>
    %cst_71 = arith.constant 0.0883883461 : f32
    %210 = vector.broadcast %cst_71 : f32 to vector<16x128xf32>
    %211 = arith.mulf %209, %210 : vector<16x128xf32>
    %212 = arith.truncf %211 : vector<16x128xf32> to vector<16x128xbf16>
    %213 = vector.extract_strided_slice %186 {offsets = [0, 128], sizes = [16, 128], strides = [1, 1]} : vector<16x256xf32> to vector<16x128xf32>
    %214 = arith.truncf %213 : vector<16x128xf32> to vector<16x128xbf16>
    %215 = vector.extract_strided_slice %187 {offsets = [0, 128], sizes = [16, 128], strides = [1, 1]} : vector<16x256xf32> to vector<16x128xf32>
    %216 = arith.truncf %215 : vector<16x128xf32> to vector<16x128xbf16>
    %cst_72 = arith.constant dense<0.000000e+00> : vector<16x16xf32>
    %217 = tpu.matmul %212, %214, %cst_72 {dimension_numbers = #tpu.dot_dimension_numbers<[1], [1], [0], [0], [0, 0, 1, 0], [], []>} : vector<16x128xbf16>, vector<16x128xbf16>, vector<16x16xf32> -> vector<16x16xf32>
    %cst_73 = arith.constant dense<0xFF800000> : vector<16xf32>
    %218 = vector.multi_reduction <maximumf>, %217, %cst_73 [1] : vector<16x16xf32> to vector<16xf32>
    %219 = vector.shape_cast %218 : vector<16xf32> to vector<16x1xf32>
    %220 = vector.broadcast %219 : vector<16x1xf32> to vector<16x16xf32>
    %221 = arith.subf %217, %220 : vector<16x16xf32>
    %222 = math.exp %221 : vector<16x16xf32>
    %cst_74 = arith.constant dense<0.000000e+00> : vector<16xf32>
    %223 = vector.multi_reduction <add>, %222, %cst_74 [1] : vector<16x16xf32> to vector<16xf32>
    %224 = vector.shape_cast %223 : vector<16xf32> to vector<16x1xf32>
    %225 = tpu.reciprocal %224 {approx = true} : vector<16x1xf32> -> vector<16x1xf32>
    %226 = vector.broadcast %225 : vector<16x1xf32> to vector<16x16xf32>
    %227 = arith.mulf %222, %226 : vector<16x16xf32>
    %228 = arith.truncf %227 : vector<16x16xf32> to vector<16x16xbf16>
    %cst_75 = arith.constant dense<0.000000e+00> : vector<16x128xf32>
    %229 = tpu.matmul %228, %216, %cst_75 {dimension_numbers = #tpu.dot_dimension_numbers<[1], [0], [0], [1], [0, 0, 1, 1], [], []>} : vector<16x16xbf16>, vector<16x128xbf16>, vector<16x128xf32> -> vector<16x128xf32>
    %230 = tpu.concatenate %208, %229 in 1 : vector<16x128xf32>, vector<16x128xf32> -> vector<16x256xf32>
    %231 = vector.extract_strided_slice %174 {offsets = [16, 0], sizes = [16, 256], strides = [1, 1]} : vector<32x256xf32> to vector<16x256xf32>
    %232 = vector.extract_strided_slice %183 {offsets = [16, 0], sizes = [16, 256], strides = [1, 1]} : vector<32x256xf32> to vector<16x256xf32>
    %233 = vector.extract_strided_slice %184 {offsets = [16, 0], sizes = [16, 256], strides = [1, 1]} : vector<32x256xf32> to vector<16x256xf32>
    %234 = vector.extract_strided_slice %231 {offsets = [0, 0], sizes = [16, 128], strides = [1, 1]} : vector<16x256xf32> to vector<16x128xf32>
    %cst_76 = arith.constant 0.0883883461 : f32
    %235 = vector.broadcast %cst_76 : f32 to vector<16x128xf32>
    %236 = arith.mulf %234, %235 : vector<16x128xf32>
    %237 = arith.truncf %236 : vector<16x128xf32> to vector<16x128xbf16>
    %238 = vector.extract_strided_slice %232 {offsets = [0, 0], sizes = [16, 128], strides = [1, 1]} : vector<16x256xf32> to vector<16x128xf32>
    %239 = arith.truncf %238 : vector<16x128xf32> to vector<16x128xbf16>
    %240 = vector.extract_strided_slice %233 {offsets = [0, 0], sizes = [16, 128], strides = [1, 1]} : vector<16x256xf32> to vector<16x128xf32>
    %241 = arith.truncf %240 : vector<16x128xf32> to vector<16x128xbf16>
    %cst_77 = arith.constant dense<0.000000e+00> : vector<16x16xf32>
    %242 = tpu.matmul %237, %239, %cst_77 {dimension_numbers = #tpu.dot_dimension_numbers<[1], [1], [0], [0], [0, 0, 1, 0], [], []>} : vector<16x128xbf16>, vector<16x128xbf16>, vector<16x16xf32> -> vector<16x16xf32>
    %cst_78 = arith.constant dense<0xFF800000> : vector<16xf32>
    %243 = vector.multi_reduction <maximumf>, %242, %cst_78 [1] : vector<16x16xf32> to vector<16xf32>
    %244 = vector.shape_cast %243 : vector<16xf32> to vector<16x1xf32>
    %245 = vector.broadcast %244 : vector<16x1xf32> to vector<16x16xf32>
    %246 = arith.subf %242, %245 : vector<16x16xf32>
    %247 = math.exp %246 : vector<16x16xf32>
    %cst_79 = arith.constant dense<0.000000e+00> : vector<16xf32>
    %248 = vector.multi_reduction <add>, %247, %cst_79 [1] : vector<16x16xf32> to vector<16xf32>
    %249 = vector.shape_cast %248 : vector<16xf32> to vector<16x1xf32>
    %250 = tpu.reciprocal %249 {approx = true} : vector<16x1xf32> -> vector<16x1xf32>
    %251 = vector.broadcast %250 : vector<16x1xf32> to vector<16x16xf32>
    %252 = arith.mulf %247, %251 : vector<16x16xf32>
    %253 = arith.truncf %252 : vector<16x16xf32> to vector<16x16xbf16>
    %cst_80 = arith.constant dense<0.000000e+00> : vector<16x128xf32>
    %254 = tpu.matmul %253, %241, %cst_80 {dimension_numbers = #tpu.dot_dimension_numbers<[1], [0], [0], [1], [0, 0, 1, 1], [], []>} : vector<16x16xbf16>, vector<16x128xbf16>, vector<16x128xf32> -> vector<16x128xf32>
    %255 = vector.extract_strided_slice %231 {offsets = [0, 128], sizes = [16, 128], strides = [1, 1]} : vector<16x256xf32> to vector<16x128xf32>
    %cst_81 = arith.constant 0.0883883461 : f32
    %256 = vector.broadcast %cst_81 : f32 to vector<16x128xf32>
    %257 = arith.mulf %255, %256 : vector<16x128xf32>
    %258 = arith.truncf %257 : vector<16x128xf32> to vector<16x128xbf16>
    %259 = vector.extract_strided_slice %232 {offsets = [0, 128], sizes = [16, 128], strides = [1, 1]} : vector<16x256xf32> to vector<16x128xf32>
    %260 = arith.truncf %259 : vector<16x128xf32> to vector<16x128xbf16>
    %261 = vector.extract_strided_slice %233 {offsets = [0, 128], sizes = [16, 128], strides = [1, 1]} : vector<16x256xf32> to vector<16x128xf32>
    %262 = arith.truncf %261 : vector<16x128xf32> to vector<16x128xbf16>
    %cst_82 = arith.constant dense<0.000000e+00> : vector<16x16xf32>
    %263 = tpu.matmul %258, %260, %cst_82 {dimension_numbers = #tpu.dot_dimension_numbers<[1], [1], [0], [0], [0, 0, 1, 0], [], []>} : vector<16x128xbf16>, vector<16x128xbf16>, vector<16x16xf32> -> vector<16x16xf32>
    %cst_83 = arith.constant dense<0xFF800000> : vector<16xf32>
    %264 = vector.multi_reduction <maximumf>, %263, %cst_83 [1] : vector<16x16xf32> to vector<16xf32>
    %265 = vector.shape_cast %264 : vector<16xf32> to vector<16x1xf32>
    %266 = vector.broadcast %265 : vector<16x1xf32> to vector<16x16xf32>
    %267 = arith.subf %263, %266 : vector<16x16xf32>
    %268 = math.exp %267 : vector<16x16xf32>
    %cst_84 = arith.constant dense<0.000000e+00> : vector<16xf32>
    %269 = vector.multi_reduction <add>, %268, %cst_84 [1] : vector<16x16xf32> to vector<16xf32>
    %270 = vector.shape_cast %269 : vector<16xf32> to vector<16x1xf32>
    %271 = tpu.reciprocal %270 {approx = true} : vector<16x1xf32> -> vector<16x1xf32>
    %272 = vector.broadcast %271 : vector<16x1xf32> to vector<16x16xf32>
    %273 = arith.mulf %268, %272 : vector<16x16xf32>
    %274 = arith.truncf %273 : vector<16x16xf32> to vector<16x16xbf16>
    %cst_85 = arith.constant dense<0.000000e+00> : vector<16x128xf32>
    %275 = tpu.matmul %274, %262, %cst_85 {dimension_numbers = #tpu.dot_dimension_numbers<[1], [0], [0], [1], [0, 0, 1, 1], [], []>} : vector<16x16xbf16>, vector<16x128xbf16>, vector<16x128xf32> -> vector<16x128xf32>
    %276 = tpu.concatenate %254, %275 in 1 : vector<16x128xf32>, vector<16x128xf32> -> vector<16x256xf32>
    %277 = tpu.concatenate %230, %276 in 0 : vector<16x256xf32>, vector<16x256xf32> -> vector<32x256xf32>
    %c0_86 = arith.constant 0 : index
    %c0_87 = arith.constant 0 : index
    %c0_88 = arith.constant 0 : index
    %278 = vector.load %arg12[%c0_86, %c0_87, %c0_88] : memref<2x256x256xbf16, #tpu.memory_space<vmem>>, vector<1x256x256xbf16>
    %279 = vector.shape_cast %278 : vector<1x256x256xbf16> to vector<256x256xbf16>
    %280 = arith.truncf %277 : vector<32x256xf32> to vector<32x256xbf16>
    %cst_89 = arith.constant dense<0.000000e+00> : vector<32x256xf32>
    %281 = tpu.matmul %280, %279, %cst_89 {dimension_numbers = #tpu.dot_dimension_numbers<[1], [0], [0], [1], [0, 0, 1, 1], [], []>} : vector<32x256xbf16>, vector<256x256xbf16>, vector<32x256xf32> -> vector<32x256xf32>
    %282 = arith.addf %142, %281 : vector<32x256xf32>
    %c0_90 = arith.constant 0 : index
    %c0_91 = arith.constant 0 : index
    %c0_92 = arith.constant 0 : index
    %283 = vector.load %arg13[%c0_90, %c0_91, %c0_92] : memref<2x1x256xf32, #tpu.memory_space<vmem>>, vector<1x1x256xf32>
    %284 = vector.shape_cast %283 : vector<1x1x256xf32> to vector<1x256xf32>
    %285 = vector.broadcast %284 : vector<1x256xf32> to vector<32x256xf32>
    %286 = arith.addf %282, %285 : vector<32x256xf32>
    %287 = vector.extract_strided_slice %3 {offsets = [2, 0], sizes = [1, 256], strides = [1, 1]} : vector<3x256xf32> to vector<1x256xf32>
    %288 = vector.extract_strided_slice %5 {offsets = [2, 0], sizes = [1, 256], strides = [1, 1]} : vector<3x256xf32> to vector<1x256xf32>
    %cst_93 = arith.constant dense<0.000000e+00> : vector<32xf32>
    %289 = vector.multi_reduction <add>, %286, %cst_93 [1] : vector<32x256xf32> to vector<32xf32>
    %290 = vector.shape_cast %289 : vector<32xf32> to vector<32x1xf32>
    %cst_94 = arith.constant 2.560000e+02 : f32
    %291 = vector.broadcast %cst_94 : f32 to vector<32x1xf32>
    %292 = arith.divf %290, %291 : vector<32x1xf32>
    %293 = vector.broadcast %292 : vector<32x1xf32> to vector<32x256xf32>
    %294 = arith.subf %286, %293 : vector<32x256xf32>
    %295 = arith.mulf %294, %294 : vector<32x256xf32>
    %cst_95 = arith.constant dense<0.000000e+00> : vector<32xf32>
    %296 = vector.multi_reduction <add>, %295, %cst_95 [1] : vector<32x256xf32> to vector<32xf32>
    %297 = vector.shape_cast %296 : vector<32xf32> to vector<32x1xf32>
    %cst_96 = arith.constant 2.560000e+02 : f32
    %298 = vector.broadcast %cst_96 : f32 to vector<32x1xf32>
    %299 = arith.divf %297, %298 : vector<32x1xf32>
    %300 = vector.broadcast %292 : vector<32x1xf32> to vector<32x256xf32>
    %301 = arith.subf %286, %300 : vector<32x256xf32>
    %cst_97 = arith.constant 9.99999974E-6 : f32
    %302 = vector.broadcast %cst_97 : f32 to vector<32x1xf32>
    %303 = arith.addf %299, %302 : vector<32x1xf32>
    %304 = math.rsqrt %303 : vector<32x1xf32>
    %305 = vector.broadcast %304 : vector<32x1xf32> to vector<32x256xf32>
    %306 = arith.mulf %301, %305 : vector<32x256xf32>
    %307 = vector.broadcast %287 : vector<1x256xf32> to vector<32x256xf32>
    %308 = arith.mulf %306, %307 : vector<32x256xf32>
    %309 = vector.broadcast %288 : vector<1x256xf32> to vector<32x256xf32>
    %310 = arith.addf %308, %309 : vector<32x256xf32>
    %c0_98 = arith.constant 0 : index
    %c0_99 = arith.constant 0 : index
    %c0_100 = arith.constant 0 : index
    %311 = vector.load %arg14[%c0_98, %c0_99, %c0_100] : memref<2x256x256xbf16, #tpu.memory_space<vmem>>, vector<1x256x256xbf16>
    %312 = vector.shape_cast %311 : vector<1x256x256xbf16> to vector<256x256xbf16>
    %313 = arith.truncf %310 : vector<32x256xf32> to vector<32x256xbf16>
    %cst_101 = arith.constant dense<0.000000e+00> : vector<32x256xf32>
    %314 = tpu.matmul %313, %312, %cst_101 {dimension_numbers = #tpu.dot_dimension_numbers<[1], [0], [0], [1], [0, 0, 1, 1], [], []>} : vector<32x256xbf16>, vector<256x256xbf16>, vector<32x256xf32> -> vector<32x256xf32>
    %c0_102 = arith.constant 0 : index
    %c0_103 = arith.constant 0 : index
    %c0_104 = arith.constant 0 : index
    %315 = vector.load %arg15[%c0_102, %c0_103, %c0_104] : memref<2x1x256xf32, #tpu.memory_space<vmem>>, vector<1x1x256xf32>
    %316 = vector.shape_cast %315 : vector<1x1x256xf32> to vector<1x256xf32>
    %317 = vector.broadcast %316 : vector<1x256xf32> to vector<32x256xf32>
    %318 = arith.addf %314, %317 : vector<32x256xf32>
    %cst_105 = arith.constant 0.000000e+00 : f32
    %319 = vector.broadcast %cst_105 : f32 to vector<32x256xf32>
    %320 = arith.maximumf %318, %319 : vector<32x256xf32>
    %c0_106 = arith.constant 0 : index
    %c0_107 = arith.constant 0 : index
    %c0_108 = arith.constant 0 : index
    %321 = vector.load %arg16[%c0_106, %c0_107, %c0_108] : memref<2x256x256xbf16, #tpu.memory_space<vmem>>, vector<1x256x256xbf16>
    %322 = vector.shape_cast %321 : vector<1x256x256xbf16> to vector<256x256xbf16>
    %323 = arith.truncf %320 : vector<32x256xf32> to vector<32x256xbf16>
    %cst_109 = arith.constant dense<0.000000e+00> : vector<32x256xf32>
    %324 = tpu.matmul %323, %322, %cst_109 {dimension_numbers = #tpu.dot_dimension_numbers<[1], [0], [0], [1], [0, 0, 1, 1], [], []>} : vector<32x256xbf16>, vector<256x256xbf16>, vector<32x256xf32> -> vector<32x256xf32>
    %325 = arith.addf %286, %324 : vector<32x256xf32>
    %c0_110 = arith.constant 0 : index
    %c0_111 = arith.constant 0 : index
    %c0_112 = arith.constant 0 : index
    %326 = vector.load %arg17[%c0_110, %c0_111, %c0_112] : memref<2x1x256xf32, #tpu.memory_space<vmem>>, vector<1x1x256xf32>
    %327 = vector.shape_cast %326 : vector<1x1x256xf32> to vector<1x256xf32>
    %328 = vector.broadcast %327 : vector<1x256xf32> to vector<32x256xf32>
    %329 = arith.addf %325, %328 : vector<32x256xf32>
    %c1 = arith.constant 1 : index
    %c0_113 = arith.constant 0 : index
    %c0_114 = arith.constant 0 : index
    %330 = vector.load %arg2[%c1, %c0_113, %c0_114] : memref<2x3x256xf32, #tpu.memory_space<vmem>>, vector<1x3x256xf32>
    %331 = vector.shape_cast %330 : vector<1x3x256xf32> to vector<3x256xf32>
    %c1_115 = arith.constant 1 : index
    %c0_116 = arith.constant 0 : index
    %c0_117 = arith.constant 0 : index
    %332 = vector.load %arg3[%c1_115, %c0_116, %c0_117] : memref<2x3x256xf32, #tpu.memory_space<vmem>>, vector<1x3x256xf32>
    %333 = vector.shape_cast %332 : vector<1x3x256xf32> to vector<3x256xf32>
    %334 = vector.extract_strided_slice %331 {offsets = [0, 0], sizes = [1, 256], strides = [1, 1]} : vector<3x256xf32> to vector<1x256xf32>
    %335 = vector.extract_strided_slice %333 {offsets = [0, 0], sizes = [1, 256], strides = [1, 1]} : vector<3x256xf32> to vector<1x256xf32>
    %cst_118 = arith.constant dense<0.000000e+00> : vector<32xf32>
    %336 = vector.multi_reduction <add>, %329, %cst_118 [1] : vector<32x256xf32> to vector<32xf32>
    %337 = vector.shape_cast %336 : vector<32xf32> to vector<32x1xf32>
    %cst_119 = arith.constant 2.560000e+02 : f32
    %338 = vector.broadcast %cst_119 : f32 to vector<32x1xf32>
    %339 = arith.divf %337, %338 : vector<32x1xf32>
    %340 = vector.broadcast %339 : vector<32x1xf32> to vector<32x256xf32>
    %341 = arith.subf %329, %340 : vector<32x256xf32>
    %342 = arith.mulf %341, %341 : vector<32x256xf32>
    %cst_120 = arith.constant dense<0.000000e+00> : vector<32xf32>
    %343 = vector.multi_reduction <add>, %342, %cst_120 [1] : vector<32x256xf32> to vector<32xf32>
    %344 = vector.shape_cast %343 : vector<32xf32> to vector<32x1xf32>
    %cst_121 = arith.constant 2.560000e+02 : f32
    %345 = vector.broadcast %cst_121 : f32 to vector<32x1xf32>
    %346 = arith.divf %344, %345 : vector<32x1xf32>
    %347 = vector.broadcast %339 : vector<32x1xf32> to vector<32x256xf32>
    %348 = arith.subf %329, %347 : vector<32x256xf32>
    %cst_122 = arith.constant 9.99999974E-6 : f32
    %349 = vector.broadcast %cst_122 : f32 to vector<32x1xf32>
    %350 = arith.addf %346, %349 : vector<32x1xf32>
    %351 = math.rsqrt %350 : vector<32x1xf32>
    %352 = vector.broadcast %351 : vector<32x1xf32> to vector<32x256xf32>
    %353 = arith.mulf %348, %352 : vector<32x256xf32>
    %354 = vector.broadcast %334 : vector<1x256xf32> to vector<32x256xf32>
    %355 = arith.mulf %353, %354 : vector<32x256xf32>
    %356 = vector.broadcast %335 : vector<1x256xf32> to vector<32x256xf32>
    %357 = arith.addf %355, %356 : vector<32x256xf32>
    %c1_123 = arith.constant 1 : index
    %c0_124 = arith.constant 0 : index
    %c0_125 = arith.constant 0 : index
    %358 = vector.load %arg4[%c1_123, %c0_124, %c0_125] : memref<2x256x768xbf16, #tpu.memory_space<vmem>>, vector<1x256x768xbf16>
    %359 = vector.shape_cast %358 : vector<1x256x768xbf16> to vector<256x768xbf16>
    %360 = arith.truncf %357 : vector<32x256xf32> to vector<32x256xbf16>
    %cst_126 = arith.constant dense<0.000000e+00> : vector<32x768xf32>
    %361 = tpu.matmul %360, %359, %cst_126 {dimension_numbers = #tpu.dot_dimension_numbers<[1], [0], [0], [1], [0, 0, 1, 1], [], []>} : vector<32x256xbf16>, vector<256x768xbf16>, vector<32x768xf32> -> vector<32x768xf32>
    %c1_127 = arith.constant 1 : index
    %c0_128 = arith.constant 0 : index
    %c0_129 = arith.constant 0 : index
    %362 = vector.load %arg5[%c1_127, %c0_128, %c0_129] : memref<2x1x768xf32, #tpu.memory_space<vmem>>, vector<1x1x768xf32>
    %363 = vector.shape_cast %362 : vector<1x1x768xf32> to vector<1x768xf32>
    %364 = vector.broadcast %363 : vector<1x768xf32> to vector<32x768xf32>
    %365 = arith.addf %361, %364 : vector<32x768xf32>
    %366 = vector.extract_strided_slice %365 {offsets = [0, 0], sizes = [32, 256], strides = [1, 1]} : vector<32x768xf32> to vector<32x256xf32>
    %367 = vector.extract_strided_slice %365 {offsets = [0, 256], sizes = [32, 256], strides = [1, 1]} : vector<32x768xf32> to vector<32x256xf32>
    %368 = vector.extract_strided_slice %365 {offsets = [0, 512], sizes = [32, 256], strides = [1, 1]} : vector<32x768xf32> to vector<32x256xf32>
    %369 = vector.extract_strided_slice %366 {offsets = [0, 0], sizes = [16, 256], strides = [1, 1]} : vector<32x256xf32> to vector<16x256xf32>
    %370 = vector.extract_strided_slice %367 {offsets = [0, 0], sizes = [16, 256], strides = [1, 1]} : vector<32x256xf32> to vector<16x256xf32>
    %371 = vector.extract_strided_slice %368 {offsets = [0, 0], sizes = [16, 256], strides = [1, 1]} : vector<32x256xf32> to vector<16x256xf32>
    %372 = vector.extract_strided_slice %369 {offsets = [0, 0], sizes = [16, 128], strides = [1, 1]} : vector<16x256xf32> to vector<16x128xf32>
    %cst_130 = arith.constant 0.0883883461 : f32
    %373 = vector.broadcast %cst_130 : f32 to vector<16x128xf32>
    %374 = arith.mulf %372, %373 : vector<16x128xf32>
    %375 = arith.truncf %374 : vector<16x128xf32> to vector<16x128xbf16>
    %376 = vector.extract_strided_slice %370 {offsets = [0, 0], sizes = [16, 128], strides = [1, 1]} : vector<16x256xf32> to vector<16x128xf32>
    %377 = arith.truncf %376 : vector<16x128xf32> to vector<16x128xbf16>
    %378 = vector.extract_strided_slice %371 {offsets = [0, 0], sizes = [16, 128], strides = [1, 1]} : vector<16x256xf32> to vector<16x128xf32>
    %379 = arith.truncf %378 : vector<16x128xf32> to vector<16x128xbf16>
    %cst_131 = arith.constant dense<0.000000e+00> : vector<16x16xf32>
    %380 = tpu.matmul %375, %377, %cst_131 {dimension_numbers = #tpu.dot_dimension_numbers<[1], [1], [0], [0], [0, 0, 1, 0], [], []>} : vector<16x128xbf16>, vector<16x128xbf16>, vector<16x16xf32> -> vector<16x16xf32>
    %cst_132 = arith.constant dense<0xFF800000> : vector<16xf32>
    %381 = vector.multi_reduction <maximumf>, %380, %cst_132 [1] : vector<16x16xf32> to vector<16xf32>
    %382 = vector.shape_cast %381 : vector<16xf32> to vector<16x1xf32>
    %383 = vector.broadcast %382 : vector<16x1xf32> to vector<16x16xf32>
    %384 = arith.subf %380, %383 : vector<16x16xf32>
    %385 = math.exp %384 : vector<16x16xf32>
    %cst_133 = arith.constant dense<0.000000e+00> : vector<16xf32>
    %386 = vector.multi_reduction <add>, %385, %cst_133 [1] : vector<16x16xf32> to vector<16xf32>
    %387 = vector.shape_cast %386 : vector<16xf32> to vector<16x1xf32>
    %388 = tpu.reciprocal %387 {approx = true} : vector<16x1xf32> -> vector<16x1xf32>
    %389 = vector.broadcast %388 : vector<16x1xf32> to vector<16x16xf32>
    %390 = arith.mulf %385, %389 : vector<16x16xf32>
    %391 = arith.truncf %390 : vector<16x16xf32> to vector<16x16xbf16>
    %cst_134 = arith.constant dense<0.000000e+00> : vector<16x128xf32>
    %392 = tpu.matmul %391, %379, %cst_134 {dimension_numbers = #tpu.dot_dimension_numbers<[1], [0], [0], [1], [0, 0, 1, 1], [], []>} : vector<16x16xbf16>, vector<16x128xbf16>, vector<16x128xf32> -> vector<16x128xf32>
    %393 = vector.extract_strided_slice %369 {offsets = [0, 128], sizes = [16, 128], strides = [1, 1]} : vector<16x256xf32> to vector<16x128xf32>
    %cst_135 = arith.constant 0.0883883461 : f32
    %394 = vector.broadcast %cst_135 : f32 to vector<16x128xf32>
    %395 = arith.mulf %393, %394 : vector<16x128xf32>
    %396 = arith.truncf %395 : vector<16x128xf32> to vector<16x128xbf16>
    %397 = vector.extract_strided_slice %370 {offsets = [0, 128], sizes = [16, 128], strides = [1, 1]} : vector<16x256xf32> to vector<16x128xf32>
    %398 = arith.truncf %397 : vector<16x128xf32> to vector<16x128xbf16>
    %399 = vector.extract_strided_slice %371 {offsets = [0, 128], sizes = [16, 128], strides = [1, 1]} : vector<16x256xf32> to vector<16x128xf32>
    %400 = arith.truncf %399 : vector<16x128xf32> to vector<16x128xbf16>
    %cst_136 = arith.constant dense<0.000000e+00> : vector<16x16xf32>
    %401 = tpu.matmul %396, %398, %cst_136 {dimension_numbers = #tpu.dot_dimension_numbers<[1], [1], [0], [0], [0, 0, 1, 0], [], []>} : vector<16x128xbf16>, vector<16x128xbf16>, vector<16x16xf32> -> vector<16x16xf32>
    %cst_137 = arith.constant dense<0xFF800000> : vector<16xf32>
    %402 = vector.multi_reduction <maximumf>, %401, %cst_137 [1] : vector<16x16xf32> to vector<16xf32>
    %403 = vector.shape_cast %402 : vector<16xf32> to vector<16x1xf32>
    %404 = vector.broadcast %403 : vector<16x1xf32> to vector<16x16xf32>
    %405 = arith.subf %401, %404 : vector<16x16xf32>
    %406 = math.exp %405 : vector<16x16xf32>
    %cst_138 = arith.constant dense<0.000000e+00> : vector<16xf32>
    %407 = vector.multi_reduction <add>, %406, %cst_138 [1] : vector<16x16xf32> to vector<16xf32>
    %408 = vector.shape_cast %407 : vector<16xf32> to vector<16x1xf32>
    %409 = tpu.reciprocal %408 {approx = true} : vector<16x1xf32> -> vector<16x1xf32>
    %410 = vector.broadcast %409 : vector<16x1xf32> to vector<16x16xf32>
    %411 = arith.mulf %406, %410 : vector<16x16xf32>
    %412 = arith.truncf %411 : vector<16x16xf32> to vector<16x16xbf16>
    %cst_139 = arith.constant dense<0.000000e+00> : vector<16x128xf32>
    %413 = tpu.matmul %412, %400, %cst_139 {dimension_numbers = #tpu.dot_dimension_numbers<[1], [0], [0], [1], [0, 0, 1, 1], [], []>} : vector<16x16xbf16>, vector<16x128xbf16>, vector<16x128xf32> -> vector<16x128xf32>
    %414 = tpu.concatenate %392, %413 in 1 : vector<16x128xf32>, vector<16x128xf32> -> vector<16x256xf32>
    %415 = vector.extract_strided_slice %366 {offsets = [16, 0], sizes = [16, 256], strides = [1, 1]} : vector<32x256xf32> to vector<16x256xf32>
    %416 = vector.extract_strided_slice %367 {offsets = [16, 0], sizes = [16, 256], strides = [1, 1]} : vector<32x256xf32> to vector<16x256xf32>
    %417 = vector.extract_strided_slice %368 {offsets = [16, 0], sizes = [16, 256], strides = [1, 1]} : vector<32x256xf32> to vector<16x256xf32>
    %418 = vector.extract_strided_slice %415 {offsets = [0, 0], sizes = [16, 128], strides = [1, 1]} : vector<16x256xf32> to vector<16x128xf32>
    %cst_140 = arith.constant 0.0883883461 : f32
    %419 = vector.broadcast %cst_140 : f32 to vector<16x128xf32>
    %420 = arith.mulf %418, %419 : vector<16x128xf32>
    %421 = arith.truncf %420 : vector<16x128xf32> to vector<16x128xbf16>
    %422 = vector.extract_strided_slice %416 {offsets = [0, 0], sizes = [16, 128], strides = [1, 1]} : vector<16x256xf32> to vector<16x128xf32>
    %423 = arith.truncf %422 : vector<16x128xf32> to vector<16x128xbf16>
    %424 = vector.extract_strided_slice %417 {offsets = [0, 0], sizes = [16, 128], strides = [1, 1]} : vector<16x256xf32> to vector<16x128xf32>
    %425 = arith.truncf %424 : vector<16x128xf32> to vector<16x128xbf16>
    %cst_141 = arith.constant dense<0.000000e+00> : vector<16x16xf32>
    %426 = tpu.matmul %421, %423, %cst_141 {dimension_numbers = #tpu.dot_dimension_numbers<[1], [1], [0], [0], [0, 0, 1, 0], [], []>} : vector<16x128xbf16>, vector<16x128xbf16>, vector<16x16xf32> -> vector<16x16xf32>
    %cst_142 = arith.constant dense<0xFF800000> : vector<16xf32>
    %427 = vector.multi_reduction <maximumf>, %426, %cst_142 [1] : vector<16x16xf32> to vector<16xf32>
    %428 = vector.shape_cast %427 : vector<16xf32> to vector<16x1xf32>
    %429 = vector.broadcast %428 : vector<16x1xf32> to vector<16x16xf32>
    %430 = arith.subf %426, %429 : vector<16x16xf32>
    %431 = math.exp %430 : vector<16x16xf32>
    %cst_143 = arith.constant dense<0.000000e+00> : vector<16xf32>
    %432 = vector.multi_reduction <add>, %431, %cst_143 [1] : vector<16x16xf32> to vector<16xf32>
    %433 = vector.shape_cast %432 : vector<16xf32> to vector<16x1xf32>
    %434 = tpu.reciprocal %433 {approx = true} : vector<16x1xf32> -> vector<16x1xf32>
    %435 = vector.broadcast %434 : vector<16x1xf32> to vector<16x16xf32>
    %436 = arith.mulf %431, %435 : vector<16x16xf32>
    %437 = arith.truncf %436 : vector<16x16xf32> to vector<16x16xbf16>
    %cst_144 = arith.constant dense<0.000000e+00> : vector<16x128xf32>
    %438 = tpu.matmul %437, %425, %cst_144 {dimension_numbers = #tpu.dot_dimension_numbers<[1], [0], [0], [1], [0, 0, 1, 1], [], []>} : vector<16x16xbf16>, vector<16x128xbf16>, vector<16x128xf32> -> vector<16x128xf32>
    %439 = vector.extract_strided_slice %415 {offsets = [0, 128], sizes = [16, 128], strides = [1, 1]} : vector<16x256xf32> to vector<16x128xf32>
    %cst_145 = arith.constant 0.0883883461 : f32
    %440 = vector.broadcast %cst_145 : f32 to vector<16x128xf32>
    %441 = arith.mulf %439, %440 : vector<16x128xf32>
    %442 = arith.truncf %441 : vector<16x128xf32> to vector<16x128xbf16>
    %443 = vector.extract_strided_slice %416 {offsets = [0, 128], sizes = [16, 128], strides = [1, 1]} : vector<16x256xf32> to vector<16x128xf32>
    %444 = arith.truncf %443 : vector<16x128xf32> to vector<16x128xbf16>
    %445 = vector.extract_strided_slice %417 {offsets = [0, 128], sizes = [16, 128], strides = [1, 1]} : vector<16x256xf32> to vector<16x128xf32>
    %446 = arith.truncf %445 : vector<16x128xf32> to vector<16x128xbf16>
    %cst_146 = arith.constant dense<0.000000e+00> : vector<16x16xf32>
    %447 = tpu.matmul %442, %444, %cst_146 {dimension_numbers = #tpu.dot_dimension_numbers<[1], [1], [0], [0], [0, 0, 1, 0], [], []>} : vector<16x128xbf16>, vector<16x128xbf16>, vector<16x16xf32> -> vector<16x16xf32>
    %cst_147 = arith.constant dense<0xFF800000> : vector<16xf32>
    %448 = vector.multi_reduction <maximumf>, %447, %cst_147 [1] : vector<16x16xf32> to vector<16xf32>
    %449 = vector.shape_cast %448 : vector<16xf32> to vector<16x1xf32>
    %450 = vector.broadcast %449 : vector<16x1xf32> to vector<16x16xf32>
    %451 = arith.subf %447, %450 : vector<16x16xf32>
    %452 = math.exp %451 : vector<16x16xf32>
    %cst_148 = arith.constant dense<0.000000e+00> : vector<16xf32>
    %453 = vector.multi_reduction <add>, %452, %cst_148 [1] : vector<16x16xf32> to vector<16xf32>
    %454 = vector.shape_cast %453 : vector<16xf32> to vector<16x1xf32>
    %455 = tpu.reciprocal %454 {approx = true} : vector<16x1xf32> -> vector<16x1xf32>
    %456 = vector.broadcast %455 : vector<16x1xf32> to vector<16x16xf32>
    %457 = arith.mulf %452, %456 : vector<16x16xf32>
    %458 = arith.truncf %457 : vector<16x16xf32> to vector<16x16xbf16>
    %cst_149 = arith.constant dense<0.000000e+00> : vector<16x128xf32>
    %459 = tpu.matmul %458, %446, %cst_149 {dimension_numbers = #tpu.dot_dimension_numbers<[1], [0], [0], [1], [0, 0, 1, 1], [], []>} : vector<16x16xbf16>, vector<16x128xbf16>, vector<16x128xf32> -> vector<16x128xf32>
    %460 = tpu.concatenate %438, %459 in 1 : vector<16x128xf32>, vector<16x128xf32> -> vector<16x256xf32>
    %461 = tpu.concatenate %414, %460 in 0 : vector<16x256xf32>, vector<16x256xf32> -> vector<32x256xf32>
    %c1_150 = arith.constant 1 : index
    %c0_151 = arith.constant 0 : index
    %c0_152 = arith.constant 0 : index
    %462 = vector.load %arg6[%c1_150, %c0_151, %c0_152] : memref<2x256x256xbf16, #tpu.memory_space<vmem>>, vector<1x256x256xbf16>
    %463 = vector.shape_cast %462 : vector<1x256x256xbf16> to vector<256x256xbf16>
    %464 = arith.truncf %461 : vector<32x256xf32> to vector<32x256xbf16>
    %cst_153 = arith.constant dense<0.000000e+00> : vector<32x256xf32>
    %465 = tpu.matmul %464, %463, %cst_153 {dimension_numbers = #tpu.dot_dimension_numbers<[1], [0], [0], [1], [0, 0, 1, 1], [], []>} : vector<32x256xbf16>, vector<256x256xbf16>, vector<32x256xf32> -> vector<32x256xf32>
    %466 = arith.addf %329, %465 : vector<32x256xf32>
    %c1_154 = arith.constant 1 : index
    %c0_155 = arith.constant 0 : index
    %c0_156 = arith.constant 0 : index
    %467 = vector.load %arg7[%c1_154, %c0_155, %c0_156] : memref<2x1x256xf32, #tpu.memory_space<vmem>>, vector<1x1x256xf32>
    %468 = vector.shape_cast %467 : vector<1x1x256xf32> to vector<1x256xf32>
    %469 = vector.broadcast %468 : vector<1x256xf32> to vector<32x256xf32>
    %470 = arith.addf %466, %469 : vector<32x256xf32>
    %471 = vector.extract_strided_slice %331 {offsets = [1, 0], sizes = [1, 256], strides = [1, 1]} : vector<3x256xf32> to vector<1x256xf32>
    %472 = vector.extract_strided_slice %333 {offsets = [1, 0], sizes = [1, 256], strides = [1, 1]} : vector<3x256xf32> to vector<1x256xf32>
    %cst_157 = arith.constant dense<0.000000e+00> : vector<32xf32>
    %473 = vector.multi_reduction <add>, %470, %cst_157 [1] : vector<32x256xf32> to vector<32xf32>
    %474 = vector.shape_cast %473 : vector<32xf32> to vector<32x1xf32>
    %cst_158 = arith.constant 2.560000e+02 : f32
    %475 = vector.broadcast %cst_158 : f32 to vector<32x1xf32>
    %476 = arith.divf %474, %475 : vector<32x1xf32>
    %477 = vector.broadcast %476 : vector<32x1xf32> to vector<32x256xf32>
    %478 = arith.subf %470, %477 : vector<32x256xf32>
    %479 = arith.mulf %478, %478 : vector<32x256xf32>
    %cst_159 = arith.constant dense<0.000000e+00> : vector<32xf32>
    %480 = vector.multi_reduction <add>, %479, %cst_159 [1] : vector<32x256xf32> to vector<32xf32>
    %481 = vector.shape_cast %480 : vector<32xf32> to vector<32x1xf32>
    %cst_160 = arith.constant 2.560000e+02 : f32
    %482 = vector.broadcast %cst_160 : f32 to vector<32x1xf32>
    %483 = arith.divf %481, %482 : vector<32x1xf32>
    %484 = vector.broadcast %476 : vector<32x1xf32> to vector<32x256xf32>
    %485 = arith.subf %470, %484 : vector<32x256xf32>
    %cst_161 = arith.constant 9.99999974E-6 : f32
    %486 = vector.broadcast %cst_161 : f32 to vector<32x1xf32>
    %487 = arith.addf %483, %486 : vector<32x1xf32>
    %488 = math.rsqrt %487 : vector<32x1xf32>
    %489 = vector.broadcast %488 : vector<32x1xf32> to vector<32x256xf32>
    %490 = arith.mulf %485, %489 : vector<32x256xf32>
    %491 = vector.broadcast %471 : vector<1x256xf32> to vector<32x256xf32>
    %492 = arith.mulf %490, %491 : vector<32x256xf32>
    %493 = vector.broadcast %472 : vector<1x256xf32> to vector<32x256xf32>
    %494 = arith.addf %492, %493 : vector<32x256xf32>
    %c1_162 = arith.constant 1 : index
    %c0_163 = arith.constant 0 : index
    %c0_164 = arith.constant 0 : index
    %495 = vector.load %arg8[%c1_162, %c0_163, %c0_164] : memref<2x256x256xbf16, #tpu.memory_space<vmem>>, vector<1x256x256xbf16>
    %496 = vector.shape_cast %495 : vector<1x256x256xbf16> to vector<256x256xbf16>
    %497 = arith.truncf %494 : vector<32x256xf32> to vector<32x256xbf16>
    %cst_165 = arith.constant dense<0.000000e+00> : vector<32x256xf32>
    %498 = tpu.matmul %497, %496, %cst_165 {dimension_numbers = #tpu.dot_dimension_numbers<[1], [0], [0], [1], [0, 0, 1, 1], [], []>} : vector<32x256xbf16>, vector<256x256xbf16>, vector<32x256xf32> -> vector<32x256xf32>
    %c1_166 = arith.constant 1 : index
    %c0_167 = arith.constant 0 : index
    %c0_168 = arith.constant 0 : index
    %499 = vector.load %arg9[%c1_166, %c0_167, %c0_168] : memref<2x1x256xf32, #tpu.memory_space<vmem>>, vector<1x1x256xf32>
    %500 = vector.shape_cast %499 : vector<1x1x256xf32> to vector<1x256xf32>
    %501 = vector.broadcast %500 : vector<1x256xf32> to vector<32x256xf32>
    %502 = arith.addf %498, %501 : vector<32x256xf32>
    %c1_169 = arith.constant 1 : index
    %c0_170 = arith.constant 0 : index
    %c0_171 = arith.constant 0 : index
    %503 = vector.load %arg10[%c1_169, %c0_170, %c0_171] : memref<2x256x512xbf16, #tpu.memory_space<vmem>>, vector<1x256x512xbf16>
    %504 = vector.shape_cast %503 : vector<1x256x512xbf16> to vector<256x512xbf16>
    %505 = arith.truncf %1 : vector<32x256xf32> to vector<32x256xbf16>
    %cst_172 = arith.constant dense<0.000000e+00> : vector<32x512xf32>
    %506 = tpu.matmul %505, %504, %cst_172 {dimension_numbers = #tpu.dot_dimension_numbers<[1], [0], [0], [1], [0, 0, 1, 1], [], []>} : vector<32x256xbf16>, vector<256x512xbf16>, vector<32x512xf32> -> vector<32x512xf32>
    %c1_173 = arith.constant 1 : index
    %c0_174 = arith.constant 0 : index
    %c0_175 = arith.constant 0 : index
    %507 = vector.load %arg11[%c1_173, %c0_174, %c0_175] : memref<2x1x512xf32, #tpu.memory_space<vmem>>, vector<1x1x512xf32>
    %508 = vector.shape_cast %507 : vector<1x1x512xf32> to vector<1x512xf32>
    %509 = vector.broadcast %508 : vector<1x512xf32> to vector<32x512xf32>
    %510 = arith.addf %506, %509 : vector<32x512xf32>
    %511 = vector.extract_strided_slice %510 {offsets = [0, 0], sizes = [32, 256], strides = [1, 1]} : vector<32x512xf32> to vector<32x256xf32>
    %512 = vector.extract_strided_slice %510 {offsets = [0, 256], sizes = [32, 256], strides = [1, 1]} : vector<32x512xf32> to vector<32x256xf32>
    %513 = vector.extract_strided_slice %502 {offsets = [0, 0], sizes = [16, 256], strides = [1, 1]} : vector<32x256xf32> to vector<16x256xf32>
    %514 = vector.extract_strided_slice %511 {offsets = [0, 0], sizes = [16, 256], strides = [1, 1]} : vector<32x256xf32> to vector<16x256xf32>
    %515 = vector.extract_strided_slice %512 {offsets = [0, 0], sizes = [16, 256], strides = [1, 1]} : vector<32x256xf32> to vector<16x256xf32>
    %516 = vector.extract_strided_slice %513 {offsets = [0, 0], sizes = [16, 128], strides = [1, 1]} : vector<16x256xf32> to vector<16x128xf32>
    %cst_176 = arith.constant 0.0883883461 : f32
    %517 = vector.broadcast %cst_176 : f32 to vector<16x128xf32>
    %518 = arith.mulf %516, %517 : vector<16x128xf32>
    %519 = arith.truncf %518 : vector<16x128xf32> to vector<16x128xbf16>
    %520 = vector.extract_strided_slice %514 {offsets = [0, 0], sizes = [16, 128], strides = [1, 1]} : vector<16x256xf32> to vector<16x128xf32>
    %521 = arith.truncf %520 : vector<16x128xf32> to vector<16x128xbf16>
    %522 = vector.extract_strided_slice %515 {offsets = [0, 0], sizes = [16, 128], strides = [1, 1]} : vector<16x256xf32> to vector<16x128xf32>
    %523 = arith.truncf %522 : vector<16x128xf32> to vector<16x128xbf16>
    %cst_177 = arith.constant dense<0.000000e+00> : vector<16x16xf32>
    %524 = tpu.matmul %519, %521, %cst_177 {dimension_numbers = #tpu.dot_dimension_numbers<[1], [1], [0], [0], [0, 0, 1, 0], [], []>} : vector<16x128xbf16>, vector<16x128xbf16>, vector<16x16xf32> -> vector<16x16xf32>
    %cst_178 = arith.constant dense<0xFF800000> : vector<16xf32>
    %525 = vector.multi_reduction <maximumf>, %524, %cst_178 [1] : vector<16x16xf32> to vector<16xf32>
    %526 = vector.shape_cast %525 : vector<16xf32> to vector<16x1xf32>
    %527 = vector.broadcast %526 : vector<16x1xf32> to vector<16x16xf32>
    %528 = arith.subf %524, %527 : vector<16x16xf32>
    %529 = math.exp %528 : vector<16x16xf32>
    %cst_179 = arith.constant dense<0.000000e+00> : vector<16xf32>
    %530 = vector.multi_reduction <add>, %529, %cst_179 [1] : vector<16x16xf32> to vector<16xf32>
    %531 = vector.shape_cast %530 : vector<16xf32> to vector<16x1xf32>
    %532 = tpu.reciprocal %531 {approx = true} : vector<16x1xf32> -> vector<16x1xf32>
    %533 = vector.broadcast %532 : vector<16x1xf32> to vector<16x16xf32>
    %534 = arith.mulf %529, %533 : vector<16x16xf32>
    %535 = arith.truncf %534 : vector<16x16xf32> to vector<16x16xbf16>
    %cst_180 = arith.constant dense<0.000000e+00> : vector<16x128xf32>
    %536 = tpu.matmul %535, %523, %cst_180 {dimension_numbers = #tpu.dot_dimension_numbers<[1], [0], [0], [1], [0, 0, 1, 1], [], []>} : vector<16x16xbf16>, vector<16x128xbf16>, vector<16x128xf32> -> vector<16x128xf32>
    %537 = vector.extract_strided_slice %513 {offsets = [0, 128], sizes = [16, 128], strides = [1, 1]} : vector<16x256xf32> to vector<16x128xf32>
    %cst_181 = arith.constant 0.0883883461 : f32
    %538 = vector.broadcast %cst_181 : f32 to vector<16x128xf32>
    %539 = arith.mulf %537, %538 : vector<16x128xf32>
    %540 = arith.truncf %539 : vector<16x128xf32> to vector<16x128xbf16>
    %541 = vector.extract_strided_slice %514 {offsets = [0, 128], sizes = [16, 128], strides = [1, 1]} : vector<16x256xf32> to vector<16x128xf32>
    %542 = arith.truncf %541 : vector<16x128xf32> to vector<16x128xbf16>
    %543 = vector.extract_strided_slice %515 {offsets = [0, 128], sizes = [16, 128], strides = [1, 1]} : vector<16x256xf32> to vector<16x128xf32>
    %544 = arith.truncf %543 : vector<16x128xf32> to vector<16x128xbf16>
    %cst_182 = arith.constant dense<0.000000e+00> : vector<16x16xf32>
    %545 = tpu.matmul %540, %542, %cst_182 {dimension_numbers = #tpu.dot_dimension_numbers<[1], [1], [0], [0], [0, 0, 1, 0], [], []>} : vector<16x128xbf16>, vector<16x128xbf16>, vector<16x16xf32> -> vector<16x16xf32>
    %cst_183 = arith.constant dense<0xFF800000> : vector<16xf32>
    %546 = vector.multi_reduction <maximumf>, %545, %cst_183 [1] : vector<16x16xf32> to vector<16xf32>
    %547 = vector.shape_cast %546 : vector<16xf32> to vector<16x1xf32>
    %548 = vector.broadcast %547 : vector<16x1xf32> to vector<16x16xf32>
    %549 = arith.subf %545, %548 : vector<16x16xf32>
    %550 = math.exp %549 : vector<16x16xf32>
    %cst_184 = arith.constant dense<0.000000e+00> : vector<16xf32>
    %551 = vector.multi_reduction <add>, %550, %cst_184 [1] : vector<16x16xf32> to vector<16xf32>
    %552 = vector.shape_cast %551 : vector<16xf32> to vector<16x1xf32>
    %553 = tpu.reciprocal %552 {approx = true} : vector<16x1xf32> -> vector<16x1xf32>
    %554 = vector.broadcast %553 : vector<16x1xf32> to vector<16x16xf32>
    %555 = arith.mulf %550, %554 : vector<16x16xf32>
    %556 = arith.truncf %555 : vector<16x16xf32> to vector<16x16xbf16>
    %cst_185 = arith.constant dense<0.000000e+00> : vector<16x128xf32>
    %557 = tpu.matmul %556, %544, %cst_185 {dimension_numbers = #tpu.dot_dimension_numbers<[1], [0], [0], [1], [0, 0, 1, 1], [], []>} : vector<16x16xbf16>, vector<16x128xbf16>, vector<16x128xf32> -> vector<16x128xf32>
    %558 = tpu.concatenate %536, %557 in 1 : vector<16x128xf32>, vector<16x128xf32> -> vector<16x256xf32>
    %559 = vector.extract_strided_slice %502 {offsets = [16, 0], sizes = [16, 256], strides = [1, 1]} : vector<32x256xf32> to vector<16x256xf32>
    %560 = vector.extract_strided_slice %511 {offsets = [16, 0], sizes = [16, 256], strides = [1, 1]} : vector<32x256xf32> to vector<16x256xf32>
    %561 = vector.extract_strided_slice %512 {offsets = [16, 0], sizes = [16, 256], strides = [1, 1]} : vector<32x256xf32> to vector<16x256xf32>
    %562 = vector.extract_strided_slice %559 {offsets = [0, 0], sizes = [16, 128], strides = [1, 1]} : vector<16x256xf32> to vector<16x128xf32>
    %cst_186 = arith.constant 0.0883883461 : f32
    %563 = vector.broadcast %cst_186 : f32 to vector<16x128xf32>
    %564 = arith.mulf %562, %563 : vector<16x128xf32>
    %565 = arith.truncf %564 : vector<16x128xf32> to vector<16x128xbf16>
    %566 = vector.extract_strided_slice %560 {offsets = [0, 0], sizes = [16, 128], strides = [1, 1]} : vector<16x256xf32> to vector<16x128xf32>
    %567 = arith.truncf %566 : vector<16x128xf32> to vector<16x128xbf16>
    %568 = vector.extract_strided_slice %561 {offsets = [0, 0], sizes = [16, 128], strides = [1, 1]} : vector<16x256xf32> to vector<16x128xf32>
    %569 = arith.truncf %568 : vector<16x128xf32> to vector<16x128xbf16>
    %cst_187 = arith.constant dense<0.000000e+00> : vector<16x16xf32>
    %570 = tpu.matmul %565, %567, %cst_187 {dimension_numbers = #tpu.dot_dimension_numbers<[1], [1], [0], [0], [0, 0, 1, 0], [], []>} : vector<16x128xbf16>, vector<16x128xbf16>, vector<16x16xf32> -> vector<16x16xf32>
    %cst_188 = arith.constant dense<0xFF800000> : vector<16xf32>
    %571 = vector.multi_reduction <maximumf>, %570, %cst_188 [1] : vector<16x16xf32> to vector<16xf32>
    %572 = vector.shape_cast %571 : vector<16xf32> to vector<16x1xf32>
    %573 = vector.broadcast %572 : vector<16x1xf32> to vector<16x16xf32>
    %574 = arith.subf %570, %573 : vector<16x16xf32>
    %575 = math.exp %574 : vector<16x16xf32>
    %cst_189 = arith.constant dense<0.000000e+00> : vector<16xf32>
    %576 = vector.multi_reduction <add>, %575, %cst_189 [1] : vector<16x16xf32> to vector<16xf32>
    %577 = vector.shape_cast %576 : vector<16xf32> to vector<16x1xf32>
    %578 = tpu.reciprocal %577 {approx = true} : vector<16x1xf32> -> vector<16x1xf32>
    %579 = vector.broadcast %578 : vector<16x1xf32> to vector<16x16xf32>
    %580 = arith.mulf %575, %579 : vector<16x16xf32>
    %581 = arith.truncf %580 : vector<16x16xf32> to vector<16x16xbf16>
    %cst_190 = arith.constant dense<0.000000e+00> : vector<16x128xf32>
    %582 = tpu.matmul %581, %569, %cst_190 {dimension_numbers = #tpu.dot_dimension_numbers<[1], [0], [0], [1], [0, 0, 1, 1], [], []>} : vector<16x16xbf16>, vector<16x128xbf16>, vector<16x128xf32> -> vector<16x128xf32>
    %583 = vector.extract_strided_slice %559 {offsets = [0, 128], sizes = [16, 128], strides = [1, 1]} : vector<16x256xf32> to vector<16x128xf32>
    %cst_191 = arith.constant 0.0883883461 : f32
    %584 = vector.broadcast %cst_191 : f32 to vector<16x128xf32>
    %585 = arith.mulf %583, %584 : vector<16x128xf32>
    %586 = arith.truncf %585 : vector<16x128xf32> to vector<16x128xbf16>
    %587 = vector.extract_strided_slice %560 {offsets = [0, 128], sizes = [16, 128], strides = [1, 1]} : vector<16x256xf32> to vector<16x128xf32>
    %588 = arith.truncf %587 : vector<16x128xf32> to vector<16x128xbf16>
    %589 = vector.extract_strided_slice %561 {offsets = [0, 128], sizes = [16, 128], strides = [1, 1]} : vector<16x256xf32> to vector<16x128xf32>
    %590 = arith.truncf %589 : vector<16x128xf32> to vector<16x128xbf16>
    %cst_192 = arith.constant dense<0.000000e+00> : vector<16x16xf32>
    %591 = tpu.matmul %586, %588, %cst_192 {dimension_numbers = #tpu.dot_dimension_numbers<[1], [1], [0], [0], [0, 0, 1, 0], [], []>} : vector<16x128xbf16>, vector<16x128xbf16>, vector<16x16xf32> -> vector<16x16xf32>
    %cst_193 = arith.constant dense<0xFF800000> : vector<16xf32>
    %592 = vector.multi_reduction <maximumf>, %591, %cst_193 [1] : vector<16x16xf32> to vector<16xf32>
    %593 = vector.shape_cast %592 : vector<16xf32> to vector<16x1xf32>
    %594 = vector.broadcast %593 : vector<16x1xf32> to vector<16x16xf32>
    %595 = arith.subf %591, %594 : vector<16x16xf32>
    %596 = math.exp %595 : vector<16x16xf32>
    %cst_194 = arith.constant dense<0.000000e+00> : vector<16xf32>
    %597 = vector.multi_reduction <add>, %596, %cst_194 [1] : vector<16x16xf32> to vector<16xf32>
    %598 = vector.shape_cast %597 : vector<16xf32> to vector<16x1xf32>
    %599 = tpu.reciprocal %598 {approx = true} : vector<16x1xf32> -> vector<16x1xf32>
    %600 = vector.broadcast %599 : vector<16x1xf32> to vector<16x16xf32>
    %601 = arith.mulf %596, %600 : vector<16x16xf32>
    %602 = arith.truncf %601 : vector<16x16xf32> to vector<16x16xbf16>
    %cst_195 = arith.constant dense<0.000000e+00> : vector<16x128xf32>
    %603 = tpu.matmul %602, %590, %cst_195 {dimension_numbers = #tpu.dot_dimension_numbers<[1], [0], [0], [1], [0, 0, 1, 1], [], []>} : vector<16x16xbf16>, vector<16x128xbf16>, vector<16x128xf32> -> vector<16x128xf32>
    %604 = tpu.concatenate %582, %603 in 1 : vector<16x128xf32>, vector<16x128xf32> -> vector<16x256xf32>
    %605 = tpu.concatenate %558, %604 in 0 : vector<16x256xf32>, vector<16x256xf32> -> vector<32x256xf32>
    %c1_196 = arith.constant 1 : index
    %c0_197 = arith.constant 0 : index
    %c0_198 = arith.constant 0 : index
    %606 = vector.load %arg12[%c1_196, %c0_197, %c0_198] : memref<2x256x256xbf16, #tpu.memory_space<vmem>>, vector<1x256x256xbf16>
    %607 = vector.shape_cast %606 : vector<1x256x256xbf16> to vector<256x256xbf16>
    %608 = arith.truncf %605 : vector<32x256xf32> to vector<32x256xbf16>
    %cst_199 = arith.constant dense<0.000000e+00> : vector<32x256xf32>
    %609 = tpu.matmul %608, %607, %cst_199 {dimension_numbers = #tpu.dot_dimension_numbers<[1], [0], [0], [1], [0, 0, 1, 1], [], []>} : vector<32x256xbf16>, vector<256x256xbf16>, vector<32x256xf32> -> vector<32x256xf32>
    %610 = arith.addf %470, %609 : vector<32x256xf32>
    %c1_200 = arith.constant 1 : index
    %c0_201 = arith.constant 0 : index
    %c0_202 = arith.constant 0 : index
    %611 = vector.load %arg13[%c1_200, %c0_201, %c0_202] : memref<2x1x256xf32, #tpu.memory_space<vmem>>, vector<1x1x256xf32>
    %612 = vector.shape_cast %611 : vector<1x1x256xf32> to vector<1x256xf32>
    %613 = vector.broadcast %612 : vector<1x256xf32> to vector<32x256xf32>
    %614 = arith.addf %610, %613 : vector<32x256xf32>
    %615 = vector.extract_strided_slice %331 {offsets = [2, 0], sizes = [1, 256], strides = [1, 1]} : vector<3x256xf32> to vector<1x256xf32>
    %616 = vector.extract_strided_slice %333 {offsets = [2, 0], sizes = [1, 256], strides = [1, 1]} : vector<3x256xf32> to vector<1x256xf32>
    %cst_203 = arith.constant dense<0.000000e+00> : vector<32xf32>
    %617 = vector.multi_reduction <add>, %614, %cst_203 [1] : vector<32x256xf32> to vector<32xf32>
    %618 = vector.shape_cast %617 : vector<32xf32> to vector<32x1xf32>
    %cst_204 = arith.constant 2.560000e+02 : f32
    %619 = vector.broadcast %cst_204 : f32 to vector<32x1xf32>
    %620 = arith.divf %618, %619 : vector<32x1xf32>
    %621 = vector.broadcast %620 : vector<32x1xf32> to vector<32x256xf32>
    %622 = arith.subf %614, %621 : vector<32x256xf32>
    %623 = arith.mulf %622, %622 : vector<32x256xf32>
    %cst_205 = arith.constant dense<0.000000e+00> : vector<32xf32>
    %624 = vector.multi_reduction <add>, %623, %cst_205 [1] : vector<32x256xf32> to vector<32xf32>
    %625 = vector.shape_cast %624 : vector<32xf32> to vector<32x1xf32>
    %cst_206 = arith.constant 2.560000e+02 : f32
    %626 = vector.broadcast %cst_206 : f32 to vector<32x1xf32>
    %627 = arith.divf %625, %626 : vector<32x1xf32>
    %628 = vector.broadcast %620 : vector<32x1xf32> to vector<32x256xf32>
    %629 = arith.subf %614, %628 : vector<32x256xf32>
    %cst_207 = arith.constant 9.99999974E-6 : f32
    %630 = vector.broadcast %cst_207 : f32 to vector<32x1xf32>
    %631 = arith.addf %627, %630 : vector<32x1xf32>
    %632 = math.rsqrt %631 : vector<32x1xf32>
    %633 = vector.broadcast %632 : vector<32x1xf32> to vector<32x256xf32>
    %634 = arith.mulf %629, %633 : vector<32x256xf32>
    %635 = vector.broadcast %615 : vector<1x256xf32> to vector<32x256xf32>
    %636 = arith.mulf %634, %635 : vector<32x256xf32>
    %637 = vector.broadcast %616 : vector<1x256xf32> to vector<32x256xf32>
    %638 = arith.addf %636, %637 : vector<32x256xf32>
    %c1_208 = arith.constant 1 : index
    %c0_209 = arith.constant 0 : index
    %c0_210 = arith.constant 0 : index
    %639 = vector.load %arg14[%c1_208, %c0_209, %c0_210] : memref<2x256x256xbf16, #tpu.memory_space<vmem>>, vector<1x256x256xbf16>
    %640 = vector.shape_cast %639 : vector<1x256x256xbf16> to vector<256x256xbf16>
    %641 = arith.truncf %638 : vector<32x256xf32> to vector<32x256xbf16>
    %cst_211 = arith.constant dense<0.000000e+00> : vector<32x256xf32>
    %642 = tpu.matmul %641, %640, %cst_211 {dimension_numbers = #tpu.dot_dimension_numbers<[1], [0], [0], [1], [0, 0, 1, 1], [], []>} : vector<32x256xbf16>, vector<256x256xbf16>, vector<32x256xf32> -> vector<32x256xf32>
    %c1_212 = arith.constant 1 : index
    %c0_213 = arith.constant 0 : index
    %c0_214 = arith.constant 0 : index
    %643 = vector.load %arg15[%c1_212, %c0_213, %c0_214] : memref<2x1x256xf32, #tpu.memory_space<vmem>>, vector<1x1x256xf32>
    %644 = vector.shape_cast %643 : vector<1x1x256xf32> to vector<1x256xf32>
    %645 = vector.broadcast %644 : vector<1x256xf32> to vector<32x256xf32>
    %646 = arith.addf %642, %645 : vector<32x256xf32>
    %cst_215 = arith.constant 0.000000e+00 : f32
    %647 = vector.broadcast %cst_215 : f32 to vector<32x256xf32>
    %648 = arith.maximumf %646, %647 : vector<32x256xf32>
    %c1_216 = arith.constant 1 : index
    %c0_217 = arith.constant 0 : index
    %c0_218 = arith.constant 0 : index
    %649 = vector.load %arg16[%c1_216, %c0_217, %c0_218] : memref<2x256x256xbf16, #tpu.memory_space<vmem>>, vector<1x256x256xbf16>
    %650 = vector.shape_cast %649 : vector<1x256x256xbf16> to vector<256x256xbf16>
    %651 = arith.truncf %648 : vector<32x256xf32> to vector<32x256xbf16>
    %cst_219 = arith.constant dense<0.000000e+00> : vector<32x256xf32>
    %652 = tpu.matmul %651, %650, %cst_219 {dimension_numbers = #tpu.dot_dimension_numbers<[1], [0], [0], [1], [0, 0, 1, 1], [], []>} : vector<32x256xbf16>, vector<256x256xbf16>, vector<32x256xf32> -> vector<32x256xf32>
    %653 = arith.addf %614, %652 : vector<32x256xf32>
    %c1_220 = arith.constant 1 : index
    %c0_221 = arith.constant 0 : index
    %c0_222 = arith.constant 0 : index
    %654 = vector.load %arg17[%c1_220, %c0_221, %c0_222] : memref<2x1x256xf32, #tpu.memory_space<vmem>>, vector<1x1x256xf32>
    %655 = vector.shape_cast %654 : vector<1x1x256xf32> to vector<1x256xf32>
    %656 = vector.broadcast %655 : vector<1x256xf32> to vector<32x256xf32>
    %657 = arith.addf %653, %656 : vector<32x256xf32>
    %658 = vector.extract_strided_slice %657 {offsets = [0, 0], sizes = [8, 256], strides = [1, 1]} : vector<32x256xf32> to vector<8x256xf32>
    %c0_223 = arith.constant 0 : index
    %c0_224 = arith.constant 0 : index
    %c0_225 = arith.constant 0 : index
    %659 = vector.load %arg18[%c0_223, %c0_224, %c0_225] : memref<2x8x256xf32, #tpu.memory_space<vmem>>, vector<1x8x256xf32>
    %660 = vector.shape_cast %659 : vector<1x8x256xf32> to vector<8x256xf32>
    %661 = vector.shape_cast %658 : vector<8x256xf32> to vector<1x8x256xf32>
    tpu.vector_store %arg18[%c0_223, %c0_224, %c0_225], %661 {strides = array<i32>} : memref<2x8x256xf32, #tpu.memory_space<vmem>>, vector<1x8x256xf32>,
    %662 = vector.extract_strided_slice %657 {offsets = [16, 0], sizes = [8, 256], strides = [1, 1]} : vector<32x256xf32> to vector<8x256xf32>
    %c1_226 = arith.constant 1 : index
    %c0_227 = arith.constant 0 : index
    %c0_228 = arith.constant 0 : index
    %663 = vector.load %arg18[%c1_226, %c0_227, %c0_228] : memref<2x8x256xf32, #tpu.memory_space<vmem>>, vector<1x8x256xf32>
    %664 = vector.shape_cast %663 : vector<1x8x256xf32> to vector<8x256xf32>
    %665 = vector.shape_cast %662 : vector<8x256xf32> to vector<1x8x256xf32>
    tpu.vector_store %arg18[%c1_226, %c0_227, %c0_228], %665 {strides = array<i32>} : memref<2x8x256xf32, #tpu.memory_space<vmem>>, vector<1x8x256xf32>,
    return
  }
}

</mosaic_0001>

<bundles_post_ra>
// kernel: tpu_custom_call.1
= control target key start
LH: loop header
LB: loop body
LE: loop exit
PB: predicated region body
PF: predicated region fallthrough
CT: control target
= control target key end

     0   :  { %s11972_s0 = inlined_call_operand.hbm [shape: f32[32,256], index: 0, kind: input, shape index: {}]   ;;  %s11973_s1 = inlined_call_operand.hbm [shape: f32[32,256], index: 1, kind: input, shape index: {}]   ;;  %s11974_s2 = inlined_call_operand.vmem [shape: f32[2,3,256], index: 2, kind: input, shape index: {}]   ;;  %s11975_s3 = inlined_call_operand.vmem [shape: f32[2,3,256], index: 3, kind: input, shape index: {}]   ;;  %s11976_s4 = inlined_call_operand.hbm [shape: bf16[2,256,768], index: 4, kind: input, shape index: {}]   ;;  %s11977_s5 = inlined_call_operand.vmem [shape: f32[2,1,768], index: 5, kind: input, shape index: {}]   ;;  %s11978_s6 = inlined_call_operand.hbm [shape: bf16[2,256,256], index: 6, kind: input, shape index: {}]   ;;  %s11979_s7 = inlined_call_operand.vmem [shape: f32[2,1,256], index: 7, kind: input, shape index: {}]   ;;  %s11980_s8 = inlined_call_operand.hbm [shape: bf16[2,256,256], index: 8, kind: input, shape index: {}]   ;;  %s11981_s9 = inlined_call_operand.vmem [shape: f32[2,1,256], index: 9, kind: input, shape index: {}]   ;;  %s11982_s10 = inlined_call_operand.hbm [shape: bf16[2,256,512], index: 10, kind: input, shape index: {}]   ;;  %s11983_s11 = inlined_call_operand.vmem [shape: f32[2,1,512], index: 11, kind: input, shape index: {}]   ;;  %s11984_s12 = inlined_call_operand.hbm [shape: bf16[2,256,256], index: 12, kind: input, shape index: {}]   ;;  %s11985_s13 = inlined_call_operand.vmem [shape: f32[2,1,256], index: 13, kind: input, shape index: {}]   ;;  %s11986_s14 = inlined_call_operand.hbm [shape: bf16[2,256,256], index: 14, kind: input, shape index: {}]   ;;  %s11987_s15 = inlined_call_operand.vmem [shape: f32[2,1,256], index: 15, kind: input, shape index: {}]   ;;  %s11988_s16 = inlined_call_operand.hbm [shape: bf16[2,256,256], index: 16, kind: input, shape index: {}]   ;;  %s11989_s17 = inlined_call_operand.vmem [shape: f32[2,1,256], index: 17, kind: input, shape index: {}]   ;;  %s11990_s18 = inlined_call_operand.hbm [shape: f32[2,8,256], index: 18, kind: output, shape index: {}]  }
   0x1   :  { %12000 = sst [smem:[#allocation24_spill]] %s11972_s0 }
   0x2   :  { %12001 = sst [smem:[#allocation25_spill]] %s11973_s1 }
   0x3   :  { %12002 = sst [smem:[#allocation26_spill]] %s11974_s2 }
   0x4   :  { %12003 = sst [smem:[#allocation27_spill]] %s11989_s17 }
   0x5   :  { %12004 = sst [smem:[#allocation28_spill]] %s11990_s18 }
   0x6   :  { %23 = vsyncpa [#allocation3], 0 }
   0x7   :  { %24 = vsyncpa [#allocation6], 0 }
   0x8   :  { %25 = vsyncpa [#allocation9], 0 }
   0x9   :  { %26 = vsyncpa [#allocation12], 0 }
   0xa   :  { %27 = vsyncpa [#allocation15], 0 }
   0xb   :  { %28 = vsyncpa [#allocation4], 0  ;;  %s10360_s27 = smov [#allocation5]   ;;  %s10361_s29 = smov [#allocation8]  }
   0xc   :  { %s46_s28 = sshll.u32 %s10360_s27, 4  ;;  %s76_s30 = sshll.u32 %s10361_s29, 4  ;;  %s47_s28 = int_to_ptr.vmem [resolvable:$true] %s46_s28  ;;  %s10473_s30 = int_to_ptr.vmem [resolvable:$true] %s76_s30 }
   0xd   :  { %s12005_s1 = sld [smem:[#allocation25_spill]] }
  0x13   :  { %s10128_s20 = scalar_lea.hbm %s12005_s1, 1024 }
  0x14   :  { %p10129_p0 = scmp.ne.s32.totalorder %s12005_s1, %s10128_s20  ;;  %p10132_p1 = scmp.lt.u32.totalorder %s10128_s20, %s12005_s1 }
  0x16   :  { %p10134_p2 = pnand %p10132_p1, %p10129_p0 }
  0x18   :  { %10137 = shalt.err (!%p10134_p2)
}
  0x19   :  { %s10138_s24 = scalar_lea.vmem %s47_s28, 1024  ;;  %p10143_p4 = scmp.lt.s32.totalorder %s47_s28, %s47_s28 }
  0x1a   :  { %p10139_p3 = scmp.ne.s32.totalorder %s47_s28, %s10138_s24  ;;  %p10144_p5 = scmp.lt.s32.totalorder %s10138_s24, %s10138_s24 }
  0x1c   :  { %p10145_p6 = por %p10144_p5, %p10143_p4 }
  0x1e   :  { %p10146_p7 = pnand %p10145_p6, %p10139_p3 }
  0x20   :  { %10149 = shalt.err (!%p10146_p7)
}
  0x21   :  { %s11994_s25 = smov 256   ;;  %s11996_s26 = smov 16  }
  0x22   :  { %52 = dma.hbm_to_vmem [thread:$0]  %s12005_s1, 1024, %s47_s28, [#allocation6], %s11994_s25, %s11994_s25, %s11996_s26  }
  0x23   :  { %s10150_s20 = scalar_lea.hbm %s11978_s6, 8192 }
  0x24   :  { %p10151_p8 = scmp.ne.s32.totalorder %s11978_s6, %s10150_s20  ;;  %p10154_p9 = scmp.lt.u32.totalorder %s10150_s20, %s11978_s6 }
  0x26   :  { %p10156_p10 = pnand %p10154_p9, %p10151_p8 }
  0x28   :  { %10159 = shalt.err (!%p10156_p10)
}
  0x29   :  { %s10160_s24 = scalar_lea.vmem %s10473_s30, 8192  ;;  %p10165_p12 = scmp.lt.s32.totalorder %s10473_s30, %s10473_s30 }
  0x2a   :  { %p10161_p11 = scmp.ne.s32.totalorder %s10473_s30, %s10160_s24  ;;  %p10166_p13 = scmp.lt.s32.totalorder %s10160_s24, %s10160_s24 }
  0x2c   :  { %p10167_p0 = por %p10166_p13, %p10165_p12 }
  0x2e   :  { %p10168_p1 = pnand %p10167_p0, %p10161_p11 }
  0x30   :  { %10171 = shalt.err (!%p10168_p1)
}
  0x31   :  { %s10364_s28 = smov 128   ;;  %s10365_s1 = smov 8  }
  0x32   :  { %82 = dma.hbm_to_vmem [thread:$0]  %s11978_s6, 8192, %s10473_s30, [#allocation9], %s10364_s28, %s10364_s28, %s10365_s1  }
  0x33   :  { %s10366_s0 = smov [#allocation11]   ;;  %s10367_s20 = smov [#allocation14]  }
  0x34   :  { %s104_s19 = sshll.u32 %s10366_s0, 4  ;;  %s132_s21 = sshll.u32 %s10367_s20, 4  ;;  %s105_s19 = int_to_ptr.vmem [resolvable:$true] %s104_s19  ;;  %s10510_s21 = int_to_ptr.vmem [resolvable:$true] %s132_s21 }
  0x35   :  { %s10172_s23 = scalar_lea.hbm %s11982_s10, 16384 }
  0x36   :  { %p10173_p2 = scmp.ne.s32.totalorder %s11982_s10, %s10172_s23  ;;  %p10176_p3 = scmp.lt.u32.totalorder %s10172_s23, %s11982_s10 }
  0x38   :  { %p10178_p4 = pnand %p10176_p3, %p10173_p2 }
  0x3a   :  { %10181 = shalt.err (!%p10178_p4)
}
  0x3b   :  { %s10182_s6 = scalar_lea.vmem %s105_s19, 16384  ;;  %p10187_p6 = scmp.lt.s32.totalorder %s105_s19, %s105_s19 }
  0x3c   :  { %p10183_p5 = scmp.ne.s32.totalorder %s105_s19, %s10182_s6  ;;  %p10188_p7 = scmp.lt.s32.totalorder %s10182_s6, %s10182_s6 }
  0x3e   :  { %p10189_p8 = por %p10188_p7, %p10187_p6 }
  0x40   :  { %p10190_p9 = pnand %p10189_p8, %p10183_p5 }
  0x42   :  { %10193 = shalt.err (!%p10190_p9)
}
  0x43   :  { %s12006_s30 = smov 16   ;;  %s12007_s27 = smov 256  }
  0x44   :  { %110 = dma.hbm_to_vmem [thread:$0]  %s11982_s10, 16384, %s105_s19, [#allocation12], %s12007_s27, %s12007_s27, %s12006_s30  }
  0x45   :  { %s10194_s18 = scalar_lea.hbm %s11986_s14, 8192 }
  0x46   :  { %p10195_p10 = scmp.ne.s32.totalorder %s11986_s14, %s10194_s18  ;;  %p10198_p11 = scmp.lt.u32.totalorder %s10194_s18, %s11986_s14 }
  0x48   :  { %p10200_p12 = pnand %p10198_p11, %p10195_p10 }
  0x4a   :  { %10203 = shalt.err (!%p10200_p12)
}
  0x4b   :  { %s10204_s24 = scalar_lea.vmem %s10510_s21, 8192  ;;  %p10209_p0 = scmp.lt.s32.totalorder %s10510_s21, %s10510_s21 }
  0x4c   :  { %p10205_p13 = scmp.ne.s32.totalorder %s10510_s21, %s10204_s24  ;;  %p10210_p1 = scmp.lt.s32.totalorder %s10204_s24, %s10204_s24 }
  0x4e   :  { %p10211_p2 = por %p10210_p1, %p10209_p0 }
  0x50   :  { %p10212_p3 = pnand %p10211_p2, %p10205_p13 }
  0x52   :  { %10215 = shalt.err (!%p10212_p3)
}
  0x53   :  { %138 = dma.hbm_to_vmem [thread:$0]  %s11986_s14, 8192, %s10510_s21, [#allocation15], %s10364_s28, %s10364_s28, %s10365_s1  }
  0x54   :  { %s10368_s6 = smov [#allocation2]   ;;  %s10369_s0 = smov [#allocation7]  }
  0x55   :  { %s34_s29 = sshll.u32 %s10368_s6, 4  ;;  %s62_s25 = sshll.u32 %s10369_s0, 4  ;;  %s35_s29 = int_to_ptr.vmem [resolvable:$true] %s34_s29  ;;  %s10547_s25 = int_to_ptr.vmem [resolvable:$true] %s62_s25 }
  0x56   :  { %s12008_s26 = sld [smem:[#allocation24_spill]] }
  0x5c   :  { %s10216_s22 = scalar_lea.hbm %s12008_s26, 1024 }
  0x5d   :  { %p10217_p4 = scmp.ne.s32.totalorder %s12008_s26, %s10216_s22  ;;  %p10220_p5 = scmp.lt.u32.totalorder %s10216_s22, %s12008_s26 }
  0x5f   :  { %p10222_p6 = pnand %p10220_p5, %p10217_p4 }
  0x61   :  { %10225 = shalt.err (!%p10222_p6)
}
  0x62   :  { %s10226_s14 = scalar_lea.vmem %s35_s29, 1024  ;;  %p10231_p8 = scmp.lt.s32.totalorder %s35_s29, %s35_s29 }
  0x63   :  { %p10227_p7 = scmp.ne.s32.totalorder %s35_s29, %s10226_s14  ;;  %p10232_p9 = scmp.lt.s32.totalorder %s10226_s14, %s10226_s14 }
  0x65   :  { %p10233_p10 = por %p10232_p9, %p10231_p8 }
  0x67   :  { %p10234_p11 = pnand %p10233_p10, %p10227_p7 }
  0x69   :  { %10237 = shalt.err (!%p10234_p11)
}
  0x6a   :  { %40 = dma.hbm_to_vmem [thread:$0]  %s12008_s26, 1024, %s35_s29, [#allocation3], %s12007_s27, %s12007_s27, %s12006_s30  }
  0x6b   :  { %s10238_s17 = scalar_lea.hbm %s11976_s4, 24576 }
  0x6c   :  { %p10239_p12 = scmp.ne.s32.totalorder %s11976_s4, %s10238_s17  ;;  %p10242_p13 = scmp.lt.u32.totalorder %s10238_s17, %s11976_s4 }
  0x6e   :  { %p10244_p0 = pnand %p10242_p13, %p10239_p12 }
  0x70   :  { %10247 = shalt.err (!%p10244_p0)
}
  0x71   :  { %s10248_s2 = scalar_lea.vmem %s10547_s25, 24576  ;;  %p10253_p2 = scmp.lt.s32.totalorder %s10547_s25, %s10547_s25 }
  0x72   :  { %p10249_p1 = scmp.ne.s32.totalorder %s10547_s25, %s10248_s2  ;;  %p10254_p3 = scmp.lt.s32.totalorder %s10248_s2, %s10248_s2 }
  0x74   :  { %p10255_p4 = por %p10254_p3, %p10253_p2 }
  0x76   :  { %p10256_p5 = pnand %p10255_p4, %p10249_p1 }
  0x78   :  { %10259 = shalt.err (!%p10256_p5)
}
  0x79   :  { %s10370_s29 = smov 384   ;;  %s10371_s26 = smov 24  }
  0x7a   :  { %68 = dma.hbm_to_vmem [thread:$0]  %s11976_s4, 24576, %s10547_s25, [#allocation6], %s10370_s29, %s10370_s29, %s10371_s26  }
  0x7b   :  { %s10372_s14 = smov [#allocation10]   ;;  %s10373_s10 = smov [#allocation13]  }
  0x7c   :  { %s90_s21 = sshll.u32 %s10372_s14, 4  ;;  %s118_s19 = sshll.u32 %s10373_s10, 4  ;;  %s91_s21 = int_to_ptr.vmem [resolvable:$true] %s90_s21  ;;  %s10581_s19 = int_to_ptr.vmem [resolvable:$true] %s118_s19 }
  0x7d   :  { %s10260_s0 = scalar_lea.hbm %s11980_s8, 8192 }
  0x7e   :  { %p10261_p6 = scmp.ne.s32.totalorder %s11980_s8, %s10260_s0  ;;  %p10264_p7 = scmp.lt.u32.totalorder %s10260_s0, %s11980_s8 }
  0x80   :  { %p10266_p8 = pnand %p10264_p7, %p10261_p6 }
  0x82   :  { %10269 = shalt.err (!%p10266_p8)
}
  0x83   :  { %s10270_s4 = scalar_lea.vmem %s91_s21, 8192  ;;  %p10275_p10 = scmp.lt.s32.totalorder %s91_s21, %s91_s21 }
  0x84   :  { %p10271_p9 = scmp.ne.s32.totalorder %s91_s21, %s10270_s4  ;;  %p10276_p11 = scmp.lt.s32.totalorder %s10270_s4, %s10270_s4 }
  0x86   :  { %p10277_p12 = por %p10276_p11, %p10275_p10 }
  0x88   :  { %p10278_p13 = pnand %p10277_p12, %p10271_p9 }
  0x8a   :  { %10281 = shalt.err (!%p10278_p13)
}
  0x8b   :  { %96 = dma.hbm_to_vmem [thread:$0]  %s11980_s8, 8192, %s91_s21, [#allocation9], %s10364_s28, %s10364_s28, %s10365_s1  }
  0x8c   :  { %s10282_s24 = scalar_lea.hbm %s11984_s12, 8192 }
  0x8d   :  { %p10283_p0 = scmp.ne.s32.totalorder %s11984_s12, %s10282_s24  ;;  %p10286_p1 = scmp.lt.u32.totalorder %s10282_s24, %s11984_s12 }
  0x8f   :  { %p10288_p2 = pnand %p10286_p1, %p10283_p0 }
  0x91   :  { %10291 = shalt.err (!%p10288_p2)
}
  0x92   :  { %s10292_s0 = scalar_lea.vmem %s10581_s19, 8192  ;;  %p10297_p4 = scmp.lt.s32.totalorder %s10581_s19, %s10581_s19 }
  0x93   :  { %p10293_p3 = scmp.ne.s32.totalorder %s10581_s19, %s10292_s0  ;;  %p10298_p5 = scmp.lt.s32.totalorder %s10292_s0, %s10292_s0 }
  0x95   :  { %p10299_p6 = por %p10298_p5, %p10297_p4 }
  0x97   :  { %p10300_p7 = pnand %p10299_p6, %p10293_p3 }
  0x99   :  { %10303 = shalt.err (!%p10300_p7)
}
  0x9a   :  { %124 = dma.hbm_to_vmem [thread:$0]  %s11984_s12, 8192, %s10581_s19, [#allocation12], %s10364_s28, %s10364_s28, %s10365_s1  }
  0x9b   :  { %s10374_s20 = smov [#allocation16]   ;;  %s10304_s4 = scalar_lea.hbm %s11988_s16, 8192 }
  0x9c   :  { %s146_s18 = sshll.u32 %s10374_s20, 4  ;;  %p10305_p8 = scmp.ne.s32.totalorder %s11988_s16, %s10304_s4  ;;  %s147_s18 = int_to_ptr.vmem [resolvable:$true] %s146_s18 }
  0x9d   :  { %p10308_p9 = scmp.lt.u32.totalorder %s10304_s4, %s11988_s16 }
  0x9f   :  { %p10310_p10 = pnand %p10308_p9, %p10305_p8 }
  0xa1   :  { %10313 = shalt.err (!%p10310_p10)
}
  0xa2   :  { %s10314_s24 = scalar_lea.vmem %s147_s18, 8192  ;;  %p10319_p12 = scmp.lt.s32.totalorder %s147_s18, %s147_s18 }
  0xa3   :  { %p10315_p11 = scmp.ne.s32.totalorder %s147_s18, %s10314_s24  ;;  %p10320_p13 = scmp.lt.s32.totalorder %s10314_s24, %s10314_s24 }
  0xa5   :  { %p10321_p0 = por %p10320_p13, %p10319_p12 }
  0xa7   :  { %p10322_p1 = pnand %p10321_p0, %p10315_p11 }
  0xa9   :  { %10325 = shalt.err (!%p10322_p1)
}
  0xaa   :  { %152 = dma.hbm_to_vmem [thread:$0]  %s11988_s16, 8192, %s147_s18, [#allocation15], %s10364_s28, %s10364_s28, %s10365_s1  }
  0xab   :  { %10348 = dma.done.wait [#allocation3], 1024  }
  0xac   :  { %10349 = vsyncadd [#allocation3], 4294966272 }
  0xad   :  { %10350 = dma.done.wait [#allocation6], 25600  }
  0xae   :  { %10351 = vsyncadd [#allocation6], 4294941696 }
  0xaf   :  { %10352 = dma.done.wait [#allocation9], 16384  }
  0xb0   :  { %10353 = vsyncadd [#allocation9], 4294950912 }
  0xb1   :  { %10354 = dma.done.wait [#allocation12], 24576  }
  0xb2   :  { %10355 = vsyncadd [#allocation12], 4294942720 }
  0xb3   :  { %10356 = dma.done.wait [#allocation15], 16384  }
  0xb4   :  { %10357 = vsyncadd [#allocation15], 4294950912  ;;  %v10633_v0 = vld [vmem:[#allocation2] sm:$0xff]  ;;  %v10635_v1 = vld [vmem:[#allocation2 + $0x8] sm:$0xff]  ;;  %s12009_s1 = sld [smem:[#allocation26_spill]]  ;;  %vm10376_vm0 = vmmov 0  }
  0xb5   :  { %v10637_v2 = vld [vmem:[#allocation2 + $0x10] sm:$0xff]  ;;  %v201_v3 = vadd.f32 %v10635_v1, %v10633_v0  ;;  %v10641_v4 = vld [vmem:[#allocation2 + $0x18] sm:$0xff]  ;;  %v187_v5 = vld [vmem:[#allocation2 + $0x20] sm:$0xff]  ;;  %vm1137_vm1 = vcmask 130048   ;;  %s12010_s17 = sld [smem:[#allocation27_spill]]  ;;  %s10377_s10 = smov [#allocation17]  }
  0xb6   :  { %v188_v6 = vld [vmem:[#allocation2 + $0x28] sm:$0xff]  ;;  %v204_v7 = vadd.f32 %v10641_v4, %v10637_v2  ;;  %v8974_v9 = vld [vmem:[#allocation7 + $0x4] ss:$24 sps:$4 sm:$0xff]   ;;  %v8978_v11 = vld [vmem:[#allocation7] ss:$24 sps:$4 sm:$0xff]   ;;  %s8019_s6 = sshll.u32 %s10377_s10, 4  ;;  %s8020_s6 = int_to_ptr.vmem [resolvable:$true] %s8019_s6 }
  0xb7   :  { %202 = vadd.xlane.f32.xlu0 %v201_v3  ;;  %v207_v8 = vadd.f32 %v188_v6, %v187_v5  ;;  %v8976_v10 = vld [vmem:[#allocation7 + $0xc] ss:$24 sps:$4 sm:$0xff]   ;;  %v8979_v12 = vld [vmem:[#allocation7 + $0x8] ss:$24 sps:$4 sm:$0xff]   ;;  %v8982_v14 = vld [vmem:[#allocation7 + $0x3c] ss:$24 sps:$4 sm:$0xff]   ;;  %932 = vmatprep.subr.bf16.mxu0 %v8974_v9  ;;  %p10331_p3 = scmp.lt.s32.totalorder %s8020_s6, %s8020_s6 }
  0xb8   :  { %v8980_v13 = vld [vmem:[#allocation7 + $0x34] ss:$24 sps:$4 sm:$0xff]   ;;  %985 = vmatprep.subr.bf16.mxu1 %v8976_v10  ;;  %933 = vmatpush1.bf16.msra.mxu0 %v8978_v11  ;;  %v8984_v15 = vld [vmem:[#allocation7 + $0x30] ss:$24 sps:$4 sm:$0xff]   ;;  %v8986_v17 = vld [vmem:[#allocation7 + $0x64] ss:$24 sps:$4 sm:$0xff]  }
  0xb9   :  { %986 = vmatpush1.bf16.msra.mxu1 %v8979_v12  ;;  %v8985_v16 = vld [vmem:[#allocation7 + $0x38] ss:$24 sps:$4 sm:$0xff]   ;;  %934 = vmatprep.subr.bf16.mxu0 %v8980_v13  ;;  %v8988_v18 = vld [vmem:[#allocation7 + $0x6c] ss:$24 sps:$4 sm:$0xff]   ;;  %v8991_v20 = vld [vmem:[#allocation7 + $0x68] ss:$24 sps:$4 sm:$0xff]  }
  0xba   :  { %987 = vmatprep.subr.bf16.mxu1 %v8982_v14  ;;  %v8990_v19 = vld [vmem:[#allocation7 + $0x60] ss:$24 sps:$4 sm:$0xff]   ;;  %v8992_v21 = vld [vmem:[#allocation7 + $0x94] ss:$24 sps:$4 sm:$0xff]   ;;  %v8996_v23 = vld [vmem:[#allocation7 + $0x90] ss:$24 sps:$4 sm:$0xff]  }
  0xbb   :  { %205 = vadd.xlane.f32.xlu0 %v204_v7  ;;  %v8994_v22 = vld [vmem:[#allocation7 + $0x9c] ss:$24 sps:$4 sm:$0xff]   ;;  %v8997_v24 = vld [vmem:[#allocation7 + $0x98] ss:$24 sps:$4 sm:$0xff]   ;;  %v9000_v26 = vld [vmem:[#allocation7 + $0xcc] ss:$24 sps:$4 sm:$0xff]  }
  0xbc   :  { %935 = vmatpush1.bf16.msra.mxu0 %v8984_v15  ;;  %v8998_v25 = vld [vmem:[#allocation7 + $0xc4] ss:$24 sps:$4 sm:$0xff]   ;;  %v9002_v27 = vld [vmem:[#allocation7 + $0xc0] ss:$24 sps:$4 sm:$0xff]   ;;  %v9004_v29 = vld [vmem:[#allocation7 + $0xf4] ss:$24 sps:$4 sm:$0xff]  }
  0xbd   :  { %988 = vmatpush1.bf16.msra.mxu1 %v8985_v16  ;;  %936 = vmatprep.subr.bf16.mxu0 %v8986_v17  ;;  %v9003_v28 = vld [vmem:[#allocation7 + $0xc8] ss:$24 sps:$4 sm:$0xff]   ;;  %v9006_v30 = vld [vmem:[#allocation7 + $0xfc] ss:$24 sps:$4 sm:$0xff]   ;;  %v9009_v32 = vld [vmem:[#allocation7 + $0xf8] ss:$24 sps:$4 sm:$0xff]  }
  0xbe   :  { %989 = vmatprep.subr.bf16.mxu1 %v8988_v18  ;;  %v9008_v31 = vld [vmem:[#allocation7 + $0xf0] ss:$24 sps:$4 sm:$0xff]   ;;  %v9010_v33 = vld [vmem:[#allocation7 + $0x124] ss:$24 sps:$4 sm:$0xff]   ;;  %v9014_v35 = vld [vmem:[#allocation7 + $0x120] ss:$24 sps:$4 sm:$0xff]  }
  0xbf   :  { %208 = vadd.xlane.f32.xlu0 %v207_v8  ;;  %v9012_v34 = vld [vmem:[#allocation7 + $0x12c] ss:$24 sps:$4 sm:$0xff]   ;;  %v9015_v36 = vld [vmem:[#allocation7 + $0x128] ss:$24 sps:$4 sm:$0xff]   ;;  %v9018_v38 = vld [vmem:[#allocation7 + $0x15c] ss:$24 sps:$4 sm:$0xff]  }
  0xc0   :  { %937 = vmatpush1.bf16.msra.mxu0 %v8990_v19  ;;  %v9016_v37 = vld [vmem:[#allocation7 + $0x154] ss:$24 sps:$4 sm:$0xff]   ;;  %v9020_v39 = vld [vmem:[#allocation7 + $0x150] ss:$24 sps:$4 sm:$0xff]   ;;  %v9022_v41 = vld [vmem:[#allocation7 + $0x184] ss:$24 sps:$4 sm:$0xff]  }
  0xc1   :  { %990 = vmatpush1.bf16.msra.mxu1 %v8991_v20  ;;  %938 = vmatprep.subr.bf16.mxu0 %v8992_v21  ;;  %v9021_v40 = vld [vmem:[#allocation7 + $0x158] ss:$24 sps:$4 sm:$0xff]   ;;  %v9024_v42 = vld [vmem:[#allocation7 + $0x18c] ss:$24 sps:$4 sm:$0xff]   ;;  %v9027_v44 = vld [vmem:[#allocation7 + $0x188] ss:$24 sps:$4 sm:$0xff]  }
  0xc2   :  { %991 = vmatprep.subr.bf16.mxu1 %v8994_v22  ;;  %v9026_v43 = vld [vmem:[#allocation7 + $0x180] ss:$24 sps:$4 sm:$0xff]   ;;  %v10661_v56 = vld [vmem:[#allocation2 + $0x30] sm:$0xff]  ;;  %v9034_v11 = vld [vmem:[#allocation7 + $0x1e4] ss:$24 sps:$4 sm:$0xff]  }
  0xc3   :  { %v10663_v57 = vld [vmem:[#allocation2 + $0x38] sm:$0xff]  ;;  %v10110_v63 = vld [vmem:[#allocation2 + $0x20] sm:$0xff]  ;;  %v9028_v7 = vld [vmem:[#allocation7 + $0x1b4] ss:$24 sps:$4 sm:$0xff]  }
  0xc4   :  { %939 = vmatpush1.bf16.msra.mxu0 %v8996_v23  ;;  %v210_v3 = vadd.f32 %v10663_v57, %v10661_v56  ;;  %v9030_v8 = vld [vmem:[#allocation7 + $0x1bc] ss:$24 sps:$4 sm:$0xff]   ;;  %v9032_v9 = vld [vmem:[#allocation7 + $0x1b0] ss:$24 sps:$4 sm:$0xff]   ;;  %v9036_v12 = vld [vmem:[#allocation7 + $0x1ec] ss:$24 sps:$4 sm:$0xff]  }
  0xc5   :  { %992 = vmatpush1.bf16.msra.mxu1 %v8997_v24  ;;  %940 = vmatprep.subr.bf16.mxu0 %v8998_v25  ;;  %v9033_v10 = vld [vmem:[#allocation7 + $0x1b8] ss:$24 sps:$4 sm:$0xff]   ;;  %v9039_v14 = vld [vmem:[#allocation7 + $0x1e8] ss:$24 sps:$4 sm:$0xff]   ;;  %v9040_v15 = vld [vmem:[#allocation7 + $0x214] ss:$24 sps:$4 sm:$0xff]  }
  0xc6   :  { %993 = vmatprep.subr.bf16.mxu1 %v9000_v26  ;;  %v9038_v13 = vld [vmem:[#allocation7 + $0x1e0] ss:$24 sps:$4 sm:$0xff]   ;;  %v9042_v16 = vld [vmem:[#allocation7 + $0x21c] ss:$24 sps:$4 sm:$0xff]   ;;  %v9044_v17 = vld [vmem:[#allocation7 + $0x210] ss:$24 sps:$4 sm:$0xff]  }
  0xc7   :  { %v9045_v18 = vld [vmem:[#allocation7 + $0x218] ss:$24 sps:$4 sm:$0xff]   ;;  %v9046_v19 = vld [vmem:[#allocation7 + $0x244] ss:$24 sps:$4 sm:$0xff]   ;;  %v9051_v22 = vld [vmem:[#allocation7 + $0x248] ss:$24 sps:$4 sm:$0xff]  }
  0xc8   :  { %941 = vmatpush1.bf16.msra.mxu0 %v9002_v27  ;;  %v9048_v20 = vld [vmem:[#allocation7 + $0x24c] ss:$24 sps:$4 sm:$0xff]   ;;  %v9050_v21 = vld [vmem:[#allocation7 + $0x240] ss:$24 sps:$4 sm:$0xff]   ;;  %v9054_v24 = vld [vmem:[#allocation7 + $0x27c] ss:$24 sps:$4 sm:$0xff]  }
  0xc9   :  { %994 = vmatpush1.bf16.msra.mxu1 %v9003_v28  ;;  %942 = vmatprep.subr.bf16.mxu0 %v9004_v29  ;;  %v9052_v23 = vld [vmem:[#allocation7 + $0x274] ss:$24 sps:$4 sm:$0xff]   ;;  %v9056_v25 = vld [vmem:[#allocation7 + $0x270] ss:$24 sps:$4 sm:$0xff]   ;;  %v9058_v27 = vld [vmem:[#allocation7 + $0x2a4] ss:$24 sps:$4 sm:$0xff]  }
  0xca   :  { %995 = vmatprep.subr.bf16.mxu1 %v9006_v30  ;;  %v9057_v26 = vld [vmem:[#allocation7 + $0x278] ss:$24 sps:$4 sm:$0xff]   ;;  %v9060_v28 = vld [vmem:[#allocation7 + $0x2ac] ss:$24 sps:$4 sm:$0xff]   ;;  %v9063_v30 = vld [vmem:[#allocation7 + $0x2a8] ss:$24 sps:$4 sm:$0xff]  }
  0xcb   :  { %v9062_v29 = vld [vmem:[#allocation7 + $0x2a0] ss:$24 sps:$4 sm:$0xff]  }
  0xcc   :  { %943 = vmatpush1.bf16.msra.mxu0 %v9008_v31  ;;  %v9064_v31 = vld [vmem:[#allocation7 + $0x2d4] ss:$24 sps:$4 sm:$0xff]  }
  0xcd   :  { %996 = vmatpush1.bf16.msra.mxu1 %v9009_v32  ;;  %944 = vmatprep.subr.bf16.mxu0 %v9010_v33  ;;  %v9066_v32 = vld [vmem:[#allocation7 + $0x2dc] ss:$24 sps:$4 sm:$0xff]   ;;  %v9068_v33 = vld [vmem:[#allocation7 + $0x2d0] ss:$24 sps:$4 sm:$0xff]  }
  0xce   :  { %997 = vmatprep.subr.bf16.mxu1 %v9012_v34  ;;  %v9069_v34 = vld [vmem:[#allocation7 + $0x2d8] ss:$24 sps:$4 sm:$0xff]  }
  0xd0   :  { %945 = vmatpush1.bf16.msra.mxu0 %v9014_v35  ;;  %v9072_v35 = vld [vmem:[#allocation7 + $0x14] ss:$24 sps:$4 sm:$0xff]  }
  0xd1   :  { %998 = vmatpush1.bf16.msra.mxu1 %v9015_v36  ;;  %946 = vmatprep.subr.bf16.mxu0 %v9016_v37  ;;  %v267_v37 = vlaneseq }
  0xd2   :  { %999 = vmatprep.subr.bf16.mxu1 %v9018_v38 }
  0xd4   :  { %947 = vmatpush1.bf16.msra.mxu0 %v9020_v39 }
  0xd5   :  { %1000 = vmatpush1.bf16.msra.mxu1 %v9021_v40  ;;  %948 = vmatprep.subr.bf16.mxu0 %v9022_v41  ;;  %v10679_v41 = vshrl.u32 %v267_v37, 7  ;;  %v9100_v37 = vld [vmem:[#allocation7 + $0x1f0] ss:$24 sps:$4 sm:$0xff]  }
  0xd6   :  { %1001 = vmatprep.subr.bf16.mxu1 %v9024_v42 }
  0xd8   :  { %949 = vmatpush1.bf16.msra.mxu0 %v9026_v43 }
  0xd9   :  { %1002 = vmatpush1.bf16.msra.mxu1 %v9027_v44  ;;  %950 = vmatprep.subr.bf16.mxu0 %v9028_v7 }
  0xda   :  { %1003 = vmatprep.subr.bf16.mxu1 %v9030_v8 }
  0xdc   :  { %951 = vmatpush1.bf16.msra.mxu0 %v9032_v9 }
  0xdd   :  { %1004 = vmatpush1.bf16.msra.mxu1 %v9033_v10  ;;  %952 = vmatprep.subr.bf16.mxu0 %v9034_v11 }
  0xde   :  { %1005 = vmatprep.subr.bf16.mxu1 %v9036_v12 }
  0xe0   :  { %953 = vmatpush1.bf16.msra.mxu0 %v9038_v13 }
  0xe1   :  { %1006 = vmatpush1.bf16.msra.mxu1 %v9039_v14  ;;  %954 = vmatprep.subr.bf16.mxu0 %v9040_v15 }
  0xe2   :  { %1007 = vmatprep.subr.bf16.mxu1 %v9042_v16 }
  0xe4   :  { %955 = vmatpush1.bf16.msra.mxu0 %v9044_v17 }
  0xe5   :  { %1008 = vmatpush1.bf16.msra.mxu1 %v9045_v18  ;;  %956 = vmatprep.subr.bf16.mxu0 %v9046_v19  ;;  %v9070_v18 = vld [vmem:[#allocation7 + $0x10] ss:$24 sps:$4 sm:$0xff]   ;;  %v9073_v19 = vld [vmem:[#allocation7 + $0x40] ss:$24 sps:$4 sm:$0xff]  }
  0xe6   :  { %1009 = vmatprep.subr.bf16.mxu1 %v9048_v20  ;;  %v9078_v20 = vld [vmem:[#allocation7 + $0x74] ss:$24 sps:$4 sm:$0xff]  }
  0xe8   :  { %957 = vmatpush1.bf16.msra.mxu0 %v9050_v21  ;;  %v9076_v21 = vld [vmem:[#allocation7 + $0x70] ss:$24 sps:$4 sm:$0xff]  }
  0xe9   :  { %1010 = vmatpush1.bf16.msra.mxu1 %v9051_v22  ;;  %958 = vmatprep.subr.bf16.mxu0 %v9052_v23  ;;  %v9081_v22 = vld [vmem:[#allocation7 + $0xa4] ss:$24 sps:$4 sm:$0xff]   ;;  %v9079_v23 = vld [vmem:[#allocation7 + $0xa0] ss:$24 sps:$4 sm:$0xff]  }
  0xea   :  { %1011 = vmatprep.subr.bf16.mxu1 %v9054_v24  ;;  %v9084_v24 = vld [vmem:[#allocation7 + $0xd4] ss:$24 sps:$4 sm:$0xff]  }
  0xec   :  { %959 = vmatpush1.bf16.msra.mxu0 %v9056_v25  ;;  %v9082_v25 = vld [vmem:[#allocation7 + $0xd0] ss:$24 sps:$4 sm:$0xff]  }
  0xed   :  { %1012 = vmatpush1.bf16.msra.mxu1 %v9057_v26  ;;  %960 = vmatprep.subr.bf16.mxu0 %v9058_v27  ;;  %v9087_v26 = vld [vmem:[#allocation7 + $0x104] ss:$24 sps:$4 sm:$0xff]   ;;  %v9085_v27 = vld [vmem:[#allocation7 + $0x100] ss:$24 sps:$4 sm:$0xff]  }
  0xee   :  { %1013 = vmatprep.subr.bf16.mxu1 %v9060_v28  ;;  %v9090_v28 = vld [vmem:[#allocation7 + $0x134] ss:$24 sps:$4 sm:$0xff]  }
  0xf0   :  { %961 = vmatpush1.bf16.msra.mxu0 %v9062_v29  ;;  %v9088_v29 = vld [vmem:[#allocation7 + $0x130] ss:$24 sps:$4 sm:$0xff]  }
  0xf1   :  { %1014 = vmatpush1.bf16.msra.mxu1 %v9063_v30  ;;  %962 = vmatprep.subr.bf16.mxu0 %v9064_v31  ;;  %v9093_v30 = vld [vmem:[#allocation7 + $0x164] ss:$24 sps:$4 sm:$0xff]   ;;  %v9091_v31 = vld [vmem:[#allocation7 + $0x160] ss:$24 sps:$4 sm:$0xff]  }
  0xf2   :  { %1015 = vmatprep.subr.bf16.mxu1 %v9066_v32  ;;  %v9096_v32 = vld [vmem:[#allocation7 + $0x194] ss:$24 sps:$4 sm:$0xff]  }
  0xf4   :  { %963 = vmatpush1.bf16.msra.mxu0 %v9068_v33  ;;  %v9094_v33 = vld [vmem:[#allocation7 + $0x190] ss:$24 sps:$4 sm:$0xff]  }
  0xf5   :  { %1016 = vmatpush1.bf16.msra.mxu1 %v9069_v34  ;;  %1038 = vmatprep.subr.bf16.mxu0 %v9072_v35  ;;  %v9099_v34 = vld [vmem:[#allocation7 + $0x1c4] ss:$24 sps:$4 sm:$0xff]   ;;  %v9097_v35 = vld [vmem:[#allocation7 + $0x1c0] ss:$24 sps:$4 sm:$0xff]  }
 0x144   :  { %v203_v45 = vpop.xlane.xlu0 %202 }
 0x145   :  { %v214_v46 = vmul.f32 0.00390625, %v203_v45  ;;  %v10682_v45 = vsub.s32 0, %v10679_v41 }
 0x147   :  { %v10646_v47 = vsub.f32 %v10633_v0, %v214_v46  ;;  %v10649_v48 = vsub.f32 %v10635_v1, %v214_v46  ;;  %v10111_v1 = vld [vmem:[#allocation2 + $0x28] sm:$0xff]  ;;  %v10685_v46 = vsub.s32 4, %v10679_v41 }
 0x148   :  { %v206_v49 = vpop.xlane.xlu0 %205 }
 0x149   :  { %v215_v50 = vmul.f32 0.00390625, %v206_v49  ;;  %v226_v51 = vmul.f32 %v10646_v47, %v10646_v47  ;;  %v227_v52 = vmul.f32 %v10649_v48, %v10649_v48 }
 0x14b   :  { %v10656_v53 = vsub.f32 %v10637_v2, %v215_v50  ;;  %v10659_v54 = vsub.f32 %v10641_v4, %v215_v50  ;;  %v234_v55 = vadd.f32 %v227_v52, %v226_v51  ;;  %v199_v50 = vld [vmem:[%s12009_s1] sm:$0x77] }
 0x14c   :  { %v209_v58 = vpop.xlane.xlu0 %208 }
 0x14d   :  { %235 = vadd.xlane.f32.xlu1 %v234_v55  ;;  %v228_v59 = vmul.f32 %v10656_v53, %v10656_v53  ;;  %v229_v60 = vmul.f32 %v10659_v54, %v10659_v54  ;;  %v216_v61 = vmul.f32 0.00390625, %v209_v58  ;;  %v200_v55 = vld [vmem:[%s11975_s3] sm:$0x77]  ;;  %v274_v58 = vrot.slane %v199_v50, %v10685_v46 }
 0x14f   :  { %v237_v62 = vadd.f32 %v229_v60, %v228_v59  ;;  %v10669_v0 = vsub.f32 %v10110_v63, %v216_v61  ;;  %v10671_v2 = vsub.f32 %v10111_v1, %v216_v61  ;;  %v270_v59 = vrot.slane %v199_v50, %v10682_v45  ;;  %v9112_v50 = vld [vmem:[#allocation7 + $0x2b0] ss:$24 sps:$4 sm:$0xff]  }
 0x150   :  { %v301_v63 = vrot.slane %v200_v55, %v10685_v46 }
 0x151   :  { %238 = vadd.xlane.f32.xlu1 %v237_v62  ;;  %v230_v4 = vmul.f32 %v10669_v0, %v10669_v0  ;;  %v231_v5 = vmul.f32 %v10671_v2, %v10671_v2 }
 0x152   :  { %v10716_v7 = vrot.slane %v301_v63, %v10682_v45 }
 0x153   :  { %v240_v6 = vadd.f32 %v231_v5, %v230_v4  ;;  %v10713_v5 = vrot.slane %v270_v59, %v10682_v45  ;;  %v10375_v59 = vmov 0.0  }
 0x154   :  { %8782 = vmatprep.subr.bf16.mxu1 %v10375_v59 }
 0x155   :  { %211 = vadd.xlane.f32.xlu1 %v210_v3  ;;  %241 = vadd.xlane.f32.xlu0 %v240_v6  ;;  %v10709_v3 = vrot.slane %v274_v58, %v10682_v45  ;;  %v9115_v58 = vld [vmem:[#allocation7 + $0x2e0] ss:$24 sps:$4 sm:$0xff]  }
 0x1da   :  { %v236_v36 = vpop.xlane.xlu1 %235 }
 0x1db   :  { %v246_v38 = vmul.f32 0.00390625, %v236_v36  ;;  %v9102_v36 = vld [vmem:[#allocation7 + $0x1f4] ss:$24 sps:$4 sm:$0xff]  }
 0x1dd   :  { %v250_v39 = vadd.f32 1e-05, %v246_v38  ;;  %v9105_v38 = vld [vmem:[#allocation7 + $0x224] ss:$24 sps:$4 sm:$0xff]  }
 0x1de   :  { %v239_v40 = vpop.xlane.xlu1 %238 }
 0x1df   :  { %9934 = vrsqrt.f32 %v250_v39  ;;  %v247_v42 = vmul.f32 0.00390625, %v239_v40  ;;  %v9103_v39 = vld [vmem:[#allocation7 + $0x220] ss:$24 sps:$4 sm:$0xff]   ;;  %v9108_v40 = vld [vmem:[#allocation7 + $0x254] ss:$24 sps:$4 sm:$0xff]  }
 0x1e1   :  { %v251_v43 = vadd.f32 1e-05, %v247_v42  ;;  %v9106_v42 = vld [vmem:[#allocation7 + $0x250] ss:$24 sps:$4 sm:$0xff]  }
 0x1e2   :  { %v212_v44 = vpop.xlane.xlu1 %211 }
 0x1e3   :  { %9936 = vrsqrt.f32 %v251_v43  ;;  %v217_v49 = vmul.f32 0.00390625, %v212_v44  ;;  %v9111_v43 = vld [vmem:[#allocation7 + $0x284] ss:$24 sps:$4 sm:$0xff]   ;;  %v9109_v44 = vld [vmem:[#allocation7 + $0x280] ss:$24 sps:$4 sm:$0xff]  }
 0x1e5   :  { %v10691_v51 = vsub.f32 %v10661_v56, %v217_v49  ;;  %v10694_v52 = vsub.f32 %v10663_v57, %v217_v49  ;;  %v297_v57 = vrot.slane %v200_v55, %v10682_v45  ;;  %v9114_v49 = vld [vmem:[#allocation7 + $0x2b4] ss:$24 sps:$4 sm:$0xff]   ;;  %v9117_v55 = vld [vmem:[#allocation7 + $0x2e4] ss:$24 sps:$4 sm:$0xff]  }
 0x1e7   :  { %v232_v60 = vmul.f32 %v10691_v51, %v10691_v51  ;;  %v233_v61 = vmul.f32 %v10694_v52, %v10694_v52  ;;  %v10719_v8 = vrot.slane %v297_v57, %v10682_v45 }
 0x1e9   :  { %v9935_v62 = vpop.eup %9934  ;;  %v243_v56 = vadd.f32 %v233_v61, %v232_v60  ;;  %v242_v60 = vpop.xlane.xlu0 %241 }
 0x1ea   :  { %v259_v1 = vmul.f32 %v9935_v62, %v10649_v48  ;;  %v258_v4 = vmul.f32 %v9935_v62, %v10646_v47  ;;  %v248_v61 = vmul.f32 0.00390625, %v242_v60 }
 0x1eb   :  { %244 = vadd.xlane.f32.xlu1 %v243_v56 }
 0x1ec   :  { %v286_v48 = vmul.f32 %v10709_v3, %v259_v1  ;;  %v285_v11 = vmul.f32 %v10713_v5, %v258_v4  ;;  %v252_v62 = vadd.f32 1e-05, %v248_v61 }
 0x1ed   :  { %v9937_v6 = vpop.eup %9936 }
 0x1ee   :  { %v261_v9 = vmul.f32 %v9937_v6, %v10659_v54  ;;  %v260_v10 = vmul.f32 %v9937_v6, %v10656_v53  ;;  %v313_v13 = vadd.f32 %v10716_v7, %v286_v48  ;;  %v312_v15 = vadd.f32 %v10719_v8, %v285_v11  ;;  %v9075_v53 = vld [vmem:[#allocation7 + $0x44] ss:$24 sps:$4 sm:$0xff]  }
 0x1ef   :  { %9938 = vrsqrt.f32 %v252_v62 }
 0x1f0   :  { %v288_v47 = vmul.f32 %v10709_v3, %v261_v9  ;;  %v287_v12 = vmul.f32 %v10713_v5, %v260_v10 }
 0x1f2   :  { %v315_v14 = vadd.f32 %v10716_v7, %v288_v47  ;;  %v314_v16 = vadd.f32 %v10719_v8, %v287_v12 }
 0x1f4   :  { %v10731_v17 = vpack.c.bf16 %v315_v14, %v313_v13  ;;  %v10733_v54 = vpack.c.bf16 %v314_v16, %v312_v15 }
 0x1f6   :  { %964 = vmatprep.mubr.bf16.mxu0 %v10731_v17  ;;  %1017 = vmatprep.mubr.bf16.mxu1 %v10731_v17 }
 0x1f7   :  { %965 = vmatmul.mubr.bf16.vlgmr.msra.gmra.mrb[0].mxu0 %v10733_v54  ;;  %1018 = vmatmul.mubr.bf16.vlgmr.msra.gmra.mrb[0].mxu1 %v10733_v54 }
 0x1f8   :  { %1039 = vmatpush1.bf16.msra.mxu0 %v9070_v18 }
 0x1f9   :  { %1040 = vmatprep.subr.bf16.mxu0 %v9075_v53  ;;  %v9939_v1 = vpop.eup %9938 }
 0x1fa   :  { %v263_v4 = vmul.f32 %v9939_v1, %v10671_v2  ;;  %v262_v6 = vmul.f32 %v9939_v1, %v10669_v0 }
 0x1fc   :  { %1041 = vmatpush1.bf16.msra.mxu0 %v9073_v19  ;;  %v290_v10 = vmul.f32 %v10709_v3, %v263_v4  ;;  %v289_v47 = vmul.f32 %v10713_v5, %v262_v6 }
 0x1fd   :  { %1042 = vmatprep.subr.bf16.mxu0 %v9078_v20 }
 0x1fe   :  { %v317_v14 = vadd.f32 %v10716_v7, %v290_v10  ;;  %v316_v2 = vadd.f32 %v10719_v8, %v289_v47 }
 0x200   :  { %1043 = vmatpush1.bf16.msra.mxu0 %v9076_v21 }
 0x201   :  { %1044 = vmatprep.subr.bf16.mxu0 %v9081_v22 }
 0x204   :  { %1045 = vmatpush1.bf16.msra.mxu0 %v9079_v23 }
 0x205   :  { %1046 = vmatprep.subr.bf16.mxu0 %v9084_v24 }
 0x208   :  { %1047 = vmatpush1.bf16.msra.mxu0 %v9082_v25 }
 0x209   :  { %1048 = vmatprep.subr.bf16.mxu0 %v9087_v26 }
 0x20c   :  { %1049 = vmatpush1.bf16.msra.mxu0 %v9085_v27 }
 0x20d   :  { %1050 = vmatprep.subr.bf16.mxu0 %v9090_v28 }
 0x210   :  { %1051 = vmatpush1.bf16.msra.mxu0 %v9088_v29 }
 0x211   :  { %1052 = vmatprep.subr.bf16.mxu0 %v9093_v30 }
 0x214   :  { %1053 = vmatpush1.bf16.msra.mxu0 %v9091_v31 }
 0x215   :  { %1054 = vmatprep.subr.bf16.mxu0 %v9096_v32 }
 0x218   :  { %1055 = vmatpush1.bf16.msra.mxu0 %v9094_v33 }
 0x219   :  { %1056 = vmatprep.subr.bf16.mxu0 %v9099_v34 }
 0x21c   :  { %1057 = vmatpush1.bf16.msra.mxu0 %v9097_v35 }
 0x21d   :  { %1058 = vmatprep.subr.bf16.mxu0 %v9102_v36 }
 0x220   :  { %1059 = vmatpush1.bf16.msra.mxu0 %v9100_v37 }
 0x221   :  { %1060 = vmatprep.subr.bf16.mxu0 %v9105_v38 }
 0x224   :  { %1061 = vmatpush1.bf16.msra.mxu0 %v9103_v39 }
 0x225   :  { %1062 = vmatprep.subr.bf16.mxu0 %v9108_v40 }
 0x228   :  { %1063 = vmatpush1.bf16.msra.mxu0 %v9106_v42 }
 0x229   :  { %1064 = vmatprep.subr.bf16.mxu0 %v9111_v43 }
 0x22c   :  { %1065 = vmatpush1.bf16.msra.mxu0 %v9109_v44 }
 0x22d   :  { %1066 = vmatprep.subr.bf16.mxu0 %v9114_v49 }
 0x230   :  { %1067 = vmatpush1.bf16.msra.mxu0 %v9112_v50 }
 0x231   :  { %1068 = vmatprep.subr.bf16.mxu0 %v9117_v55 }
 0x234   :  { %1069 = vmatpush1.bf16.msra.mxu0 %v9115_v58 }
 0x235   :  { %8764 = vmatprep.subr.bf16.mxu0 %v10375_v59 }
 0x278   :  { %v245_v56 = vpop.xlane.xlu1 %244 }
 0x279   :  { %v249_v63 = vmul.f32 0.00390625, %v245_v56 }
 0x27b   :  { %v253_v57 = vadd.f32 1e-05, %v249_v63 }
 0x27d   :  { %9940 = vrsqrt.f32 %v253_v57 }
 0x287   :  { %v9941_v9 = vpop.eup %9940 }
 0x288   :  { %v265_v48 = vmul.f32 %v9941_v9, %v10694_v52  ;;  %v264_v11 = vmul.f32 %v9941_v9, %v10691_v51  ;;  %v10760_v51 = vsub.s32 1, %v10679_v41 }
 0x28a   :  { %v292_v12 = vmul.f32 %v10709_v3, %v265_v48  ;;  %v291_v13 = vmul.f32 %v10713_v5, %v264_v11  ;;  %v420_v3 = vld [vmem:[%s11977_s5] sm:$0x3f]  ;;  %v10766_v5 = vsub.s32 2, %v10679_v41  ;;  %v10799_v48 = vsub.s32 5, %v10679_v41 }
 0x28c   :  { %v319_v15 = vadd.f32 %v10716_v7, %v292_v12  ;;  %v318_v0 = vadd.f32 %v10719_v8, %v291_v13  ;;  %v10769_v7 = vsub.s32 3, %v10679_v41  ;;  %v425_v8 = vrot.slane %v420_v3, %v10682_v45 }
 0x28e   :  { %v419_v16 = vpack.c.bf16 %v319_v15, %v317_v14  ;;  %v418_v52 = vpack.c.bf16 %v318_v0, %v316_v2  ;;  %v437_v19 = vrot.slane %v420_v3, %v10769_v7  ;;  %v441_v2 = vrot.slane %v420_v3, %v10685_v46 }
 0x290   :  { %974 = vmatprep.mubr.bf16.mxu0 %v419_v16  ;;  %1027 = vmatprep.mubr.bf16.mxu1 %v419_v16 }
 0x291   :  { %975 = vmatmul.mubr.bf16.gmra.mrb[4].mxu0 %v418_v52  ;;  %1028 = vmatmul.mubr.bf16.gmra.mrb[4].mxu1 %v418_v52 }
 0x292   :  { %1070 = vmatprep.mubr.bf16.mxu0 %v10731_v17  ;;  %8784 = vmatprep.mubr.msk.bf16.mxu1 %vm10376_vm0, %v10375_v59  ;;  %v429_v17 = vrot.slane %v420_v3, %v10760_v51 }
 0x299   :  { %1071 = vmatmul.mubr.bf16.vlgmr.msra.gmra.mrb[8].mxu0 %v10733_v54  ;;  %v433_v54 = vrot.slane %v420_v3, %v10766_v5 }
 0x29a   :  { %1080 = vmatprep.mubr.bf16.mxu0 %v419_v16 }
 0x2a1   :  { %1081 = vmatmul.mubr.bf16.gmra.mrb[12].mxu0 %v418_v52  ;;  %v445_v52 = vrot.slane %v420_v3, %v10799_v48 }
 0x2a2   :  { %8766 = vmatprep.mubr.msk.bf16.mxu0 %vm10376_vm0, %v10375_v59 }
 0x2ca   :  { %v966_v18 = vpop.f32.mrb[0].mxu0  ;;  %v1019_v53 = vpop.f32.mrb[0].mxu1 }
 0x2cb   :  { %v967_v20 = vadd.f32 %v966_v18, %v425_v8  ;;  %v968_v21 = vpop.f32.mrb[1].mxu0  ;;  %v1021_v22 = vpop.f32.mrb[1].mxu1  ;;  %v1020_v26 = vadd.f32 %v1019_v53, %v433_v54 }
 0x2cc   :  { %v969_v23 = vadd.f32 %v968_v21, %v429_v17  ;;  %v970_v24 = vpop.f32.mrb[2].mxu0  ;;  %v1023_v25 = vpop.f32.mrb[2].mxu1  ;;  %v10775_v31 = vadd.f32 %v1021_v22, %v437_v19 }
 0x2cd   :  { %v971_v27 = vadd.f32 %v970_v24, %v425_v8  ;;  %v1024_v28 = vadd.f32 %v1023_v25, %v433_v54  ;;  %v972_v29 = vpop.f32.mrb[3].mxu0  ;;  %v1025_v30 = vpop.f32.mrb[3].mxu1  ;;  %v1091_v34 = vmul.f32 0.088388346, %v967_v20 }
 0x2ce   :  { %v973_v32 = vadd.f32 %v972_v29, %v429_v17  ;;  %v10777_v33 = vadd.f32 %v1025_v30, %v437_v19  ;;  %v10779_v37 = vmul.f32 0.088388346, %v969_v23 }
 0x2cf   :  { %v1092_v35 = vmul.f32 0.088388346, %v971_v27  ;;  %v1094_v36 = vpack.c.bf16 %v1024_v28, %v1020_v26 }
 0x2d0   :  { %v10781_v38 = vmul.f32 0.088388346, %v973_v32  ;;  %v1208_v39 = vpack.c.bf16 %v10777_v33, %v10775_v31 }
 0x2d1   :  { %v1093_v40 = vpack.c.bf16 %v1092_v35, %v1091_v34  ;;  %8765 = vmatpush3.bf16.xpose.msra.mxu0 %v1094_v36 }
 0x2d2   :  { %v1207_v42 = vpack.c.bf16 %v10781_v38, %v10779_v37  ;;  %8770 = vmatprep.subr.bf16.mxu0 %v10375_v59 }
 0x2d8   :  { %8767 = vmatmul.mubr.bf16.vlgmr.msra.gmra.mrb[16].mxu0 %v1093_v40 }
 0x2d9   :  { %8772 = vmatprep.mubr.msk.bf16.mxu0 %vm10376_vm0, %v10375_v59 }
 0x364   :  { %v976_v43 = vpop.f32.mrb[4].mxu0  ;;  %v1029_v44 = vpop.f32.mrb[4].mxu1 }
 0x365   :  { %v977_v49 = vadd.f32 %v976_v43, %v425_v8  ;;  %v978_v50 = vpop.f32.mrb[5].mxu0  ;;  %v1031_v55 = vpop.f32.mrb[5].mxu1  ;;  %v10790_v62 = vadd.f32 %v1029_v44, %v433_v54 }
 0x366   :  { %v979_v58 = vadd.f32 %v978_v50, %v429_v17  ;;  %v980_v60 = vpop.f32.mrb[6].mxu0  ;;  %v1033_v61 = vpop.f32.mrb[6].mxu1  ;;  %v10794_v4 = vadd.f32 %v1031_v55, %v437_v19 }
 0x367   :  { %v981_v56 = vadd.f32 %v980_v60, %v425_v8  ;;  %v10792_v63 = vadd.f32 %v1033_v61, %v433_v54  ;;  %v982_v57 = vpop.f32.mrb[7].mxu0  ;;  %v1035_v1 = vpop.f32.mrb[7].mxu1  ;;  %v10801_v10 = vmul.f32 0.088388346, %v977_v49 }
 0x368   :  { %v983_v6 = vadd.f32 %v982_v57, %v429_v17  ;;  %v10796_v9 = vadd.f32 %v1035_v1, %v437_v19  ;;  %v10807_v12 = vmul.f32 0.088388346, %v979_v58 }
 0x369   :  { %v10803_v11 = vmul.f32 0.088388346, %v981_v56  ;;  %v1321_v47 = vpack.c.bf16 %v10792_v63, %v10790_v62  ;;  %v9165_v62 = vld [vmem:[#allocation8 + $0xf4] ss:$8 sps:$4 sm:$0xff]   ;;  %v9163_v63 = vld [vmem:[#allocation8 + $0xf0] ss:$8 sps:$4 sm:$0xff]  }
 0x36a   :  { %v10809_v13 = vmul.f32 0.088388346, %v983_v6  ;;  %v1434_v14 = vpack.c.bf16 %v10796_v9, %v10794_v4 }
 0x36b   :  { %v1320_v15 = vpack.c.bf16 %v10803_v11, %v10801_v10 }
 0x36c   :  { %v1433_v0 = vpack.c.bf16 %v10809_v13, %v10807_v12  ;;  %v1072_v16 = vpop.f32.mrb[8].mxu0 }
 0x36d   :  { %v1074_v8 = vpop.f32.mrb[9].mxu0  ;;  %v1073_v54 = vadd.f32 %v1072_v16, %v441_v2 }
 0x36e   :  { %v1076_v17 = vpop.f32.mrb[10].mxu0  ;;  %v1075_v19 = vadd.f32 %v1074_v8, %v445_v52 }
 0x36f   :  { %v1077_v18 = vadd.f32 %v1076_v17, %v441_v2  ;;  %v1078_v53 = vpop.f32.mrb[11].mxu0 }
 0x370   :  { %v1079_v20 = vadd.f32 %v1078_v53, %v445_v52 }
 0x371   :  { %v1095_v21 = vpack.c.bf16 %v1077_v18, %v1073_v54 }
 0x372   :  { %v1209_v22 = vpack.c.bf16 %v1079_v20, %v1075_v19 }
 0x373   :  { %8771 = vmatpush3.bf16.msra.mxu0 %v1095_v21 }
 0x374   :  { %v1082_v23 = vpop.f32.mrb[12].mxu0  ;;  %8783 = vmatpush3.bf16.msra.mxu1 %v1209_v22  ;;  %8776 = vmatprep.subr.bf16.mxu0 %v10375_v59 }
 0x375   :  { %v10820_v24 = vadd.f32 %v1082_v23, %v441_v2  ;;  %v1084_v25 = vpop.f32.mrb[13].mxu0  ;;  %8788 = vmatprep.subr.bf16.mxu1 %v10375_v59 }
 0x376   :  { %v10823_v3 = vadd.f32 %v1084_v25, %v445_v52  ;;  %v1086_v26 = vpop.f32.mrb[14].mxu0 }
 0x377   :  { %v10825_v27 = vadd.f32 %v1086_v26, %v441_v2  ;;  %v1088_v28 = vpop.f32.mrb[15].mxu0 }
 0x378   :  { %v10827_v29 = vadd.f32 %v1088_v28, %v445_v52 }
 0x379   :  { %v1322_v30 = vpack.c.bf16 %v10825_v27, %v10820_v24 }
 0x37a   :  { %v1435_v32 = vpack.c.bf16 %v10827_v29, %v10823_v3 }
 0x3ab   :  { %v1130_v34 = vpop.f32.mrb[16].mxu0 }
 0x3ac   :  { %v8768_v35 = vpop.f32.mrb[17].mxu0  ;;  %v1138_v36 = vsel %vm1137_vm1, %v1130_v34, -inf }
 0x3ad   :  { %1139 = vmax.xlane.f32.xlu0 %v1138_v36  ;;  %v1133_v40 = vpop.f32.mrb[18].mxu0 }
 0x3ae   :  { %v8769_v43 = vpop.f32.mrb[19].mxu0  ;;  %v1141_v44 = vsel %vm1137_vm1, %v1133_v40, -inf }
 0x3af   :  { %1142 = vmax.xlane.f32.xlu1 %v1141_v44 }
 0x43a   :  { %v1140_v49 = vpop.xlane.xlu0 %1139 }
 0x43b   :  { %v1144_v50 = vsub.f32 %v1130_v34, %v1140_v49  ;;  %v9118_v49 = vld [vmem:[#allocation8] ss:$8 sps:$4 sm:$0xff]  }
 0x43c   :  { %v1143_v55 = vpop.xlane.xlu1 %1142 }
 0x43d   :  { %v1146_v58 = vmul.f32 1.442695, %v1144_v50  ;;  %v1145_v60 = vsub.f32 %v1133_v40, %v1143_v55  ;;  %v9120_v50 = vld [vmem:[#allocation8 + $0x4] ss:$8 sps:$4 sm:$0xff]   ;;  %v9123_v55 = vld [vmem:[#allocation8 + $0x14] ss:$8 sps:$4 sm:$0xff]  }
 0x43f   :  { %9942 = vpow2.f32 %v1146_v58  ;;  %v1148_v61 = vmul.f32 1.442695, %v1145_v60  ;;  %v9121_v58 = vld [vmem:[#allocation8 + $0x10] ss:$8 sps:$4 sm:$0xff]   ;;  %v9126_v60 = vld [vmem:[#allocation8 + $0x24] ss:$8 sps:$4 sm:$0xff]  }
 0x441   :  { %9944 = vpow2.f32 %v1148_v61  ;;  %v9124_v61 = vld [vmem:[#allocation8 + $0x20] ss:$8 sps:$4 sm:$0xff]  }
 0x449   :  { %v9943_v56 = vpop.eup %9942 }
 0x44a   :  { %v1150_v57 = vsel %vm1137_vm1, %v9943_v56, 0.0 }
 0x44b   :  { %v9945_v1 = vpop.eup %9944  ;;  %1151 = vadd.xlane.f32.xlu0 %v1150_v57  ;;  %v9127_v57 = vld [vmem:[#allocation8 + $0x30] ss:$8 sps:$4 sm:$0xff]  }
 0x44c   :  { %v1153_v6 = vsel %vm1137_vm1, %v9945_v1, 0.0 }
 0x44d   :  { %1154 = vadd.xlane.f32.xlu1 %v1153_v6  ;;  %v9130_v6 = vld [vmem:[#allocation8 + $0x40] ss:$8 sps:$4 sm:$0xff]  }
 0x4d8   :  { %v1152_v2 = vpop.xlane.xlu0 %1151 }
 0x4d9   :  { %9946 = vrcp.f32 %v1152_v2  ;;  %v9135_v2 = vld [vmem:[#allocation8 + $0x54] ss:$8 sps:$4 sm:$0xff]  }
 0x4da   :  { %v1155_v16 = vpop.xlane.xlu1 %1154 }
 0x4db   :  { %9948 = vrcp.f32 %v1155_v16  ;;  %v9133_v16 = vld [vmem:[#allocation8 + $0x50] ss:$8 sps:$4 sm:$0xff]  }
 0x4e3   :  { %v9947_v52 = vpop.eup %9946 }
 0x4e4   :  { %v1158_v17 = vmul.f32 %v9947_v52, %v9943_v56  ;;  %v9129_v56 = vld [vmem:[#allocation8 + $0x34] ss:$8 sps:$4 sm:$0xff]   ;;  %v9138_v52 = vld [vmem:[#allocation8 + $0x64] ss:$8 sps:$4 sm:$0xff]  }
 0x4e5   :  { %v9949_v8 = vpop.eup %9948 }
 0x4e6   :  { %v1159_v54 = vmul.f32 %v9949_v8, %v9945_v1  ;;  %v9132_v1 = vld [vmem:[#allocation8 + $0x44] ss:$8 sps:$4 sm:$0xff]   ;;  %v9136_v8 = vld [vmem:[#allocation8 + $0x60] ss:$8 sps:$4 sm:$0xff]  }
 0x4e8   :  { %v1160_v18 = vpack.c.bf16 %v1159_v54, %v1158_v17  ;;  %v9141_v17 = vld [vmem:[#allocation8 + $0x74] ss:$8 sps:$4 sm:$0xff]   ;;  %v9139_v54 = vld [vmem:[#allocation8 + $0x70] ss:$8 sps:$4 sm:$0xff]  }
 0x4ea   :  { %8773 = vmatmul.mubr.msk.bf16.vlgmr.msra.gmra.mrb[20].mxu0 %vm1137_vm1, %v1160_v18  ;;  %v9144_v18 = vld [vmem:[#allocation8 + $0x84] ss:$8 sps:$4 sm:$0xff]  }
 0x4eb   :  { %8777 = vmatpush3.bf16.xpose.msra.mxu0 %v1208_v39  ;;  %8778 = vmatprep.mubr.msk.bf16.mxu0 %vm10376_vm0, %v10375_v59 }
 0x4ec   :  { %1740 = vmatprep.subr.bf16.mxu0 %v9120_v50 }
 0x4f2   :  { %8779 = vmatmul.mubr.bf16.vlgmr.msra.gmra.mrb[24].mxu0 %v1207_v42 }
 0x4f3   :  { %1741 = vmatpush1.bf16.msra.mxu0 %v9118_v49 }
 0x4f4   :  { %1742 = vmatprep.subr.bf16.mxu0 %v9123_v55 }
 0x4f7   :  { %1743 = vmatpush1.bf16.msra.mxu0 %v9121_v58 }
 0x4f8   :  { %1744 = vmatprep.subr.bf16.mxu0 %v9126_v60 }
 0x4fb   :  { %1745 = vmatpush1.bf16.msra.mxu0 %v9124_v61 }
 0x4fc   :  { %1746 = vmatprep.subr.bf16.mxu0 %v9129_v56 }
 0x4ff   :  { %1747 = vmatpush1.bf16.msra.mxu0 %v9127_v57 }
 0x500   :  { %1748 = vmatprep.subr.bf16.mxu0 %v9132_v1 }
 0x503   :  { %1749 = vmatpush1.bf16.msra.mxu0 %v9130_v6 }
 0x504   :  { %1750 = vmatprep.subr.bf16.mxu0 %v9135_v2 }
 0x507   :  { %1751 = vmatpush1.bf16.msra.mxu0 %v9133_v16 }
 0x508   :  { %1752 = vmatprep.subr.bf16.mxu0 %v9138_v52 }
 0x50b   :  { %1753 = vmatpush1.bf16.msra.mxu0 %v9136_v8 }
 0x50c   :  { %1754 = vmatprep.subr.bf16.mxu0 %v9141_v17 }
 0x50f   :  { %1755 = vmatpush1.bf16.msra.mxu0 %v9139_v54 }
 0x510   :  { %1756 = vmatprep.subr.bf16.mxu0 %v9144_v18 }
 0x5bd   :  { %v10846_v53 = vpop.f32.mrb[20].mxu0 }
 0x5be   :  { %v8774_v19 = vpop.f32.mrb[21].mxu0 }
 0x5bf   :  { %v10848_v20 = vpop.f32.mrb[22].mxu0  ;;  %v9142_v19 = vld [vmem:[#allocation8 + $0x80] ss:$8 sps:$4 sm:$0xff]  }
 0x5c0   :  { %v1576_v21 = vpack.c.bf16 %v10848_v20, %v10846_v53  ;;  %v8775_v22 = vpop.f32.mrb[23].mxu0  ;;  %1757 = vmatpush1.bf16.msra.mxu0 %v9142_v19 }
 0x5c1   :  { %v9147_v22 = vld [vmem:[#allocation8 + $0x94] ss:$8 sps:$4 sm:$0xff]  }
 0x5c2   :  { %1758 = vmatprep.subr.bf16.mxu0 %v9147_v22 }
 0x5c5   :  { %v1244_v23 = vpop.f32.mrb[24].mxu0 }
 0x5c6   :  { %v8780_v25 = vpop.f32.mrb[25].mxu0  ;;  %v1251_v31 = vsel %vm1137_vm1, %v1244_v23, -inf }
 0x5c7   :  { %1252 = vmax.xlane.f32.xlu0 %v1251_v31  ;;  %v1247_v33 = vpop.f32.mrb[26].mxu0  ;;  %v9150_v25 = vld [vmem:[#allocation8 + $0xa4] ss:$8 sps:$4 sm:$0xff]   ;;  %v9148_v31 = vld [vmem:[#allocation8 + $0xa0] ss:$8 sps:$4 sm:$0xff]  }
 0x5c8   :  { %v8781_v39 = vpop.f32.mrb[27].mxu0  ;;  %v1254_v26 = vsel %vm1137_vm1, %v1247_v33, -inf }
 0x5c9   :  { %1255 = vmax.xlane.f32.xlu1 %v1254_v26  ;;  %v9151_v39 = vld [vmem:[#allocation8 + $0xb0] ss:$8 sps:$4 sm:$0xff]   ;;  %v9156_v26 = vld [vmem:[#allocation8 + $0xc4] ss:$8 sps:$4 sm:$0xff]  }
 0x654   :  { %v1253_v37 = vpop.xlane.xlu0 %1252 }
 0x655   :  { %v1257_v38 = vsub.f32 %v1244_v23, %v1253_v37  ;;  %v9145_v23 = vld [vmem:[#allocation8 + $0x90] ss:$8 sps:$4 sm:$0xff]   ;;  %v9154_v37 = vld [vmem:[#allocation8 + $0xc0] ss:$8 sps:$4 sm:$0xff]  }
 0x656   :  { %v1256_v42 = vpop.xlane.xlu1 %1255  ;;  %1759 = vmatpush1.bf16.msra.mxu0 %v9145_v23 }
 0x657   :  { %v1259_v28 = vmul.f32 1.442695, %v1257_v38  ;;  %v1258_v34 = vsub.f32 %v1247_v33, %v1256_v42  ;;  %1760 = vmatprep.subr.bf16.mxu0 %v9150_v25  ;;  %v9153_v33 = vld [vmem:[#allocation8 + $0xb4] ss:$8 sps:$4 sm:$0xff]   ;;  %v9157_v42 = vld [vmem:[#allocation8 + $0xd0] ss:$8 sps:$4 sm:$0xff]  }
 0x658   :  { %v9159_v38 = vld [vmem:[#allocation8 + $0xd4] ss:$8 sps:$4 sm:$0xff]  }
 0x659   :  { %9950 = vpow2.f32 %v1259_v28  ;;  %v1261_v35 = vmul.f32 1.442695, %v1258_v34  ;;  %v9162_v28 = vld [vmem:[#allocation8 + $0xe4] ss:$8 sps:$4 sm:$0xff]   ;;  %v9160_v34 = vld [vmem:[#allocation8 + $0xe0] ss:$8 sps:$4 sm:$0xff]  }
 0x65a   :  { %1761 = vmatpush1.bf16.msra.mxu0 %v9148_v31 }
 0x65b   :  { %9952 = vpow2.f32 %v1261_v35  ;;  %1762 = vmatprep.subr.bf16.mxu0 %v9153_v33 }
 0x65e   :  { %1763 = vmatpush1.bf16.msra.mxu0 %v9151_v39 }
 0x65f   :  { %1764 = vmatprep.subr.bf16.mxu0 %v9156_v26 }
 0x662   :  { %1765 = vmatpush1.bf16.msra.mxu0 %v9154_v37 }
 0x663   :  { %v10854_v36 = vpop.eup %9950  ;;  %1766 = vmatprep.subr.bf16.mxu0 %v9159_v38 }
 0x664   :  { %v1263_v40 = vsel %vm1137_vm1, %v10854_v36, 0.0 }
 0x665   :  { %v10858_v43 = vpop.eup %9952  ;;  %1264 = vadd.xlane.f32.xlu0 %v1263_v40 }
 0x666   :  { %v1266_v44 = vsel %vm1137_vm1, %v10858_v43, 0.0  ;;  %1767 = vmatpush1.bf16.msra.mxu0 %v9157_v42 }
 0x667   :  { %1267 = vadd.xlane.f32.xlu1 %v1266_v44  ;;  %1768 = vmatprep.subr.bf16.mxu0 %v9162_v28 }
 0x66a   :  { %1769 = vmatpush1.bf16.msra.mxu0 %v9160_v34 }
 0x66b   :  { %1770 = vmatprep.subr.bf16.mxu0 %v9165_v62 }
 0x66e   :  { %1771 = vmatpush1.bf16.msra.mxu0 %v9163_v63 }
 0x6f2   :  { %v1265_v35 = vpop.xlane.xlu0 %1264 }
 0x6f3   :  { %9954 = vrcp.f32 %v1265_v35 }
 0x6f4   :  { %v1268_v40 = vpop.xlane.xlu1 %1267 }
 0x6f5   :  { %9956 = vrcp.f32 %v1268_v40 }
 0x6fd   :  { %v9955_v44 = vpop.eup %9954 }
 0x6fe   :  { %v1271_v50 = vmul.f32 %v9955_v44, %v10854_v36  ;;  %v1801_v44 = vld [vmem:[%s11979_s7] sm:$0x3] }
 0x6ff   :  { %v9957_v49 = vpop.eup %9956  ;;  %v10911_v63 = vrot.slane %v1801_v44, %v10760_v51 }
 0x700   :  { %v1272_v55 = vmul.f32 %v9957_v49, %v10858_v43  ;;  %v10112_v49 = vld [vmem:[#allocation2] sm:$0xff] }
 0x702   :  { %v1273_v58 = vpack.c.bf16 %v1272_v55, %v1271_v50  ;;  %v10908_v55 = vrot.slane %v1801_v44, %v10682_v45  ;;  %v9201_v44 = vld [vmem:[#allocation11 + $0xc4] ss:$16 sps:$4 sm:$0xff]  }
 0x704   :  { %8785 = vmatmul.mubr.msk.bf16.vlgmr.msra.gmra.mrb[8].mxu1 %vm1137_vm1, %v1273_v58  ;;  %v10113_v58 = vld [vmem:[#allocation2 + $0x8] sm:$0xff] }
 0x705   :  { %8789 = vmatpush3.bf16.xpose.msra.mxu1 %v1321_v47  ;;  %8790 = vmatprep.mubr.msk.bf16.mxu1 %vm10376_vm0, %v10375_v59 }
 0x706   :  { %8794 = vmatprep.subr.bf16.mxu1 %v10375_v59 }
 0x70c   :  { %8791 = vmatmul.mubr.bf16.vlgmr.msra.gmra.mrb[12].mxu1 %v1320_v15 }
 0x70d   :  { %8795 = vmatpush3.bf16.msra.mxu1 %v1322_v30  ;;  %8796 = vmatprep.mubr.msk.bf16.mxu1 %vm10376_vm0, %v10375_v59 }
 0x70e   :  { %8800 = vmatprep.subr.bf16.mxu1 %v10375_v59 }
 0x7d7   :  { %v1311_v47 = vpop.f32.mrb[8].mxu1 }
 0x7d8   :  { %v8786_v36 = vpop.f32.mrb[9].mxu1 }
 0x7d9   :  { %v1314_v43 = vpop.f32.mrb[10].mxu1 }
 0x7da   :  { %v1577_v60 = vpack.c.bf16 %v1314_v43, %v1311_v47  ;;  %v8787_v61 = vpop.f32.mrb[11].mxu1  ;;  %v10114_v47 = vld [vmem:[#allocation2 + $0x10] sm:$0xff]  ;;  %v10115_v43 = vld [vmem:[#allocation2 + $0x18] sm:$0xff] }
 0x7dc   :  { %1772 = vmatprep.mubr.bf16.mxu0 %v1577_v60 }
 0x7dd   :  { %1773 = vmatmul.mubr.bf16.vlgmr.msra.gmra.mrb[28].mxu0 %v1576_v21 }
 0x7df   :  { %v1357_v10 = vpop.f32.mrb[12].mxu1 }
 0x7e0   :  { %v8792_v11 = vpop.f32.mrb[13].mxu1  ;;  %v1364_v15 = vsel %vm1137_vm1, %v1357_v10, -inf }
 0x7e1   :  { %1365 = vmax.xlane.f32.xlu0 %v1364_v15  ;;  %v1360_v24 = vpop.f32.mrb[14].mxu1 }
 0x7e2   :  { %v8793_v27 = vpop.f32.mrb[15].mxu1  ;;  %v1367_v30 = vsel %vm1137_vm1, %v1360_v24, -inf }
 0x7e3   :  { %1368 = vmax.xlane.f32.xlu1 %v1367_v30 }
 0x86e   :  { %v1366_v56 = vpop.xlane.xlu0 %1365 }
 0x86f   :  { %v1370_v57 = vsub.f32 %v1357_v10, %v1366_v56 }
 0x870   :  { %v1369_v1 = vpop.xlane.xlu1 %1368 }
 0x871   :  { %v1372_v6 = vmul.f32 1.442695, %v1370_v57  ;;  %v1371_v2 = vsub.f32 %v1360_v24, %v1369_v1 }
 0x873   :  { %9958 = vpow2.f32 %v1372_v6  ;;  %v1374_v16 = vmul.f32 1.442695, %v1371_v2 }
 0x875   :  { %9960 = vpow2.f32 %v1374_v16 }
 0x87d   :  { %v9959_v53 = vpop.eup %9958 }
 0x87e   :  { %v1376_v20 = vsel %vm1137_vm1, %v9959_v53, 0.0 }
 0x87f   :  { %v9961_v21 = vpop.eup %9960  ;;  %1377 = vadd.xlane.f32.xlu0 %v1376_v20 }
 0x880   :  { %v1379_v52 = vsel %vm1137_vm1, %v9961_v21, 0.0 }
 0x881   :  { %1380 = vadd.xlane.f32.xlu1 %v1379_v52 }
 0x8b0   :  { %v1774_v8 = vpop.f32.mrb[28].mxu0 }
 0x8b1   :  { %v1776_v17 = vpop.f32.mrb[29].mxu0  ;;  %v1793_v50 = vadd.f32 %v10112_v49, %v1774_v8  ;;  %v9202_v49 = vld [vmem:[#allocation10 + $0x50] ss:$8 sps:$4 sm:$0xff]  }
 0x8b2   :  { %v1778_v54 = vpop.f32.mrb[30].mxu0  ;;  %v1794_v62 = vadd.f32 %v10113_v58, %v1776_v17  ;;  %v9199_v58 = vld [vmem:[#allocation11 + $0xc0] ss:$16 sps:$4 sm:$0xff]  }
 0x8b3   :  { %v1780_v18 = vpop.f32.mrb[31].mxu0  ;;  %v1795_v36 = vadd.f32 %v10114_v47, %v1778_v54  ;;  %v10914_v10 = vadd.f32 %v10908_v55, %v1793_v50  ;;  %v9210_v50 = vld [vmem:[#allocation10 + $0x64] ss:$8 sps:$4 sm:$0xff]   ;;  %v9208_v47 = vld [vmem:[#allocation10 + $0x60] ss:$8 sps:$4 sm:$0xff]  }
 0x8b4   :  { %v1796_v60 = vadd.f32 %v10115_v43, %v1780_v18  ;;  %v10917_v11 = vadd.f32 %v10911_v63, %v1794_v62  ;;  %v9207_v62 = vld [vmem:[#allocation11 + $0xe4] ss:$16 sps:$4 sm:$0xff]   ;;  %v9205_v43 = vld [vmem:[#allocation11 + $0xe0] ss:$16 sps:$4 sm:$0xff]  }
 0x8b5   :  { %v10921_v27 = vadd.f32 %v10908_v55, %v1795_v36  ;;  %v9216_v36 = vld [vmem:[#allocation10 + $0x74] ss:$8 sps:$4 sm:$0xff]  }
 0x8b6   :  { %v10924_v30 = vadd.f32 %v10911_v63, %v1796_v60  ;;  %v1821_v57 = vadd.f32 %v10917_v11, %v10914_v10  ;;  %v9213_v60 = vld [vmem:[#allocation11 + $0x104] ss:$16 sps:$4 sm:$0xff]  }
 0x8b8   :  { %v1824_v1 = vadd.f32 %v10924_v30, %v10921_v27 }
 0x90c   :  { %v1378_v19 = vpop.xlane.xlu0 %1377 }
 0x90d   :  { %9962 = vrcp.f32 %v1378_v19 }
 0x90e   :  { %v1381_v22 = vpop.xlane.xlu1 %1380 }
 0x90f   :  { %9964 = vrcp.f32 %v1381_v22  ;;  %v9166_v22 = vld [vmem:[#allocation11] ss:$16 sps:$4 sm:$0xff]  }
 0x917   :  { %v9963_v23 = vpop.eup %9962 }
 0x918   :  { %v1384_v31 = vmul.f32 %v9963_v23, %v9959_v53  ;;  %v9168_v23 = vld [vmem:[#allocation11 + $0x4] ss:$16 sps:$4 sm:$0xff]  }
 0x919   :  { %v9965_v25 = vpop.eup %9964  ;;  %2608 = vmatprep.subr.bf16.mxu0 %v9168_v23 }
 0x91a   :  { %v1385_v33 = vmul.f32 %v9965_v25, %v9961_v21  ;;  %v9171_v25 = vld [vmem:[#allocation11 + $0x24] ss:$16 sps:$4 sm:$0xff]   ;;  %2609 = vmatpush1.bf16.msra.mxu0 %v9166_v22 }
 0x91b   :  { %2610 = vmatprep.subr.bf16.mxu0 %v9171_v25  ;;  %v10118_v25 = vld [vmem:[#allocation2 + $0x30] sm:$0xff] }
 0x91c   :  { %v1386_v39 = vpack.c.bf16 %v1385_v33, %v1384_v31  ;;  %v9172_v31 = vld [vmem:[#allocation10] ss:$8 sps:$4 sm:$0xff]   ;;  %v9174_v33 = vld [vmem:[#allocation10 + $0x4] ss:$8 sps:$4 sm:$0xff]  }
 0x91e   :  { %8797 = vmatmul.mubr.msk.bf16.vlgmr.msra.gmra.mrb[16].mxu1 %vm1137_vm1, %v1386_v39  ;;  %v9169_v39 = vld [vmem:[#allocation11 + $0x20] ss:$16 sps:$4 sm:$0xff]  }
 0x91f   :  { %8801 = vmatpush3.bf16.xpose.msra.mxu1 %v1434_v14  ;;  %8802 = vmatprep.mubr.msk.bf16.mxu1 %vm10376_vm0, %v10375_v59 }
 0x920   :  { %8806 = vmatprep.subr.bf16.mxu1 %v10375_v59  ;;  %2611 = vmatpush1.bf16.msra.mxu0 %v9169_v39 }
 0x926   :  { %8803 = vmatmul.mubr.bf16.vlgmr.msra.gmra.mrb[20].mxu1 %v1433_v0 }
 0x927   :  { %8807 = vmatpush3.bf16.msra.mxu1 %v1435_v32  ;;  %8808 = vmatprep.mubr.msk.bf16.mxu1 %vm10376_vm0, %v10375_v59 }
 0x928   :  { %2145 = vmatprep.subr.bf16.mxu1 %v9174_v33 }
 0x9f1   :  { %v1424_v26 = vpop.f32.mrb[16].mxu1 }
 0x9f2   :  { %v8798_v37 = vpop.f32.mrb[17].mxu1 }
 0x9f3   :  { %v1427_v4 = vpop.f32.mrb[18].mxu1  ;;  %v9177_v37 = vld [vmem:[#allocation11 + $0x44] ss:$16 sps:$4 sm:$0xff]  }
 0x9f4   :  { %v1578_v9 = vpack.c.bf16 %v1427_v4, %v1424_v26  ;;  %v8799_v14 = vpop.f32.mrb[19].mxu1  ;;  %v9180_v26 = vld [vmem:[#allocation10 + $0x14] ss:$8 sps:$4 sm:$0xff]   ;;  %v9178_v4 = vld [vmem:[#allocation10 + $0x10] ss:$8 sps:$4 sm:$0xff]   ;;  %2612 = vmatprep.subr.bf16.mxu0 %v9177_v37 }
 0x9f5   :  { %v9186_v14 = vld [vmem:[#allocation10 + $0x24] ss:$8 sps:$4 sm:$0xff]  }
 0x9f9   :  { %v1470_v38 = vpop.f32.mrb[20].mxu1 }
 0x9fa   :  { %v8804_v42 = vpop.f32.mrb[21].mxu1  ;;  %v1477_v28 = vsel %vm1137_vm1, %v1470_v38, -inf }
 0x9fb   :  { %1478 = vmax.xlane.f32.xlu0 %v1477_v28  ;;  %v1473_v34 = vpop.f32.mrb[22].mxu1  ;;  %v9184_v42 = vld [vmem:[#allocation10 + $0x20] ss:$8 sps:$4 sm:$0xff]   ;;  %v9192_v28 = vld [vmem:[#allocation10 + $0x34] ss:$8 sps:$4 sm:$0xff]  }
 0x9fc   :  { %v8805_v12 = vpop.f32.mrb[23].mxu1  ;;  %v1480_v13 = vsel %vm1137_vm1, %v1473_v34, -inf }
 0x9fd   :  { %1481 = vmax.xlane.f32.xlu1 %v1480_v13  ;;  %v9189_v12 = vld [vmem:[#allocation11 + $0x84] ss:$16 sps:$4 sm:$0xff]   ;;  %v9190_v13 = vld [vmem:[#allocation10 + $0x30] ss:$8 sps:$4 sm:$0xff]  }
 0xa88   :  { %v1479_v0 = vpop.xlane.xlu0 %1478 }
 0xa89   :  { %v1483_v3 = vsub.f32 %v1470_v38, %v1479_v0  ;;  %v9175_v38 = vld [vmem:[#allocation11 + $0x40] ss:$16 sps:$4 sm:$0xff]   ;;  %v9198_v0 = vld [vmem:[#allocation10 + $0x44] ss:$8 sps:$4 sm:$0xff]  }
 0xa8a   :  { %v1482_v29 = vpop.xlane.xlu1 %1481  ;;  %2613 = vmatpush1.bf16.msra.mxu0 %v9175_v38 }
 0xa8b   :  { %v1485_v32 = vmul.f32 1.442695, %v1483_v3  ;;  %v1484_v35 = vsub.f32 %v1473_v34, %v1482_v29  ;;  %v9181_v34 = vld [vmem:[#allocation11 + $0x60] ss:$16 sps:$4 sm:$0xff]   ;;  %v9195_v29 = vld [vmem:[#allocation11 + $0xa4] ss:$16 sps:$4 sm:$0xff]  }
 0xa8c   :  { %v9187_v3 = vld [vmem:[#allocation11 + $0x80] ss:$16 sps:$4 sm:$0xff]  }
 0xa8d   :  { %9966 = vpow2.f32 %v1485_v32  ;;  %v1487_v40 = vmul.f32 1.442695, %v1484_v35  ;;  %v9196_v32 = vld [vmem:[#allocation10 + $0x40] ss:$8 sps:$4 sm:$0xff]   ;;  %v9204_v35 = vld [vmem:[#allocation10 + $0x54] ss:$8 sps:$4 sm:$0xff]  }
 0xa8f   :  { %9968 = vpow2.f32 %v1487_v40  ;;  %v9193_v40 = vld [vmem:[#allocation11 + $0xa0] ss:$16 sps:$4 sm:$0xff]  }
 0xa97   :  { %v9967_v61 = vpop.eup %9966 }
 0xa98   :  { %v1489_v15 = vsel %vm1137_vm1, %v9967_v61, 0.0 }
 0xa99   :  { %v9969_v24 = vpop.eup %9968  ;;  %1490 = vadd.xlane.f32.xlu0 %v1489_v15  ;;  %v9222_v15 = vld [vmem:[#allocation10 + $0x84] ss:$8 sps:$4 sm:$0xff]  }
 0xa9a   :  { %v1492_v56 = vsel %vm1137_vm1, %v9969_v24, 0.0 }
 0xa9b   :  { %1493 = vadd.xlane.f32.xlu1 %v1492_v56  ;;  %v9219_v56 = vld [vmem:[#allocation11 + $0x124] ss:$16 sps:$4 sm:$0xff]  }
 0xa9d   :  { %1822 = vadd.xlane.f32.xlu0 %v1821_v57  ;;  %v9220_v57 = vld [vmem:[#allocation10 + $0x80] ss:$8 sps:$4 sm:$0xff]  }
 0xa9f   :  { %1825 = vadd.xlane.f32.xlu1 %v1824_v1  ;;  %v9217_v1 = vld [vmem:[#allocation11 + $0x120] ss:$16 sps:$4 sm:$0xff]  }
 0xb26   :  { %v1491_v6 = vpop.xlane.xlu0 %1490 }
 0xb27   :  { %9970 = vrcp.f32 %v1491_v6 }
 0xb28   :  { %v1494_v2 = vpop.xlane.xlu1 %1493 }
 0xb29   :  { %9972 = vrcp.f32 %v1494_v2 }
 0xb2a   :  { %v1823_v6 = vpop.xlane.xlu0 %1822 }
 0xb2c   :  { %v1826_v2 = vpop.xlane.xlu1 %1825 }
 0xb31   :  { %v9971_v16 = vpop.eup %9970 }
 0xb32   :  { %v1497_v20 = vmul.f32 %v9971_v16, %v9967_v61  ;;  %v9214_v61 = vld [vmem:[#allocation10 + $0x70] ss:$8 sps:$4 sm:$0xff]   ;;  %v1833_v16 = vmul.f32 0.00390625, %v1823_v6  ;;  %v9255_v6 = vld [vmem:[#allocation11 + $0x1e4] ss:$16 sps:$4 sm:$0xff]  }
 0xb33   :  { %v9973_v53 = vpop.eup %9972 }
 0xb34   :  { %v1498_v21 = vmul.f32 %v9973_v53, %v9969_v24  ;;  %v9211_v24 = vld [vmem:[#allocation11 + $0x100] ss:$16 sps:$4 sm:$0xff]   ;;  %v1834_v53 = vmul.f32 0.00390625, %v1826_v2 }
 0xb35   :  { %v9253_v2 = vld [vmem:[#allocation11 + $0x1e0] ss:$16 sps:$4 sm:$0xff]  }
 0xb36   :  { %v1499_v52 = vpack.c.bf16 %v1498_v21, %v1497_v20  ;;  %v10116_v21 = vld [vmem:[#allocation2 + $0x20] sm:$0xff]  ;;  %v10942_v39 = vsub.f32 %v10921_v27, %v1834_v53 }
 0xb38   :  { %8809 = vmatmul.mubr.msk.bf16.vlgmr.msra.gmra.mrb[24].mxu1 %vm1137_vm1, %v1499_v52 }
 0xb39   :  { %2146 = vmatpush1.bf16.msra.mxu1 %v9172_v31 }
 0xb3a   :  { %2147 = vmatprep.subr.bf16.mxu1 %v9180_v26  ;;  %v10945_v26 = vsub.f32 %v10924_v30, %v1834_v53  ;;  %v9258_v53 = vld [vmem:[#allocation10 + $0xe4] ss:$8 sps:$4 sm:$0xff]  }
 0xb3d   :  { %2148 = vmatpush1.bf16.msra.mxu1 %v9178_v4  ;;  %v10119_v4 = vld [vmem:[#allocation2 + $0x38] sm:$0xff] }
 0xb3e   :  { %2149 = vmatprep.subr.bf16.mxu1 %v9186_v14 }
 0xb41   :  { %2150 = vmatpush1.bf16.msra.mxu1 %v9184_v42 }
 0xb42   :  { %2151 = vmatprep.subr.bf16.mxu1 %v9192_v28 }
 0xb45   :  { %2152 = vmatpush1.bf16.msra.mxu1 %v9190_v13 }
 0xb46   :  { %2153 = vmatprep.subr.bf16.mxu1 %v9198_v0 }
 0xb49   :  { %2154 = vmatpush1.bf16.msra.mxu1 %v9196_v32  ;;  %v9228_v32 = vld [vmem:[#allocation10 + $0x94] ss:$8 sps:$4 sm:$0xff]  }
 0xb4a   :  { %2155 = vmatprep.subr.bf16.mxu1 %v9204_v35  ;;  %v9226_v35 = vld [vmem:[#allocation10 + $0x90] ss:$8 sps:$4 sm:$0xff]  }
 0xb4d   :  { %2156 = vmatpush1.bf16.msra.mxu1 %v9202_v49  ;;  %v9234_v49 = vld [vmem:[#allocation10 + $0xa4] ss:$8 sps:$4 sm:$0xff]  }
 0xb4e   :  { %2157 = vmatprep.subr.bf16.mxu1 %v9210_v50  ;;  %v9232_v50 = vld [vmem:[#allocation10 + $0xa0] ss:$8 sps:$4 sm:$0xff]  }
 0xb51   :  { %2158 = vmatpush1.bf16.msra.mxu1 %v9208_v47  ;;  %v9240_v47 = vld [vmem:[#allocation10 + $0xb4] ss:$8 sps:$4 sm:$0xff]  }
 0xb52   :  { %2159 = vmatprep.subr.bf16.mxu1 %v9216_v36  ;;  %v9238_v36 = vld [vmem:[#allocation10 + $0xb0] ss:$8 sps:$4 sm:$0xff]  }
 0xb55   :  { %2160 = vmatpush1.bf16.msra.mxu1 %v9214_v61  ;;  %v9246_v61 = vld [vmem:[#allocation10 + $0xc4] ss:$8 sps:$4 sm:$0xff]  }
 0xb56   :  { %2161 = vmatprep.subr.bf16.mxu1 %v9222_v15  ;;  %v9244_v15 = vld [vmem:[#allocation10 + $0xc0] ss:$8 sps:$4 sm:$0xff]  }
 0xb59   :  { %2162 = vmatpush1.bf16.msra.mxu1 %v9220_v57  ;;  %v9252_v57 = vld [vmem:[#allocation10 + $0xd4] ss:$8 sps:$4 sm:$0xff]  }
 0xb5a   :  { %2163 = vmatprep.subr.bf16.mxu1 %v9228_v32 }
 0xb5d   :  { %2164 = vmatpush1.bf16.msra.mxu1 %v9226_v35 }
 0xb5e   :  { %2165 = vmatprep.subr.bf16.mxu1 %v9234_v49 }
 0xb61   :  { %2166 = vmatpush1.bf16.msra.mxu1 %v9232_v50 }
 0xb62   :  { %2167 = vmatprep.subr.bf16.mxu1 %v9240_v47 }
 0xb65   :  { %2168 = vmatpush1.bf16.msra.mxu1 %v9238_v36  ;;  %v10121_v36 = vld [vmem:[%s11975_s3] sm:$0x77] }
 0xb66   :  { %2169 = vmatprep.subr.bf16.mxu1 %v9246_v61 }
 0xb69   :  { %2170 = vmatpush1.bf16.msra.mxu1 %v9244_v15 }
 0xb6a   :  { %2171 = vmatprep.subr.bf16.mxu1 %v9252_v57 }
 0xc0b   :  { %v1537_v8 = vpop.f32.mrb[24].mxu1 }
 0xc0c   :  { %v8810_v17 = vpop.f32.mrb[25].mxu1 }
 0xc0d   :  { %v1540_v54 = vpop.f32.mrb[26].mxu1  ;;  %v10933_v17 = vsub.f32 %v10914_v10, %v1833_v16 }
 0xc0e   :  { %v1579_v18 = vpack.c.bf16 %v1540_v54, %v1537_v8  ;;  %v8811_v19 = vpop.f32.mrb[27].mxu1  ;;  %v10936_v54 = vsub.f32 %v10917_v11, %v1833_v16  ;;  %v9256_v16 = vld [vmem:[#allocation10 + $0xe0] ss:$8 sps:$4 sm:$0xff]  }
 0xc0f   :  { %v1845_v28 = vmul.f32 %v10933_v17, %v10933_v17 }
 0xc10   :  { %1782 = vmatprep.mubr.bf16.mxu0 %v1579_v18  ;;  %v10117_v18 = vld [vmem:[#allocation2 + $0x28] sm:$0xff] }
 0xc11   :  { %1783 = vmatmul.mubr.bf16.gmra.mrb[32].mxu0 %v1578_v9  ;;  %v9183_v9 = vld [vmem:[#allocation11 + $0x64] ss:$16 sps:$4 sm:$0xff]  }
 0xc12   :  { %2614 = vmatprep.subr.bf16.mxu0 %v9183_v9 }
 0xc13   :  { %2615 = vmatpush1.bf16.msra.mxu0 %v9181_v34  ;;  %v1846_v34 = vmul.f32 %v10936_v54, %v10936_v54 }
 0xc14   :  { %2616 = vmatprep.subr.bf16.mxu0 %v9189_v12 }
 0xc15   :  { %v1853_v13 = vadd.f32 %v1846_v34, %v1845_v28 }
 0xc17   :  { %2617 = vmatpush1.bf16.msra.mxu0 %v9187_v3  ;;  %v9225_v3 = vld [vmem:[#allocation11 + $0x144] ss:$16 sps:$4 sm:$0xff]  }
 0xc18   :  { %2618 = vmatprep.subr.bf16.mxu0 %v9195_v29  ;;  %v9223_v29 = vld [vmem:[#allocation11 + $0x140] ss:$16 sps:$4 sm:$0xff]  }
 0xc1b   :  { %2619 = vmatpush1.bf16.msra.mxu0 %v9193_v40  ;;  %v9231_v40 = vld [vmem:[#allocation11 + $0x164] ss:$16 sps:$4 sm:$0xff]  }
 0xc1c   :  { %2620 = vmatprep.subr.bf16.mxu0 %v9201_v44  ;;  %v9229_v44 = vld [vmem:[#allocation11 + $0x160] ss:$16 sps:$4 sm:$0xff]  }
 0xc1f   :  { %2621 = vmatpush1.bf16.msra.mxu0 %v9199_v58  ;;  %v9237_v58 = vld [vmem:[#allocation11 + $0x184] ss:$16 sps:$4 sm:$0xff]  }
 0xc20   :  { %2622 = vmatprep.subr.bf16.mxu0 %v9207_v62  ;;  %v9235_v62 = vld [vmem:[#allocation11 + $0x180] ss:$16 sps:$4 sm:$0xff]  }
 0xc23   :  { %2623 = vmatpush1.bf16.msra.mxu0 %v9205_v43  ;;  %v9243_v43 = vld [vmem:[#allocation11 + $0x1a4] ss:$16 sps:$4 sm:$0xff]  }
 0xc24   :  { %2624 = vmatprep.subr.bf16.mxu0 %v9213_v60  ;;  %v9241_v60 = vld [vmem:[#allocation11 + $0x1a0] ss:$16 sps:$4 sm:$0xff]  }
 0xc27   :  { %2625 = vmatpush1.bf16.msra.mxu0 %v9211_v24  ;;  %v9249_v24 = vld [vmem:[#allocation11 + $0x1c4] ss:$16 sps:$4 sm:$0xff]  }
 0xc28   :  { %2626 = vmatprep.subr.bf16.mxu0 %v9219_v56  ;;  %v9247_v56 = vld [vmem:[#allocation11 + $0x1c0] ss:$16 sps:$4 sm:$0xff]  }
 0xc2b   :  { %2627 = vmatpush1.bf16.msra.mxu0 %v9217_v1  ;;  %v9250_v1 = vld [vmem:[#allocation10 + $0xd0] ss:$8 sps:$4 sm:$0xff]  }
 0xc2c   :  { %2628 = vmatprep.subr.bf16.mxu0 %v9225_v3  ;;  %2172 = vmatpush1.bf16.msra.mxu1 %v9250_v1 }
 0xc2d   :  { %2173 = vmatprep.subr.bf16.mxu1 %v9258_v53 }
 0xc2f   :  { %2629 = vmatpush1.bf16.msra.mxu0 %v9223_v29 }
 0xc30   :  { %2630 = vmatprep.subr.bf16.mxu0 %v9231_v40  ;;  %2174 = vmatpush1.bf16.msra.mxu1 %v9256_v16 }
 0xc33   :  { %2631 = vmatpush1.bf16.msra.mxu0 %v9229_v44 }
 0xc34   :  { %2632 = vmatprep.subr.bf16.mxu0 %v9237_v58  ;;  %v10120_v58 = vld [vmem:[%s12009_s1] sm:$0x77] }
 0xc35   :  { %v1888_v47 = vrot.slane %v10120_v58, %v10760_v51 }
 0xc37   :  { %2633 = vmatpush1.bf16.msra.mxu0 %v9235_v62  ;;  %v1892_v62 = vrot.slane %v10120_v58, %v10799_v48  ;;  %v11009_v15 = vrot.slane %v1888_v47, %v10760_v51  ;;  %v9279_v58 = vld [vmem:[#allocation11 + $0xac] ss:$16 sps:$4 sm:$0xff]  }
 0xc38   :  { %2634 = vmatprep.subr.bf16.mxu0 %v9243_v43  ;;  %v1918_v43 = vrot.slane %v10121_v36, %v10799_v48  ;;  %v9282_v47 = vld [vmem:[#allocation11 + $0xcc] ss:$16 sps:$4 sm:$0xff]  }
 0xc39   :  { %v11006_v61 = vrot.slane %v1892_v62, %v10760_v51  ;;  %v9277_v62 = vld [vmem:[#allocation11 + $0xa8] ss:$16 sps:$4 sm:$0xff]  }
 0xc3b   :  { %2635 = vmatpush1.bf16.msra.mxu0 %v9241_v60  ;;  %v1914_v60 = vrot.slane %v10121_v36, %v10760_v51  ;;  %v9280_v36 = vld [vmem:[#allocation11 + $0xc8] ss:$16 sps:$4 sm:$0xff]  }
 0xc3c   :  { %2636 = vmatprep.subr.bf16.mxu0 %v9249_v24 }
 0xc3f   :  { %2637 = vmatpush1.bf16.msra.mxu0 %v9247_v56 }
 0xc40   :  { %2638 = vmatprep.subr.bf16.mxu0 %v9255_v6  ;;  %v11014_v6 = vrot.slane %v1918_v43, %v10760_v51  ;;  %v9285_v43 = vld [vmem:[#allocation11 + $0xec] ss:$16 sps:$4 sm:$0xff]  }
 0xc43   :  { %2639 = vmatpush1.bf16.msra.mxu0 %v9253_v2  ;;  %v11017_v2 = vrot.slane %v1914_v60, %v10760_v51  ;;  %v9283_v60 = vld [vmem:[#allocation11 + $0xe8] ss:$16 sps:$4 sm:$0xff]  }
 0xc44   :  { %8812 = vmatprep.subr.bf16.mxu0 %v10375_v59 }
 0xce4   :  { %v1784_v20 = vpop.f32.mrb[32].mxu0 }
 0xce5   :  { %v1797_v52 = vadd.f32 %v10116_v21, %v1784_v20  ;;  %v1786_v8 = vpop.f32.mrb[33].mxu0  ;;  %v192_v20 = vld [vmem:[#allocation5 + $0x8] sm:$0xff]  ;;  %v194_v21 = vld [vmem:[#allocation5 + $0x18] sm:$0xff] }
 0xce6   :  { %v1798_v19 = vadd.f32 %v10117_v18, %v1786_v8  ;;  %v1788_v22 = vpop.f32.mrb[34].mxu0  ;;  %v10968_v8 = vpack.c.bf16 %v194_v21, %v192_v20  ;;  %v193_v18 = vld [vmem:[#allocation5 + $0x10] sm:$0xff] }
 0xce7   :  { %v10939_v23 = vadd.f32 %v10908_v55, %v1797_v52  ;;  %v1799_v31 = vadd.f32 %v10118_v25, %v1788_v22  ;;  %v1790_v33 = vpop.f32.mrb[35].mxu0  ;;  %v191_v52 = vld [vmem:[#allocation5] sm:$0xff]  ;;  %v9259_v25 = vld [vmem:[#allocation10 + $0xf0] ss:$8 sps:$4 sm:$0xff]  }
 0xce8   :  { %v10948_v37 = vadd.f32 %v10911_v63, %v1798_v19  ;;  %v1800_v14 = vadd.f32 %v10119_v4, %v1790_v33  ;;  %v9261_v19 = vld [vmem:[#allocation10 + $0xf4] ss:$8 sps:$4 sm:$0xff]   ;;  %v10970_v22 = vpack.c.bf16 %v193_v18, %v191_v52  ;;  %2640 = vmatprep.mubr.bf16.mxu0 %v10968_v8 }
 0xce9   :  { %v10951_v38 = vadd.f32 %v10908_v55, %v1799_v31  ;;  %v1847_v55 = vmul.f32 %v10942_v39, %v10942_v39  ;;  %2175 = vmatprep.subr.bf16.mxu1 %v9261_v19 }
 0xcea   :  { %v10954_v9 = vadd.f32 %v10911_v63, %v1800_v14  ;;  %v1827_v42 = vadd.f32 %v10948_v37, %v10939_v23  ;;  %v1848_v63 = vmul.f32 %v10945_v26, %v10945_v26  ;;  %2641 = vmatmul.mubr.bf16.vlgmr.msra.gmra.mrb[36].mxu0 %v10970_v22  ;;  %2176 = vmatpush1.bf16.msra.mxu1 %v9259_v25 }
 0xcec   :  { %1828 = vadd.xlane.f32.xlu0 %v1827_v42  ;;  %v1830_v12 = vadd.f32 %v10954_v9, %v10951_v38  ;;  %v1856_v0 = vadd.f32 %v1848_v63, %v1847_v55 }
 0xcee   :  { %1831 = vadd.xlane.f32.xlu1 %v1830_v12 }
 0xcf0   :  { %1854 = vadd.xlane.f32.xlu0 %v1853_v13 }
 0xcf2   :  { %1857 = vadd.xlane.f32.xlu1 %v1856_v0 }
 0xd79   :  { %v1829_v31 = vpop.xlane.xlu0 %1828 }
 0xd7a   :  { %v1835_v33 = vmul.f32 0.00390625, %v1829_v31 }
 0xd7b   :  { %v1832_v4 = vpop.xlane.xlu1 %1831 }
 0xd7c   :  { %v10976_v14 = vsub.f32 %v10939_v23, %v1835_v33  ;;  %v10979_v42 = vsub.f32 %v10948_v37, %v1835_v33  ;;  %v1836_v28 = vmul.f32 0.00390625, %v1832_v4  ;;  %v196_v33 = vld [vmem:[#allocation5 + $0x28] sm:$0xff]  ;;  %v195_v4 = vld [vmem:[#allocation5 + $0x20] sm:$0xff] }
 0xd7d   :  { %v1855_v34 = vpop.xlane.xlu0 %1854 }
 0xd7e   :  { %v10982_v12 = vsub.f32 %v10951_v38, %v1836_v28  ;;  %v10985_v55 = vsub.f32 %v10954_v9, %v1836_v28  ;;  %v1865_v63 = vmul.f32 0.00390625, %v1855_v34  ;;  %v1849_v13 = vmul.f32 %v10976_v14, %v10976_v14  ;;  %v197_v34 = vld [vmem:[#allocation5 + $0x30] sm:$0xff] }
 0xd7f   :  { %v1858_v0 = vpop.xlane.xlu1 %1857  ;;  %v1850_v3 = vmul.f32 %v10979_v42, %v10979_v42 }
 0xd80   :  { %v1869_v29 = vadd.f32 1e-05, %v1865_v63  ;;  %v1866_v32 = vmul.f32 0.00390625, %v1858_v0  ;;  %v1851_v35 = vmul.f32 %v10982_v12, %v10982_v12  ;;  %v1852_v40 = vmul.f32 %v10985_v55, %v10985_v55  ;;  %v9262_v63 = vld [vmem:[#allocation11 + $0x8] ss:$16 sps:$4 sm:$0xff]  }
 0xd81   :  { %v1859_v44 = vadd.f32 %v1850_v3, %v1849_v13  ;;  %v9264_v13 = vld [vmem:[#allocation11 + $0xc] ss:$16 sps:$4 sm:$0xff]   ;;  %v11031_v0 = vpack.c.bf16 %v197_v34, %v195_v4 }
 0xd82   :  { %9974 = vrsqrt.f32 %v1869_v29  ;;  %v1870_v49 = vadd.f32 1e-05, %v1866_v32  ;;  %v1862_v50 = vadd.f32 %v1852_v40, %v1851_v35  ;;  %2661 = vmatprep.subr.bf16.mxu1 %v9264_v13  ;;  %v9267_v3 = vld [vmem:[#allocation11 + $0x2c] ss:$16 sps:$4 sm:$0xff]   ;;  %v9265_v29 = vld [vmem:[#allocation11 + $0x28] ss:$16 sps:$4 sm:$0xff]  }
 0xd83   :  { %1860 = vadd.xlane.f32.xlu0 %v1859_v44  ;;  %v9270_v32 = vld [vmem:[#allocation11 + $0x4c] ss:$16 sps:$4 sm:$0xff]   ;;  %v9268_v35 = vld [vmem:[#allocation11 + $0x48] ss:$16 sps:$4 sm:$0xff]  }
 0xd84   :  { %9976 = vrsqrt.f32 %v1870_v49  ;;  %1863 = vadd.xlane.f32.xlu1 %v1862_v50  ;;  %v9273_v40 = vld [vmem:[#allocation11 + $0x6c] ss:$16 sps:$4 sm:$0xff]   ;;  %v9271_v44 = vld [vmem:[#allocation11 + $0x68] ss:$16 sps:$4 sm:$0xff]  }
 0xd85   :  { %v9276_v49 = vld [vmem:[#allocation11 + $0x8c] ss:$16 sps:$4 sm:$0xff]   ;;  %v9274_v50 = vld [vmem:[#allocation11 + $0x88] ss:$16 sps:$4 sm:$0xff]  }
 0xd8c   :  { %v9975_v24 = vpop.eup %9974 }
 0xd8d   :  { %v1877_v56 = vmul.f32 %v9975_v24, %v10933_v17  ;;  %v1878_v57 = vmul.f32 %v9975_v24, %v10936_v54  ;;  %v9288_v24 = vld [vmem:[#allocation11 + $0x10c] ss:$16 sps:$4 sm:$0xff]  }
 0xd8e   :  { %v9977_v1 = vpop.eup %9976 }
 0xd8f   :  { %v1879_v16 = vmul.f32 %v9977_v1, %v10942_v39  ;;  %v1880_v53 = vmul.f32 %v9977_v1, %v10945_v26  ;;  %v1904_v20 = vmul.f32 %v11006_v61, %v1878_v57  ;;  %v1903_v21 = vmul.f32 %v11009_v15, %v1877_v56  ;;  %v198_v26 = vld [vmem:[#allocation5 + $0x38] sm:$0xff] }
 0xd90   :  { %v11029_v28 = vpack.c.bf16 %v198_v26, %v196_v33  ;;  %v9286_v56 = vld [vmem:[#allocation11 + $0x108] ss:$16 sps:$4 sm:$0xff]   ;;  %v9291_v57 = vld [vmem:[#allocation11 + $0x12c] ss:$16 sps:$4 sm:$0xff]   ;;  %v11040_v33 = vld [vmem:[%s11983_s11] sm:$0xf] }
 0xd91   :  { %v1906_v52 = vmul.f32 %v11006_v61, %v1880_v53  ;;  %v1905_v17 = vmul.f32 %v11009_v15, %v1879_v16  ;;  %v1930_v54 = vadd.f32 %v11014_v6, %v1904_v20  ;;  %v1929_v19 = vadd.f32 %v11017_v2, %v1903_v21  ;;  %v9289_v1 = vld [vmem:[#allocation11 + $0x128] ss:$16 sps:$4 sm:$0xff]   ;;  %v9294_v16 = vld [vmem:[#allocation11 + $0x14c] ss:$16 sps:$4 sm:$0xff]  }
 0xd92   :  { %2650 = vmatprep.mubr.bf16.mxu0 %v11029_v28  ;;  %v9292_v53 = vld [vmem:[#allocation11 + $0x148] ss:$16 sps:$4 sm:$0xff]   ;;  %v9297_v20 = vld [vmem:[#allocation11 + $0x16c] ss:$16 sps:$4 sm:$0xff]   ;;  %v11044_v26 = vrot.slane %v11040_v33, %v10682_v45  ;;  %v11049_v4 = vrot.slane %v11040_v33, %v10760_v51 }
 0xd93   :  { %v1932_v18 = vadd.f32 %v11014_v6, %v1906_v52  ;;  %v1931_v25 = vadd.f32 %v11017_v2, %v1905_v17  ;;  %2651 = vmatmul.mubr.bf16.gmra.mrb[40].mxu0 %v11031_v0  ;;  %v9295_v21 = vld [vmem:[#allocation11 + $0x168] ss:$16 sps:$4 sm:$0xff]   ;;  %v9300_v52 = vld [vmem:[#allocation11 + $0x18c] ss:$16 sps:$4 sm:$0xff]  }
 0xd94   :  { %8814 = vmatprep.mubr.msk.bf16.mxu0 %vm10376_vm0, %v10375_v59  ;;  %v9298_v17 = vld [vmem:[#allocation11 + $0x188] ss:$16 sps:$4 sm:$0xff]  }
 0xd95   :  { %v1970_v31 = vpack.c.bf16 %v1932_v18, %v1930_v54  ;;  %v1969_v39 = vpack.c.bf16 %v1931_v25, %v1929_v19  ;;  %v9303_v54 = vld [vmem:[#allocation11 + $0x1ac] ss:$16 sps:$4 sm:$0xff]   ;;  %v9301_v18 = vld [vmem:[#allocation11 + $0x1a8] ss:$16 sps:$4 sm:$0xff]  }
 0xd96   :  { %v9306_v19 = vld [vmem:[#allocation11 + $0x1cc] ss:$16 sps:$4 sm:$0xff]   ;;  %v9304_v25 = vld [vmem:[#allocation11 + $0x1c8] ss:$16 sps:$4 sm:$0xff]  }
 0xd97   :  { %2177 = vmatprep.mubr.bf16.mxu1 %v1970_v31  ;;  %v9309_v31 = vld [vmem:[#allocation11 + $0x1ec] ss:$16 sps:$4 sm:$0xff]  }
 0xd98   :  { %2178 = vmatmul.mubr.bf16.vlgmr.msra.gmra.mrb[28].mxu1 %v1969_v39  ;;  %v9307_v39 = vld [vmem:[#allocation11 + $0x1e8] ss:$16 sps:$4 sm:$0xff]  }
 0xd99   :  { %2662 = vmatpush1.bf16.msra.mxu1 %v9262_v63 }
 0xd9a   :  { %2663 = vmatprep.subr.bf16.mxu1 %v9267_v3 }
 0xd9d   :  { %2664 = vmatpush1.bf16.msra.mxu1 %v9265_v29 }
 0xd9e   :  { %2665 = vmatprep.subr.bf16.mxu1 %v9270_v32 }
 0xda1   :  { %2666 = vmatpush1.bf16.msra.mxu1 %v9268_v35 }
 0xda2   :  { %2667 = vmatprep.subr.bf16.mxu1 %v9273_v40 }
 0xda5   :  { %2668 = vmatpush1.bf16.msra.mxu1 %v9271_v44 }
 0xda6   :  { %2669 = vmatprep.subr.bf16.mxu1 %v9276_v49 }
 0xda9   :  { %2670 = vmatpush1.bf16.msra.mxu1 %v9274_v50 }
 0xdaa   :  { %2671 = vmatprep.subr.bf16.mxu1 %v9279_v58 }
 0xdad   :  { %2672 = vmatpush1.bf16.msra.mxu1 %v9277_v62 }
 0xdae   :  { %2673 = vmatprep.subr.bf16.mxu1 %v9282_v47 }
 0xdb1   :  { %2674 = vmatpush1.bf16.msra.mxu1 %v9280_v36 }
 0xdb2   :  { %2675 = vmatprep.subr.bf16.mxu1 %v9285_v43 }
 0xdb5   :  { %2676 = vmatpush1.bf16.msra.mxu1 %v9283_v60 }
 0xdb6   :  { %2677 = vmatprep.subr.bf16.mxu1 %v9288_v24 }
 0xdb9   :  { %2678 = vmatpush1.bf16.msra.mxu1 %v9286_v56 }
 0xdba   :  { %2679 = vmatprep.subr.bf16.mxu1 %v9291_v57 }
 0xdbd   :  { %2680 = vmatpush1.bf16.msra.mxu1 %v9289_v1  ;;  %v2642_v34 = vpop.f32.mrb[36].mxu0 }
 0xdbe   :  { %2681 = vmatprep.subr.bf16.mxu1 %v9294_v16  ;;  %v2643_v63 = vadd.f32 %v2642_v34, %v11044_v26  ;;  %v2644_v13 = vpop.f32.mrb[37].mxu0 }
 0xdbf   :  { %v2645_v3 = vadd.f32 %v2644_v13, %v11049_v4  ;;  %v2646_v29 = vpop.f32.mrb[38].mxu0 }
 0xdc0   :  { %v2647_v32 = vadd.f32 %v2646_v29, %v11044_v26  ;;  %v2648_v35 = vpop.f32.mrb[39].mxu0 }
 0xdc1   :  { %2682 = vmatpush1.bf16.msra.mxu1 %v9292_v53  ;;  %v2649_v40 = vadd.f32 %v2648_v35, %v11049_v4 }
 0xdc2   :  { %2683 = vmatprep.subr.bf16.mxu1 %v9297_v20  ;;  %v2717_v44 = vpack.c.bf16 %v2647_v32, %v2643_v63 }
 0xdc3   :  { %v2830_v49 = vpack.c.bf16 %v2649_v40, %v2645_v3 }
 0xdc4   :  { %8813 = vmatpush3.bf16.xpose.msra.mxu0 %v2717_v44 }
 0xdc5   :  { %2684 = vmatpush1.bf16.msra.mxu1 %v9295_v21  ;;  %8818 = vmatprep.subr.bf16.mxu0 %v10375_v59 }
 0xdc6   :  { %2685 = vmatprep.subr.bf16.mxu1 %v9300_v52 }
 0xdc9   :  { %2686 = vmatpush1.bf16.msra.mxu1 %v9298_v17 }
 0xdca   :  { %2687 = vmatprep.subr.bf16.mxu1 %v9303_v54 }
 0xdcd   :  { %2688 = vmatpush1.bf16.msra.mxu1 %v9301_v18 }
 0xdce   :  { %2689 = vmatprep.subr.bf16.mxu1 %v9306_v19 }
 0xdd1   :  { %2690 = vmatpush1.bf16.msra.mxu1 %v9304_v25 }
 0xdd2   :  { %2691 = vmatprep.subr.bf16.mxu1 %v9309_v31 }
 0xdd5   :  { %2692 = vmatpush1.bf16.msra.mxu1 %v9307_v39 }
 0xdd6   :  { %8824 = vmatprep.subr.bf16.mxu1 %v10375_v59 }
 0xe10   :  { %v1861_v50 = vpop.xlane.xlu0 %1860 }
 0xe11   :  { %v1867_v58 = vmul.f32 0.00390625, %v1861_v50  ;;  %v1864_v62 = vpop.xlane.xlu1 %1863 }
 0xe12   :  { %v1868_v47 = vmul.f32 0.00390625, %v1864_v62 }
 0xe13   :  { %v1871_v36 = vadd.f32 1e-05, %v1867_v58 }
 0xe14   :  { %v1872_v43 = vadd.f32 1e-05, %v1868_v47 }
 0xe15   :  { %9978 = vrsqrt.f32 %v1871_v36 }
 0xe16   :  { %9980 = vrsqrt.f32 %v1872_v43 }
 0xe1f   :  { %v9979_v60 = vpop.eup %9978 }
 0xe20   :  { %v9981_v24 = vpop.eup %9980  ;;  %v1882_v56 = vmul.f32 %v9979_v60, %v10979_v42  ;;  %v1881_v57 = vmul.f32 %v9979_v60, %v10976_v14 }
 0xe21   :  { %v1884_v1 = vmul.f32 %v9981_v24, %v10985_v55  ;;  %v1883_v16 = vmul.f32 %v9981_v24, %v10982_v12  ;;  %v1973_v12 = vld [vmem:[%s11981_s9] sm:$0x3] }
 0xe22   :  { %v1908_v53 = vmul.f32 %v11006_v61, %v1882_v56  ;;  %v1907_v20 = vmul.f32 %v11009_v15, %v1881_v57 }
 0xe23   :  { %v1910_v21 = vmul.f32 %v11006_v61, %v1884_v1  ;;  %v1909_v52 = vmul.f32 %v11009_v15, %v1883_v16  ;;  %v1978_v61 = vrot.slane %v1973_v12, %v10682_v45  ;;  %v1982_v15 = vrot.slane %v1973_v12, %v10760_v51 }
 0xe24   :  { %v1934_v17 = vadd.f32 %v11014_v6, %v1908_v53  ;;  %v1933_v42 = vadd.f32 %v11017_v2, %v1907_v20 }
 0xe25   :  { %v1936_v54 = vadd.f32 %v11014_v6, %v1910_v21  ;;  %v1935_v14 = vadd.f32 %v11017_v2, %v1909_v52 }
 0xe27   :  { %v1972_v18 = vpack.c.bf16 %v1936_v54, %v1934_v17  ;;  %v1971_v55 = vpack.c.bf16 %v1935_v14, %v1933_v42  ;;  %v2279_v54 = vrot.slane %v11040_v33, %v10766_v5 }
 0xe29   :  { %2187 = vmatprep.mubr.bf16.mxu1 %v1972_v18  ;;  %v2283_v18 = vrot.slane %v11040_v33, %v10769_v7 }
 0xe2a   :  { %2188 = vmatmul.mubr.bf16.gmra.mrb[32].mxu1 %v1971_v55 }
 0xe2b   :  { %2693 = vmatprep.mubr.bf16.mxu1 %v10968_v8 }
 0xe32   :  { %2694 = vmatmul.mubr.bf16.vlgmr.msra.gmra.mrb[36].mxu1 %v10970_v22 }
 0xe33   :  { %2703 = vmatprep.mubr.bf16.mxu1 %v11029_v28  ;;  %8825 = vmatpush3.bf16.xpose.msra.mxu1 %v2830_v49 }
 0xe34   :  { %8836 = vmatprep.subr.bf16.mxu1 %v10375_v59 }
 0xe3a   :  { %2704 = vmatmul.mubr.bf16.gmra.mrb[40].mxu1 %v11031_v0 }
 0xe3b   :  { %8826 = vmatprep.mubr.msk.bf16.mxu1 %vm10376_vm0, %v10375_v59 }
 0xe66   :  { %v2652_v39 = vpop.f32.mrb[40].mxu0 }
 0xe67   :  { %v2653_v13 = vadd.f32 %v2652_v39, %v11044_v26  ;;  %v2654_v3 = vpop.f32.mrb[41].mxu0 }
 0xe68   :  { %v2656_v32 = vpop.f32.mrb[42].mxu0  ;;  %v2655_v36 = vadd.f32 %v2654_v3, %v11049_v4 }
 0xe69   :  { %v2657_v44 = vadd.f32 %v2656_v32, %v11044_v26  ;;  %v2658_v43 = vpop.f32.mrb[43].mxu0 }
 0xe6a   :  { %v2659_v26 = vadd.f32 %v2658_v43, %v11049_v4 }
 0xe6b   :  { %v2179_v6 = vpop.f32.mrb[28].mxu1  ;;  %v2943_v62 = vpack.c.bf16 %v2657_v44, %v2653_v13 }
 0xe6c   :  { %v2180_v2 = vadd.f32 %v2179_v6, %v1978_v61  ;;  %v2181_v19 = vpop.f32.mrb[29].mxu1  ;;  %v3056_v60 = vpack.c.bf16 %v2659_v26, %v2655_v36 }
 0xe6d   :  { %v2182_v25 = vadd.f32 %v2181_v19, %v1982_v15  ;;  %v2183_v31 = vpop.f32.mrb[30].mxu1 }
 0xe6e   :  { %v2184_v34 = vadd.f32 %v2183_v31, %v1978_v61  ;;  %v2185_v63 = vpop.f32.mrb[31].mxu1  ;;  %v2714_v35 = vmul.f32 0.088388346, %v2180_v2 }
 0xe6f   :  { %v2186_v29 = vadd.f32 %v2185_v63, %v1982_v15  ;;  %v2827_v49 = vmul.f32 0.088388346, %v2182_v25 }
 0xe70   :  { %v2715_v40 = vmul.f32 0.088388346, %v2184_v34 }
 0xe71   :  { %v2828_v50 = vmul.f32 0.088388346, %v2186_v29 }
 0xe72   :  { %v2716_v58 = vpack.c.bf16 %v2715_v40, %v2714_v35 }
 0xe73   :  { %v2829_v47 = vpack.c.bf16 %v2828_v50, %v2827_v49 }
 0xe74   :  { %8815 = vmatmul.mubr.bf16.vlgmr.msra.gmra.mrb[44].mxu0 %v2716_v58 }
 0xe75   :  { %8827 = vmatmul.mubr.bf16.vlgmr.msra.gmra.mrb[44].mxu1 %v2829_v47  ;;  %8820 = vmatprep.mubr.msk.bf16.mxu0 %vm10376_vm0, %v10375_v59 }
 0xe76   :  { %8837 = vmatpush3.bf16.xpose.msra.mxu1 %v2943_v62  ;;  %8838 = vmatprep.mubr.msk.bf16.mxu1 %vm10376_vm0, %v10375_v59 }
 0xe77   :  { %8848 = vmatprep.subr.bf16.mxu1 %v10375_v59 }
 0xefd   :  { %v2189_v24 = vpop.f32.mrb[32].mxu1 }
 0xefe   :  { %v2190_v56 = vadd.f32 %v2189_v24, %v1978_v61  ;;  %v2191_v57 = vpop.f32.mrb[33].mxu1 }
 0xeff   :  { %v2192_v1 = vadd.f32 %v2191_v57, %v1982_v15  ;;  %v2193_v16 = vpop.f32.mrb[34].mxu1 }
 0xf00   :  { %v2194_v53 = vadd.f32 %v2193_v16, %v1978_v61  ;;  %v2195_v20 = vpop.f32.mrb[35].mxu1  ;;  %v2940_v52 = vmul.f32 0.088388346, %v2190_v56 }
 0xf01   :  { %v2196_v21 = vadd.f32 %v2195_v20, %v1982_v15  ;;  %v3053_v42 = vmul.f32 0.088388346, %v2192_v1 }
 0xf02   :  { %v2941_v17 = vmul.f32 0.088388346, %v2194_v53 }
 0xf03   :  { %v3054_v14 = vmul.f32 0.088388346, %v2196_v21 }
 0xf04   :  { %v2942_v4 = vpack.c.bf16 %v2941_v17, %v2940_v52 }
 0xf05   :  { %v3055_v55 = vpack.c.bf16 %v3054_v14, %v3053_v42  ;;  %v2695_v12 = vpop.f32.mrb[36].mxu1 }
 0xf06   :  { %8839 = vmatmul.mubr.bf16.vlgmr.msra.gmra.mrb[48].mxu1 %v2942_v4  ;;  %v2696_v6 = vadd.f32 %v2695_v12, %v2279_v54  ;;  %v2697_v2 = vpop.f32.mrb[37].mxu1 }
 0xf07   :  { %8849 = vmatpush3.bf16.xpose.msra.mxu1 %v3056_v60  ;;  %8850 = vmatprep.mubr.msk.bf16.mxu1 %vm10376_vm0, %v10375_v59  ;;  %v11095_v61 = vadd.f32 %v2697_v2, %v2283_v18  ;;  %v2699_v15 = vpop.f32.mrb[38].mxu1 }
 0xf08   :  { %v2700_v19 = vadd.f32 %v2699_v15, %v2279_v54  ;;  %v2701_v25 = vpop.f32.mrb[39].mxu1 }
 0xf09   :  { %v11097_v31 = vadd.f32 %v2701_v25, %v2283_v18 }
 0xf0a   :  { %v2718_v39 = vpack.c.bf16 %v2700_v19, %v2696_v6 }
 0xf0b   :  { %v2831_v33 = vpack.c.bf16 %v11097_v31, %v11095_v61  ;;  %v9310_v61 = vld [vmem:[#allocation13] ss:$8 sps:$4 sm:$0xff]   ;;  %v9312_v31 = vld [vmem:[#allocation13 + $0x4] ss:$8 sps:$4 sm:$0xff]  }
 0xf0c   :  { %8819 = vmatpush3.bf16.msra.mxu0 %v2718_v39  ;;  %3362 = vmatprep.subr.bf16.mxu1 %v9312_v31 }
 0xf0d   :  { %v2705_v34 = vpop.f32.mrb[40].mxu1  ;;  %8830 = vmatprep.subr.bf16.mxu0 %v10375_v59 }
 0xf0e   :  { %8851 = vmatmul.mubr.bf16.vlgmr.msra.gmra.mrb[52].mxu1 %v3055_v55  ;;  %v11102_v63 = vadd.f32 %v2705_v34, %v2279_v54  ;;  %v2707_v13 = vpop.f32.mrb[41].mxu1 }
 0xf0f   :  { %v11104_v3 = vadd.f32 %v2707_v13, %v2283_v18  ;;  %v2709_v29 = vpop.f32.mrb[42].mxu1  ;;  %3363 = vmatpush1.bf16.msra.mxu1 %v9310_v61 }
 0xf10   :  { %v11106_v32 = vadd.f32 %v2709_v29, %v2279_v54  ;;  %v2711_v35 = vpop.f32.mrb[43].mxu1 }
 0xf11   :  { %v11108_v40 = vadd.f32 %v2711_v35, %v2283_v18 }
 0xf12   :  { %v2944_v44 = vpack.c.bf16 %v11106_v32, %v11102_v63  ;;  %v9319_v63 = vld [vmem:[#allocation13 + $0x30] ss:$8 sps:$4 sm:$0xff]   ;;  %v9324_v32 = vld [vmem:[#allocation13 + $0x44] ss:$8 sps:$4 sm:$0xff]  }
 0xf13   :  { %v3057_v49 = vpack.c.bf16 %v11108_v40, %v11104_v3 }
 0xf47   :  { %v2753_v50 = vpop.f32.mrb[44].mxu0 }
 0xf48   :  { %v8816_v58 = vpop.f32.mrb[45].mxu0  ;;  %v2866_v62 = vpop.f32.mrb[44].mxu1  ;;  %v2760_v47 = vsel %vm1137_vm1, %v2753_v50, -inf }
 0xf49   :  { %v8828_v36 = vpop.f32.mrb[45].mxu1  ;;  %2761 = vmax.xlane.f32.xlu0 %v2760_v47  ;;  %v2756_v43 = vpop.f32.mrb[46].mxu0  ;;  %v2873_v57 = vsel %vm1137_vm1, %v2866_v62, -inf }
 0xf4a   :  { %v8817_v26 = vpop.f32.mrb[47].mxu0  ;;  %v2869_v60 = vpop.f32.mrb[46].mxu1  ;;  %v2763_v24 = vsel %vm1137_vm1, %v2756_v43, -inf }
 0xf4b   :  { %v8829_v56 = vpop.f32.mrb[47].mxu1  ;;  %2764 = vmax.xlane.f32.xlu1 %v2763_v24  ;;  %v2876_v1 = vsel %vm1137_vm1, %v2869_v60, -inf }
 0xf4d   :  { %2874 = vmax.xlane.f32.xlu0 %v2873_v57 }
 0xf4f   :  { %2877 = vmax.xlane.f32.xlu1 %v2876_v1 }
 0xfd6   :  { %v2762_v16 = vpop.xlane.xlu0 %2761 }
 0xfd7   :  { %v2766_v53 = vsub.f32 %v2753_v50, %v2762_v16 }
 0xfd8   :  { %v2765_v20 = vpop.xlane.xlu1 %2764 }
 0xfd9   :  { %v2768_v21 = vmul.f32 1.442695, %v2766_v53  ;;  %v2767_v52 = vsub.f32 %v2756_v43, %v2765_v20  ;;  %v2979_v17 = vpop.f32.mrb[48].mxu1 }
 0xfda   :  { %v8840_v54 = vpop.f32.mrb[49].mxu1  ;;  %v2875_v42 = vpop.xlane.xlu0 %2874  ;;  %v2986_v14 = vsel %vm1137_vm1, %v2979_v17, -inf }
 0xfdb   :  { %9982 = vpow2.f32 %v2768_v21  ;;  %v2770_v18 = vmul.f32 1.442695, %v2767_v52  ;;  %v2879_v4 = vsub.f32 %v2866_v62, %v2875_v42  ;;  %v2982_v55 = vpop.f32.mrb[50].mxu1  ;;  %2987 = vmax.xlane.f32.xlu0 %v2986_v14 }
 0xfdc   :  { %v8841_v12 = vpop.f32.mrb[51].mxu1  ;;  %v2878_v6 = vpop.xlane.xlu1 %2877  ;;  %v2989_v2 = vsel %vm1137_vm1, %v2982_v55, -inf }
 0xfdd   :  { %9984 = vpow2.f32 %v2770_v18  ;;  %v2881_v15 = vmul.f32 1.442695, %v2879_v4  ;;  %v2880_v19 = vsub.f32 %v2869_v60, %v2878_v6  ;;  %2990 = vmax.xlane.f32.xlu1 %v2989_v2 }
 0xfdf   :  { %9986 = vpow2.f32 %v2881_v15  ;;  %v2883_v25 = vmul.f32 1.442695, %v2880_v19 }
 0xfe1   :  { %9988 = vpow2.f32 %v2883_v25  ;;  %v3092_v39 = vpop.f32.mrb[52].mxu1 }
 0xfe2   :  { %v8852_v34 = vpop.f32.mrb[53].mxu1  ;;  %v3099_v13 = vsel %vm1137_vm1, %v3092_v39, -inf }
 0xfe3   :  { %v3095_v29 = vpop.f32.mrb[54].mxu1  ;;  %3100 = vmax.xlane.f32.xlu0 %v3099_v13 }
 0xfe4   :  { %v8853_v35 = vpop.f32.mrb[55].mxu1  ;;  %v3102_v50 = vsel %vm1137_vm1, %v3095_v29, -inf }
 0xfe5   :  { %v9983_v58 = vpop.eup %9982  ;;  %3103 = vmax.xlane.f32.xlu1 %v3102_v50 }
 0xfe6   :  { %v2772_v62 = vsel %vm1137_vm1, %v9983_v58, 0.0 }
 0xfe7   :  { %v9985_v47 = vpop.eup %9984  ;;  %2773 = vadd.xlane.f32.xlu0 %v2772_v62 }
 0xfe8   :  { %v2775_v36 = vsel %vm1137_vm1, %v9985_v47, 0.0 }
 0xfe9   :  { %v9987_v43 = vpop.eup %9986  ;;  %2776 = vadd.xlane.f32.xlu1 %v2775_v36 }
 0xfea   :  { %v2885_v26 = vsel %vm1137_vm1, %v9987_v43, 0.0 }
 0xfeb   :  { %v9989_v60 = vpop.eup %9988  ;;  %2886 = vadd.xlane.f32.xlu0 %v2885_v26 }
 0xfec   :  { %v2888_v24 = vsel %vm1137_vm1, %v9989_v60, 0.0 }
 0xfed   :  { %2889 = vadd.xlane.f32.xlu1 %v2888_v24 }
0x1068   :  { %v2988_v56 = vpop.xlane.xlu0 %2987 }
0x1069   :  { %v2992_v57 = vsub.f32 %v2979_v17, %v2988_v56 }
0x106a   :  { %v2991_v1 = vpop.xlane.xlu1 %2990 }
0x106b   :  { %v2994_v16 = vmul.f32 1.442695, %v2992_v57  ;;  %v2993_v53 = vsub.f32 %v2982_v55, %v2991_v1 }
0x106d   :  { %9990 = vpow2.f32 %v2994_v16  ;;  %v2996_v20 = vmul.f32 1.442695, %v2993_v53  ;;  %v9327_v16 = vld [vmem:[#allocation13 + $0x54] ss:$8 sps:$4 sm:$0xff]   ;;  %v9325_v53 = vld [vmem:[#allocation13 + $0x50] ss:$8 sps:$4 sm:$0xff]  }
0x106f   :  { %9992 = vpow2.f32 %v2996_v20  ;;  %v9330_v20 = vld [vmem:[#allocation13 + $0x64] ss:$8 sps:$4 sm:$0xff]  }
0x1070   :  { %v3101_v21 = vpop.xlane.xlu0 %3100 }
0x1071   :  { %v3105_v52 = vsub.f32 %v3092_v39, %v3101_v21  ;;  %v9328_v21 = vld [vmem:[#allocation13 + $0x60] ss:$8 sps:$4 sm:$0xff]  }
0x1072   :  { %v3104_v54 = vpop.xlane.xlu1 %3103 }
0x1073   :  { %v3107_v42 = vmul.f32 1.442695, %v3105_v52  ;;  %v3106_v14 = vsub.f32 %v3095_v29, %v3104_v54  ;;  %v9333_v52 = vld [vmem:[#allocation13 + $0x74] ss:$8 sps:$4 sm:$0xff]   ;;  %v9331_v54 = vld [vmem:[#allocation13 + $0x70] ss:$8 sps:$4 sm:$0xff]  }
0x1074   :  { %v2774_v18 = vpop.xlane.xlu0 %2773 }
0x1075   :  { %9994 = vpow2.f32 %v3107_v42  ;;  %v3109_v4 = vmul.f32 1.442695, %v3106_v14  ;;  %v9336_v42 = vld [vmem:[#allocation13 + $0x84] ss:$8 sps:$4 sm:$0xff]   ;;  %v9334_v14 = vld [vmem:[#allocation13 + $0x80] ss:$8 sps:$4 sm:$0xff]  }
0x1076   :  { %9996 = vrcp.f32 %v2774_v18  ;;  %v2777_v12 = vpop.xlane.xlu1 %2776  ;;  %v9339_v18 = vld [vmem:[#allocation13 + $0x94] ss:$8 sps:$4 sm:$0xff]  }
0x1077   :  { %v11126_v6 = vpop.eup %9990  ;;  %9998 = vpow2.f32 %v3109_v4  ;;  %v9337_v4 = vld [vmem:[#allocation13 + $0x90] ss:$8 sps:$4 sm:$0xff]  }
0x1078   :  { %10000 = vrcp.f32 %v2777_v12  ;;  %v2998_v17 = vsel %vm1137_vm1, %v11126_v6, 0.0  ;;  %v2887_v19 = vpop.xlane.xlu0 %2886  ;;  %v9342_v12 = vld [vmem:[#allocation13 + $0xa4] ss:$8 sps:$4 sm:$0xff]  }
0x1079   :  { %v11130_v55 = vpop.eup %9992  ;;  %2999 = vadd.xlane.f32.xlu0 %v2998_v17  ;;  %v9340_v17 = vld [vmem:[#allocation13 + $0xa0] ss:$8 sps:$4 sm:$0xff]  }
0x107a   :  { %v2890_v2 = vpop.xlane.xlu1 %2889  ;;  %v3001_v15 = vsel %vm1137_vm1, %v11130_v55, 0.0 }
0x107b   :  { %3002 = vadd.xlane.f32.xlu1 %v3001_v15  ;;  %10002 = vrcp.f32 %v2890_v2  ;;  %v9345_v2 = vld [vmem:[#allocation13 + $0xb4] ss:$8 sps:$4 sm:$0xff]   ;;  %v9343_v15 = vld [vmem:[#allocation13 + $0xb0] ss:$8 sps:$4 sm:$0xff]  }
0x107c   :  { %10004 = vrcp.f32 %v2887_v19  ;;  %v9348_v19 = vld [vmem:[#allocation13 + $0xc4] ss:$8 sps:$4 sm:$0xff]  }
0x107f   :  { %v11134_v25 = vpop.eup %9994 }
0x1080   :  { %v9997_v39 = vpop.eup %9996  ;;  %v3111_v34 = vsel %vm1137_vm1, %v11134_v25, 0.0 }
0x1081   :  { %v11138_v13 = vpop.eup %9998  ;;  %3112 = vadd.xlane.f32.xlu0 %v3111_v34  ;;  %v2780_v50 = vmul.f32 %v9997_v39, %v9983_v58  ;;  %v9313_v58 = vld [vmem:[#allocation13 + $0x10] ss:$8 sps:$4 sm:$0xff]   ;;  %v9346_v39 = vld [vmem:[#allocation13 + $0xc0] ss:$8 sps:$4 sm:$0xff]   ;;  %v9351_v34 = vld [vmem:[#allocation13 + $0xd4] ss:$8 sps:$4 sm:$0xff]  }
0x1082   :  { %v10001_v29 = vpop.eup %10000  ;;  %v3114_v35 = vsel %vm1137_vm1, %v11138_v13, 0.0 }
0x1083   :  { %v2781_v62 = vmul.f32 %v10001_v29, %v9985_v47  ;;  %3115 = vadd.xlane.f32.xlu1 %v3114_v35  ;;  %v9318_v47 = vld [vmem:[#allocation13 + $0x24] ss:$8 sps:$4 sm:$0xff]   ;;  %v9349_v29 = vld [vmem:[#allocation13 + $0xd0] ss:$8 sps:$4 sm:$0xff]  }
0x1084   :  { %v9354_v35 = vld [vmem:[#allocation13 + $0xe4] ss:$8 sps:$4 sm:$0xff]  }
0x1085   :  { %v2782_v36 = vpack.c.bf16 %v2781_v62, %v2780_v50  ;;  %v10003_v26 = vpop.eup %10002  ;;  %v9352_v50 = vld [vmem:[#allocation13 + $0xe0] ss:$8 sps:$4 sm:$0xff]   ;;  %v9357_v62 = vld [vmem:[#allocation13 + $0xf4] ss:$8 sps:$4 sm:$0xff]  }
0x1086   :  { %v10005_v24 = vpop.eup %10004  ;;  %v2894_v56 = vmul.f32 %v10003_v26, %v9989_v60  ;;  %v9321_v60 = vld [vmem:[#allocation13 + $0x34] ss:$8 sps:$4 sm:$0xff]  }
0x1087   :  { %8821 = vmatmul.mubr.msk.bf16.vlgmr.msra.gmra.mrb[48].mxu0 %vm1137_vm1, %v2782_v36  ;;  %v2893_v57 = vmul.f32 %v10005_v24, %v9987_v43  ;;  %v9316_v43 = vld [vmem:[#allocation13 + $0x20] ss:$8 sps:$4 sm:$0xff]   ;;  %v9355_v36 = vld [vmem:[#allocation13 + $0xf0] ss:$8 sps:$4 sm:$0xff]  }
0x1088   :  { %8831 = vmatpush3.bf16.msra.mxu0 %v2831_v33  ;;  %8832 = vmatprep.mubr.msk.bf16.mxu0 %vm10376_vm0, %v10375_v59  ;;  %v9315_v33 = vld [vmem:[#allocation13 + $0x14] ss:$8 sps:$4 sm:$0xff]  }
0x1089   :  { %8842 = vmatprep.subr.bf16.mxu0 %v10375_v59  ;;  %v2895_v1 = vpack.c.bf16 %v2894_v56, %v2893_v57  ;;  %3364 = vmatprep.subr.bf16.mxu1 %v9315_v33 }
0x108a   :  { %3365 = vmatpush1.bf16.msra.mxu1 %v9313_v58 }
0x108b   :  { %3366 = vmatprep.subr.bf16.mxu1 %v9318_v47 }
0x108e   :  { %3367 = vmatpush1.bf16.msra.mxu1 %v9316_v43 }
0x108f   :  { %8833 = vmatmul.mubr.msk.bf16.vlgmr.msra.gmra.mrb[52].mxu0 %vm1137_vm1, %v2895_v1  ;;  %3368 = vmatprep.subr.bf16.mxu1 %v9321_v60 }
0x1090   :  { %8843 = vmatpush3.bf16.msra.mxu0 %v2944_v44  ;;  %8844 = vmatprep.mubr.msk.bf16.mxu0 %vm10376_vm0, %v10375_v59  ;;  %v9322_v44 = vld [vmem:[#allocation13 + $0x40] ss:$8 sps:$4 sm:$0xff]  }
0x1091   :  { %8854 = vmatprep.subr.bf16.mxu0 %v10375_v59 }
0x1092   :  { %3369 = vmatpush1.bf16.msra.mxu1 %v9319_v63 }
0x1093   :  { %3370 = vmatprep.subr.bf16.mxu1 %v9324_v32 }
0x1096   :  { %3371 = vmatpush1.bf16.msra.mxu1 %v9322_v44 }
0x1097   :  { %3372 = vmatprep.subr.bf16.mxu1 %v9327_v16 }
0x109a   :  { %3373 = vmatpush1.bf16.msra.mxu1 %v9325_v53 }
0x109b   :  { %3374 = vmatprep.subr.bf16.mxu1 %v9330_v20 }
0x109e   :  { %3375 = vmatpush1.bf16.msra.mxu1 %v9328_v21 }
0x109f   :  { %3376 = vmatprep.subr.bf16.mxu1 %v9333_v52 }
0x10a2   :  { %3377 = vmatpush1.bf16.msra.mxu1 %v9331_v54 }
0x10a3   :  { %3378 = vmatprep.subr.bf16.mxu1 %v9336_v42 }
0x10a6   :  { %3379 = vmatpush1.bf16.msra.mxu1 %v9334_v14 }
0x10a7   :  { %3380 = vmatprep.subr.bf16.mxu1 %v9339_v18 }
0x10aa   :  { %3381 = vmatpush1.bf16.msra.mxu1 %v9337_v4 }
0x10ab   :  { %3382 = vmatprep.subr.bf16.mxu1 %v9342_v12 }
0x10ae   :  { %3383 = vmatpush1.bf16.msra.mxu1 %v9340_v17 }
0x10af   :  { %3384 = vmatprep.subr.bf16.mxu1 %v9345_v2  ;;  %v3423_v2 = vld [vmem:[%s11985_s13] sm:$0x3] }
0x10b2   :  { %3385 = vmatpush1.bf16.msra.mxu1 %v9343_v15  ;;  %v11171_v15 = vrot.slane %v3423_v2, %v10682_v45 }
0x10b3   :  { %3386 = vmatprep.subr.bf16.mxu1 %v9348_v19 }
0x10b6   :  { %3387 = vmatpush1.bf16.msra.mxu1 %v9346_v39  ;;  %v11174_v39 = vrot.slane %v3423_v2, %v10760_v51 }
0x10b7   :  { %3388 = vmatprep.subr.bf16.mxu1 %v9351_v34 }
0x10ba   :  { %3389 = vmatpush1.bf16.msra.mxu1 %v9349_v29 }
0x10bb   :  { %3390 = vmatprep.subr.bf16.mxu1 %v9354_v35 }
0x10be   :  { %3391 = vmatpush1.bf16.msra.mxu1 %v9352_v50 }
0x10bf   :  { %3392 = vmatprep.subr.bf16.mxu1 %v9357_v62 }
0x10c2   :  { %3393 = vmatpush1.bf16.msra.mxu1 %v9355_v36 }
0x1106   :  { %v3000_v26 = vpop.xlane.xlu0 %2999 }
0x1107   :  { %10006 = vrcp.f32 %v3000_v26 }
0x1108   :  { %v3003_v24 = vpop.xlane.xlu1 %3002 }
0x1109   :  { %10008 = vrcp.f32 %v3003_v24 }
0x110e   :  { %v3113_v56 = vpop.xlane.xlu0 %3112 }
0x110f   :  { %10010 = vrcp.f32 %v3113_v56 }
0x1110   :  { %v3116_v57 = vpop.xlane.xlu1 %3115 }
0x1111   :  { %v10007_v1 = vpop.eup %10006  ;;  %10012 = vrcp.f32 %v3116_v57 }
0x1112   :  { %v3006_v31 = vmul.f32 %v10007_v1, %v11126_v6 }
0x1113   :  { %v10009_v61 = vpop.eup %10008 }
0x1114   :  { %v3007_v33 = vmul.f32 %v10009_v61, %v11130_v55  ;;  %v9360_v61 = vld [vmem:[#allocation14 + $0x4] ss:$8 sps:$4 sm:$0xff]  }
0x1116   :  { %v3008_v58 = vpack.c.bf16 %v3007_v33, %v3006_v31  ;;  %v9363_v31 = vld [vmem:[#allocation14 + $0x14] ss:$8 sps:$4 sm:$0xff]   ;;  %v9366_v33 = vld [vmem:[#allocation14 + $0x24] ss:$8 sps:$4 sm:$0xff]  }
0x1118   :  { %8845 = vmatmul.mubr.msk.bf16.vlgmr.msra.gmra.mrb[56].mxu0 %vm1137_vm1, %v3008_v58  ;;  %v9364_v58 = vld [vmem:[#allocation14 + $0x20] ss:$8 sps:$4 sm:$0xff]  }
0x1119   :  { %v10011_v47 = vpop.eup %10010  ;;  %8855 = vmatpush3.bf16.msra.mxu0 %v3057_v49  ;;  %8856 = vmatprep.mubr.msk.bf16.mxu0 %vm10376_vm0, %v10375_v59 }
0x111a   :  { %v3119_v60 = vmul.f32 %v10011_v47, %v11134_v25  ;;  %3767 = vmatprep.subr.bf16.mxu0 %v9360_v61  ;;  %v9369_v47 = vld [vmem:[#allocation14 + $0x34] ss:$8 sps:$4 sm:$0xff]   ;;  %v9388_v61 = vld [vmem:[#allocation14 + $0xa0] ss:$8 sps:$4 sm:$0xff]  }
0x111b   :  { %v10013_v43 = vpop.eup %10012 }
0x111c   :  { %v3120_v63 = vmul.f32 %v10013_v43, %v11138_v13  ;;  %v9367_v43 = vld [vmem:[#allocation14 + $0x30] ss:$8 sps:$4 sm:$0xff]  }
0x111e   :  { %v3121_v32 = vpack.c.bf16 %v3120_v63, %v3119_v60  ;;  %v9372_v60 = vld [vmem:[#allocation14 + $0x44] ss:$8 sps:$4 sm:$0xff]   ;;  %v9370_v63 = vld [vmem:[#allocation14 + $0x40] ss:$8 sps:$4 sm:$0xff]  }
0x1120   :  { %8857 = vmatmul.mubr.msk.bf16.vlgmr.msra.gmra.mrb[60].mxu0 %vm1137_vm1, %v3121_v32  ;;  %v9375_v32 = vld [vmem:[#allocation14 + $0x54] ss:$8 sps:$4 sm:$0xff]  }
0x115a   :  { %v2820_v6 = vpop.f32.mrb[48].mxu0 }
0x115b   :  { %v8822_v55 = vpop.f32.mrb[49].mxu0 }
0x115c   :  { %v2823_v44 = vpop.f32.mrb[50].mxu0  ;;  %v9378_v55 = vld [vmem:[#allocation14 + $0x64] ss:$8 sps:$4 sm:$0xff]  }
0x115d   :  { %v3198_v16 = vpack.c.bf16 %v2823_v44, %v2820_v6  ;;  %v8823_v53 = vpop.f32.mrb[51].mxu0  ;;  %v9373_v6 = vld [vmem:[#allocation14 + $0x50] ss:$8 sps:$4 sm:$0xff]   ;;  %v9376_v44 = vld [vmem:[#allocation14 + $0x60] ss:$8 sps:$4 sm:$0xff]  }
0x115e   :  { %v9379_v53 = vld [vmem:[#allocation14 + $0x70] ss:$8 sps:$4 sm:$0xff]  }
0x1162   :  { %v2933_v20 = vpop.f32.mrb[52].mxu0 }
0x1163   :  { %v8834_v21 = vpop.f32.mrb[53].mxu0 }
0x1164   :  { %v2936_v3 = vpop.f32.mrb[54].mxu0  ;;  %v9382_v21 = vld [vmem:[#allocation14 + $0x80] ss:$8 sps:$4 sm:$0xff]  }
0x1165   :  { %v3199_v40 = vpack.c.bf16 %v2936_v3, %v2933_v20  ;;  %v8835_v49 = vpop.f32.mrb[55].mxu0  ;;  %v9384_v20 = vld [vmem:[#allocation14 + $0x84] ss:$8 sps:$4 sm:$0xff]  }
0x1167   :  { %3394 = vmatprep.mubr.bf16.mxu1 %v3199_v40 }
0x1168   :  { %3395 = vmatmul.mubr.bf16.vlgmr.msra.gmra.mrb[56].mxu1 %v3198_v16  ;;  %v9381_v16 = vld [vmem:[#allocation14 + $0x74] ss:$8 sps:$4 sm:$0xff]  }
0x11eb   :  { %v3046_v52 = vpop.f32.mrb[56].mxu0 }
0x11ec   :  { %v8846_v54 = vpop.f32.mrb[57].mxu0 }
0x11ed   :  { %v3049_v25 = vpop.f32.mrb[58].mxu0 }
0x11ee   :  { %v3200_v42 = vpack.c.bf16 %v3049_v25, %v3046_v52  ;;  %v8847_v13 = vpop.f32.mrb[59].mxu0 }
0x11f3   :  { %v3159_v14 = vpop.f32.mrb[60].mxu0 }
0x11f4   :  { %v8858_v18 = vpop.f32.mrb[61].mxu0 }
0x11f5   :  { %v3162_v4 = vpop.f32.mrb[62].mxu0 }
0x11f6   :  { %v3201_v12 = vpack.c.bf16 %v3162_v4, %v3159_v14  ;;  %v8859_v17 = vpop.f32.mrb[63].mxu0 }
0x11f8   :  { %3404 = vmatprep.mubr.bf16.mxu1 %v3201_v12 }
0x11f9   :  { %3405 = vmatmul.mubr.bf16.gmra.mrb[60].mxu1 %v3200_v42 }
0x123b   :  { %v3396_v19 = vpop.f32.mrb[56].mxu1 }
0x123c   :  { %v3415_v34 = vadd.f32 %v3396_v19, %v10914_v10  ;;  %v3398_v29 = vpop.f32.mrb[57].mxu1 }
0x123d   :  { %v3416_v35 = vadd.f32 %v3398_v29, %v10917_v11  ;;  %v3400_v50 = vpop.f32.mrb[58].mxu1 }
0x123e   :  { %v11179_v62 = vadd.f32 %v11171_v15, %v3415_v34  ;;  %v3417_v36 = vadd.f32 %v3400_v50, %v10921_v27  ;;  %v3402_v26 = vpop.f32.mrb[59].mxu1  ;;  %v9358_v27 = vld [vmem:[#allocation14] ss:$8 sps:$4 sm:$0xff]  }
0x123f   :  { %v11183_v24 = vadd.f32 %v11174_v39, %v3416_v35  ;;  %v3418_v56 = vadd.f32 %v3402_v26, %v10924_v30  ;;  %3768 = vmatpush1.bf16.msra.mxu0 %v9358_v27  ;;  %v9361_v30 = vld [vmem:[#allocation14 + $0x10] ss:$8 sps:$4 sm:$0xff]   ;;  %v9390_v27 = vld [vmem:[#allocation14 + $0xa4] ss:$8 sps:$4 sm:$0xff]  }
0x1240   :  { %v11187_v57 = vadd.f32 %v11171_v15, %v3417_v36  ;;  %3769 = vmatprep.subr.bf16.mxu0 %v9363_v31  ;;  %v9393_v31 = vld [vmem:[#allocation14 + $0xb4] ss:$8 sps:$4 sm:$0xff]  }
0x1241   :  { %v11190_v10 = vadd.f32 %v11174_v39, %v3418_v56  ;;  %v3443_v11 = vadd.f32 %v11183_v24, %v11179_v62 }
0x1243   :  { %3444 = vadd.xlane.f32.xlu0 %v3443_v11  ;;  %v3446_v1 = vadd.f32 %v11190_v10, %v11187_v57  ;;  %3770 = vmatpush1.bf16.msra.mxu0 %v9361_v30  ;;  %v9387_v11 = vld [vmem:[#allocation14 + $0x94] ss:$8 sps:$4 sm:$0xff]   ;;  %v9391_v30 = vld [vmem:[#allocation14 + $0xb0] ss:$8 sps:$4 sm:$0xff]  }
0x1244   :  { %3771 = vmatprep.subr.bf16.mxu0 %v9366_v33  ;;  %v9396_v33 = vld [vmem:[#allocation14 + $0xc4] ss:$8 sps:$4 sm:$0xff]  }
0x1245   :  { %3447 = vadd.xlane.f32.xlu1 %v3446_v1  ;;  %v9385_v1 = vld [vmem:[#allocation14 + $0x90] ss:$8 sps:$4 sm:$0xff]  }
0x1247   :  { %3772 = vmatpush1.bf16.msra.mxu0 %v9364_v58  ;;  %v9394_v58 = vld [vmem:[#allocation14 + $0xc0] ss:$8 sps:$4 sm:$0xff]  }
0x1248   :  { %3773 = vmatprep.subr.bf16.mxu0 %v9369_v47  ;;  %v9399_v47 = vld [vmem:[#allocation14 + $0xd4] ss:$8 sps:$4 sm:$0xff]  }
0x124b   :  { %3774 = vmatpush1.bf16.msra.mxu0 %v9367_v43  ;;  %v9397_v43 = vld [vmem:[#allocation14 + $0xd0] ss:$8 sps:$4 sm:$0xff]  }
0x124c   :  { %3775 = vmatprep.subr.bf16.mxu0 %v9372_v60  ;;  %v9400_v60 = vld [vmem:[#allocation14 + $0xe0] ss:$8 sps:$4 sm:$0xff]  }
0x124f   :  { %3776 = vmatpush1.bf16.msra.mxu0 %v9370_v63  ;;  %v9402_v63 = vld [vmem:[#allocation14 + $0xe4] ss:$8 sps:$4 sm:$0xff]  }
0x1250   :  { %3777 = vmatprep.subr.bf16.mxu0 %v9375_v32  ;;  %v9405_v32 = vld [vmem:[#allocation14 + $0xf4] ss:$8 sps:$4 sm:$0xff]  }
0x1253   :  { %3778 = vmatpush1.bf16.msra.mxu0 %v9373_v6  ;;  %v9403_v6 = vld [vmem:[#allocation14 + $0xf0] ss:$8 sps:$4 sm:$0xff]  }
0x1254   :  { %3779 = vmatprep.subr.bf16.mxu0 %v9378_v55 }
0x1257   :  { %3780 = vmatpush1.bf16.msra.mxu0 %v9376_v44 }
0x1258   :  { %3781 = vmatprep.subr.bf16.mxu0 %v9381_v16 }
0x125b   :  { %3782 = vmatpush1.bf16.msra.mxu0 %v9379_v53 }
0x125c   :  { %3783 = vmatprep.subr.bf16.mxu0 %v9384_v20 }
0x125f   :  { %3784 = vmatpush1.bf16.msra.mxu0 %v9382_v21 }
0x1260   :  { %3785 = vmatprep.subr.bf16.mxu0 %v9387_v11 }
0x1263   :  { %3786 = vmatpush1.bf16.msra.mxu0 %v9385_v1 }
0x1264   :  { %3787 = vmatprep.subr.bf16.mxu0 %v9390_v27 }
0x1267   :  { %3788 = vmatpush1.bf16.msra.mxu0 %v9388_v61 }
0x1268   :  { %3789 = vmatprep.subr.bf16.mxu0 %v9393_v31 }
0x126b   :  { %3790 = vmatpush1.bf16.msra.mxu0 %v9391_v30 }
0x126c   :  { %3791 = vmatprep.subr.bf16.mxu0 %v9396_v33 }
0x126f   :  { %3792 = vmatpush1.bf16.msra.mxu0 %v9394_v58 }
0x1270   :  { %3793 = vmatprep.subr.bf16.mxu0 %v9399_v47 }
0x1273   :  { %3794 = vmatpush1.bf16.msra.mxu0 %v9397_v43 }
0x1274   :  { %3795 = vmatprep.subr.bf16.mxu0 %v9402_v63 }
0x1277   :  { %3796 = vmatpush1.bf16.msra.mxu0 %v9400_v60 }
0x1278   :  { %3797 = vmatprep.subr.bf16.mxu0 %v9405_v32 }
0x127b   :  { %3798 = vmatpush1.bf16.msra.mxu0 %v9403_v6 }
0x12cc   :  { %v3406_v3 = vpop.f32.mrb[60].mxu1 }
0x12cd   :  { %v3419_v40 = vadd.f32 %v3406_v3, %v10939_v23  ;;  %v3408_v49 = vpop.f32.mrb[61].mxu1 }
0x12ce   :  { %v3420_v52 = vadd.f32 %v3408_v49, %v10948_v37  ;;  %v3410_v54 = vpop.f32.mrb[62].mxu1 }
0x12cf   :  { %v11199_v25 = vadd.f32 %v11171_v15, %v3419_v40  ;;  %v3421_v42 = vadd.f32 %v3410_v54, %v10951_v38  ;;  %v3412_v13 = vpop.f32.mrb[63].mxu1 }
0x12d0   :  { %v11203_v14 = vadd.f32 %v11174_v39, %v3420_v52  ;;  %v3445_v18 = vpop.xlane.xlu0 %3444  ;;  %v3422_v4 = vadd.f32 %v3412_v13, %v10954_v9 }
0x12d1   :  { %v11207_v12 = vadd.f32 %v11171_v15, %v3421_v42  ;;  %v3455_v23 = vmul.f32 0.00390625, %v3445_v18 }
0x12d2   :  { %v11210_v17 = vadd.f32 %v11174_v39, %v3422_v4  ;;  %v3448_v37 = vpop.xlane.xlu1 %3447  ;;  %v3449_v2 = vadd.f32 %v11203_v14, %v11199_v25 }
0x12d3   :  { %v11215_v38 = vsub.f32 %v11179_v62, %v3455_v23  ;;  %v11218_v19 = vsub.f32 %v11183_v24, %v3455_v23  ;;  %v3456_v34 = vmul.f32 0.00390625, %v3448_v37 }
0x12d4   :  { %3450 = vadd.xlane.f32.xlu0 %v3449_v2  ;;  %v3452_v9 = vadd.f32 %v11210_v17, %v11207_v12 }
0x12d5   :  { %v11223_v15 = vsub.f32 %v11187_v57, %v3456_v34  ;;  %v11226_v39 = vsub.f32 %v11190_v10, %v3456_v34  ;;  %v3467_v29 = vmul.f32 %v11215_v38, %v11215_v38  ;;  %v3468_v35 = vmul.f32 %v11218_v19, %v11218_v19 }
0x12d6   :  { %3453 = vadd.xlane.f32.xlu1 %v3452_v9 }
0x12d7   :  { %v3475_v50 = vadd.f32 %v3468_v35, %v3467_v29  ;;  %v3469_v36 = vmul.f32 %v11223_v15, %v11223_v15  ;;  %v3470_v26 = vmul.f32 %v11226_v39, %v11226_v39  ;;  %v11257_v29 = vsub.s32 6, %v10679_v41  ;;  %v10122_v35 = vld [vmem:[%s12009_s1] sm:$0x77] }
0x12d9   :  { %3476 = vadd.xlane.f32.xlu0 %v3475_v50  ;;  %v3478_v56 = vadd.f32 %v3470_v26, %v3469_v36  ;;  %v3514_v50 = vrot.slane %v10122_v35, %v11257_v29  ;;  %v3510_v36 = vrot.slane %v10122_v35, %v10766_v5  ;;  %v10123_v26 = vld [vmem:[%s11975_s3] sm:$0x77]  ;;  %v9429_v35 = vld [vmem:[#allocation16 + $0x74] ss:$8 sps:$4 sm:$0xff]  }
0x12da   :  { %v3536_v11 = vrot.slane %v10123_v26, %v10766_v5 }
0x12db   :  { %3479 = vadd.xlane.f32.xlu1 %v3478_v56  ;;  %v3540_v56 = vrot.slane %v10123_v26, %v11257_v29  ;;  %v11270_v41 = vrot.slane %v3514_v50, %v10766_v5  ;;  %v11273_v1 = vrot.slane %v3510_v36, %v10766_v5  ;;  %v9427_v50 = vld [vmem:[#allocation16 + $0x70] ss:$8 sps:$4 sm:$0xff]   ;;  %v9432_v36 = vld [vmem:[#allocation16 + $0x84] ss:$8 sps:$4 sm:$0xff]   ;;  %v9430_v26 = vld [vmem:[#allocation16 + $0x80] ss:$8 sps:$4 sm:$0xff]  }
0x12dc   :  { %v11281_v58 = vrot.slane %v3536_v11, %v10766_v5  ;;  %v9433_v11 = vld [vmem:[#allocation16 + $0x90] ss:$8 sps:$4 sm:$0xff]  }
0x12dd   :  { %v11278_v33 = vrot.slane %v3540_v56, %v10766_v5  ;;  %v9435_v56 = vld [vmem:[#allocation16 + $0x94] ss:$8 sps:$4 sm:$0xff]  }
0x1361   :  { %v3451_v55 = vpop.xlane.xlu0 %3450 }
0x1362   :  { %v3457_v44 = vmul.f32 0.00390625, %v3451_v55 }
0x1363   :  { %v3454_v16 = vpop.xlane.xlu1 %3453 }
0x1364   :  { %v11237_v53 = vsub.f32 %v11199_v25, %v3457_v44  ;;  %v11240_v20 = vsub.f32 %v11203_v14, %v3457_v44  ;;  %v3458_v21 = vmul.f32 0.00390625, %v3454_v16 }
0x1366   :  { %v11243_v3 = vsub.f32 %v11207_v12, %v3458_v21  ;;  %v11246_v40 = vsub.f32 %v11210_v17, %v3458_v21  ;;  %v3477_v49 = vpop.xlane.xlu0 %3476  ;;  %v3471_v52 = vmul.f32 %v11237_v53, %v11237_v53  ;;  %v3472_v54 = vmul.f32 %v11240_v20, %v11240_v20  ;;  %v9408_v21 = vld [vmem:[#allocation16 + $0x4] ss:$8 sps:$4 sm:$0xff]  }
0x1367   :  { %v3487_v42 = vmul.f32 0.00390625, %v3477_v49  ;;  %v9411_v49 = vld [vmem:[#allocation16 + $0x14] ss:$8 sps:$4 sm:$0xff]   ;;  %4024 = vmatprep.subr.bf16.mxu1 %v9408_v21 }
0x1368   :  { %v3480_v13 = vpop.xlane.xlu1 %3479  ;;  %v3481_v18 = vadd.f32 %v3472_v54, %v3471_v52  ;;  %v3473_v4 = vmul.f32 %v11243_v3, %v11243_v3  ;;  %v3474_v23 = vmul.f32 %v11246_v40, %v11246_v40  ;;  %v9409_v52 = vld [vmem:[#allocation16 + $0x10] ss:$8 sps:$4 sm:$0xff]   ;;  %v9414_v54 = vld [vmem:[#allocation16 + $0x24] ss:$8 sps:$4 sm:$0xff]  }
0x1369   :  { %v3491_v37 = vadd.f32 1e-05, %v3487_v42  ;;  %v3488_v2 = vmul.f32 0.00390625, %v3480_v13  ;;  %v9412_v42 = vld [vmem:[#allocation16 + $0x20] ss:$8 sps:$4 sm:$0xff]  }
0x136a   :  { %3482 = vadd.xlane.f32.xlu0 %v3481_v18  ;;  %v3484_v34 = vadd.f32 %v3474_v23, %v3473_v4  ;;  %v9417_v13 = vld [vmem:[#allocation16 + $0x34] ss:$8 sps:$4 sm:$0xff]   ;;  %v9415_v18 = vld [vmem:[#allocation16 + $0x30] ss:$8 sps:$4 sm:$0xff]   ;;  %v9420_v4 = vld [vmem:[#allocation16 + $0x44] ss:$8 sps:$4 sm:$0xff]  }
0x136b   :  { %10014 = vrsqrt.f32 %v3491_v37  ;;  %v3492_v9 = vadd.f32 1e-05, %v3488_v2  ;;  %v9418_v23 = vld [vmem:[#allocation16 + $0x40] ss:$8 sps:$4 sm:$0xff]   ;;  %v9423_v37 = vld [vmem:[#allocation16 + $0x54] ss:$8 sps:$4 sm:$0xff]  }
0x136c   :  { %3485 = vadd.xlane.f32.xlu1 %v3484_v34  ;;  %v9421_v2 = vld [vmem:[#allocation16 + $0x50] ss:$8 sps:$4 sm:$0xff]   ;;  %v9426_v34 = vld [vmem:[#allocation16 + $0x64] ss:$8 sps:$4 sm:$0xff]  }
0x136d   :  { %10016 = vrsqrt.f32 %v3492_v9  ;;  %v9424_v9 = vld [vmem:[#allocation16 + $0x60] ss:$8 sps:$4 sm:$0xff]  }
0x1375   :  { %v10015_v27 = vpop.eup %10014 }
0x1376   :  { %v3499_v61 = vmul.f32 %v10015_v27, %v11215_v38  ;;  %v3500_v31 = vmul.f32 %v10015_v27, %v11218_v19  ;;  %v9438_v27 = vld [vmem:[#allocation16 + $0xa4] ss:$8 sps:$4 sm:$0xff]  }
0x1377   :  { %v10017_v30 = vpop.eup %10016 }
0x1378   :  { %v3501_v47 = vmul.f32 %v10017_v30, %v11223_v15  ;;  %v3502_v43 = vmul.f32 %v10017_v30, %v11226_v39  ;;  %v3526_v60 = vmul.f32 %v11270_v41, %v3500_v31  ;;  %v3525_v63 = vmul.f32 %v11273_v1, %v3499_v61  ;;  %v9406_v39 = vld [vmem:[#allocation16] ss:$8 sps:$4 sm:$0xff]   ;;  %v9441_v31 = vld [vmem:[#allocation16 + $0xb4] ss:$8 sps:$4 sm:$0xff]   ;;  %v9439_v30 = vld [vmem:[#allocation16 + $0xb0] ss:$8 sps:$4 sm:$0xff]  }
0x1379   :  { %4025 = vmatpush1.bf16.msra.mxu1 %v9406_v39  ;;  %v9436_v61 = vld [vmem:[#allocation16 + $0xa0] ss:$8 sps:$4 sm:$0xff]  }
0x137a   :  { %v3528_v32 = vmul.f32 %v11270_v41, %v3502_v43  ;;  %v3527_v38 = vmul.f32 %v11273_v1, %v3501_v47  ;;  %v3552_v19 = vadd.f32 %v11278_v33, %v3526_v60  ;;  %v3551_v55 = vadd.f32 %v11281_v58, %v3525_v63  ;;  %4026 = vmatprep.subr.bf16.mxu1 %v9411_v49  ;;  %v9444_v47 = vld [vmem:[#allocation16 + $0xc4] ss:$8 sps:$4 sm:$0xff]   ;;  %v9442_v43 = vld [vmem:[#allocation16 + $0xc0] ss:$8 sps:$4 sm:$0xff]   ;;  %v9447_v60 = vld [vmem:[#allocation16 + $0xd4] ss:$8 sps:$4 sm:$0xff]  }
0x137b   :  { %v9445_v63 = vld [vmem:[#allocation16 + $0xd0] ss:$8 sps:$4 sm:$0xff]  }
0x137c   :  { %v3554_v6 = vadd.f32 %v11278_v33, %v3528_v32  ;;  %v3553_v44 = vadd.f32 %v11281_v58, %v3527_v38  ;;  %v9450_v32 = vld [vmem:[#allocation16 + $0xe4] ss:$8 sps:$4 sm:$0xff]   ;;  %v9448_v38 = vld [vmem:[#allocation16 + $0xe0] ss:$8 sps:$4 sm:$0xff]  }
0x137d   :  { %4027 = vmatpush1.bf16.msra.mxu1 %v9409_v52 }
0x137e   :  { %v3592_v16 = vpack.c.bf16 %v3554_v6, %v3552_v19  ;;  %v3591_v15 = vpack.c.bf16 %v3553_v44, %v3551_v55  ;;  %4028 = vmatprep.subr.bf16.mxu1 %v9414_v54  ;;  %v9453_v19 = vld [vmem:[#allocation16 + $0xf4] ss:$8 sps:$4 sm:$0xff]   ;;  %v9451_v6 = vld [vmem:[#allocation16 + $0xf0] ss:$8 sps:$4 sm:$0xff]  }
0x1380   :  { %3799 = vmatprep.mubr.bf16.mxu0 %v3592_v16 }
0x1381   :  { %3800 = vmatmul.mubr.bf16.vlgmr.msra.gmra.mrb[64].mxu0 %v3591_v15  ;;  %4029 = vmatpush1.bf16.msra.mxu1 %v9412_v42 }
0x1382   :  { %4030 = vmatprep.subr.bf16.mxu1 %v9417_v13 }
0x1385   :  { %4031 = vmatpush1.bf16.msra.mxu1 %v9415_v18 }
0x1386   :  { %4032 = vmatprep.subr.bf16.mxu1 %v9420_v4 }
0x1389   :  { %4033 = vmatpush1.bf16.msra.mxu1 %v9418_v23 }
0x138a   :  { %4034 = vmatprep.subr.bf16.mxu1 %v9423_v37 }
0x138d   :  { %4035 = vmatpush1.bf16.msra.mxu1 %v9421_v2 }
0x138e   :  { %4036 = vmatprep.subr.bf16.mxu1 %v9426_v34 }
0x1391   :  { %4037 = vmatpush1.bf16.msra.mxu1 %v9424_v9 }
0x1392   :  { %4038 = vmatprep.subr.bf16.mxu1 %v9429_v35 }
0x1395   :  { %4039 = vmatpush1.bf16.msra.mxu1 %v9427_v50 }
0x1396   :  { %4040 = vmatprep.subr.bf16.mxu1 %v9432_v36 }
0x1399   :  { %4041 = vmatpush1.bf16.msra.mxu1 %v9430_v26 }
0x139a   :  { %4042 = vmatprep.subr.bf16.mxu1 %v9435_v56 }
0x139d   :  { %4043 = vmatpush1.bf16.msra.mxu1 %v9433_v11 }
0x139e   :  { %4044 = vmatprep.subr.bf16.mxu1 %v9438_v27 }
0x13a1   :  { %4045 = vmatpush1.bf16.msra.mxu1 %v9436_v61 }
0x13a2   :  { %4046 = vmatprep.subr.bf16.mxu1 %v9441_v31 }
0x13a5   :  { %4047 = vmatpush1.bf16.msra.mxu1 %v9439_v30 }
0x13a6   :  { %4048 = vmatprep.subr.bf16.mxu1 %v9444_v47 }
0x13a9   :  { %4049 = vmatpush1.bf16.msra.mxu1 %v9442_v43 }
0x13aa   :  { %4050 = vmatprep.subr.bf16.mxu1 %v9447_v60 }
0x13ad   :  { %4051 = vmatpush1.bf16.msra.mxu1 %v9445_v63 }
0x13ae   :  { %4052 = vmatprep.subr.bf16.mxu1 %v9450_v32 }
0x13b1   :  { %4053 = vmatpush1.bf16.msra.mxu1 %v9448_v38 }
0x13b2   :  { %4054 = vmatprep.subr.bf16.mxu1 %v9453_v19 }
0x13b5   :  { %4055 = vmatpush1.bf16.msra.mxu1 %v9451_v6 }
0x13f7   :  { %v3483_v55 = vpop.xlane.xlu0 %3482 }
0x13f8   :  { %v3489_v44 = vmul.f32 0.00390625, %v3483_v55 }
0x13f9   :  { %v3486_v16 = vpop.xlane.xlu1 %3485 }
0x13fa   :  { %v3493_v15 = vadd.f32 1e-05, %v3489_v44  ;;  %v3490_v39 = vmul.f32 0.00390625, %v3486_v16 }
0x13fc   :  { %10018 = vrsqrt.f32 %v3493_v15  ;;  %v3494_v21 = vadd.f32 1e-05, %v3490_v39 }
0x13fe   :  { %10020 = vrsqrt.f32 %v3494_v21 }
0x1406   :  { %v10019_v49 = vpop.eup %10018 }
0x1407   :  { %v3504_v52 = vmul.f32 %v10019_v49, %v11240_v20  ;;  %v3503_v54 = vmul.f32 %v10019_v49, %v11237_v53 }
0x1408   :  { %v10021_v42 = vpop.eup %10020 }
0x1409   :  { %v3506_v13 = vmul.f32 %v10021_v42, %v11246_v40  ;;  %v3530_v18 = vmul.f32 %v11270_v41, %v3504_v52  ;;  %v3505_v4 = vmul.f32 %v10021_v42, %v11243_v3  ;;  %v3529_v23 = vmul.f32 %v11273_v1, %v3503_v54  ;;  %v3595_v3 = vld [vmem:[%s11987_s15] sm:$0x3] }
0x140a   :  { %v4085_v42 = vld [vmem:[%s12010_s17] sm:$0x3] }
0x140b   :  { %v3532_v37 = vmul.f32 %v11270_v41, %v3506_v13  ;;  %v3531_v2 = vmul.f32 %v11273_v1, %v3505_v4  ;;  %v3556_v34 = vadd.f32 %v11278_v33, %v3530_v18  ;;  %v3555_v20 = vadd.f32 %v11281_v58, %v3529_v23 }
0x140c   :  { %v3600_v41 = vrot.slane %v3595_v3, %v10682_v45  ;;  %v3604_v1 = vrot.slane %v3595_v3, %v10760_v51  ;;  %v11314_v13 = vrot.slane %v4085_v42, %v10682_v45  ;;  %v11317_v4 = vrot.slane %v4085_v42, %v10760_v51  ;;  %v9499_v42 = vld [vmem:[#allocation7 + $0x458] ss:$24 sps:$4 sm:$0xff]  }
0x140d   :  { %v3558_v9 = vadd.f32 %v11278_v33, %v3532_v37  ;;  %v3557_v53 = vadd.f32 %v11281_v58, %v3531_v2 }
0x140f   :  { %v3594_v35 = vpack.c.bf16 %v3558_v9, %v3556_v34  ;;  %v3593_v40 = vpack.c.bf16 %v3557_v53, %v3555_v20 }
0x1411   :  { %3809 = vmatprep.mubr.bf16.mxu0 %v3594_v35 }
0x1412   :  { %3810 = vmatmul.mubr.bf16.gmra.mrb[68].mxu0 %v3593_v40 }
0x1454   :  { %v3801_v50 = vpop.f32.mrb[64].mxu0 }
0x1455   :  { %v3802_v36 = vadd.f32 %v3801_v50, %v3600_v41  ;;  %v3803_v26 = vpop.f32.mrb[65].mxu0  ;;  %v9457_v50 = vld [vmem:[#allocation7 + $0x308] ss:$24 sps:$4 sm:$0xff]  }
0x1456   :  { %v3804_v33 = vadd.f32 %v3803_v26, %v3604_v1  ;;  %v3805_v56 = vpop.f32.mrb[66].mxu0  ;;  %v9462_v26 = vld [vmem:[#allocation7 + $0x334] ss:$24 sps:$4 sm:$0xff]  }
0x1457   :  { %v3806_v11 = vadd.f32 %v3805_v56, %v3600_v41  ;;  %v3807_v27 = vpop.f32.mrb[67].mxu0  ;;  %v3820_v61 = vmax.f32 %v3802_v36, 0.0  ;;  %v9459_v36 = vld [vmem:[#allocation7 + $0x30c] ss:$24 sps:$4 sm:$0xff]   ;;  %v9463_v56 = vld [vmem:[#allocation7 + $0x338] ss:$24 sps:$4 sm:$0xff]  }
0x1458   :  { %v3808_v58 = vadd.f32 %v3807_v27, %v3604_v1  ;;  %v3821_v30 = vmax.f32 %v3804_v33, 0.0  ;;  %4894 = vmatprep.subr.bf16.mxu1 %v9459_v36  ;;  %v9460_v33 = vld [vmem:[#allocation7 + $0x330] ss:$24 sps:$4 sm:$0xff]   ;;  %v9471_v27 = vld [vmem:[#allocation7 + $0x36c] ss:$24 sps:$4 sm:$0xff]  }
0x1459   :  { %v3822_v31 = vmax.f32 %v3806_v11, 0.0  ;;  %v9468_v11 = vld [vmem:[#allocation7 + $0x364] ss:$24 sps:$4 sm:$0xff]  }
0x145a   :  { %v3823_v47 = vmax.f32 %v3808_v58, 0.0  ;;  %v9466_v58 = vld [vmem:[#allocation7 + $0x360] ss:$24 sps:$4 sm:$0xff]  }
0x145b   :  { %v3860_v43 = vpack.c.bf16 %v3822_v31, %v3820_v61  ;;  %v9469_v61 = vld [vmem:[#allocation7 + $0x368] ss:$24 sps:$4 sm:$0xff]   ;;  %v9474_v31 = vld [vmem:[#allocation7 + $0x394] ss:$24 sps:$4 sm:$0xff]  }
0x145c   :  { %v3861_v60 = vpack.c.bf16 %v3823_v47, %v3821_v30  ;;  %v9477_v30 = vld [vmem:[#allocation7 + $0x39c] ss:$24 sps:$4 sm:$0xff]   ;;  %v9472_v47 = vld [vmem:[#allocation7 + $0x390] ss:$24 sps:$4 sm:$0xff]  }
0x145e   :  { %4056 = vmatprep.mubr.bf16.mxu1 %v3861_v60  ;;  %v9480_v60 = vld [vmem:[#allocation7 + $0x3c4] ss:$24 sps:$4 sm:$0xff]  }
0x145f   :  { %4057 = vmatmul.mubr.bf16.vlgmr.msra.gmra.mrb[64].mxu1 %v3860_v43  ;;  %v9475_v43 = vld [vmem:[#allocation7 + $0x398] ss:$24 sps:$4 sm:$0xff]  }
0x1460   :  { %4895 = vmatpush1.bf16.msra.mxu1 %v9457_v50 }
0x14e5   :  { %v3811_v63 = vpop.f32.mrb[68].mxu0 }
0x14e6   :  { %v3812_v32 = vadd.f32 %v3811_v63, %v3600_v41  ;;  %v3813_v38 = vpop.f32.mrb[69].mxu0  ;;  %v9483_v63 = vld [vmem:[#allocation7 + $0x3cc] ss:$24 sps:$4 sm:$0xff]  }
0x14e7   :  { %v3814_v19 = vadd.f32 %v3813_v38, %v3604_v1  ;;  %v3815_v6 = vpop.f32.mrb[70].mxu0  ;;  %v9481_v38 = vld [vmem:[#allocation7 + $0x3c8] ss:$24 sps:$4 sm:$0xff]  }
0x14e8   :  { %v3816_v55 = vadd.f32 %v3815_v6, %v3600_v41  ;;  %v3817_v44 = vpop.f32.mrb[71].mxu0  ;;  %v3824_v15 = vmax.f32 %v3812_v32, 0.0  ;;  %v9478_v32 = vld [vmem:[#allocation7 + $0x3c0] ss:$24 sps:$4 sm:$0xff]   ;;  %v9489_v6 = vld [vmem:[#allocation7 + $0x3fc] ss:$24 sps:$4 sm:$0xff]  }
0x14e9   :  { %v3818_v16 = vadd.f32 %v3817_v44, %v3604_v1  ;;  %v3825_v21 = vmax.f32 %v3814_v19, 0.0  ;;  %v9456_v1 = vld [vmem:[#allocation7 + $0x304] ss:$24 sps:$4 sm:$0xff]   ;;  %v9486_v19 = vld [vmem:[#allocation7 + $0x3f4] ss:$24 sps:$4 sm:$0xff]  }
0x14ea   :  { %v3826_v39 = vmax.f32 %v3816_v55, 0.0  ;;  %4841 = vmatprep.subr.bf16.mxu0 %v9456_v1  ;;  %v9484_v55 = vld [vmem:[#allocation7 + $0x3f0] ss:$24 sps:$4 sm:$0xff]  }
0x14eb   :  { %v3827_v49 = vmax.f32 %v3818_v16, 0.0  ;;  %v9487_v44 = vld [vmem:[#allocation7 + $0x3f8] ss:$24 sps:$4 sm:$0xff]   ;;  %v9492_v16 = vld [vmem:[#allocation7 + $0x424] ss:$24 sps:$4 sm:$0xff]  }
0x14ec   :  { %v3862_v52 = vpack.c.bf16 %v3826_v39, %v3824_v15  ;;  %v9495_v15 = vld [vmem:[#allocation7 + $0x42c] ss:$24 sps:$4 sm:$0xff]   ;;  %v9490_v39 = vld [vmem:[#allocation7 + $0x420] ss:$24 sps:$4 sm:$0xff]  }
0x14ed   :  { %v3863_v54 = vpack.c.bf16 %v3827_v49, %v3825_v21  ;;  %v9493_v21 = vld [vmem:[#allocation7 + $0x428] ss:$24 sps:$4 sm:$0xff]   ;;  %v9498_v49 = vld [vmem:[#allocation7 + $0x454] ss:$24 sps:$4 sm:$0xff]  }
0x14ef   :  { %4066 = vmatprep.mubr.bf16.mxu1 %v3863_v54  ;;  %v9496_v54 = vld [vmem:[#allocation7 + $0x450] ss:$24 sps:$4 sm:$0xff]  }
0x14f0   :  { %4067 = vmatmul.mubr.bf16.gmra.mrb[68].mxu1 %v3862_v52  ;;  %v9501_v52 = vld [vmem:[#allocation7 + $0x45c] ss:$24 sps:$4 sm:$0xff]  }
0x1532   :  { %v4058_v18 = vpop.f32.mrb[64].mxu1 }
0x1533   :  { %v4077_v23 = vadd.f32 %v4058_v18, %v11179_v62  ;;  %v4060_v37 = vpop.f32.mrb[65].mxu1  ;;  %v9504_v18 = vld [vmem:[#allocation7 + $0x484] ss:$24 sps:$4 sm:$0xff]  }
0x1534   :  { %v4078_v2 = vadd.f32 %v4060_v37, %v11183_v24  ;;  %v4062_v34 = vpop.f32.mrb[66].mxu1  ;;  %v9502_v37 = vld [vmem:[#allocation7 + $0x480] ss:$24 sps:$4 sm:$0xff]  }
0x1535   :  { %v11322_v9 = vadd.f32 %v11314_v13, %v4077_v23  ;;  %v4079_v20 = vadd.f32 %v4062_v34, %v11187_v57  ;;  %v4064_v53 = vpop.f32.mrb[67].mxu1  ;;  %v9454_v57 = vld [vmem:[#allocation7 + $0x300] ss:$24 sps:$4 sm:$0xff]   ;;  %v9507_v23 = vld [vmem:[#allocation7 + $0x48c] ss:$24 sps:$4 sm:$0xff]  }
0x1536   :  { %v11326_v35 = vadd.f32 %v11317_v4, %v4078_v2  ;;  %v4080_v40 = vadd.f32 %v4064_v53, %v11190_v10  ;;  %v9465_v10 = vld [vmem:[#allocation7 + $0x33c] ss:$24 sps:$4 sm:$0xff]   ;;  %4842 = vmatpush1.bf16.msra.mxu0 %v9454_v57  ;;  %v9505_v2 = vld [vmem:[#allocation7 + $0x488] ss:$24 sps:$4 sm:$0xff]  }
0x1537   :  { %v11330_v3 = vadd.f32 %v11314_v13, %v4079_v20  ;;  %4843 = vmatprep.subr.bf16.mxu0 %v9462_v26  ;;  %4896 = vmatprep.subr.bf16.mxu1 %v9465_v10 }
0x1538   :  { %v11333_v62 = vadd.f32 %v11317_v4, %v4080_v40  ;;  %v4109_v24 = vadd.f32 %v11326_v35, %v11322_v9  ;;  %4897 = vmatpush1.bf16.msra.mxu1 %v9463_v56 }
0x1539   :  { %4898 = vmatprep.subr.bf16.mxu1 %v9471_v27 }
0x153a   :  { %4110 = vadd.xlane.f32.xlu0 %v4109_v24  ;;  %v4112_v41 = vadd.f32 %v11333_v62, %v11330_v3  ;;  %4844 = vmatpush1.bf16.msra.mxu0 %v9460_v33 }
0x153b   :  { %4845 = vmatprep.subr.bf16.mxu0 %v9468_v11 }
0x153c   :  { %4113 = vadd.xlane.f32.xlu1 %v4112_v41  ;;  %4899 = vmatpush1.bf16.msra.mxu1 %v9469_v61 }
0x153d   :  { %4900 = vmatprep.subr.bf16.mxu1 %v9477_v30 }
0x153e   :  { %4846 = vmatpush1.bf16.msra.mxu0 %v9466_v58 }
0x153f   :  { %4847 = vmatprep.subr.bf16.mxu0 %v9474_v31 }
0x1540   :  { %4901 = vmatpush1.bf16.msra.mxu1 %v9475_v43 }
0x1541   :  { %4902 = vmatprep.subr.bf16.mxu1 %v9483_v63  ;;  %v9513_v63 = vld [vmem:[#allocation7 + $0x4bc] ss:$24 sps:$4 sm:$0xff]  }
0x1542   :  { %4848 = vmatpush1.bf16.msra.mxu0 %v9472_v47 }
0x1543   :  { %4849 = vmatprep.subr.bf16.mxu0 %v9480_v60  ;;  %v9510_v60 = vld [vmem:[#allocation7 + $0x4b4] ss:$24 sps:$4 sm:$0xff]  }
0x1544   :  { %4903 = vmatpush1.bf16.msra.mxu1 %v9481_v38  ;;  %v9511_v38 = vld [vmem:[#allocation7 + $0x4b8] ss:$24 sps:$4 sm:$0xff]  }
0x1545   :  { %4904 = vmatprep.subr.bf16.mxu1 %v9489_v6  ;;  %v9519_v6 = vld [vmem:[#allocation7 + $0x4ec] ss:$24 sps:$4 sm:$0xff]  }
0x1546   :  { %4850 = vmatpush1.bf16.msra.mxu0 %v9478_v32  ;;  %v9508_v32 = vld [vmem:[#allocation7 + $0x4b0] ss:$24 sps:$4 sm:$0xff]  }
0x1547   :  { %4851 = vmatprep.subr.bf16.mxu0 %v9486_v19  ;;  %v9516_v19 = vld [vmem:[#allocation7 + $0x4e4] ss:$24 sps:$4 sm:$0xff]  }
0x1548   :  { %4905 = vmatpush1.bf16.msra.mxu1 %v9487_v44  ;;  %v9517_v44 = vld [vmem:[#allocation7 + $0x4e8] ss:$24 sps:$4 sm:$0xff]  }
0x1549   :  { %4906 = vmatprep.subr.bf16.mxu1 %v9495_v15  ;;  %v9525_v15 = vld [vmem:[#allocation7 + $0x51c] ss:$24 sps:$4 sm:$0xff]  }
0x154a   :  { %4852 = vmatpush1.bf16.msra.mxu0 %v9484_v55  ;;  %v9514_v55 = vld [vmem:[#allocation7 + $0x4e0] ss:$24 sps:$4 sm:$0xff]  }
0x154b   :  { %4853 = vmatprep.subr.bf16.mxu0 %v9492_v16  ;;  %v9522_v16 = vld [vmem:[#allocation7 + $0x514] ss:$24 sps:$4 sm:$0xff]  }
0x154c   :  { %4907 = vmatpush1.bf16.msra.mxu1 %v9493_v21  ;;  %v9523_v21 = vld [vmem:[#allocation7 + $0x518] ss:$24 sps:$4 sm:$0xff]  }
0x154d   :  { %4908 = vmatprep.subr.bf16.mxu1 %v9501_v52  ;;  %v9531_v52 = vld [vmem:[#allocation7 + $0x54c] ss:$24 sps:$4 sm:$0xff]  }
0x154e   :  { %4854 = vmatpush1.bf16.msra.mxu0 %v9490_v39  ;;  %v9520_v39 = vld [vmem:[#allocation7 + $0x510] ss:$24 sps:$4 sm:$0xff]  }
0x154f   :  { %4855 = vmatprep.subr.bf16.mxu0 %v9498_v49  ;;  %v9528_v49 = vld [vmem:[#allocation7 + $0x544] ss:$24 sps:$4 sm:$0xff]  }
0x1550   :  { %4909 = vmatpush1.bf16.msra.mxu1 %v9499_v42  ;;  %v9529_v42 = vld [vmem:[#allocation7 + $0x548] ss:$24 sps:$4 sm:$0xff]  }
0x1551   :  { %4910 = vmatprep.subr.bf16.mxu1 %v9507_v23  ;;  %v9537_v23 = vld [vmem:[#allocation7 + $0x57c] ss:$24 sps:$4 sm:$0xff]  }
0x1552   :  { %4856 = vmatpush1.bf16.msra.mxu0 %v9496_v54  ;;  %v9526_v54 = vld [vmem:[#allocation7 + $0x540] ss:$24 sps:$4 sm:$0xff]  }
0x1553   :  { %4857 = vmatprep.subr.bf16.mxu0 %v9504_v18  ;;  %v9534_v18 = vld [vmem:[#allocation7 + $0x574] ss:$24 sps:$4 sm:$0xff]  }
0x1554   :  { %4911 = vmatpush1.bf16.msra.mxu1 %v9505_v2  ;;  %v9535_v2 = vld [vmem:[#allocation7 + $0x578] ss:$24 sps:$4 sm:$0xff]  }
0x1555   :  { %4912 = vmatprep.subr.bf16.mxu1 %v9513_v63 }
0x1556   :  { %4858 = vmatpush1.bf16.msra.mxu0 %v9502_v37  ;;  %v9532_v37 = vld [vmem:[#allocation7 + $0x570] ss:$24 sps:$4 sm:$0xff]  }
0x1557   :  { %4859 = vmatprep.subr.bf16.mxu0 %v9510_v60 }
0x1558   :  { %4913 = vmatpush1.bf16.msra.mxu1 %v9511_v38 }
0x1559   :  { %4914 = vmatprep.subr.bf16.mxu1 %v9519_v6 }
0x155a   :  { %4860 = vmatpush1.bf16.msra.mxu0 %v9508_v32 }
0x155b   :  { %4861 = vmatprep.subr.bf16.mxu0 %v9516_v19 }
0x155c   :  { %4915 = vmatpush1.bf16.msra.mxu1 %v9517_v44 }
0x155d   :  { %4916 = vmatprep.subr.bf16.mxu1 %v9525_v15  ;;  %v8363_v15 = vld [vmem:[%s12009_s1 + $0x8] sm:$0x77] }
0x155e   :  { %4862 = vmatpush1.bf16.msra.mxu0 %v9514_v55 }
0x155f   :  { %4863 = vmatprep.subr.bf16.mxu0 %v9522_v16 }
0x1560   :  { %4917 = vmatpush1.bf16.msra.mxu1 %v9523_v21  ;;  %v8364_v21 = vld [vmem:[%s11975_s3 + $0x8] sm:$0x77] }
0x1561   :  { %4918 = vmatprep.subr.bf16.mxu1 %v9531_v52  ;;  %v4208_v52 = vrot.slane %v8364_v21, %v10685_v46 }
0x1562   :  { %4864 = vmatpush1.bf16.msra.mxu0 %v9520_v39  ;;  %v4177_v39 = vrot.slane %v8363_v15, %v10682_v45 }
0x1563   :  { %4865 = vmatprep.subr.bf16.mxu0 %v9528_v49  ;;  %v4181_v49 = vrot.slane %v8363_v15, %v10685_v46  ;;  %v9571_v15 = vld [vmem:[#allocation7 + $0x460] ss:$24 sps:$4 sm:$0xff]  }
0x1564   :  { %4919 = vmatpush1.bf16.msra.mxu1 %v9529_v42  ;;  %v11411_v42 = vrot.slane %v4177_v39, %v10682_v45  ;;  %v9576_v39 = vld [vmem:[#allocation7 + $0x494] ss:$24 sps:$4 sm:$0xff]  }
0x1565   :  { %4920 = vmatprep.subr.bf16.mxu1 %v9537_v23 }
0x1566   :  { %4866 = vmatpush1.bf16.msra.mxu0 %v9526_v54  ;;  %v4204_v54 = vrot.slane %v8364_v21, %v10682_v45  ;;  %v9574_v21 = vld [vmem:[#allocation7 + $0x490] ss:$24 sps:$4 sm:$0xff]  }
0x1567   :  { %4867 = vmatprep.subr.bf16.mxu0 %v9534_v18  ;;  %v11414_v18 = vrot.slane %v4181_v49, %v10682_v45  ;;  %v9579_v49 = vld [vmem:[#allocation7 + $0x4c4] ss:$24 sps:$4 sm:$0xff]  }
0x1568   :  { %4921 = vmatpush1.bf16.msra.mxu1 %v9535_v2 }
0x156a   :  { %4868 = vmatpush1.bf16.msra.mxu0 %v9532_v37 }
0x15c3   :  { %v4068_v34 = vpop.f32.mrb[68].mxu1 }
0x15c4   :  { %v4081_v20 = vadd.f32 %v4068_v34, %v11199_v25  ;;  %v4070_v53 = vpop.f32.mrb[69].mxu1  ;;  %v9540_v34 = vld [vmem:[#allocation7 + $0x5a4] ss:$24 sps:$4 sm:$0xff]  }
0x15c5   :  { %v4082_v40 = vadd.f32 %v4070_v53, %v11203_v14  ;;  %v4072_v24 = vpop.f32.mrb[70].mxu1  ;;  %v9538_v53 = vld [vmem:[#allocation7 + $0x5a0] ss:$24 sps:$4 sm:$0xff]   ;;  %4869 = vmatprep.subr.bf16.mxu0 %v9540_v34 }
0x15c6   :  { %v11342_v41 = vadd.f32 %v11314_v13, %v4081_v20  ;;  %v4083_v57 = vadd.f32 %v4072_v24, %v11207_v12  ;;  %v4074_v1 = vpop.f32.mrb[71].mxu1  ;;  %v9543_v20 = vld [vmem:[#allocation7 + $0x5ac] ss:$24 sps:$4 sm:$0xff]   ;;  %4870 = vmatpush1.bf16.msra.mxu0 %v9538_v53  ;;  %v11422_v53 = vrot.slane %v4204_v54, %v10682_v45 }
0x15c7   :  { %v11346_v50 = vadd.f32 %v11317_v4, %v4082_v40  ;;  %v4111_v36 = vpop.xlane.xlu0 %4110  ;;  %v4084_v26 = vadd.f32 %v4074_v1, %v11210_v17  ;;  %v9541_v40 = vld [vmem:[#allocation7 + $0x5a8] ss:$24 sps:$4 sm:$0xff]   ;;  %4922 = vmatprep.subr.bf16.mxu1 %v9543_v20  ;;  %v9546_v24 = vld [vmem:[#allocation7 + $0x5d4] ss:$24 sps:$4 sm:$0xff]   ;;  %v9547_v1 = vld [vmem:[#allocation7 + $0x5d8] ss:$24 sps:$4 sm:$0xff]   ;;  %v11419_v20 = vrot.slane %v4208_v52, %v10682_v45 }
0x15c8   :  { %v11350_v10 = vadd.f32 %v11314_v13, %v4083_v57  ;;  %v4121_v25 = vmul.f32 0.00390625, %v4111_v36  ;;  %4923 = vmatpush1.bf16.msra.mxu1 %v9541_v40  ;;  %v9544_v57 = vld [vmem:[#allocation7 + $0x5d0] ss:$24 sps:$4 sm:$0xff]   ;;  %v9549_v36 = vld [vmem:[#allocation7 + $0x5dc] ss:$24 sps:$4 sm:$0xff]   ;;  %4871 = vmatprep.subr.bf16.mxu0 %v9546_v24 }
0x15c9   :  { %v11353_v33 = vadd.f32 %v11317_v4, %v4084_v26  ;;  %v4114_v14 = vpop.xlane.xlu1 %4113  ;;  %v4115_v56 = vadd.f32 %v11346_v50, %v11342_v41  ;;  %4924 = vmatprep.subr.bf16.mxu1 %v9549_v36  ;;  %v9552_v26 = vld [vmem:[#allocation7 + $0x314] ss:$24 sps:$4 sm:$0xff]   ;;  %v9577_v52 = vld [vmem:[#allocation7 + $0x4c0] ss:$24 sps:$4 sm:$0xff]  }
0x15ca   :  { %v11358_v12 = vsub.f32 %v11322_v9, %v4121_v25  ;;  %v11361_v11 = vsub.f32 %v11326_v35, %v4121_v25  ;;  %v4122_v27 = vmul.f32 0.00390625, %v4114_v14  ;;  %4872 = vmatpush1.bf16.msra.mxu0 %v9544_v57  ;;  %v9582_v54 = vld [vmem:[#allocation7 + $0x4f4] ss:$24 sps:$4 sm:$0xff]  }
0x15cb   :  { %4116 = vadd.xlane.f32.xlu0 %v4115_v56  ;;  %v4118_v17 = vadd.f32 %v11353_v33, %v11350_v10  ;;  %4947 = vmatprep.subr.bf16.mxu0 %v9552_v26 }
0x15cc   :  { %v11366_v13 = vsub.f32 %v11330_v3, %v4122_v27  ;;  %v11369_v4 = vsub.f32 %v11333_v62, %v4122_v27  ;;  %v4133_v58 = vmul.f32 %v11358_v12, %v11358_v12  ;;  %v4134_v61 = vmul.f32 %v11361_v11, %v11361_v11  ;;  %4925 = vmatpush1.bf16.msra.mxu1 %v9547_v1 }
0x15cd   :  { %4119 = vadd.xlane.f32.xlu1 %v4118_v17  ;;  %8860 = vmatprep.subr.bf16.mxu1 %v10375_v59 }
0x15ce   :  { %v4141_v31 = vadd.f32 %v4134_v61, %v4133_v58  ;;  %v4135_v30 = vmul.f32 %v11366_v13, %v11366_v13  ;;  %v4136_v47 = vmul.f32 %v11369_v4, %v11369_v4 }
0x15d0   :  { %4142 = vadd.xlane.f32.xlu0 %v4141_v31  ;;  %v4144_v43 = vadd.f32 %v4136_v47, %v4135_v30 }
0x15d2   :  { %4145 = vadd.xlane.f32.xlu1 %v4144_v43 }
0x1658   :  { %v4117_v25 = vpop.xlane.xlu0 %4116 }
0x1659   :  { %v4123_v14 = vmul.f32 0.00390625, %v4117_v25 }
0x165a   :  { %v4120_v56 = vpop.xlane.xlu1 %4119 }
0x165b   :  { %v11381_v27 = vsub.f32 %v11342_v41, %v4123_v14  ;;  %v11384_v17 = vsub.f32 %v11346_v50, %v4123_v14  ;;  %v4124_v58 = vmul.f32 0.00390625, %v4120_v56 }
0x165d   :  { %v11387_v61 = vsub.f32 %v11350_v10, %v4124_v58  ;;  %v11390_v31 = vsub.f32 %v11353_v33, %v4124_v58  ;;  %v4143_v30 = vpop.xlane.xlu0 %4142  ;;  %v4137_v47 = vmul.f32 %v11381_v27, %v11381_v27  ;;  %v4138_v43 = vmul.f32 %v11384_v17, %v11384_v17 }
0x165e   :  { %v4153_v60 = vmul.f32 0.00390625, %v4143_v30  ;;  %v9553_v30 = vld [vmem:[#allocation7 + $0x340] ss:$24 sps:$4 sm:$0xff]  }
0x165f   :  { %v4146_v63 = vpop.xlane.xlu1 %4145  ;;  %v4147_v32 = vadd.f32 %v4138_v43, %v4137_v47  ;;  %v4139_v38 = vmul.f32 %v11387_v61, %v11387_v61  ;;  %v4140_v19 = vmul.f32 %v11390_v31, %v11390_v31  ;;  %v9558_v47 = vld [vmem:[#allocation7 + $0x374] ss:$24 sps:$4 sm:$0xff]   ;;  %v9556_v43 = vld [vmem:[#allocation7 + $0x370] ss:$24 sps:$4 sm:$0xff]  }
0x1660   :  { %v4157_v6 = vadd.f32 1e-05, %v4153_v60  ;;  %v4154_v55 = vmul.f32 0.00390625, %v4146_v63  ;;  %v9561_v60 = vld [vmem:[#allocation7 + $0x3a4] ss:$24 sps:$4 sm:$0xff]  }
0x1661   :  { %4148 = vadd.xlane.f32.xlu0 %v4147_v32  ;;  %v4150_v44 = vadd.f32 %v4140_v19, %v4139_v38  ;;  %v9559_v63 = vld [vmem:[#allocation7 + $0x3a0] ss:$24 sps:$4 sm:$0xff]   ;;  %v9564_v32 = vld [vmem:[#allocation7 + $0x3d4] ss:$24 sps:$4 sm:$0xff]   ;;  %v9562_v38 = vld [vmem:[#allocation7 + $0x3d0] ss:$24 sps:$4 sm:$0xff]  }
0x1662   :  { %10022 = vrsqrt.f32 %v4157_v6  ;;  %v4158_v16 = vadd.f32 1e-05, %v4154_v55  ;;  %v9567_v19 = vld [vmem:[#allocation7 + $0x404] ss:$24 sps:$4 sm:$0xff]   ;;  %v9565_v6 = vld [vmem:[#allocation7 + $0x400] ss:$24 sps:$4 sm:$0xff]  }
0x1663   :  { %4151 = vadd.xlane.f32.xlu1 %v4150_v44  ;;  %v9570_v55 = vld [vmem:[#allocation7 + $0x434] ss:$24 sps:$4 sm:$0xff]   ;;  %v9568_v44 = vld [vmem:[#allocation7 + $0x430] ss:$24 sps:$4 sm:$0xff]  }
0x1664   :  { %10024 = vrsqrt.f32 %v4158_v16  ;;  %v9573_v16 = vld [vmem:[#allocation7 + $0x464] ss:$24 sps:$4 sm:$0xff]  }
0x166c   :  { %v10023_v23 = vpop.eup %10022 }
0x166d   :  { %v4165_v37 = vmul.f32 %v10023_v23, %v11358_v12  ;;  %v4166_v2 = vmul.f32 %v10023_v23, %v11361_v11  ;;  %v9580_v23 = vld [vmem:[#allocation7 + $0x4f0] ss:$24 sps:$4 sm:$0xff]  }
0x166e   :  { %v10025_v34 = vpop.eup %10024 }
0x166f   :  { %v4192_v40 = vmul.f32 %v11411_v42, %v4165_v37  ;;  %v4167_v24 = vmul.f32 %v10025_v34, %v11366_v13  ;;  %v4168_v57 = vmul.f32 %v10025_v34, %v11369_v4  ;;  %v4193_v1 = vmul.f32 %v11414_v18, %v4166_v2  ;;  %v9550_v13 = vld [vmem:[#allocation7 + $0x310] ss:$24 sps:$4 sm:$0xff]   ;;  %v9555_v4 = vld [vmem:[#allocation7 + $0x344] ss:$24 sps:$4 sm:$0xff]   ;;  %v9583_v2 = vld [vmem:[#allocation7 + $0x520] ss:$24 sps:$4 sm:$0xff]  }
0x1670   :  { %v9585_v37 = vld [vmem:[#allocation7 + $0x524] ss:$24 sps:$4 sm:$0xff]   ;;  %v9588_v34 = vld [vmem:[#allocation7 + $0x554] ss:$24 sps:$4 sm:$0xff]  }
0x1671   :  { %v4194_v36 = vmul.f32 %v11411_v42, %v4167_v24  ;;  %v4195_v12 = vmul.f32 %v11414_v18, %v4168_v57  ;;  %v4220_v11 = vadd.f32 %v11419_v20, %v4193_v1  ;;  %v4219_v25 = vadd.f32 %v11422_v53, %v4192_v40  ;;  %v9586_v40 = vld [vmem:[#allocation7 + $0x550] ss:$24 sps:$4 sm:$0xff]   ;;  %v9591_v24 = vld [vmem:[#allocation7 + $0x584] ss:$24 sps:$4 sm:$0xff]   ;;  %v9589_v57 = vld [vmem:[#allocation7 + $0x580] ss:$24 sps:$4 sm:$0xff]  }
0x1672   :  { %v9594_v1 = vld [vmem:[#allocation7 + $0x5b4] ss:$24 sps:$4 sm:$0xff]  }
0x1673   :  { %v4222_v26 = vadd.f32 %v11419_v20, %v4195_v12  ;;  %v4221_v14 = vadd.f32 %v11422_v53, %v4194_v36  ;;  %v9592_v36 = vld [vmem:[#allocation7 + $0x5b0] ss:$24 sps:$4 sm:$0xff]   ;;  %v9597_v12 = vld [vmem:[#allocation7 + $0x5e4] ss:$24 sps:$4 sm:$0xff]  }
0x1675   :  { %v11434_v56 = vpack.c.bf16 %v4222_v26, %v4220_v11  ;;  %v11436_v58 = vpack.c.bf16 %v4221_v14, %v4219_v25  ;;  %v9595_v11 = vld [vmem:[#allocation7 + $0x5e0] ss:$24 sps:$4 sm:$0xff]  }
0x1677   :  { %4873 = vmatprep.mubr.bf16.mxu0 %v11434_v56  ;;  %4926 = vmatprep.mubr.bf16.mxu1 %v11434_v56 }
0x1678   :  { %4874 = vmatmul.mubr.bf16.vlgmr.msra.gmra.mrb[72].mxu0 %v11436_v58  ;;  %4927 = vmatmul.mubr.bf16.vlgmr.msra.gmra.mrb[72].mxu1 %v11436_v58 }
0x1679   :  { %4948 = vmatpush1.bf16.msra.mxu0 %v9550_v13 }
0x167a   :  { %4949 = vmatprep.subr.bf16.mxu0 %v9555_v4 }
0x167d   :  { %4950 = vmatpush1.bf16.msra.mxu0 %v9553_v30 }
0x167e   :  { %4951 = vmatprep.subr.bf16.mxu0 %v9558_v47 }
0x1681   :  { %4952 = vmatpush1.bf16.msra.mxu0 %v9556_v43 }
0x1682   :  { %4953 = vmatprep.subr.bf16.mxu0 %v9561_v60 }
0x1685   :  { %4954 = vmatpush1.bf16.msra.mxu0 %v9559_v63 }
0x1686   :  { %4955 = vmatprep.subr.bf16.mxu0 %v9564_v32 }
0x1689   :  { %4956 = vmatpush1.bf16.msra.mxu0 %v9562_v38 }
0x168a   :  { %4957 = vmatprep.subr.bf16.mxu0 %v9567_v19 }
0x168d   :  { %4958 = vmatpush1.bf16.msra.mxu0 %v9565_v6 }
0x168e   :  { %4959 = vmatprep.subr.bf16.mxu0 %v9570_v55 }
0x1691   :  { %4960 = vmatpush1.bf16.msra.mxu0 %v9568_v44 }
0x1692   :  { %4961 = vmatprep.subr.bf16.mxu0 %v9573_v16 }
0x1695   :  { %4962 = vmatpush1.bf16.msra.mxu0 %v9571_v15 }
0x1696   :  { %4963 = vmatprep.subr.bf16.mxu0 %v9576_v39 }
0x1699   :  { %4964 = vmatpush1.bf16.msra.mxu0 %v9574_v21 }
0x169a   :  { %4965 = vmatprep.subr.bf16.mxu0 %v9579_v49 }
0x169d   :  { %4966 = vmatpush1.bf16.msra.mxu0 %v9577_v52 }
0x169e   :  { %4967 = vmatprep.subr.bf16.mxu0 %v9582_v54 }
0x16a1   :  { %4968 = vmatpush1.bf16.msra.mxu0 %v9580_v23 }
0x16a2   :  { %4969 = vmatprep.subr.bf16.mxu0 %v9585_v37 }
0x16a5   :  { %4970 = vmatpush1.bf16.msra.mxu0 %v9583_v2 }
0x16a6   :  { %4971 = vmatprep.subr.bf16.mxu0 %v9588_v34 }
0x16a9   :  { %4972 = vmatpush1.bf16.msra.mxu0 %v9586_v40 }
0x16aa   :  { %4973 = vmatprep.subr.bf16.mxu0 %v9591_v24 }
0x16ad   :  { %4974 = vmatpush1.bf16.msra.mxu0 %v9589_v57 }
0x16ae   :  { %4975 = vmatprep.subr.bf16.mxu0 %v9594_v1 }
0x16b1   :  { %4976 = vmatpush1.bf16.msra.mxu0 %v9592_v36 }
0x16b2   :  { %4977 = vmatprep.subr.bf16.mxu0 %v9597_v12 }
0x16b5   :  { %4978 = vmatpush1.bf16.msra.mxu0 %v9595_v11 }
0x16b6   :  { %8866 = vmatprep.subr.bf16.mxu0 %v10375_v59 }
0x16ee   :  { %v4149_v26 = vpop.xlane.xlu0 %4148 }
0x16ef   :  { %v4155_v25 = vmul.f32 0.00390625, %v4149_v26 }
0x16f0   :  { %v4152_v14 = vpop.xlane.xlu1 %4151 }
0x16f1   :  { %v4159_v13 = vadd.f32 1e-05, %v4155_v25  ;;  %v4156_v4 = vmul.f32 0.00390625, %v4152_v14 }
0x16f3   :  { %10026 = vrsqrt.f32 %v4159_v13  ;;  %v4160_v30 = vadd.f32 1e-05, %v4156_v4 }
0x16f5   :  { %10028 = vrsqrt.f32 %v4160_v30 }
0x16fd   :  { %v10027_v47 = vpop.eup %10026 }
0x16fe   :  { %v4170_v43 = vmul.f32 %v10027_v47, %v11384_v17  ;;  %v4169_v60 = vmul.f32 %v10027_v47, %v11381_v27 }
0x16ff   :  { %v10029_v63 = vpop.eup %10028 }
0x1700   :  { %v4172_v32 = vmul.f32 %v10029_v63, %v11390_v31  ;;  %v4197_v38 = vmul.f32 %v11414_v18, %v4170_v43  ;;  %v4171_v19 = vmul.f32 %v10029_v63, %v11387_v61  ;;  %v4196_v6 = vmul.f32 %v11411_v42, %v4169_v60  ;;  %v11464_v61 = vld [vmem:[%s11977_s5 + $0x6] sm:$0x3f] }
0x1702   :  { %v4199_v55 = vmul.f32 %v11414_v18, %v4172_v32  ;;  %v4198_v44 = vmul.f32 %v11411_v42, %v4171_v19  ;;  %v4224_v16 = vadd.f32 %v11419_v20, %v4197_v38  ;;  %v4223_v17 = vadd.f32 %v11422_v53, %v4196_v6 }
0x1703   :  { %v4334_v42 = vrot.slane %v11464_v61, %v10682_v45  ;;  %v4338_v18 = vrot.slane %v11464_v61, %v10760_v51 }
0x1704   :  { %v4226_v15 = vadd.f32 %v11419_v20, %v4199_v55  ;;  %v4225_v27 = vadd.f32 %v11422_v53, %v4198_v44  ;;  %v4342_v20 = vrot.slane %v11464_v61, %v10766_v5 }
0x1706   :  { %v4327_v39 = vpack.c.bf16 %v4226_v15, %v4224_v16  ;;  %v4326_v31 = vpack.c.bf16 %v4225_v27, %v4223_v17 }
0x1708   :  { %4883 = vmatprep.mubr.bf16.mxu0 %v4327_v39  ;;  %4936 = vmatprep.mubr.bf16.mxu1 %v4327_v39 }
0x1709   :  { %4884 = vmatmul.mubr.bf16.gmra.mrb[76].mxu0 %v4326_v31  ;;  %4937 = vmatmul.mubr.bf16.gmra.mrb[76].mxu1 %v4326_v31 }
0x170a   :  { %4979 = vmatprep.mubr.bf16.mxu0 %v11434_v56  ;;  %8862 = vmatprep.mubr.msk.bf16.mxu1 %vm10376_vm0, %v10375_v59 }
0x1711   :  { %4980 = vmatmul.mubr.bf16.vlgmr.msra.gmra.mrb[80].mxu0 %v11436_v58  ;;  %v4346_v58 = vrot.slane %v11464_v61, %v10769_v7 }
0x1712   :  { %4989 = vmatprep.mubr.bf16.mxu0 %v4327_v39 }
0x1719   :  { %4990 = vmatmul.mubr.bf16.gmra.mrb[84].mxu0 %v4326_v31 }
0x171a   :  { %8868 = vmatprep.mubr.msk.bf16.mxu0 %vm10376_vm0, %v10375_v59 }
0x174b   :  { %v4875_v53 = vpop.f32.mrb[72].mxu0  ;;  %v4928_v56 = vpop.f32.mrb[72].mxu1 }
0x174c   :  { %v4876_v21 = vadd.f32 %v4875_v53, %v4334_v42  ;;  %v4877_v49 = vpop.f32.mrb[73].mxu0  ;;  %v4930_v52 = vpop.f32.mrb[73].mxu1  ;;  %v4929_v2 = vadd.f32 %v4928_v56, %v4342_v20 }
0x174d   :  { %v4878_v54 = vadd.f32 %v4877_v49, %v4338_v18  ;;  %v4879_v23 = vpop.f32.mrb[74].mxu0  ;;  %v4932_v37 = vpop.f32.mrb[74].mxu1  ;;  %v4931_v1 = vadd.f32 %v4930_v52, %v4346_v58 }
0x174e   :  { %v4880_v34 = vadd.f32 %v4879_v23, %v4334_v42  ;;  %v4933_v40 = vadd.f32 %v4932_v37, %v4342_v20  ;;  %v4881_v24 = vpop.f32.mrb[75].mxu0  ;;  %v4934_v57 = vpop.f32.mrb[75].mxu1  ;;  %v5000_v11 = vmul.f32 0.088388346, %v4876_v21 }
0x174f   :  { %v4882_v36 = vadd.f32 %v4881_v24, %v4338_v18  ;;  %v4935_v12 = vadd.f32 %v4934_v57, %v4346_v58  ;;  %v5113_v14 = vmul.f32 0.088388346, %v4878_v54 }
0x1750   :  { %v5001_v26 = vmul.f32 0.088388346, %v4880_v34  ;;  %v5003_v25 = vpack.c.bf16 %v4933_v40, %v4929_v2  ;;  %v4350_v2 = vrot.slane %v11464_v61, %v10685_v46 }
0x1751   :  { %v5114_v13 = vmul.f32 0.088388346, %v4882_v36  ;;  %v5116_v4 = vpack.c.bf16 %v4935_v12, %v4931_v1 }
0x1752   :  { %v5002_v30 = vpack.c.bf16 %v5001_v26, %v5000_v11  ;;  %8861 = vmatpush3.bf16.xpose.msra.mxu1 %v5003_v25 }
0x1753   :  { %v5115_v47 = vpack.c.bf16 %v5114_v13, %v5113_v14  ;;  %8872 = vmatprep.subr.bf16.mxu1 %v10375_v59 }
0x1759   :  { %8863 = vmatmul.mubr.bf16.vlgmr.msra.gmra.mrb[80].mxu1 %v5002_v30 }
0x175a   :  { %8873 = vmatpush3.bf16.xpose.msra.mxu1 %v5116_v4  ;;  %8874 = vmatprep.mubr.msk.bf16.mxu1 %vm10376_vm0, %v10375_v59 }
0x175b   :  { %8884 = vmatprep.subr.bf16.mxu1 %v10375_v59 }
0x1761   :  { %8875 = vmatmul.mubr.bf16.vlgmr.msra.gmra.mrb[84].mxu1 %v5115_v47 }
0x1762   :  { %8886 = vmatprep.mubr.msk.bf16.mxu1 %vm10376_vm0, %v10375_v59 }
0x17dc   :  { %v4885_v43 = vpop.f32.mrb[76].mxu0  ;;  %v4938_v60 = vpop.f32.mrb[76].mxu1 }
0x17dd   :  { %v4886_v63 = vadd.f32 %v4885_v43, %v4334_v42  ;;  %v4887_v32 = vpop.f32.mrb[77].mxu0  ;;  %v4940_v38 = vpop.f32.mrb[77].mxu1  ;;  %v4939_v44 = vadd.f32 %v4938_v60, %v4342_v20 }
0x17de   :  { %v4888_v19 = vadd.f32 %v4887_v32, %v4338_v18  ;;  %v4889_v6 = vpop.f32.mrb[78].mxu0  ;;  %v4942_v55 = vpop.f32.mrb[78].mxu1  ;;  %v4941_v39 = vadd.f32 %v4940_v38, %v4346_v58 }
0x17df   :  { %v4890_v16 = vadd.f32 %v4889_v6, %v4334_v42  ;;  %v4943_v15 = vadd.f32 %v4942_v55, %v4342_v20  ;;  %v4891_v17 = vpop.f32.mrb[79].mxu0  ;;  %v4944_v27 = vpop.f32.mrb[79].mxu1  ;;  %v5226_v56 = vmul.f32 0.088388346, %v4886_v63  ;;  %v4354_v42 = vrot.slane %v11464_v61, %v10799_v48 }
0x17e0   :  { %v4892_v31 = vadd.f32 %v4891_v17, %v4338_v18  ;;  %v4945_v53 = vadd.f32 %v4944_v27, %v4346_v58  ;;  %v5339_v52 = vmul.f32 0.088388346, %v4888_v19 }
0x17e1   :  { %v5227_v21 = vmul.f32 0.088388346, %v4890_v16  ;;  %v5229_v49 = vpack.c.bf16 %v4943_v15, %v4939_v44 }
0x17e2   :  { %v5340_v54 = vmul.f32 0.088388346, %v4892_v31  ;;  %v5342_v23 = vpack.c.bf16 %v4945_v53, %v4941_v39 }
0x17e3   :  { %v5228_v37 = vpack.c.bf16 %v5227_v21, %v5226_v56  ;;  %8885 = vmatpush3.bf16.xpose.msra.mxu1 %v5229_v49 }
0x17e4   :  { %v5341_v34 = vpack.c.bf16 %v5340_v54, %v5339_v52  ;;  %v4981_v40 = vpop.f32.mrb[80].mxu0  ;;  %8896 = vmatprep.subr.bf16.mxu1 %v10375_v59 }
0x17e5   :  { %v4983_v18 = vpop.f32.mrb[81].mxu0  ;;  %v4982_v58 = vadd.f32 %v4981_v40, %v4350_v2 }
0x17e6   :  { %v4985_v20 = vpop.f32.mrb[82].mxu0  ;;  %v11485_v1 = vadd.f32 %v4983_v18, %v4354_v42 }
0x17e7   :  { %v4986_v24 = vadd.f32 %v4985_v20, %v4350_v2  ;;  %v4987_v57 = vpop.f32.mrb[83].mxu0 }
0x17e8   :  { %v11487_v36 = vadd.f32 %v4987_v57, %v4354_v42 }
0x17e9   :  { %v5004_v12 = vpack.c.bf16 %v4986_v24, %v4982_v58 }
0x17ea   :  { %v5117_v46 = vpack.c.bf16 %v11487_v36, %v11485_v1  ;;  %8887 = vmatmul.mubr.bf16.vlgmr.msra.gmra.mrb[88].mxu1 %v5228_v37  ;;  %v9598_v1 = vld [vmem:[#allocation8 + $0x100] ss:$8 sps:$4 sm:$0xff]   ;;  %v9600_v36 = vld [vmem:[#allocation8 + $0x104] ss:$8 sps:$4 sm:$0xff]  }
0x17eb   :  { %8867 = vmatpush3.bf16.msra.mxu0 %v5004_v12  ;;  %8897 = vmatpush3.bf16.xpose.msra.mxu1 %v5342_v23 }
0x17ec   :  { %v4991_v11 = vpop.f32.mrb[84].mxu0  ;;  %8898 = vmatprep.mubr.msk.bf16.mxu1 %vm10376_vm0, %v10375_v59  ;;  %8878 = vmatprep.subr.bf16.mxu0 %v10375_v59 }
0x17ed   :  { %v11494_v61 = vadd.f32 %v4991_v11, %v4350_v2  ;;  %v4993_v26 = vpop.f32.mrb[85].mxu0  ;;  %5649 = vmatprep.subr.bf16.mxu1 %v9600_v36 }
0x17ee   :  { %v11496_v25 = vadd.f32 %v4993_v26, %v4354_v42  ;;  %v4995_v14 = vpop.f32.mrb[86].mxu0 }
0x17ef   :  { %v11498_v13 = vadd.f32 %v4995_v14, %v4350_v2  ;;  %v4997_v4 = vpop.f32.mrb[87].mxu0 }
0x17f0   :  { %v11500_v30 = vadd.f32 %v4997_v4, %v4354_v42 }
0x17f1   :  { %v5230_v47 = vpack.c.bf16 %v11498_v13, %v11494_v61  ;;  %v9607_v61 = vld [vmem:[#allocation8 + $0x130] ss:$8 sps:$4 sm:$0xff]   ;;  %v9612_v13 = vld [vmem:[#allocation8 + $0x144] ss:$8 sps:$4 sm:$0xff]  }
0x17f2   :  { %v5343_v43 = vpack.c.bf16 %v11500_v30, %v11496_v25  ;;  %8899 = vmatmul.mubr.bf16.vlgmr.msra.gmra.mrb[92].mxu1 %v5341_v34 }
0x17f3   :  { %5650 = vmatpush1.bf16.msra.mxu1 %v9598_v1 }
0x182c   :  { %v5039_v60 = vpop.f32.mrb[80].mxu1 }
0x182d   :  { %v8864_v63 = vpop.f32.mrb[81].mxu1  ;;  %v5046_v32 = vsel %vm1137_vm1, %v5039_v60, -inf }
0x182e   :  { %5047 = vmax.xlane.f32.xlu0 %v5046_v32  ;;  %v5042_v38 = vpop.f32.mrb[82].mxu1 }
0x182f   :  { %v8865_v19 = vpop.f32.mrb[83].mxu1  ;;  %v5049_v6 = vsel %vm1137_vm1, %v5042_v38, -inf }
0x1830   :  { %5050 = vmax.xlane.f32.xlu1 %v5049_v6 }
0x1834   :  { %v5152_v55 = vpop.f32.mrb[84].mxu1 }
0x1835   :  { %v8876_v44 = vpop.f32.mrb[85].mxu1  ;;  %v5159_v16 = vsel %vm1137_vm1, %v5152_v55, -inf }
0x1836   :  { %5160 = vmax.xlane.f32.xlu0 %v5159_v16  ;;  %v5155_v15 = vpop.f32.mrb[86].mxu1 }
0x1837   :  { %v8877_v17 = vpop.f32.mrb[87].mxu1  ;;  %v5162_v27 = vsel %vm1137_vm1, %v5155_v15, -inf }
0x1838   :  { %5163 = vmax.xlane.f32.xlu1 %v5162_v27 }
0x18bb   :  { %v5048_v39 = vpop.xlane.xlu0 %5047 }
0x18bc   :  { %v5052_v31 = vsub.f32 %v5039_v60, %v5048_v39 }
0x18bd   :  { %v5051_v53 = vpop.xlane.xlu1 %5050  ;;  %v5265_v56 = vpop.f32.mrb[88].mxu1 }
0x18be   :  { %v5054_v21 = vmul.f32 1.442695, %v5052_v31  ;;  %v5053_v49 = vsub.f32 %v5042_v38, %v5051_v53  ;;  %v8888_v52 = vpop.f32.mrb[89].mxu1  ;;  %v5272_v54 = vsel %vm1137_vm1, %v5265_v56, -inf }
0x18bf   :  { %5273 = vmax.xlane.f32.xlu0 %v5272_v54  ;;  %v5268_v23 = vpop.f32.mrb[90].mxu1 }
0x18c0   :  { %10030 = vpow2.f32 %v5054_v21  ;;  %v5056_v37 = vmul.f32 1.442695, %v5053_v49  ;;  %v8889_v2 = vpop.f32.mrb[91].mxu1  ;;  %v5275_v34 = vsel %vm1137_vm1, %v5268_v23, -inf }
0x18c1   :  { %5276 = vmax.xlane.f32.xlu1 %v5275_v34 }
0x18c2   :  { %10032 = vpow2.f32 %v5056_v37 }
0x18c3   :  { %v5161_v40 = vpop.xlane.xlu0 %5160 }
0x18c4   :  { %v5165_v42 = vsub.f32 %v5152_v55, %v5161_v40 }
0x18c5   :  { %v5164_v18 = vpop.xlane.xlu1 %5163  ;;  %v5378_v20 = vpop.f32.mrb[92].mxu1 }
0x18c6   :  { %v5167_v58 = vmul.f32 1.442695, %v5165_v42  ;;  %v5166_v24 = vsub.f32 %v5155_v15, %v5164_v18  ;;  %v8900_v57 = vpop.f32.mrb[93].mxu1  ;;  %v5385_v12 = vsel %vm1137_vm1, %v5378_v20, -inf }
0x18c7   :  { %5386 = vmax.xlane.f32.xlu0 %v5385_v12  ;;  %v5381_v11 = vpop.f32.mrb[94].mxu1 }
0x18c8   :  { %10034 = vpow2.f32 %v5167_v58  ;;  %v5169_v26 = vmul.f32 1.442695, %v5166_v24  ;;  %v8901_v14 = vpop.f32.mrb[95].mxu1  ;;  %v5388_v4 = vsel %vm1137_vm1, %v5381_v11, -inf }
0x18c9   :  { %5389 = vmax.xlane.f32.xlu1 %v5388_v4 }
0x18ca   :  { %v10031_v60 = vpop.eup %10030  ;;  %10036 = vpow2.f32 %v5169_v26 }
0x18cb   :  { %v5058_v63 = vsel %vm1137_vm1, %v10031_v60, 0.0 }
0x18cc   :  { %v10033_v32 = vpop.eup %10032  ;;  %5059 = vadd.xlane.f32.xlu0 %v5058_v63 }
0x18cd   :  { %v5061_v38 = vsel %vm1137_vm1, %v10033_v32, 0.0 }
0x18ce   :  { %5062 = vadd.xlane.f32.xlu1 %v5061_v38 }
0x18d2   :  { %v10035_v19 = vpop.eup %10034 }
0x18d3   :  { %v5171_v6 = vsel %vm1137_vm1, %v10035_v19, 0.0 }
0x18d4   :  { %v10037_v55 = vpop.eup %10036  ;;  %5172 = vadd.xlane.f32.xlu0 %v5171_v6 }
0x18d5   :  { %v5174_v44 = vsel %vm1137_vm1, %v10037_v55, 0.0 }
0x18d6   :  { %5175 = vadd.xlane.f32.xlu1 %v5174_v44 }
0x194c   :  { %v5274_v16 = vpop.xlane.xlu0 %5273 }
0x194d   :  { %v5278_v15 = vsub.f32 %v5265_v56, %v5274_v16 }
0x194e   :  { %v5277_v17 = vpop.xlane.xlu1 %5276 }
0x194f   :  { %v5280_v27 = vmul.f32 1.442695, %v5278_v15  ;;  %v5279_v39 = vsub.f32 %v5268_v23, %v5277_v17  ;;  %v9615_v17 = vld [vmem:[#allocation8 + $0x154] ss:$8 sps:$4 sm:$0xff]  }
0x1951   :  { %10038 = vpow2.f32 %v5280_v27  ;;  %v5282_v31 = vmul.f32 1.442695, %v5279_v39  ;;  %v9613_v27 = vld [vmem:[#allocation8 + $0x150] ss:$8 sps:$4 sm:$0xff]   ;;  %v9618_v39 = vld [vmem:[#allocation8 + $0x164] ss:$8 sps:$4 sm:$0xff]  }
0x1953   :  { %10040 = vpow2.f32 %v5282_v31  ;;  %v9616_v31 = vld [vmem:[#allocation8 + $0x160] ss:$8 sps:$4 sm:$0xff]  }
0x1954   :  { %v5387_v53 = vpop.xlane.xlu0 %5386 }
0x1955   :  { %v5391_v21 = vsub.f32 %v5378_v20, %v5387_v53  ;;  %v9621_v53 = vld [vmem:[#allocation8 + $0x174] ss:$8 sps:$4 sm:$0xff]  }
0x1956   :  { %v5390_v49 = vpop.xlane.xlu1 %5389 }
0x1957   :  { %v5393_v52 = vmul.f32 1.442695, %v5391_v21  ;;  %v5392_v54 = vsub.f32 %v5381_v11, %v5390_v49  ;;  %v9619_v21 = vld [vmem:[#allocation8 + $0x170] ss:$8 sps:$4 sm:$0xff]   ;;  %v9624_v49 = vld [vmem:[#allocation8 + $0x184] ss:$8 sps:$4 sm:$0xff]  }
0x1959   :  { %10042 = vpow2.f32 %v5393_v52  ;;  %v5395_v37 = vmul.f32 1.442695, %v5392_v54  ;;  %v5060_v2 = vpop.xlane.xlu0 %5059  ;;  %v9622_v52 = vld [vmem:[#allocation8 + $0x180] ss:$8 sps:$4 sm:$0xff]   ;;  %v9627_v54 = vld [vmem:[#allocation8 + $0x194] ss:$8 sps:$4 sm:$0xff]  }
0x195a   :  { %10044 = vrcp.f32 %v5060_v2  ;;  %v9630_v2 = vld [vmem:[#allocation8 + $0x1a4] ss:$8 sps:$4 sm:$0xff]  }
0x195b   :  { %v11518_v34 = vpop.eup %10038  ;;  %10046 = vpow2.f32 %v5395_v37  ;;  %v5063_v40 = vpop.xlane.xlu1 %5062  ;;  %v9625_v37 = vld [vmem:[#allocation8 + $0x190] ss:$8 sps:$4 sm:$0xff]  }
0x195c   :  { %10048 = vrcp.f32 %v5063_v40  ;;  %v5284_v56 = vsel %vm1137_vm1, %v11518_v34, 0.0  ;;  %v9628_v40 = vld [vmem:[#allocation8 + $0x1a0] ss:$8 sps:$4 sm:$0xff]  }
0x195d   :  { %v11522_v23 = vpop.eup %10040  ;;  %5285 = vadd.xlane.f32.xlu0 %v5284_v56  ;;  %v9633_v56 = vld [vmem:[#allocation8 + $0x1b4] ss:$8 sps:$4 sm:$0xff]  }
0x195e   :  { %v5287_v42 = vsel %vm1137_vm1, %v11522_v23, 0.0 }
0x195f   :  { %5288 = vadd.xlane.f32.xlu1 %v5287_v42  ;;  %v9631_v42 = vld [vmem:[#allocation8 + $0x1b0] ss:$8 sps:$4 sm:$0xff]  }
0x1961   :  { %v5173_v18 = vpop.xlane.xlu0 %5172 }
0x1962   :  { %10050 = vrcp.f32 %v5173_v18  ;;  %v9636_v18 = vld [vmem:[#allocation8 + $0x1c4] ss:$8 sps:$4 sm:$0xff]  }
0x1963   :  { %v11526_v20 = vpop.eup %10042  ;;  %v5176_v58 = vpop.xlane.xlu1 %5175 }
0x1964   :  { %v10045_v24 = vpop.eup %10044  ;;  %10052 = vrcp.f32 %v5176_v58  ;;  %v5397_v57 = vsel %vm1137_vm1, %v11526_v20, 0.0  ;;  %v9634_v58 = vld [vmem:[#allocation8 + $0x1c0] ss:$8 sps:$4 sm:$0xff]  }
0x1965   :  { %v11530_v12 = vpop.eup %10046  ;;  %5398 = vadd.xlane.f32.xlu0 %v5397_v57  ;;  %v5066_v14 = vmul.f32 %v10045_v24, %v10031_v60  ;;  %v9601_v60 = vld [vmem:[#allocation8 + $0x110] ss:$8 sps:$4 sm:$0xff]   ;;  %v9639_v24 = vld [vmem:[#allocation8 + $0x1d4] ss:$8 sps:$4 sm:$0xff]  }
0x1966   :  { %v10049_v11 = vpop.eup %10048  ;;  %v5400_v26 = vsel %vm1137_vm1, %v11530_v12, 0.0  ;;  %v9637_v57 = vld [vmem:[#allocation8 + $0x1d0] ss:$8 sps:$4 sm:$0xff]  }
0x1967   :  { %v5067_v4 = vmul.f32 %v10049_v11, %v10033_v32  ;;  %5401 = vadd.xlane.f32.xlu1 %v5400_v26  ;;  %v9606_v32 = vld [vmem:[#allocation8 + $0x124] ss:$8 sps:$4 sm:$0xff]   ;;  %v9640_v26 = vld [vmem:[#allocation8 + $0x1e0] ss:$8 sps:$4 sm:$0xff]  }
0x1968   :  { %v9642_v11 = vld [vmem:[#allocation8 + $0x1e4] ss:$8 sps:$4 sm:$0xff]  }
0x1969   :  { %v5068_v63 = vpack.c.bf16 %v5067_v4, %v5066_v14  ;;  %v9645_v14 = vld [vmem:[#allocation8 + $0x1f4] ss:$8 sps:$4 sm:$0xff]   ;;  %v9643_v4 = vld [vmem:[#allocation8 + $0x1f0] ss:$8 sps:$4 sm:$0xff]  }
0x196b   :  { %8869 = vmatmul.mubr.msk.bf16.vlgmr.msra.gmra.mrb[88].mxu0 %vm1137_vm1, %v5068_v63 }
0x196c   :  { %v10051_v38 = vpop.eup %10050  ;;  %8879 = vmatpush3.bf16.msra.mxu0 %v5117_v46  ;;  %8880 = vmatprep.mubr.msk.bf16.mxu0 %vm10376_vm0, %v10375_v59  ;;  %v9603_v46 = vld [vmem:[#allocation8 + $0x114] ss:$8 sps:$4 sm:$0xff]  }
0x196d   :  { %8890 = vmatprep.subr.bf16.mxu0 %v10375_v59  ;;  %v5179_v44 = vmul.f32 %v10051_v38, %v10035_v19  ;;  %5651 = vmatprep.subr.bf16.mxu1 %v9603_v46  ;;  %v9604_v19 = vld [vmem:[#allocation8 + $0x120] ss:$8 sps:$4 sm:$0xff]  }
0x196e   :  { %v10053_v6 = vpop.eup %10052  ;;  %5652 = vmatpush1.bf16.msra.mxu1 %v9601_v60 }
0x196f   :  { %v5180_v16 = vmul.f32 %v10053_v6, %v10037_v55  ;;  %5653 = vmatprep.subr.bf16.mxu1 %v9606_v32  ;;  %v9609_v55 = vld [vmem:[#allocation8 + $0x134] ss:$8 sps:$4 sm:$0xff]  }
0x1971   :  { %v5181_v15 = vpack.c.bf16 %v5180_v16, %v5179_v44 }
0x1972   :  { %5654 = vmatpush1.bf16.msra.mxu1 %v9604_v19 }
0x1973   :  { %8881 = vmatmul.mubr.msk.bf16.vlgmr.msra.gmra.mrb[92].mxu0 %vm1137_vm1, %v5181_v15  ;;  %5655 = vmatprep.subr.bf16.mxu1 %v9609_v55 }
0x1974   :  { %8891 = vmatpush3.bf16.msra.mxu0 %v5230_v47  ;;  %8892 = vmatprep.mubr.msk.bf16.mxu0 %vm10376_vm0, %v10375_v59  ;;  %v9610_v47 = vld [vmem:[#allocation8 + $0x140] ss:$8 sps:$4 sm:$0xff]  }
0x1975   :  { %8902 = vmatprep.subr.bf16.mxu0 %v10375_v59 }
0x1976   :  { %5656 = vmatpush1.bf16.msra.mxu1 %v9607_v61 }
0x1977   :  { %5657 = vmatprep.subr.bf16.mxu1 %v9612_v13 }
0x197a   :  { %5658 = vmatpush1.bf16.msra.mxu1 %v9610_v47 }
0x197b   :  { %5659 = vmatprep.subr.bf16.mxu1 %v9615_v17 }
0x197e   :  { %5660 = vmatpush1.bf16.msra.mxu1 %v9613_v27 }
0x197f   :  { %5661 = vmatprep.subr.bf16.mxu1 %v9618_v39 }
0x1982   :  { %5662 = vmatpush1.bf16.msra.mxu1 %v9616_v31 }
0x1983   :  { %5663 = vmatprep.subr.bf16.mxu1 %v9621_v53 }
0x1986   :  { %5664 = vmatpush1.bf16.msra.mxu1 %v9619_v21 }
0x1987   :  { %5665 = vmatprep.subr.bf16.mxu1 %v9624_v49 }
0x198a   :  { %5666 = vmatpush1.bf16.msra.mxu1 %v9622_v52 }
0x198b   :  { %5667 = vmatprep.subr.bf16.mxu1 %v9627_v54 }
0x198e   :  { %5668 = vmatpush1.bf16.msra.mxu1 %v9625_v37 }
0x198f   :  { %5669 = vmatprep.subr.bf16.mxu1 %v9630_v2 }
0x1992   :  { %5670 = vmatpush1.bf16.msra.mxu1 %v9628_v40  ;;  %v8498_v40 = vld [vmem:[%s11979_s7 + $0x2] sm:$0x3] }
0x1993   :  { %5671 = vmatprep.subr.bf16.mxu1 %v9633_v56  ;;  %v11564_v56 = vrot.slane %v8498_v40, %v10682_v45 }
0x1996   :  { %5672 = vmatpush1.bf16.msra.mxu1 %v9631_v42 }
0x1997   :  { %5673 = vmatprep.subr.bf16.mxu1 %v9636_v18  ;;  %v11567_v18 = vrot.slane %v8498_v40, %v10760_v51  ;;  %v9694_v40 = vld [vmem:[#allocation10 + $0x170] ss:$8 sps:$4 sm:$0xff]  }
0x199a   :  { %5674 = vmatpush1.bf16.msra.mxu1 %v9634_v58 }
0x199b   :  { %5675 = vmatprep.subr.bf16.mxu1 %v9639_v24 }
0x199e   :  { %5676 = vmatpush1.bf16.msra.mxu1 %v9637_v57 }
0x199f   :  { %5677 = vmatprep.subr.bf16.mxu1 %v9642_v11 }
0x19a2   :  { %5678 = vmatpush1.bf16.msra.mxu1 %v9640_v26 }
0x19a3   :  { %5679 = vmatprep.subr.bf16.mxu1 %v9645_v14 }
0x19a6   :  { %5680 = vmatpush1.bf16.msra.mxu1 %v9643_v4 }
0x19ea   :  { %v5286_v63 = vpop.xlane.xlu0 %5285 }
0x19eb   :  { %10054 = vrcp.f32 %v5286_v63 }
0x19ec   :  { %v5289_v38 = vpop.xlane.xlu1 %5288 }
0x19ed   :  { %10056 = vrcp.f32 %v5289_v38 }
0x19f2   :  { %v5399_v6 = vpop.xlane.xlu0 %5398 }
0x19f3   :  { %10058 = vrcp.f32 %v5399_v6 }
0x19f4   :  { %v5402_v44 = vpop.xlane.xlu1 %5401 }
0x19f5   :  { %v10055_v16 = vpop.eup %10054  ;;  %10060 = vrcp.f32 %v5402_v44 }
0x19f6   :  { %v5292_v1 = vmul.f32 %v10055_v16, %v11518_v34  ;;  %v9648_v16 = vld [vmem:[#allocation11 + $0x204] ss:$16 sps:$4 sm:$0xff]  }
0x19f7   :  { %v10057_v15 = vpop.eup %10056  ;;  %6518 = vmatprep.subr.bf16.mxu1 %v9648_v16 }
0x19f8   :  { %v5293_v36 = vmul.f32 %v10057_v15, %v11522_v23  ;;  %v9651_v15 = vld [vmem:[#allocation11 + $0x224] ss:$16 sps:$4 sm:$0xff]  }
0x19fa   :  { %v5294_v46 = vpack.c.bf16 %v5293_v36, %v5292_v1  ;;  %v9652_v1 = vld [vmem:[#allocation10 + $0x100] ss:$8 sps:$4 sm:$0xff]   ;;  %v9654_v36 = vld [vmem:[#allocation10 + $0x104] ss:$8 sps:$4 sm:$0xff]  }
0x19fc   :  { %8893 = vmatmul.mubr.msk.bf16.vlgmr.msra.gmra.mrb[96].mxu0 %vm1137_vm1, %v5294_v46  ;;  %v9660_v46 = vld [vmem:[#allocation10 + $0x114] ss:$8 sps:$4 sm:$0xff]  }
0x19fd   :  { %v10059_v60 = vpop.eup %10058  ;;  %8903 = vmatpush3.bf16.msra.mxu0 %v5343_v43  ;;  %8904 = vmatprep.mubr.msk.bf16.mxu0 %vm10376_vm0, %v10375_v59 }
0x19fe   :  { %v5405_v19 = vmul.f32 %v10059_v60, %v11526_v20  ;;  %6057 = vmatprep.subr.bf16.mxu0 %v9654_v36  ;;  %v9657_v60 = vld [vmem:[#allocation11 + $0x244] ss:$16 sps:$4 sm:$0xff]  }
0x19ff   :  { %v10061_v32 = vpop.eup %10060 }
0x1a00   :  { %v5406_v55 = vmul.f32 %v10061_v32, %v11530_v12  ;;  %v9658_v32 = vld [vmem:[#allocation10 + $0x110] ss:$8 sps:$4 sm:$0xff]  }
0x1a02   :  { %v5407_v61 = vpack.c.bf16 %v5406_v55, %v5405_v19  ;;  %v9666_v19 = vld [vmem:[#allocation10 + $0x124] ss:$8 sps:$4 sm:$0xff]   ;;  %v9655_v55 = vld [vmem:[#allocation11 + $0x240] ss:$16 sps:$4 sm:$0xff]  }
0x1a04   :  { %8905 = vmatmul.mubr.msk.bf16.vlgmr.msra.gmra.mrb[100].mxu0 %vm1137_vm1, %v5407_v61  ;;  %v9663_v61 = vld [vmem:[#allocation11 + $0x264] ss:$16 sps:$4 sm:$0xff]  }
0x1a05   :  { %6058 = vmatpush1.bf16.msra.mxu0 %v9652_v1 }
0x1a06   :  { %6059 = vmatprep.subr.bf16.mxu0 %v9660_v46 }
0x1a09   :  { %6060 = vmatpush1.bf16.msra.mxu0 %v9658_v32 }
0x1a0a   :  { %6061 = vmatprep.subr.bf16.mxu0 %v9666_v19 }
0x1a3e   :  { %v5106_v34 = vpop.f32.mrb[88].mxu0 }
0x1a3f   :  { %v8870_v23 = vpop.f32.mrb[89].mxu0 }
0x1a40   :  { %v5109_v13 = vpop.f32.mrb[90].mxu0  ;;  %v9672_v23 = vld [vmem:[#allocation10 + $0x134] ss:$8 sps:$4 sm:$0xff]  }
0x1a41   :  { %v5485_v47 = vpack.c.bf16 %v5109_v13, %v5106_v34  ;;  %v8871_v17 = vpop.f32.mrb[91].mxu0  ;;  %v9664_v34 = vld [vmem:[#allocation10 + $0x120] ss:$8 sps:$4 sm:$0xff]  }
0x1a42   :  { %v9661_v13 = vld [vmem:[#allocation11 + $0x260] ss:$16 sps:$4 sm:$0xff]   ;;  %6062 = vmatpush1.bf16.msra.mxu0 %v9664_v34 }
0x1a43   :  { %v9670_v17 = vld [vmem:[#allocation10 + $0x130] ss:$8 sps:$4 sm:$0xff]   ;;  %6063 = vmatprep.subr.bf16.mxu0 %v9672_v23 }
0x1a46   :  { %v5219_v27 = vpop.f32.mrb[92].mxu0  ;;  %6064 = vmatpush1.bf16.msra.mxu0 %v9670_v17 }
0x1a47   :  { %v8882_v39 = vpop.f32.mrb[93].mxu0 }
0x1a48   :  { %v5222_v25 = vpop.f32.mrb[94].mxu0  ;;  %v9667_v39 = vld [vmem:[#allocation11 + $0x280] ss:$16 sps:$4 sm:$0xff]  }
0x1a49   :  { %v5486_v30 = vpack.c.bf16 %v5222_v25, %v5219_v27  ;;  %v8883_v43 = vpop.f32.mrb[95].mxu0  ;;  %v9678_v27 = vld [vmem:[#allocation10 + $0x144] ss:$8 sps:$4 sm:$0xff]  }
0x1a4a   :  { %v9675_v25 = vld [vmem:[#allocation11 + $0x2a4] ss:$16 sps:$4 sm:$0xff]   ;;  %6065 = vmatprep.subr.bf16.mxu0 %v9678_v27 }
0x1a4b   :  { %5681 = vmatprep.mubr.bf16.mxu1 %v5486_v30  ;;  %v9676_v30 = vld [vmem:[#allocation10 + $0x140] ss:$8 sps:$4 sm:$0xff]   ;;  %v9684_v43 = vld [vmem:[#allocation10 + $0x154] ss:$8 sps:$4 sm:$0xff]  }
0x1a4c   :  { %5682 = vmatmul.mubr.bf16.vlgmr.msra.gmra.mrb[96].mxu1 %v5485_v47  ;;  %v9669_v47 = vld [vmem:[#allocation11 + $0x284] ss:$16 sps:$4 sm:$0xff]   ;;  %6066 = vmatpush1.bf16.msra.mxu0 %v9676_v30  ;;  %v9706_v30 = vld [vmem:[#allocation10 + $0x190] ss:$8 sps:$4 sm:$0xff]  }
0x1a4d   :  { %6067 = vmatprep.subr.bf16.mxu0 %v9684_v43  ;;  %v9705_v27 = vld [vmem:[#allocation11 + $0x344] ss:$16 sps:$4 sm:$0xff]  }
0x1a4e   :  { %v9711_v43 = vld [vmem:[#allocation11 + $0x364] ss:$16 sps:$4 sm:$0xff]  }
0x1acf   :  { %v5332_v31 = vpop.f32.mrb[96].mxu0 }
0x1ad0   :  { %v8894_v53 = vpop.f32.mrb[97].mxu0 }
0x1ad1   :  { %v5335_v20 = vpop.f32.mrb[98].mxu0  ;;  %v9681_v53 = vld [vmem:[#allocation11 + $0x2c4] ss:$16 sps:$4 sm:$0xff]  }
0x1ad2   :  { %v5487_v21 = vpack.c.bf16 %v5335_v20, %v5332_v31  ;;  %v8895_v12 = vpop.f32.mrb[99].mxu0  ;;  %v9673_v31 = vld [vmem:[#allocation11 + $0x2a0] ss:$16 sps:$4 sm:$0xff]  }
0x1ad3   :  { %v9682_v20 = vld [vmem:[#allocation10 + $0x150] ss:$8 sps:$4 sm:$0xff]  }
0x1ad4   :  { %v9679_v12 = vld [vmem:[#allocation11 + $0x2c0] ss:$16 sps:$4 sm:$0xff]   ;;  %6068 = vmatpush1.bf16.msra.mxu0 %v9682_v20 }
0x1ad5   :  { %v9712_v20 = vld [vmem:[#allocation10 + $0x1a0] ss:$8 sps:$4 sm:$0xff]  }
0x1ad7   :  { %v5445_v49 = vpop.f32.mrb[100].mxu0 }
0x1ad8   :  { %v8906_v52 = vpop.f32.mrb[101].mxu0 }
0x1ad9   :  { %v5448_v54 = vpop.f32.mrb[102].mxu0  ;;  %v9688_v52 = vld [vmem:[#allocation10 + $0x160] ss:$8 sps:$4 sm:$0xff]  }
0x1ada   :  { %v5488_v37 = vpack.c.bf16 %v5448_v54, %v5445_v49  ;;  %v8907_v2 = vpop.f32.mrb[103].mxu0  ;;  %v9687_v49 = vld [vmem:[#allocation11 + $0x2e4] ss:$16 sps:$4 sm:$0xff]  }
0x1adb   :  { %v9696_v54 = vld [vmem:[#allocation10 + $0x174] ss:$8 sps:$4 sm:$0xff]  }
0x1adc   :  { %5691 = vmatprep.mubr.bf16.mxu1 %v5488_v37  ;;  %v9685_v37 = vld [vmem:[#allocation11 + $0x2e0] ss:$16 sps:$4 sm:$0xff]   ;;  %v9693_v2 = vld [vmem:[#allocation11 + $0x304] ss:$16 sps:$4 sm:$0xff]  }
0x1add   :  { %5692 = vmatmul.mubr.bf16.gmra.mrb[100].mxu1 %v5487_v21  ;;  %v9690_v21 = vld [vmem:[#allocation10 + $0x164] ss:$8 sps:$4 sm:$0xff]  }
0x1ade   :  { %6550 = vmatprep.mubr.bf16.mxu1 %v10968_v8  ;;  %6069 = vmatprep.subr.bf16.mxu0 %v9690_v21  ;;  %v9717_v21 = vld [vmem:[#allocation11 + $0x384] ss:$16 sps:$4 sm:$0xff]  }
0x1adf   :  { %6070 = vmatpush1.bf16.msra.mxu0 %v9688_v52  ;;  %v9718_v52 = vld [vmem:[#allocation10 + $0x1b0] ss:$8 sps:$4 sm:$0xff]  }
0x1ae0   :  { %6071 = vmatprep.subr.bf16.mxu0 %v9696_v54  ;;  %v9723_v54 = vld [vmem:[#allocation11 + $0x3a4] ss:$16 sps:$4 sm:$0xff]  }
0x1ae3   :  { %6072 = vmatpush1.bf16.msra.mxu0 %v9694_v40  ;;  %v9724_v40 = vld [vmem:[#allocation10 + $0x1c0] ss:$8 sps:$4 sm:$0xff]  }
0x1b1f   :  { %v5683_v42 = vpop.f32.mrb[96].mxu1 }
0x1b20   :  { %v5702_v58 = vadd.f32 %v5683_v42, %v11322_v9  ;;  %v5685_v24 = vpop.f32.mrb[97].mxu1  ;;  %v9702_v42 = vld [vmem:[#allocation10 + $0x184] ss:$8 sps:$4 sm:$0xff]  }
0x1b21   :  { %v5703_v57 = vadd.f32 %v5685_v24, %v11326_v35  ;;  %v5687_v11 = vpop.f32.mrb[98].mxu1  ;;  %v9699_v24 = vld [vmem:[#allocation11 + $0x324] ss:$16 sps:$4 sm:$0xff]   ;;  %6073 = vmatprep.subr.bf16.mxu0 %v9702_v42 }
0x1b22   :  { %v11572_v26 = vadd.f32 %v11564_v56, %v5702_v58  ;;  %v5704_v14 = vadd.f32 %v5687_v11, %v11330_v3  ;;  %v5689_v4 = vpop.f32.mrb[99].mxu1  ;;  %v9646_v3 = vld [vmem:[#allocation11 + $0x200] ss:$16 sps:$4 sm:$0xff]   ;;  %v9729_v42 = vld [vmem:[#allocation11 + $0x3c4] ss:$16 sps:$4 sm:$0xff]  }
0x1b23   :  { %v11576_v63 = vadd.f32 %v11567_v18, %v5703_v57  ;;  %v5705_v38 = vadd.f32 %v5689_v4, %v11333_v62  ;;  %6519 = vmatpush1.bf16.msra.mxu1 %v9646_v3  ;;  %v9649_v62 = vld [vmem:[#allocation11 + $0x220] ss:$16 sps:$4 sm:$0xff]  }
0x1b24   :  { %v11580_v6 = vadd.f32 %v11564_v56, %v5704_v14  ;;  %6520 = vmatprep.subr.bf16.mxu1 %v9651_v15  ;;  %v9691_v58 = vld [vmem:[#allocation11 + $0x300] ss:$16 sps:$4 sm:$0xff]  }
0x1b25   :  { %v11583_v9 = vadd.f32 %v11567_v18, %v5705_v38  ;;  %v5731_v35 = vadd.f32 %v11576_v63, %v11572_v26  ;;  %v9700_v57 = vld [vmem:[#allocation10 + $0x180] ss:$8 sps:$4 sm:$0xff]  }
0x1b26   :  { %v9697_v11 = vld [vmem:[#allocation11 + $0x320] ss:$16 sps:$4 sm:$0xff]   ;;  %6074 = vmatpush1.bf16.msra.mxu0 %v9700_v57 }
0x1b27   :  { %5732 = vadd.xlane.f32.xlu0 %v5731_v35  ;;  %v5734_v44 = vadd.f32 %v11583_v9, %v11580_v6  ;;  %6521 = vmatpush1.bf16.msra.mxu1 %v9649_v62  ;;  %v9730_v57 = vld [vmem:[#allocation10 + $0x1d0] ss:$8 sps:$4 sm:$0xff]  }
0x1b28   :  { %6522 = vmatprep.subr.bf16.mxu1 %v9657_v60 }
0x1b29   :  { %5735 = vadd.xlane.f32.xlu1 %v5734_v44 }
0x1b2b   :  { %6523 = vmatpush1.bf16.msra.mxu1 %v9655_v55 }
0x1b2c   :  { %6524 = vmatprep.subr.bf16.mxu1 %v9663_v61 }
0x1b2f   :  { %6525 = vmatpush1.bf16.msra.mxu1 %v9661_v13 }
0x1b30   :  { %6526 = vmatprep.subr.bf16.mxu1 %v9669_v47 }
0x1b33   :  { %6527 = vmatpush1.bf16.msra.mxu1 %v9667_v39  ;;  %v9703_v39 = vld [vmem:[#allocation11 + $0x340] ss:$16 sps:$4 sm:$0xff]  }
0x1b34   :  { %6528 = vmatprep.subr.bf16.mxu1 %v9675_v25  ;;  %v9708_v25 = vld [vmem:[#allocation10 + $0x194] ss:$8 sps:$4 sm:$0xff]  }
0x1b35   :  { %6075 = vmatprep.subr.bf16.mxu0 %v9708_v25 }
0x1b36   :  { %6076 = vmatpush1.bf16.msra.mxu0 %v9706_v30 }
0x1b37   :  { %6529 = vmatpush1.bf16.msra.mxu1 %v9673_v31  ;;  %v9709_v31 = vld [vmem:[#allocation11 + $0x360] ss:$16 sps:$4 sm:$0xff]  }
0x1b38   :  { %6530 = vmatprep.subr.bf16.mxu1 %v9681_v53  ;;  %v9714_v53 = vld [vmem:[#allocation10 + $0x1a4] ss:$8 sps:$4 sm:$0xff]  }
0x1b39   :  { %6077 = vmatprep.subr.bf16.mxu0 %v9714_v53 }
0x1b3a   :  { %6078 = vmatpush1.bf16.msra.mxu0 %v9712_v20 }
0x1b3b   :  { %6531 = vmatpush1.bf16.msra.mxu1 %v9679_v12  ;;  %v9715_v12 = vld [vmem:[#allocation11 + $0x380] ss:$16 sps:$4 sm:$0xff]  }
0x1b3c   :  { %6532 = vmatprep.subr.bf16.mxu1 %v9687_v49  ;;  %v9720_v49 = vld [vmem:[#allocation10 + $0x1b4] ss:$8 sps:$4 sm:$0xff]  }
0x1b3d   :  { %6079 = vmatprep.subr.bf16.mxu0 %v9720_v49 }
0x1b3e   :  { %6080 = vmatpush1.bf16.msra.mxu0 %v9718_v52 }
0x1b3f   :  { %6533 = vmatpush1.bf16.msra.mxu1 %v9685_v37  ;;  %v9721_v37 = vld [vmem:[#allocation11 + $0x3a0] ss:$16 sps:$4 sm:$0xff]  }
0x1b40   :  { %6534 = vmatprep.subr.bf16.mxu1 %v9693_v2  ;;  %v9726_v2 = vld [vmem:[#allocation10 + $0x1c4] ss:$8 sps:$4 sm:$0xff]  }
0x1b41   :  { %6081 = vmatprep.subr.bf16.mxu0 %v9726_v2 }
0x1b42   :  { %6082 = vmatpush1.bf16.msra.mxu0 %v9724_v40 }
0x1b43   :  { %6535 = vmatpush1.bf16.msra.mxu1 %v9691_v58  ;;  %v9727_v58 = vld [vmem:[#allocation11 + $0x3c0] ss:$16 sps:$4 sm:$0xff]  }
0x1b44   :  { %6536 = vmatprep.subr.bf16.mxu1 %v9699_v24  ;;  %v9732_v24 = vld [vmem:[#allocation10 + $0x1d4] ss:$8 sps:$4 sm:$0xff]  }
0x1b45   :  { %6083 = vmatprep.subr.bf16.mxu0 %v9732_v24 }
0x1b46   :  { %6084 = vmatpush1.bf16.msra.mxu0 %v9730_v57 }
0x1b47   :  { %6537 = vmatpush1.bf16.msra.mxu1 %v9697_v11  ;;  %v9735_v11 = vld [vmem:[#allocation11 + $0x3e4] ss:$16 sps:$4 sm:$0xff]  }
0x1b48   :  { %6538 = vmatprep.subr.bf16.mxu1 %v9705_v27 }
0x1b4b   :  { %6539 = vmatpush1.bf16.msra.mxu1 %v9703_v39 }
0x1b4c   :  { %6540 = vmatprep.subr.bf16.mxu1 %v9711_v43 }
0x1b4f   :  { %6541 = vmatpush1.bf16.msra.mxu1 %v9709_v31  ;;  %v10124_v31 = vld [vmem:[%s12009_s1 + $0x8] sm:$0x77] }
0x1b50   :  { %6542 = vmatprep.subr.bf16.mxu1 %v9717_v21  ;;  %v5802_v53 = vrot.slane %v10124_v31, %v10799_v48  ;;  %v5798_v20 = vrot.slane %v10124_v31, %v10760_v51  ;;  %v10125_v21 = vld [vmem:[%s11975_s3 + $0x8] sm:$0x77] }
0x1b51   :  { %v5824_v49 = vrot.slane %v10125_v21, %v10760_v51 }
0x1b52   :  { %v5812_v52 = vrot.slane %v5802_v53, %v10760_v51 }
0x1b53   :  { %6543 = vmatpush1.bf16.msra.mxu1 %v9715_v12  ;;  %v5828_v12 = vrot.slane %v10125_v21, %v10799_v48  ;;  %v5834_v24 = vrot.slane %v5824_v49, %v10760_v51 }
0x1b54   :  { %6544 = vmatprep.subr.bf16.mxu1 %v9723_v54  ;;  %v5808_v54 = vrot.slane %v5798_v20, %v10760_v51 }
0x1b57   :  { %6545 = vmatpush1.bf16.msra.mxu1 %v9721_v37 }
0x1b58   :  { %6546 = vmatprep.subr.bf16.mxu1 %v9729_v42 }
0x1b5b   :  { %6547 = vmatpush1.bf16.msra.mxu1 %v9727_v58  ;;  %v5838_v58 = vrot.slane %v5828_v12, %v10760_v51 }
0x1b5c   :  { %6548 = vmatprep.subr.bf16.mxu1 %v9735_v11 }
0x1bb0   :  { %v5693_v14 = vpop.f32.mrb[100].mxu1 }
0x1bb1   :  { %v5706_v4 = vadd.f32 %v5693_v14, %v11342_v41  ;;  %v5695_v38 = vpop.f32.mrb[101].mxu1  ;;  %v9733_v14 = vld [vmem:[#allocation11 + $0x3e0] ss:$16 sps:$4 sm:$0xff]  }
0x1bb2   :  { %v5707_v35 = vadd.f32 %v5695_v38, %v11346_v50  ;;  %v5697_v44 = vpop.f32.mrb[102].mxu1  ;;  %v9738_v38 = vld [vmem:[#allocation10 + $0x1e4] ss:$8 sps:$4 sm:$0xff]   ;;  %6549 = vmatpush1.bf16.msra.mxu1 %v9733_v14 }
0x1bb3   :  { %v11592_v3 = vadd.f32 %v11564_v56, %v5706_v4  ;;  %v5708_v16 = vadd.f32 %v5697_v44, %v11350_v10  ;;  %v5699_v15 = vpop.f32.mrb[103].mxu1  ;;  %v9736_v4 = vld [vmem:[#allocation10 + $0x1e0] ss:$8 sps:$4 sm:$0xff]   ;;  %6085 = vmatprep.subr.bf16.mxu0 %v9738_v38  ;;  %v9739_v44 = vld [vmem:[#allocation10 + $0x1f0] ss:$8 sps:$4 sm:$0xff]   ;;  %8908 = vmatprep.subr.bf16.mxu1 %v10375_v59 }
0x1bb4   :  { %v11596_v1 = vadd.f32 %v11567_v18, %v5707_v35  ;;  %v5733_v36 = vpop.xlane.xlu0 %5732  ;;  %v5709_v62 = vadd.f32 %v5699_v15, %v11353_v33  ;;  %v9741_v35 = vld [vmem:[#allocation10 + $0x1f4] ss:$8 sps:$4 sm:$0xff]   ;;  %6086 = vmatpush1.bf16.msra.mxu0 %v9736_v4 }
0x1bb5   :  { %v11600_v46 = vadd.f32 %v11564_v56, %v5708_v16  ;;  %v5743_v41 = vmul.f32 0.00390625, %v5733_v36  ;;  %6087 = vmatprep.subr.bf16.mxu0 %v9741_v35  ;;  %6551 = vmatmul.mubr.bf16.vlgmr.msra.gmra.mrb[104].mxu1 %v10970_v22 }
0x1bb6   :  { %v11603_v60 = vadd.f32 %v11567_v18, %v5709_v62  ;;  %v5736_v50 = vpop.xlane.xlu1 %5735  ;;  %v5737_v32 = vadd.f32 %v11596_v1, %v11592_v3  ;;  %6560 = vmatprep.mubr.bf16.mxu1 %v11029_v28 }
0x1bb7   :  { %v11608_v10 = vsub.f32 %v11572_v26, %v5743_v41  ;;  %v11611_v19 = vsub.f32 %v11576_v63, %v5743_v41  ;;  %v5744_v55 = vmul.f32 0.00390625, %v5736_v50 }
0x1bb8   :  { %5738 = vadd.xlane.f32.xlu0 %v5737_v32  ;;  %v5740_v33 = vadd.f32 %v11603_v60, %v11600_v46  ;;  %6088 = vmatpush1.bf16.msra.mxu0 %v9739_v44 }
0x1bb9   :  { %v11616_v56 = vsub.f32 %v11580_v6, %v5744_v55  ;;  %v11619_v18 = vsub.f32 %v11583_v9, %v5744_v55  ;;  %v5755_v61 = vmul.f32 %v11608_v10, %v11608_v10  ;;  %v5756_v34 = vmul.f32 %v11611_v19, %v11611_v19 }
0x1bba   :  { %5741 = vadd.xlane.f32.xlu1 %v5740_v33 }
0x1bbb   :  { %v5763_v23 = vadd.f32 %v5756_v34, %v5755_v61  ;;  %v5757_v13 = vmul.f32 %v11616_v56, %v11616_v56  ;;  %v5758_v47 = vmul.f32 %v11619_v18, %v11619_v18 }
0x1bbd   :  { %5764 = vadd.xlane.f32.xlu0 %v5763_v23  ;;  %v5766_v17 = vadd.f32 %v5758_v47, %v5757_v13  ;;  %6561 = vmatmul.mubr.bf16.gmra.mrb[108].mxu1 %v11031_v0 }
0x1bbe   :  { %8910 = vmatprep.mubr.msk.bf16.mxu1 %vm10376_vm0, %v10375_v59 }
0x1bbf   :  { %5767 = vadd.xlane.f32.xlu1 %v5766_v17 }
0x1c45   :  { %v5739_v16 = vpop.xlane.xlu0 %5738 }
0x1c46   :  { %v5745_v15 = vmul.f32 0.00390625, %v5739_v16 }
0x1c47   :  { %v5742_v36 = vpop.xlane.xlu1 %5741 }
0x1c48   :  { %v11636_v62 = vsub.f32 %v11592_v3, %v5745_v15  ;;  %v11639_v41 = vsub.f32 %v11596_v1, %v5745_v15  ;;  %v5746_v50 = vmul.f32 0.00390625, %v5742_v36 }
0x1c4a   :  { %v11642_v32 = vsub.f32 %v11600_v46, %v5746_v50  ;;  %v11645_v55 = vsub.f32 %v11603_v60, %v5746_v50  ;;  %v5765_v33 = vpop.xlane.xlu0 %5764  ;;  %v5759_v61 = vmul.f32 %v11636_v62, %v11636_v62  ;;  %v5760_v34 = vmul.f32 %v11639_v41, %v11639_v41 }
0x1c4b   :  { %v5775_v23 = vmul.f32 0.00390625, %v5765_v33 }
0x1c4c   :  { %v5768_v13 = vpop.xlane.xlu1 %5767  ;;  %v5769_v47 = vadd.f32 %v5760_v34, %v5759_v61  ;;  %v5761_v17 = vmul.f32 %v11642_v32, %v11642_v32  ;;  %v5762_v27 = vmul.f32 %v11645_v55, %v11645_v55 }
0x1c4d   :  { %v5779_v39 = vadd.f32 1e-05, %v5775_v23  ;;  %v5776_v25 = vmul.f32 0.00390625, %v5768_v13 }
0x1c4e   :  { %5770 = vadd.xlane.f32.xlu0 %v5769_v47  ;;  %v5772_v30 = vadd.f32 %v5762_v27, %v5761_v17 }
0x1c4f   :  { %10062 = vrsqrt.f32 %v5779_v39  ;;  %v5780_v43 = vadd.f32 1e-05, %v5776_v25 }
0x1c50   :  { %5773 = vadd.xlane.f32.xlu1 %v5772_v30 }
0x1c51   :  { %10064 = vrsqrt.f32 %v5780_v43 }
0x1c59   :  { %v10063_v37 = vpop.eup %10062 }
0x1c5a   :  { %v5787_v2 = vmul.f32 %v10063_v37, %v11608_v10  ;;  %v5788_v40 = vmul.f32 %v10063_v37, %v11611_v19  ;;  %v11676_v19 = vld [vmem:[%s11983_s11 + $0x4] sm:$0xf] }
0x1c5b   :  { %v10065_v42 = vpop.eup %10064  ;;  %v11682_v23 = vrot.slane %v11676_v19, %v10760_v51 }
0x1c5c   :  { %v5789_v57 = vmul.f32 %v10065_v42, %v11616_v56  ;;  %v5790_v48 = vmul.f32 %v10065_v42, %v11619_v18  ;;  %v5814_v11 = vmul.f32 %v5812_v52, %v5788_v40  ;;  %v5813_v14 = vmul.f32 %v5808_v54, %v5787_v2 }
0x1c5d   :  { %v6181_v56 = vrot.slane %v11676_v19, %v10682_v45 }
0x1c5e   :  { %v5816_v4 = vmul.f32 %v5812_v52, %v5790_v48  ;;  %v5815_v38 = vmul.f32 %v5808_v54, %v5789_v57  ;;  %v5840_v35 = vadd.f32 %v5838_v58, %v5814_v11  ;;  %v5839_v16 = vadd.f32 %v5834_v24, %v5813_v14 }
0x1c60   :  { %v5842_v44 = vadd.f32 %v5838_v58, %v5816_v4  ;;  %v5841_v15 = vadd.f32 %v5834_v24, %v5815_v38 }
0x1c62   :  { %v5881_v10 = vpack.c.bf16 %v5842_v44, %v5840_v35  ;;  %v5880_v36 = vpack.c.bf16 %v5841_v15, %v5839_v16 }
0x1c64   :  { %6089 = vmatprep.mubr.bf16.mxu0 %v5881_v10 }
0x1c65   :  { %6090 = vmatmul.mubr.bf16.vlgmr.msra.gmra.mrb[104].mxu0 %v5880_v36 }
0x1c88   :  { %v6552_v18 = vpop.f32.mrb[104].mxu1 }
0x1c89   :  { %v6553_v50 = vadd.f32 %v6552_v18, %v6181_v56  ;;  %v6554_v33 = vpop.f32.mrb[105].mxu1 }
0x1c8a   :  { %v6556_v61 = vpop.f32.mrb[106].mxu1  ;;  %v6555_v47 = vadd.f32 %v6554_v33, %v11682_v23 }
0x1c8b   :  { %v6557_v34 = vadd.f32 %v6556_v61, %v6181_v56  ;;  %v6558_v17 = vpop.f32.mrb[107].mxu1 }
0x1c8c   :  { %v6559_v27 = vadd.f32 %v6558_v17, %v11682_v23 }
0x1c8d   :  { %v6627_v13 = vpack.c.bf16 %v6557_v34, %v6553_v50 }
0x1c8e   :  { %v6740_v39 = vpack.c.bf16 %v6559_v27, %v6555_v47 }
0x1c8f   :  { %8909 = vmatpush3.bf16.xpose.msra.mxu1 %v6627_v13 }
0x1c90   :  { %8920 = vmatprep.subr.bf16.mxu1 %v10375_v59  ;;  %v6562_v25 = vpop.f32.mrb[108].mxu1 }
0x1c91   :  { %v6563_v30 = vadd.f32 %v6562_v25, %v6181_v56  ;;  %v6564_v43 = vpop.f32.mrb[109].mxu1 }
0x1c92   :  { %v6566_v31 = vpop.f32.mrb[110].mxu1 }
0x1c93   :  { %v6567_v53 = vadd.f32 %v6566_v31, %v6181_v56  ;;  %v6568_v31 = vpop.f32.mrb[111].mxu1 }
0x1c95   :  { %v6853_v20 = vpack.c.bf16 %v6567_v53, %v6563_v30  ;;  %v11709_v30 = vadd.f32 %v6564_v43, %v11682_v23  ;;  %v11712_v53 = vadd.f32 %v6568_v31, %v11682_v23  ;;  %v9745_v43 = vld [vmem:[#allocation11 + $0x228] ss:$16 sps:$4 sm:$0xff]   ;;  %v9783_v31 = vld [vmem:[#allocation11 + $0x3ac] ss:$16 sps:$4 sm:$0xff]  }
0x1c96   :  { %v9748_v23 = vld [vmem:[#allocation11 + $0x248] ss:$16 sps:$4 sm:$0xff]  }
0x1cdb   :  { %v5771_v21 = vpop.xlane.xlu0 %5770 }
0x1cdc   :  { %v5777_v12 = vmul.f32 0.00390625, %v5771_v21  ;;  %v6966_v21 = vpack.c.bf16 %v11712_v53, %v11709_v30 }
0x1cdd   :  { %v5774_v49 = vpop.xlane.xlu1 %5773 }
0x1cde   :  { %v5781_v37 = vadd.f32 1e-05, %v5777_v12  ;;  %v5778_v2 = vmul.f32 0.00390625, %v5774_v49  ;;  %v9744_v12 = vld [vmem:[#allocation11 + $0x20c] ss:$16 sps:$4 sm:$0xff]  }
0x1cdf   :  { %v9747_v49 = vld [vmem:[#allocation11 + $0x22c] ss:$16 sps:$4 sm:$0xff]   ;;  %6571 = vmatprep.subr.bf16.mxu0 %v9744_v12 }
0x1ce0   :  { %10066 = vrsqrt.f32 %v5781_v37  ;;  %v5782_v40 = vadd.f32 1e-05, %v5778_v2  ;;  %v9750_v37 = vld [vmem:[#allocation11 + $0x24c] ss:$16 sps:$4 sm:$0xff]  }
0x1ce1   :  { %v9753_v2 = vld [vmem:[#allocation11 + $0x26c] ss:$16 sps:$4 sm:$0xff]  }
0x1ce2   :  { %10068 = vrsqrt.f32 %v5782_v40  ;;  %v9751_v40 = vld [vmem:[#allocation11 + $0x268] ss:$16 sps:$4 sm:$0xff]   ;;  %v9789_v12 = vld [vmem:[#allocation11 + $0x3ec] ss:$16 sps:$4 sm:$0xff]  }
0x1cea   :  { %v10067_v42 = vpop.eup %10066 }
0x1ceb   :  { %v5792_v57 = vmul.f32 %v10067_v42, %v11639_v41  ;;  %v5791_v48 = vmul.f32 %v10067_v42, %v11636_v62  ;;  %v8499_v62 = vld [vmem:[%s11981_s9 + $0x2] sm:$0x3]  ;;  %v9754_v42 = vld [vmem:[#allocation11 + $0x288] ss:$16 sps:$4 sm:$0xff]  }
0x1cec   :  { %v10069_v11 = vpop.eup %10068  ;;  %v11696_v41 = vrot.slane %v8499_v62, %v10682_v45 }
0x1ced   :  { %v5794_v14 = vmul.f32 %v10069_v11, %v11645_v55  ;;  %v5818_v4 = vmul.f32 %v5812_v52, %v5792_v57  ;;  %v5793_v38 = vmul.f32 %v10069_v11, %v11642_v32  ;;  %v5817_v35 = vmul.f32 %v5808_v54, %v5791_v48  ;;  %v9759_v57 = vld [vmem:[#allocation11 + $0x2ac] ss:$16 sps:$4 sm:$0xff]   ;;  %v9757_v48 = vld [vmem:[#allocation11 + $0x2a8] ss:$16 sps:$4 sm:$0xff]  }
0x1cee   :  { %v11699_v32 = vrot.slane %v8499_v62, %v10760_v51  ;;  %v9762_v11 = vld [vmem:[#allocation11 + $0x2cc] ss:$16 sps:$4 sm:$0xff]  }
0x1cef   :  { %v5820_v44 = vmul.f32 %v5812_v52, %v5794_v14  ;;  %v5819_v16 = vmul.f32 %v5808_v54, %v5793_v38  ;;  %v5844_v15 = vadd.f32 %v5838_v58, %v5818_v4  ;;  %v5843_v36 = vadd.f32 %v5834_v24, %v5817_v35  ;;  %v9760_v14 = vld [vmem:[#allocation11 + $0x2c8] ss:$16 sps:$4 sm:$0xff]   ;;  %v9765_v4 = vld [vmem:[#allocation11 + $0x2ec] ss:$16 sps:$4 sm:$0xff]  }
0x1cf0   :  { %v9763_v38 = vld [vmem:[#allocation11 + $0x2e8] ss:$16 sps:$4 sm:$0xff]   ;;  %v9768_v35 = vld [vmem:[#allocation11 + $0x30c] ss:$16 sps:$4 sm:$0xff]  }
0x1cf1   :  { %v5846_v10 = vadd.f32 %v5838_v58, %v5820_v44  ;;  %v5845_v56 = vadd.f32 %v5834_v24, %v5819_v16  ;;  %v9766_v44 = vld [vmem:[#allocation11 + $0x308] ss:$16 sps:$4 sm:$0xff]   ;;  %v9771_v16 = vld [vmem:[#allocation11 + $0x32c] ss:$16 sps:$4 sm:$0xff]  }
0x1cf3   :  { %v5883_v18 = vpack.c.bf16 %v5846_v10, %v5844_v15  ;;  %v5882_v50 = vpack.c.bf16 %v5845_v56, %v5843_v36  ;;  %v9769_v15 = vld [vmem:[#allocation11 + $0x328] ss:$16 sps:$4 sm:$0xff]   ;;  %v9774_v10 = vld [vmem:[#allocation11 + $0x34c] ss:$16 sps:$4 sm:$0xff]  }
0x1cf4   :  { %v9772_v36 = vld [vmem:[#allocation11 + $0x348] ss:$16 sps:$4 sm:$0xff]   ;;  %v9777_v56 = vld [vmem:[#allocation11 + $0x36c] ss:$16 sps:$4 sm:$0xff]  }
0x1cf5   :  { %6099 = vmatprep.mubr.bf16.mxu0 %v5883_v18 }
0x1cf6   :  { %6100 = vmatmul.mubr.bf16.gmra.mrb[108].mxu0 %v5882_v50 }
0x1cf7   :  { %6603 = vmatprep.mubr.bf16.mxu0 %v10968_v8 }
0x1d38   :  { %v6091_v55 = vpop.f32.mrb[104].mxu0 }
0x1d39   :  { %v6092_v52 = vadd.f32 %v6091_v55, %v11696_v41  ;;  %v6093_v54 = vpop.f32.mrb[105].mxu0 }
0x1d3a   :  { %v6094_v58 = vadd.f32 %v6093_v54, %v11699_v32  ;;  %v6095_v24 = vpop.f32.mrb[106].mxu0  ;;  %v9775_v54 = vld [vmem:[#allocation11 + $0x368] ss:$16 sps:$4 sm:$0xff]  }
0x1d3b   :  { %v6096_v33 = vadd.f32 %v6095_v24, %v11696_v41  ;;  %v6097_v8 = vpop.f32.mrb[107].mxu0  ;;  %v6624_v34 = vmul.f32 0.088388346, %v6092_v52 }
0x1d3c   :  { %v6098_v61 = vadd.f32 %v6097_v8, %v11699_v32  ;;  %v6737_v47 = vmul.f32 0.088388346, %v6094_v58 }
0x1d3d   :  { %v6625_v13 = vmul.f32 0.088388346, %v6096_v33  ;;  %v9780_v33 = vld [vmem:[#allocation11 + $0x38c] ss:$16 sps:$4 sm:$0xff]  }
0x1d3e   :  { %v6738_v17 = vmul.f32 0.088388346, %v6098_v61 }
0x1d3f   :  { %v6626_v27 = vpack.c.bf16 %v6625_v13, %v6624_v34 }
0x1d40   :  { %v6739_v25 = vpack.c.bf16 %v6738_v17, %v6737_v47 }
0x1d41   :  { %8911 = vmatmul.mubr.bf16.vlgmr.msra.gmra.mrb[112].mxu1 %v6626_v27  ;;  %v9778_v27 = vld [vmem:[#allocation11 + $0x388] ss:$16 sps:$4 sm:$0xff]  }
0x1d42   :  { %8921 = vmatpush3.bf16.xpose.msra.mxu1 %v6740_v39  ;;  %8922 = vmatprep.mubr.msk.bf16.mxu1 %vm10376_vm0, %v10375_v59  ;;  %v9742_v39 = vld [vmem:[#allocation11 + $0x208] ss:$16 sps:$4 sm:$0xff]  }
0x1d43   :  { %8932 = vmatprep.subr.bf16.mxu1 %v10375_v59  ;;  %6572 = vmatpush1.bf16.msra.mxu0 %v9742_v39  ;;  %v9784_v39 = vld [vmem:[#allocation11 + $0x3c8] ss:$16 sps:$4 sm:$0xff]  }
0x1d44   :  { %6573 = vmatprep.subr.bf16.mxu0 %v9747_v49  ;;  %v9787_v49 = vld [vmem:[#allocation11 + $0x3e8] ss:$16 sps:$4 sm:$0xff]  }
0x1d47   :  { %6574 = vmatpush1.bf16.msra.mxu0 %v9745_v43 }
0x1d48   :  { %6575 = vmatprep.subr.bf16.mxu0 %v9750_v37 }
0x1d49   :  { %8923 = vmatmul.mubr.bf16.vlgmr.msra.gmra.mrb[116].mxu1 %v6739_v25 }
0x1d4a   :  { %8933 = vmatpush3.bf16.xpose.msra.mxu1 %v6853_v20  ;;  %8934 = vmatprep.mubr.msk.bf16.mxu1 %vm10376_vm0, %v10375_v59  ;;  %v9756_v20 = vld [vmem:[#allocation11 + $0x28c] ss:$16 sps:$4 sm:$0xff]  }
0x1d4b   :  { %8944 = vmatprep.subr.bf16.mxu1 %v10375_v59  ;;  %6576 = vmatpush1.bf16.msra.mxu0 %v9748_v23 }
0x1d4c   :  { %6577 = vmatprep.subr.bf16.mxu0 %v9753_v2 }
0x1d4f   :  { %6578 = vmatpush1.bf16.msra.mxu0 %v9751_v40 }
0x1d50   :  { %6579 = vmatprep.subr.bf16.mxu0 %v9756_v20 }
0x1d53   :  { %6580 = vmatpush1.bf16.msra.mxu0 %v9754_v42 }
0x1d54   :  { %6581 = vmatprep.subr.bf16.mxu0 %v9759_v57 }
0x1d57   :  { %6582 = vmatpush1.bf16.msra.mxu0 %v9757_v48 }
0x1d58   :  { %6583 = vmatprep.subr.bf16.mxu0 %v9762_v11 }
0x1d5b   :  { %6584 = vmatpush1.bf16.msra.mxu0 %v9760_v14 }
0x1d5c   :  { %6585 = vmatprep.subr.bf16.mxu0 %v9765_v4 }
0x1d5f   :  { %6586 = vmatpush1.bf16.msra.mxu0 %v9763_v38 }
0x1d60   :  { %6587 = vmatprep.subr.bf16.mxu0 %v9768_v35 }
0x1d63   :  { %6588 = vmatpush1.bf16.msra.mxu0 %v9766_v44 }
0x1d64   :  { %6589 = vmatprep.subr.bf16.mxu0 %v9771_v16 }
0x1d67   :  { %6590 = vmatpush1.bf16.msra.mxu0 %v9769_v15 }
0x1d68   :  { %6591 = vmatprep.subr.bf16.mxu0 %v9774_v10 }
0x1d6b   :  { %6592 = vmatpush1.bf16.msra.mxu0 %v9772_v36 }
0x1d6c   :  { %6593 = vmatprep.subr.bf16.mxu0 %v9777_v56 }
0x1d6f   :  { %6594 = vmatpush1.bf16.msra.mxu0 %v9775_v54 }
0x1d70   :  { %6595 = vmatprep.subr.bf16.mxu0 %v9780_v33 }
0x1d73   :  { %6596 = vmatpush1.bf16.msra.mxu0 %v9778_v27 }
0x1d74   :  { %6597 = vmatprep.subr.bf16.mxu0 %v9783_v31 }
0x1dc9   :  { %v6101_v18 = vpop.f32.mrb[108].mxu0 }
0x1dca   :  { %v6102_v50 = vadd.f32 %v6101_v18, %v11696_v41  ;;  %v6103_v62 = vpop.f32.mrb[109].mxu0 }
0x1dcb   :  { %v6104_v55 = vadd.f32 %v6103_v62, %v11699_v32  ;;  %v6105_v52 = vpop.f32.mrb[110].mxu0 }
0x1dcc   :  { %v6106_v58 = vadd.f32 %v6105_v52, %v11696_v41  ;;  %v6107_v24 = vpop.f32.mrb[111].mxu0  ;;  %v6850_v61 = vmul.f32 0.088388346, %v6102_v50  ;;  %v9781_v41 = vld [vmem:[#allocation11 + $0x3a8] ss:$16 sps:$4 sm:$0xff]  }
0x1dcd   :  { %v6108_v8 = vadd.f32 %v6107_v24, %v11699_v32  ;;  %v6963_v13 = vmul.f32 0.088388346, %v6104_v55  ;;  %v9786_v32 = vld [vmem:[#allocation11 + $0x3cc] ss:$16 sps:$4 sm:$0xff]   ;;  %6598 = vmatpush1.bf16.msra.mxu0 %v9781_v41 }
0x1dce   :  { %v6851_v34 = vmul.f32 0.088388346, %v6106_v58  ;;  %6599 = vmatprep.subr.bf16.mxu0 %v9786_v32  ;;  %v11757_v32 = vrot.slane %v11676_v19, %v10766_v5 }
0x1dcf   :  { %v6964_v47 = vmul.f32 0.088388346, %v6108_v8 }
0x1dd0   :  { %v6852_v17 = vpack.c.bf16 %v6851_v34, %v6850_v61 }
0x1dd1   :  { %v6965_v25 = vpack.c.bf16 %v6964_v47, %v6963_v13  ;;  %6600 = vmatpush1.bf16.msra.mxu0 %v9784_v39 }
0x1dd2   :  { %8935 = vmatmul.mubr.bf16.vlgmr.msra.gmra.mrb[120].mxu1 %v6852_v17  ;;  %6601 = vmatprep.subr.bf16.mxu0 %v9789_v12 }
0x1dd3   :  { %8945 = vmatpush3.bf16.xpose.msra.mxu1 %v6966_v21  ;;  %8946 = vmatprep.mubr.msk.bf16.mxu1 %vm10376_vm0, %v10375_v59 }
0x1dd5   :  { %6602 = vmatpush1.bf16.msra.mxu0 %v9787_v49 }
0x1dd6   :  { %8914 = vmatprep.subr.bf16.mxu0 %v10375_v59 }
0x1dd8   :  { %6604 = vmatmul.mubr.bf16.vlgmr.msra.gmra.mrb[112].mxu0 %v10970_v22 }
0x1dd9   :  { %6613 = vmatprep.mubr.bf16.mxu0 %v11029_v28 }
0x1dda   :  { %8947 = vmatmul.mubr.bf16.vlgmr.msra.gmra.mrb[124].mxu1 %v6965_v25 }
0x1de0   :  { %6614 = vmatmul.mubr.bf16.gmra.mrb[116].mxu0 %v11031_v0 }
0x1de1   :  { %8916 = vmatprep.mubr.msk.bf16.mxu0 %vm10376_vm0, %v10375_v59 }
0x1e14   :  { %v6663_v30 = vpop.f32.mrb[112].mxu1 }
0x1e15   :  { %v8912_v53 = vpop.f32.mrb[113].mxu1  ;;  %v6670_v21 = vsel %vm1137_vm1, %v6663_v30, -inf }
0x1e16   :  { %6671 = vmax.xlane.f32.xlu0 %v6670_v21  ;;  %v6666_v43 = vpop.f32.mrb[114].mxu1  ;;  %v11764_v21 = vrot.slane %v11676_v19, %v10769_v7 }
0x1e17   :  { %v8913_v37 = vpop.f32.mrb[115].mxu1  ;;  %v6673_v23 = vsel %vm1137_vm1, %v6666_v43, -inf }
0x1e18   :  { %6674 = vmax.xlane.f32.xlu1 %v6673_v23 }
0x1e1c   :  { %v6776_v2 = vpop.f32.mrb[116].mxu1 }
0x1e1d   :  { %v8924_v40 = vpop.f32.mrb[117].mxu1  ;;  %v6783_v22 = vsel %vm1137_vm1, %v6776_v2, -inf }
0x1e1e   :  { %6784 = vmax.xlane.f32.xlu0 %v6783_v22  ;;  %v6779_v28 = vpop.f32.mrb[118].mxu1 }
0x1e1f   :  { %v8925_v0 = vpop.f32.mrb[119].mxu1  ;;  %v6786_v20 = vsel %vm1137_vm1, %v6779_v28, -inf }
0x1e20   :  { %6787 = vmax.xlane.f32.xlu1 %v6786_v20 }
0x1ea3   :  { %v6672_v42 = vpop.xlane.xlu0 %6671 }
0x1ea4   :  { %v6676_v57 = vsub.f32 %v6663_v30, %v6672_v42 }
0x1ea5   :  { %v6675_v48 = vpop.xlane.xlu1 %6674  ;;  %v6889_v11 = vpop.f32.mrb[120].mxu1 }
0x1ea6   :  { %v6678_v14 = vmul.f32 1.442695, %v6676_v57  ;;  %v6677_v4 = vsub.f32 %v6666_v43, %v6675_v48  ;;  %v8936_v38 = vpop.f32.mrb[121].mxu1  ;;  %v6896_v35 = vsel %vm1137_vm1, %v6889_v11, -inf }
0x1ea7   :  { %6897 = vmax.xlane.f32.xlu0 %v6896_v35  ;;  %v6892_v44 = vpop.f32.mrb[122].mxu1 }
0x1ea8   :  { %10070 = vpow2.f32 %v6678_v14  ;;  %v6680_v16 = vmul.f32 1.442695, %v6677_v4  ;;  %v8937_v15 = vpop.f32.mrb[123].mxu1  ;;  %v6899_v10 = vsel %vm1137_vm1, %v6892_v44, -inf }
0x1ea9   :  { %6900 = vmax.xlane.f32.xlu1 %v6899_v10 }
0x1eaa   :  { %10072 = vpow2.f32 %v6680_v16 }
0x1eab   :  { %v6785_v36 = vpop.xlane.xlu0 %6784  ;;  %v6605_v41 = vpop.f32.mrb[112].mxu0 }
0x1eac   :  { %v6789_v56 = vsub.f32 %v6776_v2, %v6785_v36  ;;  %v6607_v39 = vpop.f32.mrb[113].mxu0  ;;  %v6606_v49 = vadd.f32 %v6605_v41, %v11757_v32 }
0x1ead   :  { %v6788_v18 = vpop.xlane.xlu1 %6787  ;;  %v7002_v50 = vpop.f32.mrb[124].mxu1  ;;  %v6608_v37 = vadd.f32 %v6607_v39, %v11764_v21 }
0x1eae   :  { %v6791_v62 = vmul.f32 1.442695, %v6789_v56  ;;  %v6790_v55 = vsub.f32 %v6779_v28, %v6788_v18  ;;  %v8948_v52 = vpop.f32.mrb[125].mxu1  ;;  %v7009_v54 = vsel %vm1137_vm1, %v7002_v50, -inf  ;;  %v6609_v12 = vpop.f32.mrb[114].mxu0 }
0x1eaf   :  { %7010 = vmax.xlane.f32.xlu0 %v7009_v54  ;;  %v7005_v58 = vpop.f32.mrb[126].mxu1  ;;  %v6610_v30 = vadd.f32 %v6609_v12, %v11757_v32  ;;  %v6611_v43 = vpop.f32.mrb[115].mxu0 }
0x1eb0   :  { %10074 = vpow2.f32 %v6791_v62  ;;  %v6793_v24 = vmul.f32 1.442695, %v6790_v55  ;;  %v8949_v33 = vpop.f32.mrb[127].mxu1  ;;  %v7012_v8 = vsel %vm1137_vm1, %v7005_v58, -inf  ;;  %v6612_v23 = vadd.f32 %v6611_v43, %v11764_v21  ;;  %v9792_v43 = vld [vmem:[#allocation13 + $0x104] ss:$8 sps:$4 sm:$0xff]  }
0x1eb1   :  { %7013 = vmax.xlane.f32.xlu1 %v7012_v8  ;;  %v6628_v53 = vpack.c.bf16 %v6610_v30, %v6606_v49  ;;  %7273 = vmatprep.subr.bf16.mxu1 %v9792_v43 }
0x1eb2   :  { %v11742_v61 = vpop.eup %10070  ;;  %10076 = vpow2.f32 %v6793_v24  ;;  %v6741_v2 = vpack.c.bf16 %v6612_v23, %v6608_v37  ;;  %v9795_v37 = vld [vmem:[#allocation13 + $0x114] ss:$8 sps:$4 sm:$0xff]   ;;  %v9793_v23 = vld [vmem:[#allocation13 + $0x110] ss:$8 sps:$4 sm:$0xff]  }
0x1eb3   :  { %v6682_v34 = vsel %vm1137_vm1, %v11742_v61, 0.0  ;;  %8915 = vmatpush3.bf16.msra.mxu0 %v6628_v53  ;;  %v9790_v53 = vld [vmem:[#allocation13 + $0x100] ss:$8 sps:$4 sm:$0xff]  }
0x1eb4   :  { %v10073_v13 = vpop.eup %10072  ;;  %6683 = vadd.xlane.f32.xlu0 %v6682_v34  ;;  %8926 = vmatprep.subr.bf16.mxu0 %v10375_v59 }
0x1eb5   :  { %v6685_v47 = vsel %vm1137_vm1, %v10073_v13, 0.0  ;;  %7274 = vmatpush1.bf16.msra.mxu1 %v9790_v53 }
0x1eb6   :  { %6686 = vadd.xlane.f32.xlu1 %v6685_v47  ;;  %7275 = vmatprep.subr.bf16.mxu1 %v9795_v37 }
0x1eb9   :  { %7276 = vmatpush1.bf16.msra.mxu1 %v9793_v23 }
0x1eba   :  { %v11747_v17 = vpop.eup %10074 }
0x1ebb   :  { %v6795_v27 = vsel %vm1137_vm1, %v11747_v17, 0.0 }
0x1ebc   :  { %v11751_v25 = vpop.eup %10076  ;;  %6796 = vadd.xlane.f32.xlu0 %v6795_v27 }
0x1ebd   :  { %v6798_v31 = vsel %vm1137_vm1, %v11751_v25, 0.0 }
0x1ebe   :  { %6799 = vadd.xlane.f32.xlu1 %v6798_v31  ;;  %v6615_v31 = vpop.f32.mrb[116].mxu0 }
0x1ebf   :  { %v6616_v39 = vadd.f32 %v6615_v31, %v11757_v32 }
0x1f34   :  { %v6898_v40 = vpop.xlane.xlu0 %6897 }
0x1f35   :  { %v6902_v22 = vsub.f32 %v6889_v11, %v6898_v40  ;;  %v9799_v40 = vld [vmem:[#allocation13 + $0x130] ss:$8 sps:$4 sm:$0xff]  }
0x1f36   :  { %v6901_v28 = vpop.xlane.xlu1 %6900 }
0x1f37   :  { %v6904_v0 = vmul.f32 1.442695, %v6902_v22  ;;  %v6903_v20 = vsub.f32 %v6892_v44, %v6901_v28  ;;  %v9804_v22 = vld [vmem:[#allocation13 + $0x144] ss:$8 sps:$4 sm:$0xff]   ;;  %v9802_v28 = vld [vmem:[#allocation13 + $0x140] ss:$8 sps:$4 sm:$0xff]  }
0x1f39   :  { %10078 = vpow2.f32 %v6904_v0  ;;  %v6906_v42 = vmul.f32 1.442695, %v6903_v20  ;;  %v9807_v0 = vld [vmem:[#allocation13 + $0x154] ss:$8 sps:$4 sm:$0xff]   ;;  %v9805_v20 = vld [vmem:[#allocation13 + $0x150] ss:$8 sps:$4 sm:$0xff]  }
0x1f3b   :  { %10080 = vpow2.f32 %v6906_v42  ;;  %v9810_v42 = vld [vmem:[#allocation13 + $0x164] ss:$8 sps:$4 sm:$0xff]  }
0x1f3c   :  { %v7011_v57 = vpop.xlane.xlu0 %7010 }
0x1f3d   :  { %v7015_v48 = vsub.f32 %v7002_v50, %v7011_v57  ;;  %v9808_v57 = vld [vmem:[#allocation13 + $0x160] ss:$8 sps:$4 sm:$0xff]  }
0x1f3e   :  { %v7014_v14 = vpop.xlane.xlu1 %7013 }
0x1f3f   :  { %v7017_v4 = vmul.f32 1.442695, %v7015_v48  ;;  %v7016_v7 = vsub.f32 %v7005_v58, %v7014_v14  ;;  %v9813_v48 = vld [vmem:[#allocation13 + $0x174] ss:$8 sps:$4 sm:$0xff]   ;;  %v9811_v14 = vld [vmem:[#allocation13 + $0x170] ss:$8 sps:$4 sm:$0xff]  }
0x1f41   :  { %10082 = vpow2.f32 %v7017_v4  ;;  %v7019_v19 = vmul.f32 1.442695, %v7016_v7  ;;  %v6684_v38 = vpop.xlane.xlu0 %6683  ;;  %v9816_v4 = vld [vmem:[#allocation13 + $0x184] ss:$8 sps:$4 sm:$0xff]   ;;  %v9814_v7 = vld [vmem:[#allocation13 + $0x180] ss:$8 sps:$4 sm:$0xff]  }
0x1f42   :  { %10084 = vrcp.f32 %v6684_v38  ;;  %v9817_v38 = vld [vmem:[#allocation13 + $0x190] ss:$8 sps:$4 sm:$0xff]  }
0x1f43   :  { %v11768_v35 = vpop.eup %10078  ;;  %10086 = vpow2.f32 %v7019_v19  ;;  %v6687_v16 = vpop.xlane.xlu1 %6686  ;;  %v9819_v19 = vld [vmem:[#allocation13 + $0x194] ss:$8 sps:$4 sm:$0xff]  }
0x1f44   :  { %10088 = vrcp.f32 %v6687_v16  ;;  %v6908_v11 = vsel %vm1137_vm1, %v11768_v35, 0.0  ;;  %v9822_v16 = vld [vmem:[#allocation13 + $0x1a4] ss:$8 sps:$4 sm:$0xff]  }
0x1f45   :  { %v11772_v44 = vpop.eup %10080  ;;  %6909 = vadd.xlane.f32.xlu0 %v6908_v11  ;;  %v9820_v11 = vld [vmem:[#allocation13 + $0x1a0] ss:$8 sps:$4 sm:$0xff]  }
0x1f46   :  { %v6911_v15 = vsel %vm1137_vm1, %v11772_v44, 0.0 }
0x1f47   :  { %6912 = vadd.xlane.f32.xlu1 %v6911_v15  ;;  %v9825_v15 = vld [vmem:[#allocation13 + $0x1b4] ss:$8 sps:$4 sm:$0xff]  }
0x1f49   :  { %v6797_v10 = vpop.xlane.xlu0 %6796 }
0x1f4a   :  { %10090 = vrcp.f32 %v6797_v10  ;;  %v9823_v10 = vld [vmem:[#allocation13 + $0x1b0] ss:$8 sps:$4 sm:$0xff]  }
0x1f4b   :  { %v11776_v36 = vpop.eup %10082  ;;  %v6800_v56 = vpop.xlane.xlu1 %6799 }
0x1f4c   :  { %v10085_v18 = vpop.eup %10084  ;;  %10092 = vrcp.f32 %v6800_v56  ;;  %v7021_v50 = vsel %vm1137_vm1, %v11776_v36, 0.0  ;;  %v9828_v56 = vld [vmem:[#allocation13 + $0x1c4] ss:$8 sps:$4 sm:$0xff]  }
0x1f4d   :  { %v11780_v62 = vpop.eup %10086  ;;  %7022 = vadd.xlane.f32.xlu0 %v7021_v50  ;;  %v6690_v54 = vmul.f32 %v10085_v18, %v11742_v61  ;;  %v6617_v61 = vpop.f32.mrb[117].mxu0  ;;  %v9826_v18 = vld [vmem:[#allocation13 + $0x1c0] ss:$8 sps:$4 sm:$0xff]   ;;  %v9831_v50 = vld [vmem:[#allocation13 + $0x1d4] ss:$8 sps:$4 sm:$0xff]  }
0x1f4e   :  { %v10089_v55 = vpop.eup %10088  ;;  %v7024_v52 = vsel %vm1137_vm1, %v11780_v62, 0.0  ;;  %v11796_v12 = vadd.f32 %v6617_v61, %v11764_v21 }
0x1f4f   :  { %v6691_v58 = vmul.f32 %v10089_v55, %v10073_v13  ;;  %7025 = vadd.xlane.f32.xlu1 %v7024_v52  ;;  %v6619_v13 = vpop.f32.mrb[118].mxu0  ;;  %v9829_v55 = vld [vmem:[#allocation13 + $0x1d0] ss:$8 sps:$4 sm:$0xff]   ;;  %v9834_v52 = vld [vmem:[#allocation13 + $0x1e4] ss:$8 sps:$4 sm:$0xff]  }
0x1f50   :  { %v6621_v41 = vpop.f32.mrb[119].mxu0  ;;  %v6620_v49 = vadd.f32 %v6619_v13, %v11757_v32  ;;  %v9796_v32 = vld [vmem:[#allocation13 + $0x120] ss:$8 sps:$4 sm:$0xff]  }
0x1f51   :  { %v6692_v24 = vpack.c.bf16 %v6691_v58, %v6690_v54  ;;  %v9832_v54 = vld [vmem:[#allocation13 + $0x1e0] ss:$8 sps:$4 sm:$0xff]   ;;  %v9837_v58 = vld [vmem:[#allocation13 + $0x1f4] ss:$8 sps:$4 sm:$0xff]  }
0x1f53   :  { %8917 = vmatmul.mubr.msk.bf16.vlgmr.msra.gmra.mrb[120].mxu0 %vm1137_vm1, %v6692_v24  ;;  %v9835_v24 = vld [vmem:[#allocation13 + $0x1f0] ss:$8 sps:$4 sm:$0xff]  }
0x1f54   :  { %v10091_v33 = vpop.eup %10090  ;;  %8927 = vmatpush3.bf16.msra.mxu0 %v6741_v2  ;;  %8928 = vmatprep.mubr.msk.bf16.mxu0 %vm10376_vm0, %v10375_v59  ;;  %v9798_v2 = vld [vmem:[#allocation13 + $0x124] ss:$8 sps:$4 sm:$0xff]  }
0x1f55   :  { %8938 = vmatprep.subr.bf16.mxu0 %v10375_v59  ;;  %v6803_v34 = vmul.f32 %v10091_v33, %v11747_v17  ;;  %v11800_v17 = vadd.f32 %v6621_v41, %v11764_v21  ;;  %7277 = vmatprep.subr.bf16.mxu1 %v9798_v2  ;;  %v9801_v21 = vld [vmem:[#allocation13 + $0x134] ss:$8 sps:$4 sm:$0xff]  }
0x1f56   :  { %v10093_v8 = vpop.eup %10092  ;;  %7278 = vmatpush1.bf16.msra.mxu1 %v9796_v32 }
0x1f57   :  { %v6804_v47 = vmul.f32 %v10093_v8, %v11751_v25  ;;  %v6854_v25 = vpack.c.bf16 %v6620_v49, %v6616_v39  ;;  %v6967_v30 = vpack.c.bf16 %v11800_v17, %v11796_v12  ;;  %7279 = vmatprep.subr.bf16.mxu1 %v9801_v21 }
0x1f59   :  { %v6805_v27 = vpack.c.bf16 %v6804_v47, %v6803_v34 }
0x1f5a   :  { %7280 = vmatpush1.bf16.msra.mxu1 %v9799_v40 }
0x1f5b   :  { %8929 = vmatmul.mubr.msk.bf16.vlgmr.msra.gmra.mrb[124].mxu0 %vm1137_vm1, %v6805_v27  ;;  %7281 = vmatprep.subr.bf16.mxu1 %v9804_v22 }
0x1f5c   :  { %8940 = vmatprep.mubr.msk.bf16.mxu0 %vm10376_vm0, %v10375_v59  ;;  %8939 = vmatpush3.bf16.msra.mxu0 %v6854_v25 }
0x1f5d   :  { %8950 = vmatprep.subr.bf16.mxu0 %v10375_v59 }
0x1f5e   :  { %7282 = vmatpush1.bf16.msra.mxu1 %v9802_v28 }
0x1f5f   :  { %7283 = vmatprep.subr.bf16.mxu1 %v9807_v0 }
0x1f62   :  { %7284 = vmatpush1.bf16.msra.mxu1 %v9805_v20 }
0x1f63   :  { %7285 = vmatprep.subr.bf16.mxu1 %v9810_v42 }
0x1f66   :  { %7286 = vmatpush1.bf16.msra.mxu1 %v9808_v57 }
0x1f67   :  { %7287 = vmatprep.subr.bf16.mxu1 %v9813_v48  ;;  %v8633_v48 = vld [vmem:[%s11985_s13 + $0x2] sm:$0x3] }
0x1f6a   :  { %7288 = vmatpush1.bf16.msra.mxu1 %v9811_v14  ;;  %v11820_v14 = vrot.slane %v8633_v48, %v10682_v45 }
0x1f6b   :  { %7289 = vmatprep.subr.bf16.mxu1 %v9816_v4 }
0x1f6e   :  { %7290 = vmatpush1.bf16.msra.mxu1 %v9814_v7  ;;  %v11823_v7 = vrot.slane %v8633_v48, %v10760_v51 }
0x1f6f   :  { %7291 = vmatprep.subr.bf16.mxu1 %v9819_v19 }
0x1f72   :  { %7292 = vmatpush1.bf16.msra.mxu1 %v9817_v38 }
0x1f73   :  { %7293 = vmatprep.subr.bf16.mxu1 %v9822_v16 }
0x1f76   :  { %7294 = vmatpush1.bf16.msra.mxu1 %v9820_v11 }
0x1f77   :  { %7295 = vmatprep.subr.bf16.mxu1 %v9825_v15 }
0x1f7a   :  { %7296 = vmatpush1.bf16.msra.mxu1 %v9823_v10 }
0x1f7b   :  { %7297 = vmatprep.subr.bf16.mxu1 %v9828_v56 }
0x1f7e   :  { %7298 = vmatpush1.bf16.msra.mxu1 %v9826_v18 }
0x1f7f   :  { %7299 = vmatprep.subr.bf16.mxu1 %v9831_v50 }
0x1f82   :  { %7300 = vmatpush1.bf16.msra.mxu1 %v9829_v55 }
0x1f83   :  { %7301 = vmatprep.subr.bf16.mxu1 %v9834_v52 }
0x1f86   :  { %7302 = vmatpush1.bf16.msra.mxu1 %v9832_v54  ;;  %v9840_v54 = vld [vmem:[#allocation14 + $0x104] ss:$8 sps:$4 sm:$0xff]  }
0x1f87   :  { %7303 = vmatprep.subr.bf16.mxu1 %v9837_v58  ;;  %v9843_v58 = vld [vmem:[#allocation14 + $0x114] ss:$8 sps:$4 sm:$0xff]  }
0x1f8a   :  { %7304 = vmatpush1.bf16.msra.mxu1 %v9835_v24  ;;  %v9846_v24 = vld [vmem:[#allocation14 + $0x124] ss:$8 sps:$4 sm:$0xff]  }
0x1fd2   :  { %v6910_v33 = vpop.xlane.xlu0 %6909 }
0x1fd3   :  { %10094 = vrcp.f32 %v6910_v33  ;;  %v9844_v33 = vld [vmem:[#allocation14 + $0x120] ss:$8 sps:$4 sm:$0xff]  }
0x1fd4   :  { %v6913_v8 = vpop.xlane.xlu1 %6912 }
0x1fd5   :  { %10096 = vrcp.f32 %v6913_v8  ;;  %v9849_v8 = vld [vmem:[#allocation14 + $0x134] ss:$8 sps:$4 sm:$0xff]  }
0x1fda   :  { %v7023_v34 = vpop.xlane.xlu0 %7022 }
0x1fdb   :  { %10098 = vrcp.f32 %v7023_v34  ;;  %v9847_v34 = vld [vmem:[#allocation14 + $0x130] ss:$8 sps:$4 sm:$0xff]  }
0x1fdc   :  { %v7026_v47 = vpop.xlane.xlu1 %7025 }
0x1fdd   :  { %v10095_v27 = vpop.eup %10094  ;;  %10100 = vrcp.f32 %v7026_v47  ;;  %v9852_v47 = vld [vmem:[#allocation14 + $0x144] ss:$8 sps:$4 sm:$0xff]  }
0x1fde   :  { %v6916_v61 = vmul.f32 %v10095_v27, %v11768_v35  ;;  %v9850_v27 = vld [vmem:[#allocation14 + $0x140] ss:$8 sps:$4 sm:$0xff]  }
0x1fdf   :  { %v10097_v31 = vpop.eup %10096 }
0x1fe0   :  { %v6917_v13 = vmul.f32 %v10097_v31, %v11772_v44  ;;  %v9855_v31 = vld [vmem:[#allocation14 + $0x154] ss:$8 sps:$4 sm:$0xff]  }
0x1fe2   :  { %v6918_v41 = vpack.c.bf16 %v6917_v13, %v6916_v61  ;;  %v9853_v61 = vld [vmem:[#allocation14 + $0x150] ss:$8 sps:$4 sm:$0xff]   ;;  %v9858_v13 = vld [vmem:[#allocation14 + $0x164] ss:$8 sps:$4 sm:$0xff]  }
0x1fe4   :  { %8941 = vmatmul.mubr.msk.bf16.vlgmr.msra.gmra.mrb[128].mxu0 %vm1137_vm1, %v6918_v41  ;;  %v9856_v41 = vld [vmem:[#allocation14 + $0x160] ss:$8 sps:$4 sm:$0xff]  }
0x1fe5   :  { %v10099_v39 = vpop.eup %10098  ;;  %8951 = vmatpush3.bf16.msra.mxu0 %v6967_v30  ;;  %8952 = vmatprep.mubr.msk.bf16.mxu0 %vm10376_vm0, %v10375_v59 }
0x1fe6   :  { %v7029_v25 = vmul.f32 %v10099_v39, %v11776_v36  ;;  %7681 = vmatprep.subr.bf16.mxu0 %v9840_v54  ;;  %v9861_v39 = vld [vmem:[#allocation14 + $0x174] ss:$8 sps:$4 sm:$0xff]   ;;  %v9883_v54 = vld [vmem:[#allocation14 + $0x1f0] ss:$8 sps:$4 sm:$0xff]  }
0x1fe7   :  { %v10101_v49 = vpop.eup %10100 }
0x1fe8   :  { %v7030_v53 = vmul.f32 %v10101_v49, %v11780_v62  ;;  %v9859_v49 = vld [vmem:[#allocation14 + $0x170] ss:$8 sps:$4 sm:$0xff]  }
0x1fea   :  { %v7031_v43 = vpack.c.bf16 %v7030_v53, %v7029_v25  ;;  %v9864_v25 = vld [vmem:[#allocation14 + $0x184] ss:$8 sps:$4 sm:$0xff]   ;;  %v9862_v53 = vld [vmem:[#allocation14 + $0x180] ss:$8 sps:$4 sm:$0xff]  }
0x1fec   :  { %8953 = vmatmul.mubr.msk.bf16.vlgmr.msra.gmra.mrb[132].mxu0 %vm1137_vm1, %v7031_v43 }
0x2026   :  { %v6730_v35 = vpop.f32.mrb[120].mxu0 }
0x2027   :  { %v8918_v44 = vpop.f32.mrb[121].mxu0 }
0x2028   :  { %v6733_v37 = vpop.f32.mrb[122].mxu0 }
0x2029   :  { %v7109_v23 = vpack.c.bf16 %v6733_v37, %v6730_v35  ;;  %v8919_v2 = vpop.f32.mrb[123].mxu0 }
0x202e   :  { %v6843_v32 = vpop.f32.mrb[124].mxu0 }
0x202f   :  { %v8930_v21 = vpop.f32.mrb[125].mxu0 }
0x2030   :  { %v6846_v12 = vpop.f32.mrb[126].mxu0 }
0x2031   :  { %v7110_v17 = vpack.c.bf16 %v6846_v12, %v6843_v32  ;;  %v8931_v30 = vpop.f32.mrb[127].mxu0 }
0x2033   :  { %7305 = vmatprep.mubr.bf16.mxu1 %v7110_v17 }
0x2034   :  { %7306 = vmatmul.mubr.bf16.vlgmr.msra.gmra.mrb[128].mxu1 %v7109_v23 }
0x20b7   :  { %v6956_v59 = vpop.f32.mrb[128].mxu0 }
0x20b8   :  { %v8942_v40 = vpop.f32.mrb[129].mxu0 }
0x20b9   :  { %v6959_v36 = vpop.f32.mrb[130].mxu0 }
0x20ba   :  { %v7111_v22 = vpack.c.bf16 %v6959_v36, %v6956_v59  ;;  %v8943_v62 = vpop.f32.mrb[131].mxu0 }
0x20bf   :  { %v7069_v28 = vpop.f32.mrb[132].mxu0 }
0x20c0   :  { %v8954_v0 = vpop.f32.mrb[133].mxu0 }
0x20c1   :  { %v7072_v20 = vpop.f32.mrb[134].mxu0 }
0x20c2   :  { %v7112_v42 = vpack.c.bf16 %v7072_v20, %v7069_v28  ;;  %v8955_v57 = vpop.f32.mrb[135].mxu0 }
0x20c4   :  { %7315 = vmatprep.mubr.bf16.mxu1 %v7112_v42 }
0x20c5   :  { %7316 = vmatmul.mubr.bf16.gmra.mrb[132].mxu1 %v7111_v22 }
0x2107   :  { %v7307_v4 = vpop.f32.mrb[128].mxu1 }
0x2108   :  { %v7326_v19 = vadd.f32 %v7307_v4, %v11572_v26  ;;  %v7309_v38 = vpop.f32.mrb[129].mxu1 }
0x2109   :  { %v7327_v16 = vadd.f32 %v7309_v38, %v11576_v63  ;;  %v7311_v11 = vpop.f32.mrb[130].mxu1  ;;  %v9870_v38 = vld [vmem:[#allocation14 + $0x1a4] ss:$8 sps:$4 sm:$0xff]  }
0x210a   :  { %v11828_v15 = vadd.f32 %v11820_v14, %v7326_v19  ;;  %v7328_v10 = vadd.f32 %v7311_v11, %v11580_v6  ;;  %v7313_v56 = vpop.f32.mrb[131].mxu1  ;;  %v9838_v6 = vld [vmem:[#allocation14 + $0x100] ss:$8 sps:$4 sm:$0xff]   ;;  %v9865_v19 = vld [vmem:[#allocation14 + $0x190] ss:$8 sps:$4 sm:$0xff]  }
0x210b   :  { %v11832_v18 = vadd.f32 %v11823_v7, %v7327_v16  ;;  %v7329_v50 = vadd.f32 %v7313_v56, %v11583_v9  ;;  %7682 = vmatpush1.bf16.msra.mxu0 %v9838_v6  ;;  %v9841_v9 = vld [vmem:[#allocation14 + $0x110] ss:$8 sps:$4 sm:$0xff]   ;;  %v9868_v16 = vld [vmem:[#allocation14 + $0x1a0] ss:$8 sps:$4 sm:$0xff]   ;;  %v9873_v11 = vld [vmem:[#allocation14 + $0x1b4] ss:$8 sps:$4 sm:$0xff]  }
0x210c   :  { %v11836_v55 = vadd.f32 %v11820_v14, %v7328_v10  ;;  %7683 = vmatprep.subr.bf16.mxu0 %v9843_v58  ;;  %v9871_v10 = vld [vmem:[#allocation14 + $0x1b0] ss:$8 sps:$4 sm:$0xff]   ;;  %v9876_v56 = vld [vmem:[#allocation14 + $0x1c4] ss:$8 sps:$4 sm:$0xff]   ;;  %v9885_v6 = vld [vmem:[#allocation14 + $0x1f4] ss:$8 sps:$4 sm:$0xff]  }
0x210d   :  { %v11839_v26 = vadd.f32 %v11823_v7, %v7329_v50  ;;  %v7355_v63 = vadd.f32 %v11832_v18, %v11828_v15  ;;  %v9874_v50 = vld [vmem:[#allocation14 + $0x1c0] ss:$8 sps:$4 sm:$0xff]  }
0x210f   :  { %7356 = vadd.xlane.f32.xlu0 %v7355_v63  ;;  %v7358_v52 = vadd.f32 %v11839_v26, %v11836_v55  ;;  %7684 = vmatpush1.bf16.msra.mxu0 %v9841_v9  ;;  %v9880_v63 = vld [vmem:[#allocation14 + $0x1e0] ss:$8 sps:$4 sm:$0xff]  }
0x2110   :  { %7685 = vmatprep.subr.bf16.mxu0 %v9846_v24 }
0x2111   :  { %7359 = vadd.xlane.f32.xlu1 %v7358_v52  ;;  %v9882_v52 = vld [vmem:[#allocation14 + $0x1e4] ss:$8 sps:$4 sm:$0xff]  }
0x2113   :  { %7686 = vmatpush1.bf16.msra.mxu0 %v9844_v33 }
0x2114   :  { %7687 = vmatprep.subr.bf16.mxu0 %v9849_v8 }
0x2117   :  { %7688 = vmatpush1.bf16.msra.mxu0 %v9847_v34 }
0x2118   :  { %7689 = vmatprep.subr.bf16.mxu0 %v9852_v47 }
0x211b   :  { %7690 = vmatpush1.bf16.msra.mxu0 %v9850_v27 }
0x211c   :  { %7691 = vmatprep.subr.bf16.mxu0 %v9855_v31 }
0x211f   :  { %7692 = vmatpush1.bf16.msra.mxu0 %v9853_v61 }
0x2120   :  { %7693 = vmatprep.subr.bf16.mxu0 %v9858_v13 }
0x2123   :  { %7694 = vmatpush1.bf16.msra.mxu0 %v9856_v41 }
0x2124   :  { %7695 = vmatprep.subr.bf16.mxu0 %v9861_v39 }
0x2127   :  { %7696 = vmatpush1.bf16.msra.mxu0 %v9859_v49 }
0x2128   :  { %7697 = vmatprep.subr.bf16.mxu0 %v9864_v25 }
0x212b   :  { %7698 = vmatpush1.bf16.msra.mxu0 %v9862_v53 }
0x2198   :  { %v7317_v43 = vpop.f32.mrb[132].mxu1 }
0x2199   :  { %v7330_v35 = vadd.f32 %v7317_v43, %v11592_v3  ;;  %v7319_v44 = vpop.f32.mrb[133].mxu1 }
0x219a   :  { %v7331_v37 = vadd.f32 %v7319_v44, %v11596_v1  ;;  %v7321_v23 = vpop.f32.mrb[134].mxu1 }
0x219b   :  { %v11848_v2 = vadd.f32 %v11820_v14, %v7330_v35  ;;  %v7332_v32 = vadd.f32 %v7321_v23, %v11600_v46  ;;  %v7323_v21 = vpop.f32.mrb[135].mxu1  ;;  %v10126_v23 = vld [vmem:[%s12009_s1 + $0x8] sm:$0x77] }
0x219c   :  { %v11852_v12 = vadd.f32 %v11823_v7, %v7331_v37  ;;  %v7357_v17 = vpop.xlane.xlu0 %7356  ;;  %v7333_v30 = vadd.f32 %v7323_v21, %v11603_v60  ;;  %v7422_v21 = vrot.slane %v10126_v23, %v10766_v5 }
0x219d   :  { %v7353_v59 = vadd.f32 %v11820_v14, %v7332_v32  ;;  %v7367_v40 = vmul.f32 0.00390625, %v7357_v17  ;;  %v7426_v32 = vrot.slane %v10126_v23, %v11257_v29  ;;  %v10127_v17 = vld [vmem:[%s11975_s3 + $0x8] sm:$0x77] }
0x219e   :  { %v7354_v3 = vadd.f32 %v11823_v7, %v7333_v30  ;;  %v7360_v36 = vpop.xlane.xlu1 %7359  ;;  %v7361_v1 = vadd.f32 %v11852_v12, %v11848_v2  ;;  %v9867_v7 = vld [vmem:[#allocation14 + $0x194] ss:$8 sps:$4 sm:$0xff]   ;;  %v7452_v30 = vrot.slane %v10127_v17, %v11257_v29  ;;  %v9930_v23 = vld [vmem:[#allocation16 + $0x1e4] ss:$8 sps:$4 sm:$0xff]  }
0x219f   :  { %v11860_v22 = vsub.f32 %v11828_v15, %v7367_v40  ;;  %v11863_v46 = vsub.f32 %v11832_v18, %v7367_v40  ;;  %v7368_v62 = vmul.f32 0.00390625, %v7360_v36  ;;  %7699 = vmatprep.subr.bf16.mxu0 %v9867_v7  ;;  %v11908_v40 = vrot.slane %v7426_v32, %v10766_v5  ;;  %v9928_v32 = vld [vmem:[#allocation16 + $0x1e0] ss:$8 sps:$4 sm:$0xff]  }
0x21a0   :  { %7362 = vadd.xlane.f32.xlu0 %v7361_v1  ;;  %v7364_v28 = vadd.f32 %v7354_v3, %v7353_v59  ;;  %7700 = vmatpush1.bf16.msra.mxu0 %v9865_v19 }
0x21a1   :  { %v7379_v60 = vmul.f32 %v11860_v22, %v11860_v22  ;;  %v7380_v0 = vmul.f32 %v11863_v46, %v11863_v46  ;;  %v11870_v20 = vsub.f32 %v11836_v55, %v7368_v62  ;;  %v11873_v42 = vsub.f32 %v11839_v26, %v7368_v62  ;;  %7701 = vmatprep.subr.bf16.mxu0 %v9870_v38  ;;  %v9879_v55 = vld [vmem:[#allocation14 + $0x1d4] ss:$8 sps:$4 sm:$0xff]   ;;  %v9877_v26 = vld [vmem:[#allocation14 + $0x1d0] ss:$8 sps:$4 sm:$0xff]  }
0x21a2   :  { %7365 = vadd.xlane.f32.xlu1 %v7364_v28 }
0x21a3   :  { %v7381_v57 = vmul.f32 %v11870_v20, %v11870_v20  ;;  %v7382_v48 = vmul.f32 %v11873_v42, %v11873_v42  ;;  %v7387_v14 = vadd.f32 %v7380_v0, %v7379_v60  ;;  %v11916_v60 = vrot.slane %v7452_v30, %v10766_v5 }
0x21a4   :  { %7702 = vmatpush1.bf16.msra.mxu0 %v9868_v16  ;;  %v9888_v16 = vld [vmem:[#allocation16 + $0x104] ss:$8 sps:$4 sm:$0xff]  }
0x21a5   :  { %7388 = vadd.xlane.f32.xlu0 %v7387_v14  ;;  %v7390_v4 = vadd.f32 %v7382_v48, %v7381_v57  ;;  %7703 = vmatprep.subr.bf16.mxu0 %v9873_v11  ;;  %v9891_v11 = vld [vmem:[#allocation16 + $0x114] ss:$8 sps:$4 sm:$0xff]  }
0x21a6   :  { %7939 = vmatprep.subr.bf16.mxu1 %v9888_v16 }
0x21a7   :  { %7391 = vadd.xlane.f32.xlu1 %v7390_v4 }
0x21a8   :  { %7704 = vmatpush1.bf16.msra.mxu0 %v9871_v10  ;;  %v9889_v10 = vld [vmem:[#allocation16 + $0x110] ss:$8 sps:$4 sm:$0xff]  }
0x21a9   :  { %7705 = vmatprep.subr.bf16.mxu0 %v9876_v56  ;;  %v9894_v56 = vld [vmem:[#allocation16 + $0x124] ss:$8 sps:$4 sm:$0xff]  }
0x21ac   :  { %7706 = vmatpush1.bf16.msra.mxu0 %v9874_v50  ;;  %v9892_v50 = vld [vmem:[#allocation16 + $0x120] ss:$8 sps:$4 sm:$0xff]  }
0x21ad   :  { %7707 = vmatprep.subr.bf16.mxu0 %v9879_v55  ;;  %v9897_v55 = vld [vmem:[#allocation16 + $0x134] ss:$8 sps:$4 sm:$0xff]  }
0x21b0   :  { %7708 = vmatpush1.bf16.msra.mxu0 %v9877_v26  ;;  %v9895_v26 = vld [vmem:[#allocation16 + $0x130] ss:$8 sps:$4 sm:$0xff]  }
0x21b1   :  { %7709 = vmatprep.subr.bf16.mxu0 %v9882_v52  ;;  %v9898_v52 = vld [vmem:[#allocation16 + $0x140] ss:$8 sps:$4 sm:$0xff]  }
0x21b4   :  { %7710 = vmatpush1.bf16.msra.mxu0 %v9880_v63  ;;  %v9900_v63 = vld [vmem:[#allocation16 + $0x144] ss:$8 sps:$4 sm:$0xff]  }
0x21b5   :  { %7711 = vmatprep.subr.bf16.mxu0 %v9885_v6  ;;  %v9903_v6 = vld [vmem:[#allocation16 + $0x154] ss:$8 sps:$4 sm:$0xff]  }
0x21b8   :  { %7712 = vmatpush1.bf16.msra.mxu0 %v9883_v54  ;;  %v9901_v54 = vld [vmem:[#allocation16 + $0x150] ss:$8 sps:$4 sm:$0xff]  }
0x222d   :  { %v7363_v58 = vpop.xlane.xlu0 %7362 }
0x222e   :  { %v7369_v9 = vmul.f32 0.00390625, %v7363_v58  ;;  %v9906_v58 = vld [vmem:[#allocation16 + $0x164] ss:$8 sps:$4 sm:$0xff]  }
0x222f   :  { %v7366_v24 = vpop.xlane.xlu1 %7365 }
0x2230   :  { %v11880_v33 = vsub.f32 %v11848_v2, %v7369_v9  ;;  %v11883_v8 = vsub.f32 %v11852_v12, %v7369_v9  ;;  %v7370_v34 = vmul.f32 0.00390625, %v7366_v24  ;;  %v9904_v9 = vld [vmem:[#allocation16 + $0x160] ss:$8 sps:$4 sm:$0xff]   ;;  %v9909_v24 = vld [vmem:[#allocation16 + $0x174] ss:$8 sps:$4 sm:$0xff]  }
0x2232   :  { %v7383_v47 = vmul.f32 %v11880_v33, %v11880_v33  ;;  %v7384_v27 = vmul.f32 %v11883_v8, %v11883_v8  ;;  %v11889_v31 = vsub.f32 %v7353_v59, %v7370_v34  ;;  %v11891_v61 = vsub.f32 %v7354_v3, %v7370_v34  ;;  %v7389_v13 = vpop.xlane.xlu0 %7388  ;;  %v9907_v34 = vld [vmem:[#allocation16 + $0x170] ss:$8 sps:$4 sm:$0xff]  }
0x2233   :  { %v7399_v41 = vmul.f32 0.00390625, %v7389_v13  ;;  %v7448_v59 = vrot.slane %v10127_v17, %v10766_v5  ;;  %v11911_v3 = vrot.slane %v7422_v21, %v10766_v5  ;;  %v9915_v13 = vld [vmem:[#allocation16 + $0x194] ss:$8 sps:$4 sm:$0xff]   ;;  %v9931_v17 = vld [vmem:[#allocation16 + $0x1f0] ss:$8 sps:$4 sm:$0xff]  }
0x2234   :  { %v7385_v39 = vmul.f32 %v11889_v31, %v11889_v31  ;;  %v7386_v49 = vmul.f32 %v11891_v61, %v11891_v61  ;;  %v7392_v25 = vpop.xlane.xlu1 %7391  ;;  %v7393_v53 = vadd.f32 %v7384_v27, %v7383_v47  ;;  %v9912_v47 = vld [vmem:[#allocation16 + $0x184] ss:$8 sps:$4 sm:$0xff]   ;;  %v9910_v27 = vld [vmem:[#allocation16 + $0x180] ss:$8 sps:$4 sm:$0xff]   ;;  %v9933_v21 = vld [vmem:[#allocation16 + $0x1f4] ss:$8 sps:$4 sm:$0xff]  }
0x2235   :  { %v7403_v43 = vadd.f32 1e-05, %v7399_v41  ;;  %v7400_v35 = vmul.f32 0.00390625, %v7392_v25  ;;  %v11919_v0 = vrot.slane %v7448_v59, %v10766_v5  ;;  %v9913_v41 = vld [vmem:[#allocation16 + $0x190] ss:$8 sps:$4 sm:$0xff]  }
0x2236   :  { %7394 = vadd.xlane.f32.xlu0 %v7393_v53  ;;  %v7396_v44 = vadd.f32 %v7386_v49, %v7385_v39  ;;  %v9918_v39 = vld [vmem:[#allocation16 + $0x1a4] ss:$8 sps:$4 sm:$0xff]   ;;  %v9916_v49 = vld [vmem:[#allocation16 + $0x1a0] ss:$8 sps:$4 sm:$0xff]   ;;  %v9921_v25 = vld [vmem:[#allocation16 + $0x1b4] ss:$8 sps:$4 sm:$0xff]  }
0x2237   :  { %10102 = vrsqrt.f32 %v7403_v43  ;;  %v7404_v37 = vadd.f32 1e-05, %v7400_v35  ;;  %v9919_v53 = vld [vmem:[#allocation16 + $0x1b0] ss:$8 sps:$4 sm:$0xff]   ;;  %v9924_v43 = vld [vmem:[#allocation16 + $0x1c4] ss:$8 sps:$4 sm:$0xff]  }
0x2238   :  { %7397 = vadd.xlane.f32.xlu1 %v7396_v44  ;;  %v9922_v35 = vld [vmem:[#allocation16 + $0x1c0] ss:$8 sps:$4 sm:$0xff]   ;;  %v9927_v44 = vld [vmem:[#allocation16 + $0x1d4] ss:$8 sps:$4 sm:$0xff]  }
0x2239   :  { %10104 = vrsqrt.f32 %v7404_v37  ;;  %v9925_v37 = vld [vmem:[#allocation16 + $0x1d0] ss:$8 sps:$4 sm:$0xff]  }
0x2241   :  { %v10103_v36 = vpop.eup %10102 }
0x2242   :  { %v7411_v1 = vmul.f32 %v10103_v36, %v11860_v22  ;;  %v7412_v62 = vmul.f32 %v10103_v36, %v11863_v46 }
0x2243   :  { %v10105_v28 = vpop.eup %10104 }
0x2244   :  { %v7413_v29 = vmul.f32 %v10105_v28, %v11870_v20  ;;  %v7414_v57 = vmul.f32 %v10105_v28, %v11873_v42  ;;  %v7438_v48 = vmul.f32 %v11908_v40, %v7412_v62  ;;  %v7437_v14 = vmul.f32 %v11911_v3, %v7411_v1  ;;  %v9886_v42 = vld [vmem:[#allocation16 + $0x100] ss:$8 sps:$4 sm:$0xff]  }
0x2245   :  { %7940 = vmatpush1.bf16.msra.mxu1 %v9886_v42 }
0x2246   :  { %v7440_v4 = vmul.f32 %v11908_v40, %v7414_v57  ;;  %v7439_v22 = vmul.f32 %v11911_v3, %v7413_v29  ;;  %v7464_v46 = vadd.f32 %v11916_v60, %v7438_v48  ;;  %v7463_v19 = vadd.f32 %v11919_v0, %v7437_v14  ;;  %7941 = vmatprep.subr.bf16.mxu1 %v9891_v11 }
0x2248   :  { %v7466_v7 = vadd.f32 %v11916_v60, %v7440_v4  ;;  %v7465_v5 = vadd.f32 %v11919_v0, %v7439_v22 }
0x2249   :  { %7942 = vmatpush1.bf16.msra.mxu1 %v9889_v10 }
0x224a   :  { %v7505_v38 = vpack.c.bf16 %v7466_v7, %v7464_v46  ;;  %v7504_v20 = vpack.c.bf16 %v7465_v5, %v7463_v19  ;;  %7943 = vmatprep.subr.bf16.mxu1 %v9894_v56 }
0x224c   :  { %7713 = vmatprep.mubr.bf16.mxu0 %v7505_v38 }
0x224d   :  { %7714 = vmatmul.mubr.bf16.vlgmr.msra.gmra.mrb[136].mxu0 %v7504_v20  ;;  %7944 = vmatpush1.bf16.msra.mxu1 %v9892_v50 }
0x224e   :  { %7945 = vmatprep.subr.bf16.mxu1 %v9897_v55 }
0x2251   :  { %7946 = vmatpush1.bf16.msra.mxu1 %v9895_v26 }
0x2252   :  { %7947 = vmatprep.subr.bf16.mxu1 %v9900_v63 }
0x2255   :  { %7948 = vmatpush1.bf16.msra.mxu1 %v9898_v52 }
0x2256   :  { %7949 = vmatprep.subr.bf16.mxu1 %v9903_v6 }
0x2259   :  { %7950 = vmatpush1.bf16.msra.mxu1 %v9901_v54 }
0x225a   :  { %7951 = vmatprep.subr.bf16.mxu1 %v9906_v58 }
0x225d   :  { %7952 = vmatpush1.bf16.msra.mxu1 %v9904_v9 }
0x225e   :  { %7953 = vmatprep.subr.bf16.mxu1 %v9909_v24 }
0x2261   :  { %7954 = vmatpush1.bf16.msra.mxu1 %v9907_v34 }
0x2262   :  { %7955 = vmatprep.subr.bf16.mxu1 %v9912_v47 }
0x2265   :  { %7956 = vmatpush1.bf16.msra.mxu1 %v9910_v27 }
0x2266   :  { %7957 = vmatprep.subr.bf16.mxu1 %v9915_v13 }
0x2269   :  { %7958 = vmatpush1.bf16.msra.mxu1 %v9913_v41 }
0x226a   :  { %7959 = vmatprep.subr.bf16.mxu1 %v9918_v39 }
0x226d   :  { %7960 = vmatpush1.bf16.msra.mxu1 %v9916_v49 }
0x226e   :  { %7961 = vmatprep.subr.bf16.mxu1 %v9921_v25 }
0x2271   :  { %7962 = vmatpush1.bf16.msra.mxu1 %v9919_v53 }
0x2272   :  { %7963 = vmatprep.subr.bf16.mxu1 %v9924_v43 }
0x2275   :  { %7964 = vmatpush1.bf16.msra.mxu1 %v9922_v35 }
0x2276   :  { %7965 = vmatprep.subr.bf16.mxu1 %v9927_v44 }
0x2279   :  { %7966 = vmatpush1.bf16.msra.mxu1 %v9925_v37  ;;  %v8699_v37 = vld [vmem:[%s12010_s17 + $0x2] sm:$0x3]  ;;  %s10326_s17 = scalar_lea.vmem %s8020_s6, 512 }
0x227a   :  { %7967 = vmatprep.subr.bf16.mxu1 %v9930_v23  ;;  %v7998_v23 = vrot.slane %v8699_v37, %v10682_v45  ;;  %p10327_p2 = scmp.ne.s32.totalorder %s8020_s6, %s10326_s17  ;;  %p10332_p4 = scmp.lt.s32.totalorder %s10326_s17, %s10326_s17 }
0x227c   :  { %p10333_p5 = por %p10332_p4, %p10331_p3 }
0x227d   :  { %7968 = vmatpush1.bf16.msra.mxu1 %v9928_v32 }
0x227e   :  { %7969 = vmatprep.subr.bf16.mxu1 %v9933_v21  ;;  %v8002_v21 = vrot.slane %v8699_v37, %v10760_v51  ;;  %p10334_p6 = pnand %p10333_p5, %p10327_p2 }
0x2281   :  { %7970 = vmatpush1.bf16.msra.mxu1 %v9931_v17 }
0x22c3   :  { %v7395_v30 = vpop.xlane.xlu0 %7394 }
0x22c4   :  { %v7401_v59 = vmul.f32 0.00390625, %v7395_v30 }
0x22c5   :  { %v7398_v36 = vpop.xlane.xlu1 %7397 }
0x22c6   :  { %v7405_v1 = vadd.f32 1e-05, %v7401_v59  ;;  %v7402_v62 = vmul.f32 0.00390625, %v7398_v36 }
0x22c8   :  { %10106 = vrsqrt.f32 %v7405_v1  ;;  %v7406_v28 = vadd.f32 1e-05, %v7402_v62 }
0x22ca   :  { %10108 = vrsqrt.f32 %v7406_v28 }
0x22d2   :  { %v10107_v29 = vpop.eup %10106 }
0x22d3   :  { %v7416_v57 = vmul.f32 %v10107_v29, %v11883_v8  ;;  %v7415_v48 = vmul.f32 %v10107_v29, %v11880_v33 }
0x22d4   :  { %v10109_v14 = vpop.eup %10108 }
0x22d5   :  { %v7418_v4 = vmul.f32 %v10109_v14, %v11891_v61  ;;  %v7442_v22 = vmul.f32 %v11908_v40, %v7416_v57  ;;  %v7417_v46 = vmul.f32 %v10109_v14, %v11889_v31  ;;  %v7441_v7 = vmul.f32 %v11911_v3, %v7415_v48  ;;  %v8634_v31 = vld [vmem:[%s11987_s15 + $0x2] sm:$0x3] }
0x22d7   :  { %v7444_v19 = vmul.f32 %v11908_v40, %v7418_v4  ;;  %v7443_v5 = vmul.f32 %v11911_v3, %v7417_v46  ;;  %v7468_v38 = vadd.f32 %v11916_v60, %v7442_v22  ;;  %v7467_v8 = vadd.f32 %v11919_v0, %v7441_v7 }
0x22d8   :  { %v7514_v40 = vrot.slane %v8634_v31, %v10682_v45  ;;  %v7518_v3 = vrot.slane %v8634_v31, %v10760_v51 }
0x22d9   :  { %v7470_v20 = vadd.f32 %v11916_v60, %v7444_v19  ;;  %v7469_v33 = vadd.f32 %v11919_v0, %v7443_v5 }
0x22db   :  { %v7507_v42 = vpack.c.bf16 %v7470_v20, %v7468_v38  ;;  %v7506_v61 = vpack.c.bf16 %v7469_v33, %v7467_v8 }
0x22dd   :  { %7723 = vmatprep.mubr.bf16.mxu0 %v7507_v42 }
0x22de   :  { %7724 = vmatmul.mubr.bf16.gmra.mrb[140].mxu0 %v7506_v61 }
0x2320   :  { %v7715_v16 = vpop.f32.mrb[136].mxu0 }
0x2321   :  { %v7716_v11 = vadd.f32 %v7715_v16, %v7514_v40  ;;  %v7717_v10 = vpop.f32.mrb[137].mxu0 }
0x2322   :  { %v7718_v60 = vadd.f32 %v7717_v10, %v7518_v3  ;;  %v7719_v56 = vpop.f32.mrb[138].mxu0 }
0x2323   :  { %v7720_v50 = vadd.f32 %v7719_v56, %v7514_v40  ;;  %v7721_v55 = vpop.f32.mrb[139].mxu0  ;;  %v7734_v26 = vmax.f32 %v7716_v11, 0.0 }
0x2324   :  { %v7722_v0 = vadd.f32 %v7721_v55, %v7518_v3  ;;  %v7735_v52 = vmax.f32 %v7718_v60, 0.0 }
0x2325   :  { %v7736_v63 = vmax.f32 %v7720_v50, 0.0 }
0x2326   :  { %v7737_v6 = vmax.f32 %v7722_v0, 0.0 }
0x2327   :  { %v7775_v54 = vpack.c.bf16 %v7736_v63, %v7734_v26 }
0x2328   :  { %v7776_v58 = vpack.c.bf16 %v7737_v6, %v7735_v52 }
0x232a   :  { %7971 = vmatprep.mubr.bf16.mxu1 %v7776_v58 }
0x232b   :  { %7972 = vmatmul.mubr.bf16.vlgmr.msra.gmra.mrb[136].mxu1 %v7775_v54 }
0x23b1   :  { %v7725_v9 = vpop.f32.mrb[140].mxu0 }
0x23b2   :  { %v7726_v24 = vadd.f32 %v7725_v9, %v7514_v40  ;;  %v7727_v34 = vpop.f32.mrb[141].mxu0 }
0x23b3   :  { %v7728_v47 = vadd.f32 %v7727_v34, %v7518_v3  ;;  %v7729_v27 = vpop.f32.mrb[142].mxu0 }
0x23b4   :  { %v7730_v13 = vadd.f32 %v7729_v27, %v7514_v40  ;;  %v7731_v41 = vpop.f32.mrb[143].mxu0  ;;  %v7738_v49 = vmax.f32 %v7726_v24, 0.0 }
0x23b5   :  { %v7732_v39 = vadd.f32 %v7731_v41, %v7518_v3  ;;  %v7739_v53 = vmax.f32 %v7728_v47, 0.0 }
0x23b6   :  { %v7740_v25 = vmax.f32 %v7730_v13, 0.0 }
0x23b7   :  { %v7741_v43 = vmax.f32 %v7732_v39, 0.0 }
0x23b8   :  { %v7777_v35 = vpack.c.bf16 %v7740_v25, %v7738_v49 }
0x23b9   :  { %v7778_v44 = vpack.c.bf16 %v7741_v43, %v7739_v53 }
0x23bb   :  { %7979 = vmatprep.mubr.bf16.mxu1 %v7778_v44 }
0x23bc   :  { %7980 = vmatmul.mubr.bf16.gmra.mrb[140].mxu1 %v7777_v35 }
0x23fe   :  { %v7973_v32 = vpop.f32.mrb[136].mxu1 }
0x23ff   :  { %v7988_v17 = vadd.f32 %v7973_v32, %v11828_v15  ;;  %v7975_v30 = vpop.f32.mrb[137].mxu1 }
0x2400   :  { %v7989_v59 = vadd.f32 %v7975_v30, %v11832_v18  ;;  %v7977_v36 = vpop.f32.mrb[138].mxu1 }
0x2401   :  { %v8005_v1 = vadd.f32 %v7998_v23, %v7988_v17  ;;  %v7978_v62 = vpop.f32.mrb[139].mxu1 }
0x2402   :  { %v8006_v28 = vadd.f32 %v8002_v21, %v7989_v59 }
0x2403   :  { %8009 = vst [vmem:[#allocation17] sm:$0xff] %v8005_v1 }
0x2404   :  { %8010 = vst [vmem:[#allocation17 + $0x8] sm:$0xff] %v8006_v28 }
0x248f   :  { %v7981_v29 = vpop.f32.mrb[140].mxu1 }
0x2490   :  { %v7990_v57 = vadd.f32 %v7981_v29, %v11848_v2  ;;  %v7983_v48 = vpop.f32.mrb[141].mxu1 }
0x2491   :  { %v7991_v45 = vadd.f32 %v7983_v48, %v11852_v12  ;;  %v7985_v51 = vpop.f32.mrb[142].mxu1 }
0x2492   :  { %v8007_v14 = vadd.f32 %v7998_v23, %v7990_v57  ;;  %v7986_v15 = vpop.f32.mrb[143].mxu1 }
0x2493   :  { %v8008_v4 = vadd.f32 %v8002_v21, %v7991_v45 }
0x2494   :  { %8012 = vst [vmem:[#allocation17 + $0x10] sm:$0xff] %v8007_v14 }
0x2495   :  { %8013 = vst [vmem:[#allocation17 + $0x18] sm:$0xff] %v8008_v4 }
0x2496   :  { %10337 = shalt.err (!%p10334_p6)
}
0x2497   :  { %s12011_s21 = sld [smem:[#allocation28_spill]] }
0x249d   :  { %s10338_s20 = scalar_lea.hbm %s12011_s21, 512 }
0x249e   :  { %p10339_p7 = scmp.ne.s32.totalorder %s12011_s21, %s10338_s20  ;;  %p10342_p8 = scmp.lt.u32.totalorder %s10338_s20, %s12011_s21 }
0x24a0   :  { %p10344_p9 = pnand %p10342_p8, %p10339_p7 }
0x24a2   :  { %10347 = shalt.err (!%p10344_p9)
}
0x24a3   :  { %8025 = dma.vmem_to_hbm [thread:$0]  %s8020_s6, 512, %s12011_s21, [#allocation4], %s12007_s27, %s12007_s27, %s12006_s30  }
0x24a4   :  { %10358 = dma.done.wait [#allocation4], 512  }
0x24a5   :  { %10359 = vsyncadd [#allocation4], 4294966784 }
0x24a6   :  { %8029 = vsyncpa [#allocation3], 1 }
0x24a7   :  { %8030 = vsyncpa [#allocation6], 1 }
0x24a8   :  { %8031 = vsyncpa [#allocation9], 1 }
0x24a9   :  { %8032 = vsyncpa [#allocation12], 1 }
0x24aa   :  { %8033 = vsyncpa [#allocation15], 1 }
0x24ab   :  { %8034 = vsyncpa [#allocation4], 1 }

</bundles_post_ra>
